<compile_context>
chip_gen: v5e
topology: v5e:2x2
jax: 0.10.0
libtpu: 0.0.40
codegen_flags: <defaults>
</compile_context>

<pallas_src>
import jax
import jax.numpy as jnp
import numpy as np
from jax.experimental import pallas as pl
from jax.experimental.pallas import tpu as pltpu

# ------------- model geometry (same CNN encoder/decoder as before) -------------
IN_C, IN_H, IN_W = 4, 16, 16      # input image (NCHW, like PyTorch)
C1, H1, W1 = 8, 8, 8              # encoder conv1 output
C2, H2, W2 = 16, 4, 4             # encoder conv2 output == features_shape (C,H,W)
Z_DIM = 32
N_IN = IN_C * IN_H * IN_W         # 1024
N_H1 = C1 * H1 * W1               # 512
N_FEAT = C2 * H2 * W2             # 256

# Packed-bias layout: every slice start is a multiple of 128 so the in-kernel
# static slices stay vreg-aligned (no lane relayouts).
#   [ e1b(512) | e2b(256) | d2b(1024) | d1b(512) | zdb(256) | mu_b|ls_b(64) ]
_B_E1 = 0
_B_E2 = _B_E1 + N_H1              # 512
_B_D2 = _B_E2 + N_FEAT            # 768
_B_D1 = _B_D2 + N_IN              # 1792
_B_ZD = _B_D1 + N_H1              # 2304
_B_HD = _B_ZD + N_FEAT            # 2560
_B_TOT = _B_HD + 2 * Z_DIM        # 2624


# ------------------------------ fused Pallas kernel ------------------------------

def _vae_fused_kernel(s_ref, x_ref, e1q_ref, e2q_ref, hw_ref, zw_ref,
                      d1q_ref, d2q_ref, b_ref, eps_ref, xrec_ref, mls_ref):
    f32, bf16 = jnp.float32, jnp.bfloat16

    def bias(lo, size):
        return b_ref[:, lo:lo + size]          # (1, size), broadcasts over batch

    x = x_ref[...]                                                    # (B, 1024) f32

    # ---- encoder: conv1/conv2 as dense per-sample operators (int8 weights,
    # dequantized to bf16 in VMEM, f32 accumulation, scale in f32 epilogue) ----
    h1 = jnp.dot(x.astype(bf16), e1q_ref[...].astype(bf16),
                 preferred_element_type=f32) * s_ref[0]
    h1 = jnp.maximum(h1 + bias(_B_E1, N_H1), 0.0)                     # (B, 512)
    h2 = jnp.dot(h1.astype(bf16), e2q_ref[...].astype(bf16),
                 preferred_element_type=f32) * s_ref[1]
    h2 = jnp.maximum(h2 + bias(_B_E2, N_FEAT), 0.0)                   # (B, 256) == torch `encoded`

    # ---- fused latent heads [mu | log_sigma2] + reparameterization (f32) ----
    # TODO(synk): pass precision=jax.lax.Precision.HIGHEST here if bit-faithful
    # f32 mu/log_sigma2 is ever required (negligible cost at this size).
    mls = jnp.dot(h2, hw_ref[...], preferred_element_type=f32) + bias(_B_HD, 2 * Z_DIM)
    mu = mls[:, :Z_DIM]
    ls = mls[:, Z_DIM:]
    # TODO(synk): eps (torch.randn) is passed in precomputed; could be generated
    # in-kernel with pltpu.prng_seed/prng_random_bits + Box-Muller.
    z = mu + jnp.exp(0.5 * ls) * eps_ref[...]                         # (B, Z)

    # ---- decoder: z -> features, 2x (upsample2x + conv) dense operators, tanh ----
    d0 = jnp.dot(z, zw_ref[...], preferred_element_type=f32) + bias(_B_ZD, N_FEAT)
    d1 = jnp.dot(d0.astype(bf16), d1q_ref[...].astype(bf16),
                 preferred_element_type=f32) * s_ref[2]
    d1 = jnp.maximum(d1 + bias(_B_D1, N_H1), 0.0)                     # (B, 512)
    d2 = jnp.dot(d1.astype(bf16), d2q_ref[...].astype(bf16),
                 preferred_element_type=f32) * s_ref[3]
    xrec_ref[...] = jnp.tanh(d2 + bias(_B_D2, N_IN))                  # (B, 1024), lane-dense
    mls_ref[...] = mls                                                # (B, 2*Z)


def _fused_vae_pallas(x_flat, kp, eps):
    B = x_flat.shape[0]
    vmem = pl.BlockSpec(memory_space=pltpu.MemorySpace.VMEM)
    smem = pl.BlockSpec(memory_space=pltpu.MemorySpace.SMEM)
    args = (kp["scales"], x_flat, kp["e1q"], kp["e2q"], kp["heads_w"], kp["zd_w"],
            kp["d1q"], kp["d2q"], kp["biases"], eps)

    # Advisory cost estimate: this call is DMA-bound on the int8 weight bytes.
    flops = 2 * B * (N_IN * N_H1 + N_H1 * N_FEAT + N_FEAT * 2 * Z_DIM
                     + Z_DIM * N_FEAT + N_FEAT * N_H1 + N_H1 * N_IN)
    bytes_accessed = (
        N_IN * N_H1 + N_H1 * N_FEAT + N_FEAT * N_H1 + N_H1 * N_IN            # int8 conv ops
        + 4 * (N_FEAT * 2 * Z_DIM + Z_DIM * N_FEAT + _B_TOT)                 # f32 latents+biases
        + 4 * B * (N_IN + Z_DIM + N_IN + 2 * Z_DIM) + 16)                    # acts in/out, scales
    cost = pl.CostEstimate(flops=flops, transcendentals=B * (Z_DIM + N_IN),
                           bytes_accessed=bytes_accessed)

    return pl.pallas_call(
        _vae_fused_kernel,
        out_shape=(jax.ShapeDtypeStruct((B, N_IN), jnp.float32),
                   jax.ShapeDtypeStruct((B, 2 * Z_DIM), jnp.float32)),
        in_specs=[smem] + [vmem] * (len(args) - 1),
        out_specs=(vmem, vmem),
        cost_estimate=cost,
    )(*args)


# --------------------------------- VAE forward ---------------------------------

def vae_forward(x_nchw, kparams, eps):
    """Mirrors VAE.forward: returns (x_rec [NCHW], mu (1, B*Z), log_sigma2 (1, B*Z))."""
    B = x_nchw.shape[0]
    x_flat = x_nchw.reshape(B, N_IN)           # torch-order (c,h,w) flatten (a view)
    xrec_flat, mls = _fused_vae_pallas(x_flat, kparams, eps)
    x_rec = xrec_flat.reshape(B, IN_C, IN_H, IN_W)
    mu = mls[:, :Z_DIM].reshape(1, -1)
    log_sigma2 = mls[:, Z_DIM:].reshape(1, -1)
    return x_rec, mu, log_sigma2


# ------------------------- params (torch layout) + repack -------------------------

def init_params(key):
    ks = jax.random.split(key, 14)
    s = 0.05

    def nrm(k, shape):
        return (s * jax.random.normal(k, shape)).astype(jnp.float32)

    return {
        # encoder convs (OIHW, like torch), stride 2, pad 1
        "enc_w1": nrm(ks[0], (C1, IN_C, 3, 3)), "enc_b1": nrm(ks[1], (C1,)),
        "enc_w2": nrm(ks[2], (C2, C1, 3, 3)),   "enc_b2": nrm(ks[3], (C2,)),
        # latent linears, stored as (in, out) == torch weight transposed
        "mu_w": nrm(ks[4], (N_FEAT, Z_DIM)), "mu_b": nrm(ks[5], (Z_DIM,)),
        "ls_w": nrm(ks[6], (N_FEAT, Z_DIM)), "ls_b": nrm(ks[7], (Z_DIM,)),
        "zd_w": nrm(ks[8], (Z_DIM, N_FEAT)), "zd_b": nrm(ks[9], (N_FEAT,)),
        # decoder convs (OIHW), stride 1, pad 1, preceded by nearest-upsample x2
        "dec_w1": nrm(ks[10], (C1, C2, 3, 3)),   "dec_b1": nrm(ks[11], (C1,)),
        "dec_w2": nrm(ks[12], (IN_C, C1, 3, 3)), "dec_b2": nrm(ks[13], (IN_C,)),
    }


def _conv_as_matrix(w_oihw, h, w, stride, pad, upsample2x=False):
    """Dense per-sample operator of (optional upsample2x ->) 3x3 conv, acting on the
    torch-order (C,H,W)-flattened feature vector: out_flat = in_flat @ M.
    Built once at init (NOT in the hot path) by pushing the identity basis through
    the reference conv, which guarantees exact agreement with the conv semantics."""
    cout, cin, kh, kw = w_oihw.shape
    n_in = cin * h * w
    basis = jnp.eye(n_in, dtype=jnp.float32).reshape(n_in, cin, h, w)
    if upsample2x:
        basis = jnp.repeat(jnp.repeat(basis, 2, axis=2), 2, axis=3)
    out = jax.lax.conv_general_dilated(
        basis, w_oihw, window_strides=(stride, stride),
        padding=((pad, pad), (pad, pad)),
        dimension_numbers=("NCHW", "OIHW", "NCHW"))
    return out.reshape(n_in, -1)                  # (cin*h*w, cout*ho*wo)


def _quantize_i8(m):
    """Symmetric per-matrix int8 quantization; returns (q_int8, f32 scale)."""
    amax = jnp.max(jnp.abs(m))
    scale = jnp.maximum(amax, 1e-30) / 127.0
    q = jnp.clip(jnp.round(m / scale), -127, 127).astype(jnp.int8)
    return q, scale.astype(jnp.float32)


def prepare_kernel_params(p):
    """One-time repack of torch-layout params into fused-kernel operands:
    dense conv operators (int8 + per-matrix scale), fused latent heads, and a
    single packed bias array."""
    e1m = _conv_as_matrix(p["enc_w1"], IN_H, IN_W, 2, 1)                     # (1024, 512)
    e2m = _conv_as_matrix(p["enc_w2"], H1, W1, 2, 1)                         # (512, 256)
    d1m = _conv_as_matrix(p["dec_w1"], H2, W2, 1, 1, upsample2x=True)        # (256, 512)
    d2m = _conv_as_matrix(p["dec_w2"], H1, W1, 1, 1, upsample2x=True)        # (512, 1024)
    e1q, s1 = _quantize_i8(e1m)
    e2q, s2 = _quantize_i8(e2m)
    d1q, s3 = _quantize_i8(d1m)
    d2q, s4 = _quantize_i8(d2m)

    def bias_flat(b, hw):                         # bias in (c,h,w)-flatten order
        return jnp.repeat(b, hw).astype(jnp.float32)

    biases = jnp.concatenate([
        bias_flat(p["enc_b1"], H1 * W1),          # _B_E1, 512
        bias_flat(p["enc_b2"], H2 * W2),          # _B_E2, 256
        bias_flat(p["dec_b2"], IN_H * IN_W),      # _B_D2, 1024
        bias_flat(p["dec_b1"], H1 * W1),          # _B_D1, 512
        p["zd_b"].astype(jnp.float32),            # _B_ZD, 256
        p["mu_b"].astype(jnp.float32),            # _B_HD, 32
        p["ls_b"].astype(jnp.float32),            #        32
    ]).reshape(1, _B_TOT)

    return {
        "e1q": e1q, "e2q": e2q, "d1q": d1q, "d2q": d2q,
        "scales": jnp.stack([s1, s2, s3, s4]),                       # (4,) f32 (SMEM)
        "heads_w": jnp.concatenate([p["mu_w"], p["ls_w"]], axis=1),  # (256, 64) f32
        "zd_w": p["zd_w"],                                           # (32, 256) f32
        "biases": biases,                                            # (1, 2624) f32
    }


# ------------------- plain-JAX f32 reference (sanity check only) -------------------

def _reference_forward(x, p, eps):
    def conv(t, w, b, s, pad):
        y = jax.lax.conv_general_dilated(t, w, (s, s), ((pad, pad), (pad, pad)),
                                         dimension_numbers=("NCHW", "OIHW", "NCHW"))
        return y + b.reshape(1, -1, 1, 1)

    def up(t):
        return jnp.repeat(jnp.repeat(t, 2, axis=2), 2, axis=3)

    B = x.shape[0]
    h = jax.nn.relu(conv(x, p["enc_w1"], p["enc_b1"], 2, 1))
    h = jax.nn.relu(conv(h, p["enc_w2"], p["enc_b2"], 2, 1))
    encoded = h.reshape(B, -1)                                  # torch .view(B, -1)
    mu = (encoded @ p["mu_w"] + p["mu_b"]).reshape(1, -1)
    ls = (encoded @ p["ls_w"] + p["ls_b"]).reshape(1, -1)
    z = mu + jnp.exp(0.5 * ls) * eps.reshape(1, -1)
    d = (z.reshape(-1, Z_DIM) @ p["zd_w"] + p["zd_b"]).reshape(-1, C2, H2, W2)
    d = jax.nn.relu(conv(up(d), p["dec_w1"], p["dec_b1"], 1, 1))
    d = conv(up(d), p["dec_w2"], p["dec_b2"], 1, 1)
    return jnp.tanh(d), mu, ls


# ------------------------------------- main -------------------------------------

if __name__ == "__main__":
    key = jax.random.PRNGKey(0)
    k_x, k_p, k_eps = jax.random.split(key, 3)

    B = 2
    x = jax.random.normal(k_x, (B, IN_C, IN_H, IN_W), dtype=jnp.float32)   # NCHW
    params = init_params(k_p)
    kparams = prepare_kernel_params(params)        # one-time init-path weight repack
    # torch.randn(*mu.size()) noise, fixed & deterministic here; (B, Z) is the
    # row-major view of torch's (1, B*Z).
    eps = jax.random.normal(k_eps, (B, Z_DIM), dtype=jnp.float32)

    fwd = jax.jit(vae_forward)
    x_rec, mu, log_sigma2 = fwd(x, kparams, eps)
    jax.block_until_ready((x_rec, mu, log_sigma2))

    assert x_rec.shape == (B, IN_C, IN_H, IN_W)
    assert mu.shape == (1, B * Z_DIM)
    assert log_sigma2.shape == (1, B * Z_DIM)

    # Sanity check against the plain-JAX f32 reference. Tolerances account for
    # int8 weight storage + bf16 MXU operands in the kernel (latent math is f32).
    xr_ref, mu_ref_v, ls_ref_v = _reference_forward(x, params, eps)
    np.testing.assert_allclose(np.asarray(mu), np.asarray(mu_ref_v), atol=2e-2, rtol=2e-2)
    np.testing.assert_allclose(np.asarray(log_sigma2), np.asarray(ls_ref_v), atol=2e-2, rtol=2e-2)
    np.testing.assert_allclose(np.asarray(x_rec), np.asarray(xr_ref), atol=2e-2, rtol=1e-1)

    print("KERNEL_OK")
</pallas_src>

<mosaic_0001>
module attributes {stable_mosaic.version = 11 : i64} {
  func.func @_vae_fused_kernel(%arg0: memref<4xf32, #tpu.memory_space<smem>>, %arg1: memref<2x1024xf32, #tpu.memory_space<vmem>>, %arg2: memref<1024x512xi8, #tpu.memory_space<vmem>>, %arg3: memref<512x256xi8, #tpu.memory_space<vmem>>, %arg4: memref<256x64xf32, #tpu.memory_space<vmem>>, %arg5: memref<32x256xf32, #tpu.memory_space<vmem>>, %arg6: memref<256x512xi8, #tpu.memory_space<vmem>>, %arg7: memref<512x1024xi8, #tpu.memory_space<vmem>>, %arg8: memref<1x2624xf32, #tpu.memory_space<vmem>>, %arg9: memref<2x32xf32, #tpu.memory_space<vmem>>, %arg10: memref<2x1024xf32, #tpu.memory_space<vmem>>, %arg11: memref<2x64xf32, #tpu.memory_space<vmem>>) attributes {dimension_semantics = [], scalar_prefetch = 0 : i64, scratch_operands = 0 : i64, tpu.core_type = #tpu.core_type<tc>} {
    %c0 = arith.constant 0 : index
    %c0_0 = arith.constant 0 : index
    %0 = vector.load %arg1[%c0, %c0_0] : memref<2x1024xf32, #tpu.memory_space<vmem>>, vector<2x1024xf32>
    %1 = arith.truncf %0 : vector<2x1024xf32> to vector<2x1024xbf16>
    %c0_1 = arith.constant 0 : index
    %c0_2 = arith.constant 0 : index
    %2 = vector.load %arg2[%c0_1, %c0_2] : memref<1024x512xi8, #tpu.memory_space<vmem>>, vector<1024x512xi8>
    %3 = arith.sitofp %2 : vector<1024x512xi8> to vector<1024x512xbf16>
    %cst = arith.constant dense<0.000000e+00> : vector<2x512xf32>
    %4 = tpu.matmul %1, %3, %cst {dimension_numbers = #tpu.dot_dimension_numbers<[1], [0], [0], [1], [0, 0, 1, 1], [], []>} : vector<2x1024xbf16>, vector<1024x512xbf16>, vector<2x512xf32> -> vector<2x512xf32>
    %c0_3 = arith.constant 0 : index
    %5 = memref.load %arg0[%c0_3] : memref<4xf32, #tpu.memory_space<smem>>
    %6 = vector.broadcast %5 : f32 to vector<2x512xf32>
    %7 = arith.mulf %4, %6 : vector<2x512xf32>
    %c0_4 = arith.constant 0 : index
    %c0_5 = arith.constant 0 : index
    %8 = vector.load %arg8[%c0_4, %c0_5] : memref<1x2624xf32, #tpu.memory_space<vmem>>, vector<1x512xf32>
    %9 = vector.broadcast %8 : vector<1x512xf32> to vector<2x512xf32>
    %10 = arith.addf %7, %9 : vector<2x512xf32>
    %cst_6 = arith.constant 0.000000e+00 : f32
    %11 = vector.broadcast %cst_6 : f32 to vector<2x512xf32>
    %12 = arith.maximumf %10, %11 : vector<2x512xf32>
    %13 = arith.truncf %12 : vector<2x512xf32> to vector<2x512xbf16>
    %c0_7 = arith.constant 0 : index
    %c0_8 = arith.constant 0 : index
    %14 = vector.load %arg3[%c0_7, %c0_8] : memref<512x256xi8, #tpu.memory_space<vmem>>, vector<512x256xi8>
    %15 = arith.sitofp %14 : vector<512x256xi8> to vector<512x256xbf16>
    %cst_9 = arith.constant dense<0.000000e+00> : vector<2x256xf32>
    %16 = tpu.matmul %13, %15, %cst_9 {dimension_numbers = #tpu.dot_dimension_numbers<[1], [0], [0], [1], [0, 0, 1, 1], [], []>} : vector<2x512xbf16>, vector<512x256xbf16>, vector<2x256xf32> -> vector<2x256xf32>
    %c1 = arith.constant 1 : index
    %17 = memref.load %arg0[%c1] : memref<4xf32, #tpu.memory_space<smem>>
    %18 = vector.broadcast %17 : f32 to vector<2x256xf32>
    %19 = arith.mulf %16, %18 : vector<2x256xf32>
    %c0_10 = arith.constant 0 : index
    %c512 = arith.constant 512 : index
    %20 = vector.load %arg8[%c0_10, %c512] : memref<1x2624xf32, #tpu.memory_space<vmem>>, vector<1x256xf32>
    %21 = vector.broadcast %20 : vector<1x256xf32> to vector<2x256xf32>
    %22 = arith.addf %19, %21 : vector<2x256xf32>
    %cst_11 = arith.constant 0.000000e+00 : f32
    %23 = vector.broadcast %cst_11 : f32 to vector<2x256xf32>
    %24 = arith.maximumf %22, %23 : vector<2x256xf32>
    %c0_12 = arith.constant 0 : index
    %c0_13 = arith.constant 0 : index
    %25 = vector.load %arg4[%c0_12, %c0_13] : memref<256x64xf32, #tpu.memory_space<vmem>>, vector<256x64xf32>
    %cst_14 = arith.constant dense<0.000000e+00> : vector<2x64xf32>
    %26 = tpu.matmul %24, %25, %cst_14 {dimension_numbers = #tpu.dot_dimension_numbers<[1], [0], [0], [1], [0, 0, 1, 1], [], []>} : vector<2x256xf32>, vector<256x64xf32>, vector<2x64xf32> -> vector<2x64xf32>
    %c0_15 = arith.constant 0 : index
    %c2560 = arith.constant 2560 : index
    %27 = vector.load %arg8[%c0_15, %c2560] : memref<1x2624xf32, #tpu.memory_space<vmem>>, vector<1x64xf32>
    %28 = vector.broadcast %27 : vector<1x64xf32> to vector<2x64xf32>
    %29 = arith.addf %26, %28 : vector<2x64xf32>
    %30 = vector.extract_strided_slice %29 {offsets = [0, 0], sizes = [2, 32], strides = [1, 1]} : vector<2x64xf32> to vector<2x32xf32>
    %31 = vector.extract_strided_slice %29 {offsets = [0, 32], sizes = [2, 32], strides = [1, 1]} : vector<2x64xf32> to vector<2x32xf32>
    %cst_16 = arith.constant 5.000000e-01 : f32
    %32 = vector.broadcast %cst_16 : f32 to vector<2x32xf32>
    %33 = arith.mulf %32, %31 : vector<2x32xf32>
    %34 = math.exp %33 : vector<2x32xf32>
    %c0_17 = arith.constant 0 : index
    %c0_18 = arith.constant 0 : index
    %35 = vector.load %arg9[%c0_17, %c0_18] : memref<2x32xf32, #tpu.memory_space<vmem>>, vector<2x32xf32>
    %36 = arith.mulf %34, %35 : vector<2x32xf32>
    %37 = arith.addf %30, %36 : vector<2x32xf32>
    %c0_19 = arith.constant 0 : index
    %c0_20 = arith.constant 0 : index
    %38 = vector.load %arg5[%c0_19, %c0_20] : memref<32x256xf32, #tpu.memory_space<vmem>>, vector<32x256xf32>
    %cst_21 = arith.constant dense<0.000000e+00> : vector<2x256xf32>
    %39 = tpu.matmul %37, %38, %cst_21 {dimension_numbers = #tpu.dot_dimension_numbers<[1], [0], [0], [1], [0, 0, 1, 1], [], []>} : vector<2x32xf32>, vector<32x256xf32>, vector<2x256xf32> -> vector<2x256xf32>
    %c0_22 = arith.constant 0 : index
    %c2304 = arith.constant 2304 : index
    %40 = vector.load %arg8[%c0_22, %c2304] : memref<1x2624xf32, #tpu.memory_space<vmem>>, vector<1x256xf32>
    %41 = vector.broadcast %40 : vector<1x256xf32> to vector<2x256xf32>
    %42 = arith.addf %39, %41 : vector<2x256xf32>
    %43 = arith.truncf %42 : vector<2x256xf32> to vector<2x256xbf16>
    %c0_23 = arith.constant 0 : index
    %c0_24 = arith.constant 0 : index
    %44 = vector.load %arg6[%c0_23, %c0_24] : memref<256x512xi8, #tpu.memory_space<vmem>>, vector<256x512xi8>
    %45 = arith.sitofp %44 : vector<256x512xi8> to vector<256x512xbf16>
    %cst_25 = arith.constant dense<0.000000e+00> : vector<2x512xf32>
    %46 = tpu.matmul %43, %45, %cst_25 {dimension_numbers = #tpu.dot_dimension_numbers<[1], [0], [0], [1], [0, 0, 1, 1], [], []>} : vector<2x256xbf16>, vector<256x512xbf16>, vector<2x512xf32> -> vector<2x512xf32>
    %c2 = arith.constant 2 : index
    %47 = memref.load %arg0[%c2] : memref<4xf32, #tpu.memory_space<smem>>
    %48 = vector.broadcast %47 : f32 to vector<2x512xf32>
    %49 = arith.mulf %46, %48 : vector<2x512xf32>
    %c0_26 = arith.constant 0 : index
    %c1792 = arith.constant 1792 : index
    %50 = vector.load %arg8[%c0_26, %c1792] : memref<1x2624xf32, #tpu.memory_space<vmem>>, vector<1x512xf32>
    %51 = vector.broadcast %50 : vector<1x512xf32> to vector<2x512xf32>
    %52 = arith.addf %49, %51 : vector<2x512xf32>
    %cst_27 = arith.constant 0.000000e+00 : f32
    %53 = vector.broadcast %cst_27 : f32 to vector<2x512xf32>
    %54 = arith.maximumf %52, %53 : vector<2x512xf32>
    %55 = arith.truncf %54 : vector<2x512xf32> to vector<2x512xbf16>
    %c0_28 = arith.constant 0 : index
    %c0_29 = arith.constant 0 : index
    %56 = vector.load %arg7[%c0_28, %c0_29] : memref<512x1024xi8, #tpu.memory_space<vmem>>, vector<512x1024xi8>
    %57 = arith.sitofp %56 : vector<512x1024xi8> to vector<512x1024xbf16>
    %cst_30 = arith.constant dense<0.000000e+00> : vector<2x1024xf32>
    %58 = tpu.matmul %55, %57, %cst_30 {dimension_numbers = #tpu.dot_dimension_numbers<[1], [0], [0], [1], [0, 0, 1, 1], [], []>} : vector<2x512xbf16>, vector<512x1024xbf16>, vector<2x1024xf32> -> vector<2x1024xf32>
    %c3 = arith.constant 3 : index
    %59 = memref.load %arg0[%c3] : memref<4xf32, #tpu.memory_space<smem>>
    %60 = vector.broadcast %59 : f32 to vector<2x1024xf32>
    %61 = arith.mulf %58, %60 : vector<2x1024xf32>
    %c0_31 = arith.constant 0 : index
    %c768 = arith.constant 768 : index
    %62 = vector.load %arg8[%c0_31, %c768] : memref<1x2624xf32, #tpu.memory_space<vmem>>, vector<1x1024xf32>
    %63 = vector.broadcast %62 : vector<1x1024xf32> to vector<2x1024xf32>
    %64 = arith.addf %61, %63 : vector<2x1024xf32>
    %65 = math.tanh %64 : vector<2x1024xf32>
    %c0_32 = arith.constant 0 : index
    %c0_33 = arith.constant 0 : index
    %66 = vector.load %arg10[%c0_32, %c0_33] : memref<2x1024xf32, #tpu.memory_space<vmem>>, vector<2x1024xf32>
    tpu.vector_store %arg10[%c0_32, %c0_33], %65 {strides = array<i32>} : memref<2x1024xf32, #tpu.memory_space<vmem>>, vector<2x1024xf32>,
    %c0_34 = arith.constant 0 : index
    %c0_35 = arith.constant 0 : index
    %67 = vector.load %arg11[%c0_34, %c0_35] : memref<2x64xf32, #tpu.memory_space<vmem>>, vector<2x64xf32>
    tpu.vector_store %arg11[%c0_34, %c0_35], %29 {strides = array<i32>} : memref<2x64xf32, #tpu.memory_space<vmem>>, vector<2x64xf32>,
    return
  }
}

</mosaic_0001>

<bundles_post_ra>
// kernel: vae_forward.1
= control target key start
LH: loop header
LB: loop body
LE: loop exit
PB: predicated region body
PF: predicated region fallthrough
CT: control target
= control target key end

     0   :  { %17 = vsyncpa [#allocation4], 0  ;;  %s6337_s0 = inlined_call_operand.vmem [shape: f32[4], index: 0, kind: input, shape index: {}]   ;;  %s6338_s1 = inlined_call_operand.vmem [shape: f32[2,1024], index: 1, kind: input, shape index: {}]   ;;  %s6339_s2 = inlined_call_operand.hbm [shape: s8[1024,512], index: 2, kind: input, shape index: {}]   ;;  %s6340_s3 = inlined_call_operand.vmem [shape: s8[512,256], index: 3, kind: input, shape index: {}]   ;;  %s6341_s4 = inlined_call_operand.vmem [shape: f32[256,64], index: 4, kind: input, shape index: {}]   ;;  %s6342_s5 = inlined_call_operand.hbm [shape: f32[32,256], index: 5, kind: input, shape index: {}]   ;;  %s6343_s6 = inlined_call_operand.vmem [shape: s8[256,512], index: 6, kind: input, shape index: {}]   ;;  %s6344_s7 = inlined_call_operand.hbm [shape: s8[512,1024], index: 7, kind: input, shape index: {}]   ;;  %s6345_s8 = inlined_call_operand.hbm [shape: f32[1,2624], index: 8, kind: input, shape index: {}]   ;;  %s6346_s9 = inlined_call_operand.vmem [shape: f32[2,32], index: 9, kind: input, shape index: {}]   ;;  %s6347_s10 = inlined_call_operand.vmem [shape: f32[2,1024], index: 10, kind: output, shape index: {0}]   ;;  %s6348_s11 = inlined_call_operand.vmem [shape: f32[2,64], index: 11, kind: output, shape index: {1}]  }
   0x1   :  { %18 = vsyncpa [#allocation3], 0 }
   0x2   :  { %19 = vsyncpa [#allocation7], 0  ;;  %s53_s19 = sshll.u32 %s6342_s5, 4  ;;  %s54_s19 = int_to_ptr.hbm [resolvable:$true] %s53_s19 }
   0x3   :  { %20 = vsyncpa [#allocation10], 0  ;;  %s5159_s20 = smov [#allocation6]   ;;  %s26_s24 = sshll.u32 %s6337_s0, 4  ;;  %s27_s24 = int_to_ptr.vmem [resolvable:$true] %s26_s24 }
   0x4   :  { %s55_s21 = sshll.u32 %s5159_s20, 4  ;;  %s5160_s25 = smov 256   ;;  %s56_s21 = int_to_ptr.vmem [resolvable:$true] %s55_s21 }
   0x5   :  { %s5161_s26 = smov 16   ;;  %s5162_s27 = smov [#allocation2]  }
   0x6   :  { %61 = dma.hbm_to_vmem [thread:$0]  %s54_s19, 1024, %s56_s21, [#allocation7], %s5160_s25, %s5160_s25, %s5161_s26  }
   0x7   :  { %29 = dma.vmem_to_smem %s27_s24, 16, %s5162_s27, [#allocation4]  }
   0x8   :  { %s36_s30 = sshll.u32 %s6339_s2, 4  ;;  %s5163_s5 = smov [#allocation5]   ;;  %s37_s30 = int_to_ptr.hbm [resolvable:$true] %s36_s30 }
   0x9   :  { %s38_s12 = sshll.u32 %s5163_s5, 4  ;;  %s68_s15 = sshll.u32 %s6344_s7, 4  ;;  %s39_s12 = int_to_ptr.vmem [resolvable:$true] %s38_s12  ;;  %s69_s15 = int_to_ptr.hbm [resolvable:$true] %s68_s15 }
   0xa   :  { %s5164_s16 = smov 512   ;;  %s5165_s0 = smov 32  }
   0xb   :  { %44 = dma.hbm_to_vmem [thread:$0]  %s37_s30, 16384, %s39_s12, [#allocation3], %s5164_s16, %s5164_s16, %s5165_s0  }
   0xc   :  { %s5166_s17 = smov [#allocation8]   ;;  %s5167_s19 = smov 1024  }
   0xd   :  { %s70_s18 = sshll.u32 %s5166_s17, 4  ;;  %s5168_s20 = smov 64   ;;  %s71_s18 = int_to_ptr.vmem [resolvable:$true] %s70_s18 }
   0xe   :  { %76 = dma.hbm_to_vmem [thread:$0]  %s69_s15, 16384, %s71_s18, [#allocation7], %s5167_s19, %s5167_s19, %s5168_s20  }
   0xf   :  { %s82_s22 = sshll.u32 %s6345_s8, 4  ;;  %s5169_s23 = smov [#allocation9]   ;;  %s83_s22 = int_to_ptr.hbm [resolvable:$true] %s82_s22 }
  0x10   :  { %s84_s24 = sshll.u32 %s5169_s23, 4  ;;  %s85_s24 = int_to_ptr.vmem [resolvable:$true] %s84_s24 }
  0x11   :  { %87 = dma.hbm_to_vmem [thread:$0]  %s83_s22, 336, %s85_s24, [#allocation10]  }
  0x12   :  { %5151 = dma.done.wait [#allocation4], 16  }
  0x13   :  { %5152 = vsyncadd [#allocation4], 4294967280 }
  0x14   :  { %5153 = dma.done.wait [#allocation3], 16384  }
  0x15   :  { %5154 = vsyncadd [#allocation3], 4294950912 }
  0x16   :  { %5155 = dma.done.wait [#allocation7], 17408  }
  0x17   :  { %5156 = vsyncadd [#allocation7], 4294949888 }
  0x18   :  { %5157 = dma.done.wait [#allocation10], 336  }
  0x19   :  { %5158 = vsyncadd [#allocation10], 4294966960 }
  0x1a   :  { %110 = sfence }
  0x1b   :  { %v154_v0 = vld [vmem:[#allocation5 + $0x60] sm:$0xff]  ;;  %s5362_s30 = sld [smem:[#allocation2]]  ;;  %vm4993_vm0 = vcmask 517120   ;;  %vm2568_vm1 = vcmask 261120   ;;  %vm4980_vm2 = vcmask 1041408   ;;  %vm4982_vm3 = vcmask 1045508  }
  0x1c   :  { %v170_v1 = vld [vmem:[#allocation5 + $0xe0] sm:$0xff]  ;;  %v326_v3 = vunpack.c.2.s8 %v154_v0  ;;  %v330_v4 = vunpack.c.3.s8 %v154_v0  ;;  %v318_v22 = vunpack.c.0.s8 %v154_v0  ;;  %v322_v23 = vunpack.c.1.s8 %v154_v0  ;;  %s6224_s20 = sld [smem:[#allocation2 + $0x3]] }
  0x1d   :  { %v186_v2 = vld [vmem:[#allocation5 + $0x160] sm:$0xff]  ;;  %v390_v5 = vunpack.c.2.s8 %v170_v1  ;;  %v394_v6 = vunpack.c.3.s8 %v170_v1  ;;  %v382_v26 = vunpack.c.0.s8 %v170_v1  ;;  %v386_v27 = vunpack.c.1.s8 %v170_v1 }
  0x1e   :  { %v202_v7 = vld [vmem:[#allocation5 + $0x1e0] sm:$0xff]  ;;  %v454_v8 = vunpack.c.2.s8 %v186_v2  ;;  %v458_v9 = vunpack.c.3.s8 %v186_v2  ;;  %v838_v12 = vcvt.s32.f32 %v326_v3  ;;  %v842_v13 = vcvt.s32.f32 %v330_v4 }
  0x1f   :  { %v518_v10 = vunpack.c.2.s8 %v202_v7  ;;  %v522_v11 = vunpack.c.3.s8 %v202_v7  ;;  %v902_v14 = vcvt.s32.f32 %v390_v5  ;;  %v906_v15 = vcvt.s32.f32 %v394_v6  ;;  %v150_v28 = vld [vmem:[#allocation5 + $0x40] sm:$0xff] }
  0x20   :  { %v966_v16 = vcvt.s32.f32 %v454_v8  ;;  %v970_v17 = vcvt.s32.f32 %v458_v9  ;;  %v1322_v20 = vpack.c.bf16 %v842_v13, %v838_v12  ;;  %v830_v29 = vcvt.s32.f32 %v318_v22  ;;  %v166_v37 = vld [vmem:[#allocation5 + $0xc0] sm:$0xff] }
  0x21   :  { %v1030_v18 = vcvt.s32.f32 %v518_v10  ;;  %v1034_v19 = vcvt.s32.f32 %v522_v11  ;;  %v1354_v21 = vpack.c.bf16 %v906_v15, %v902_v14  ;;  %v834_v30 = vcvt.s32.f32 %v322_v23  ;;  %v182_v42 = vld [vmem:[#allocation5 + $0x140] sm:$0xff] }
  0x22   :  { %v1386_v24 = vpack.c.bf16 %v970_v17, %v966_v16  ;;  %1550 = vmatpush.bf16.msra.mxu0 %v1322_v20  ;;  %v446_v31 = vunpack.c.0.s8 %v186_v2  ;;  %v450_v32 = vunpack.c.1.s8 %v186_v2  ;;  %v894_v33 = vcvt.s32.f32 %v382_v26  ;;  %v198_v47 = vld [vmem:[#allocation5 + $0x1c0] sm:$0xff] }
  0x23   :  { %v1418_v25 = vpack.c.bf16 %v1034_v19, %v1030_v18  ;;  %1563 = vmatpush.bf16.msra.mxu1 %v1354_v21  ;;  %v898_v34 = vcvt.s32.f32 %v386_v27  ;;  %v510_v35 = vunpack.c.0.s8 %v202_v7  ;;  %v514_v36 = vunpack.c.1.s8 %v202_v7  ;;  %v146_v8 = vld [vmem:[#allocation5 + $0x20] sm:$0xff] }
  0x24   :  { %1576 = vmatpush.bf16.msra.mxu2 %v1386_v24  ;;  %v1318_v38 = vpack.c.bf16 %v834_v30, %v830_v29  ;;  %v958_v39 = vcvt.s32.f32 %v446_v31  ;;  %v962_v40 = vcvt.s32.f32 %v450_v32  ;;  %v310_v41 = vunpack.c.2.s8 %v150_v28  ;;  %v162_v17 = vld [vmem:[#allocation5 + $0xa0] sm:$0xff] }
  0x25   :  { %1589 = vmatpush.bf16.msra.mxu3 %v1418_v25  ;;  %v1350_v43 = vpack.c.bf16 %v898_v34, %v894_v33  ;;  %v1022_v44 = vcvt.s32.f32 %v510_v35  ;;  %v1026_v45 = vcvt.s32.f32 %v514_v36  ;;  %v314_v46 = vunpack.c.3.s8 %v150_v28  ;;  %v178_v22 = vld [vmem:[#allocation5 + $0x120] sm:$0xff] }
  0x26   :  { %1551 = vmatpush.bf16.msra.mxu0 %v1318_v38  ;;  %v1382_v48 = vpack.c.bf16 %v962_v40, %v958_v39  ;;  %v822_v49 = vcvt.s32.f32 %v310_v41  ;;  %v374_v50 = vunpack.c.2.s8 %v166_v37  ;;  %v378_v51 = vunpack.c.3.s8 %v166_v37  ;;  %v194_v27 = vld [vmem:[#allocation5 + $0x1a0] sm:$0xff] }
  0x27   :  { %1564 = vmatpush.bf16.msra.mxu1 %v1350_v43  ;;  %v1414_v52 = vpack.c.bf16 %v1026_v45, %v1022_v44  ;;  %v826_v53 = vcvt.s32.f32 %v314_v46  ;;  %v438_v54 = vunpack.c.2.s8 %v182_v42  ;;  %v442_v55 = vunpack.c.3.s8 %v182_v42 }
  0x28   :  { %1577 = vmatpush.bf16.msra.mxu2 %v1382_v48  ;;  %v886_v56 = vcvt.s32.f32 %v374_v50  ;;  %v890_v57 = vcvt.s32.f32 %v378_v51  ;;  %v502_v58 = vunpack.c.2.s8 %v198_v47  ;;  %v506_v59 = vunpack.c.3.s8 %v198_v47 }
  0x29   :  { %1590 = vmatpush.bf16.msra.mxu3 %v1414_v52  ;;  %v1314_v60 = vpack.c.bf16 %v826_v53, %v822_v49  ;;  %v950_v61 = vcvt.s32.f32 %v438_v54  ;;  %v954_v62 = vcvt.s32.f32 %v442_v55  ;;  %v302_v63 = vunpack.c.0.s8 %v150_v28  ;;  %v142_v52 = vld [vmem:[#allocation5] sm:$0xff] }
  0x2a   :  { %v1346_v0 = vpack.c.bf16 %v890_v57, %v886_v56  ;;  %v1014_v1 = vcvt.s32.f32 %v502_v58  ;;  %v1018_v2 = vcvt.s32.f32 %v506_v59  ;;  %v306_v3 = vunpack.c.1.s8 %v150_v28 }
  0x2b   :  { %1552 = vmatpush.bf16.msra.mxu0 %v1314_v60  ;;  %v1378_v4 = vpack.c.bf16 %v954_v62, %v950_v61  ;;  %v814_v5 = vcvt.s32.f32 %v302_v63  ;;  %v366_v6 = vunpack.c.0.s8 %v166_v37  ;;  %v370_v7 = vunpack.c.1.s8 %v166_v37  ;;  %v158_v61 = vld [vmem:[#allocation5 + $0x80] sm:$0xff] }
  0x2c   :  { %1565 = vmatpush.bf16.msra.mxu1 %v1346_v0  ;;  %v1410_v9 = vpack.c.bf16 %v1018_v2, %v1014_v1  ;;  %v818_v10 = vcvt.s32.f32 %v306_v3  ;;  %v430_v11 = vunpack.c.0.s8 %v182_v42  ;;  %v434_v12 = vunpack.c.1.s8 %v182_v42  ;;  %v174_v2 = vld [vmem:[#allocation5 + $0x100] sm:$0xff] }
  0x2d   :  { %1578 = vmatpush.bf16.msra.mxu2 %v1378_v4  ;;  %v878_v13 = vcvt.s32.f32 %v366_v6  ;;  %v882_v14 = vcvt.s32.f32 %v370_v7  ;;  %v494_v15 = vunpack.c.0.s8 %v198_v47  ;;  %v498_v16 = vunpack.c.1.s8 %v198_v47  ;;  %v190_v7 = vld [vmem:[#allocation5 + $0x180] sm:$0xff] }
  0x2e   :  { %1591 = vmatpush.bf16.msra.mxu3 %v1410_v9  ;;  %v1310_v18 = vpack.c.bf16 %v818_v10, %v814_v5  ;;  %v942_v19 = vcvt.s32.f32 %v430_v11  ;;  %v946_v20 = vcvt.s32.f32 %v434_v12  ;;  %v294_v21 = vunpack.c.2.s8 %v146_v8 }
  0x2f   :  { %v1342_v23 = vpack.c.bf16 %v882_v14, %v878_v13  ;;  %v1006_v24 = vcvt.s32.f32 %v494_v15  ;;  %v1010_v25 = vcvt.s32.f32 %v498_v16  ;;  %v298_v26 = vunpack.c.3.s8 %v146_v8 }
  0x30   :  { %1553 = vmatpush.bf16.msra.mxu0 %v1310_v18  ;;  %v1374_v28 = vpack.c.bf16 %v946_v20, %v942_v19  ;;  %v806_v29 = vcvt.s32.f32 %v294_v21  ;;  %v358_v30 = vunpack.c.2.s8 %v162_v17  ;;  %v362_v31 = vunpack.c.3.s8 %v162_v17 }
  0x31   :  { %1566 = vmatpush.bf16.msra.mxu1 %v1342_v23  ;;  %v1406_v32 = vpack.c.bf16 %v1010_v25, %v1006_v24  ;;  %v810_v33 = vcvt.s32.f32 %v298_v26  ;;  %v422_v34 = vunpack.c.2.s8 %v178_v22  ;;  %v426_v35 = vunpack.c.3.s8 %v178_v22 }
  0x32   :  { %1579 = vmatpush.bf16.msra.mxu2 %v1374_v28  ;;  %v870_v36 = vcvt.s32.f32 %v358_v30  ;;  %v874_v37 = vcvt.s32.f32 %v362_v31  ;;  %v486_v38 = vunpack.c.2.s8 %v194_v27  ;;  %v490_v39 = vunpack.c.3.s8 %v194_v27 }
  0x33   :  { %1592 = vmatpush.bf16.msra.mxu3 %v1406_v32  ;;  %v1306_v40 = vpack.c.bf16 %v810_v33, %v806_v29  ;;  %v934_v41 = vcvt.s32.f32 %v422_v34  ;;  %v938_v42 = vcvt.s32.f32 %v426_v35  ;;  %v286_v43 = vunpack.c.0.s8 %v146_v8  ;;  %v218_v33 = vld [vmem:[#allocation5 + $0x260] sm:$0xff] }
  0x34   :  { %v1338_v44 = vpack.c.bf16 %v874_v37, %v870_v36  ;;  %v998_v45 = vcvt.s32.f32 %v486_v38  ;;  %v1002_v46 = vcvt.s32.f32 %v490_v39  ;;  %v290_v47 = vunpack.c.1.s8 %v146_v8  ;;  %v111_v8 = vld [vmem:[%s6338_s1] sm:$0xff] }
  0x35   :  { %1554 = vmatpush.bf16.msra.mxu0 %v1306_v40  ;;  %v1370_v48 = vpack.c.bf16 %v938_v42, %v934_v41  ;;  %v798_v49 = vcvt.s32.f32 %v286_v43  ;;  %v350_v50 = vunpack.c.0.s8 %v162_v17  ;;  %v354_v51 = vunpack.c.1.s8 %v162_v17  ;;  %115 = vst [vmem:[#allocation1] ss:$4 sm:$0xff] %v111_v8  ;;  %v234_v42 = vld [vmem:[#allocation5 + $0x2e0] sm:$0xff] }
  0x36   :  { %1567 = vmatpush.bf16.msra.mxu1 %v1338_v44  ;;  %v1402_v53 = vpack.c.bf16 %v1002_v46, %v998_v45  ;;  %v802_v54 = vcvt.s32.f32 %v290_v47  ;;  %v414_v55 = vunpack.c.0.s8 %v178_v22  ;;  %v418_v56 = vunpack.c.1.s8 %v178_v22  ;;  %v250_v47 = vld [vmem:[#allocation5 + $0x360] sm:$0xff] }
  0x37   :  { %1580 = vmatpush.bf16.msra.mxu2 %v1370_v48  ;;  %v862_v57 = vcvt.s32.f32 %v350_v50  ;;  %v866_v58 = vcvt.s32.f32 %v354_v51  ;;  %v478_v59 = vunpack.c.0.s8 %v194_v27  ;;  %v482_v60 = vunpack.c.1.s8 %v194_v27 }
  0x38   :  { %1593 = vmatpush.bf16.msra.mxu3 %v1402_v53  ;;  %v1302_v62 = vpack.c.bf16 %v802_v54, %v798_v49  ;;  %v926_v63 = vcvt.s32.f32 %v414_v55  ;;  %v930_v0 = vcvt.s32.f32 %v418_v56  ;;  %v278_v1 = vunpack.c.2.s8 %v142_v52 }
  0x39   :  { %v1334_v3 = vpack.c.bf16 %v866_v58, %v862_v57  ;;  %v990_v4 = vcvt.s32.f32 %v478_v59  ;;  %v994_v5 = vcvt.s32.f32 %v482_v60  ;;  %v282_v6 = vunpack.c.3.s8 %v142_v52 }
  0x3a   :  { %1555 = vmatpush.bf16.msra.mxu0 %v1302_v62  ;;  %v1366_v9 = vpack.c.bf16 %v930_v0, %v926_v63  ;;  %v790_v10 = vcvt.s32.f32 %v278_v1  ;;  %v342_v11 = vunpack.c.2.s8 %v158_v61  ;;  %v346_v12 = vunpack.c.3.s8 %v158_v61 }
  0x3b   :  { %1568 = vmatpush.bf16.msra.mxu1 %v1334_v3  ;;  %v1398_v13 = vpack.c.bf16 %v994_v5, %v990_v4  ;;  %v794_v14 = vcvt.s32.f32 %v282_v6  ;;  %v406_v15 = vunpack.c.2.s8 %v174_v2  ;;  %v410_v16 = vunpack.c.3.s8 %v174_v2 }
  0x3c   :  { %1581 = vmatpush.bf16.msra.mxu2 %v1366_v9  ;;  %v854_v17 = vcvt.s32.f32 %v342_v11  ;;  %v858_v18 = vcvt.s32.f32 %v346_v12  ;;  %v470_v19 = vunpack.c.2.s8 %v190_v7  ;;  %v474_v20 = vunpack.c.3.s8 %v190_v7 }
  0x3d   :  { %1594 = vmatpush.bf16.msra.mxu3 %v1398_v13  ;;  %v1298_v21 = vpack.c.bf16 %v794_v14, %v790_v10  ;;  %v918_v22 = vcvt.s32.f32 %v406_v15  ;;  %v922_v23 = vcvt.s32.f32 %v410_v16  ;;  %v270_v24 = vunpack.c.0.s8 %v142_v52  ;;  %v214_v13 = vld [vmem:[#allocation5 + $0x240] sm:$0xff] }
  0x3e   :  { %v1330_v25 = vpack.c.bf16 %v858_v18, %v854_v17  ;;  %v982_v26 = vcvt.s32.f32 %v470_v19  ;;  %v986_v27 = vcvt.s32.f32 %v474_v20  ;;  %v274_v28 = vunpack.c.1.s8 %v142_v52  ;;  %v266_v52 = vld [vmem:[#allocation5 + $0x3e0] sm:$0xff] }
  0x3f   :  { %1556 = vmatpush.bf16.msra.mxu0 %v1298_v21  ;;  %v1362_v29 = vpack.c.bf16 %v922_v23, %v918_v22  ;;  %v782_v30 = vcvt.s32.f32 %v270_v24  ;;  %v334_v31 = vunpack.c.0.s8 %v158_v61  ;;  %v338_v32 = vunpack.c.1.s8 %v158_v61  ;;  %v230_v22 = vld [vmem:[#allocation5 + $0x2c0] sm:$0xff] }
  0x40   :  { %1569 = vmatpush.bf16.msra.mxu1 %v1330_v25  ;;  %v1394_v34 = vpack.c.bf16 %v986_v27, %v982_v26  ;;  %v786_v35 = vcvt.s32.f32 %v274_v28  ;;  %v398_v36 = vunpack.c.0.s8 %v174_v2  ;;  %v402_v37 = vunpack.c.1.s8 %v174_v2  ;;  %v246_v27 = vld [vmem:[#allocation5 + $0x340] sm:$0xff] }
  0x41   :  { %1582 = vmatpush.bf16.msra.mxu2 %v1362_v29  ;;  %v846_v38 = vcvt.s32.f32 %v334_v31  ;;  %v850_v39 = vcvt.s32.f32 %v338_v32  ;;  %v462_v40 = vunpack.c.0.s8 %v190_v7  ;;  %v466_v41 = vunpack.c.1.s8 %v190_v7  ;;  %v262_v32 = vld [vmem:[#allocation5 + $0x3c0] sm:$0xff] }
  0x42   :  { %1595 = vmatpush.bf16.msra.mxu3 %v1394_v34  ;;  %v1294_v43 = vpack.c.bf16 %v786_v35, %v782_v30  ;;  %v910_v44 = vcvt.s32.f32 %v398_v36  ;;  %v914_v45 = vcvt.s32.f32 %v402_v37  ;;  %v582_v46 = vunpack.c.2.s8 %v218_v33 }
  0x43   :  { %v1326_v48 = vpack.c.bf16 %v850_v39, %v846_v38  ;;  %v974_v49 = vcvt.s32.f32 %v462_v40  ;;  %v978_v50 = vcvt.s32.f32 %v466_v41  ;;  %v586_v51 = vunpack.c.3.s8 %v218_v33 }
  0x44   :  { %1557 = vmatpush.bf16.msra.mxu0 %v1294_v43  ;;  %v1358_v53 = vpack.c.bf16 %v914_v45, %v910_v44  ;;  %v1094_v54 = vcvt.s32.f32 %v582_v46  ;;  %v646_v55 = vunpack.c.2.s8 %v234_v42  ;;  %v650_v56 = vunpack.c.3.s8 %v234_v42 }
  0x45   :  { %1570 = vmatpush.bf16.msra.mxu1 %v1326_v48  ;;  %v1390_v57 = vpack.c.bf16 %v978_v50, %v974_v49  ;;  %v1098_v58 = vcvt.s32.f32 %v586_v51  ;;  %v710_v59 = vunpack.c.2.s8 %v250_v47  ;;  %v714_v60 = vunpack.c.3.s8 %v250_v47  ;;  %v112_v49 = vld [vmem:[%s6338_s1 + $0x8] sm:$0xff] }
  0x46   :  { %1583 = vmatpush.bf16.msra.mxu2 %v1358_v53  ;;  %v1158_v61 = vcvt.s32.f32 %v646_v55  ;;  %v1162_v62 = vcvt.s32.f32 %v650_v56  ;;  %v774_v63 = vunpack.c.2.s8 %v266_v52  ;;  %v778_v0 = vunpack.c.3.s8 %v266_v52  ;;  %117 = vst [vmem:[#allocation1 + $0x20] ss:$4 sm:$0xff] %v112_v49  ;;  %v119_v49 = vld.sshfl [vmem:[#allocation1 + $0x8] sm:$0xff pattern:$0x73625140] }
  0x47   :  { %1596 = vmatpush.bf16.msra.mxu3 %v1390_v57  ;;  %v1450_v1 = vpack.c.bf16 %v1098_v58, %v1094_v54  ;;  %v1222_v2 = vcvt.s32.f32 %v710_v59  ;;  %v1226_v3 = vcvt.s32.f32 %v714_v60  ;;  %v574_v4 = vunpack.c.0.s8 %v218_v33  ;;  %v210_v58 = vld [vmem:[#allocation5 + $0x220] sm:$0xff] }
  0x48   :  { %v1482_v5 = vpack.c.bf16 %v1162_v62, %v1158_v61  ;;  %v1286_v6 = vcvt.s32.f32 %v774_v63  ;;  %v1290_v7 = vcvt.s32.f32 %v778_v0  ;;  %v578_v8 = vunpack.c.1.s8 %v218_v33 }
  0x49   :  { %1602 = vmatpush.bf16.msrb.mxu0 %v1450_v1  ;;  %v1514_v9 = vpack.c.bf16 %v1226_v3, %v1222_v2  ;;  %v1086_v10 = vcvt.s32.f32 %v574_v4  ;;  %v638_v11 = vunpack.c.0.s8 %v234_v42  ;;  %v642_v12 = vunpack.c.1.s8 %v234_v42  ;;  %v226_v3 = vld [vmem:[#allocation5 + $0x2a0] sm:$0xff] }
  0x4a   :  { %1615 = vmatpush.bf16.msrb.mxu1 %v1482_v5  ;;  %v1546_v14 = vpack.c.bf16 %v1290_v7, %v1286_v6  ;;  %v1090_v15 = vcvt.s32.f32 %v578_v8  ;;  %v702_v16 = vunpack.c.0.s8 %v250_v47  ;;  %v706_v17 = vunpack.c.1.s8 %v250_v47  ;;  %v242_v8 = vld [vmem:[#allocation5 + $0x320] sm:$0xff] }
  0x4b   :  { %1628 = vmatpush.bf16.msrb.mxu2 %v1514_v9  ;;  %v1150_v18 = vcvt.s32.f32 %v638_v11  ;;  %v1154_v19 = vcvt.s32.f32 %v642_v12  ;;  %v766_v20 = vunpack.c.0.s8 %v266_v52  ;;  %v770_v21 = vunpack.c.1.s8 %v266_v52 }
  0x4c   :  { %1641 = vmatpush.bf16.msrb.mxu3 %v1546_v14  ;;  %v1446_v23 = vpack.c.bf16 %v1090_v15, %v1086_v10  ;;  %v1214_v24 = vcvt.s32.f32 %v702_v16  ;;  %v1218_v25 = vcvt.s32.f32 %v706_v17  ;;  %v566_v26 = vunpack.c.2.s8 %v214_v13 }
  0x4d   :  { %v1478_v28 = vpack.c.bf16 %v1154_v19, %v1150_v18  ;;  %v1278_v29 = vcvt.s32.f32 %v766_v20  ;;  %v1282_v30 = vcvt.s32.f32 %v770_v21  ;;  %v570_v31 = vunpack.c.3.s8 %v214_v13  ;;  %v120_v18 = vld.sshfl [vmem:[#allocation1 + $0x10] sm:$0xff pattern:$0x73625140] }
  0x4e   :  { %1603 = vmatpush.bf16.msrb.mxu0 %v1446_v23  ;;  %v1510_v33 = vpack.c.bf16 %v1218_v25, %v1214_v24  ;;  %v1078_v34 = vcvt.s32.f32 %v566_v26  ;;  %v630_v35 = vunpack.c.2.s8 %v230_v22  ;;  %v634_v36 = vunpack.c.3.s8 %v230_v22 }
  0x4f   :  { %1616 = vmatpush.bf16.msrb.mxu1 %v1478_v28  ;;  %v1542_v37 = vpack.c.bf16 %v1282_v30, %v1278_v29  ;;  %v1082_v38 = vcvt.s32.f32 %v570_v31  ;;  %v694_v39 = vunpack.c.2.s8 %v246_v27  ;;  %v698_v40 = vunpack.c.3.s8 %v246_v27 }
  0x50   :  { %1629 = vmatpush.bf16.msrb.mxu2 %v1510_v33  ;;  %v1142_v41 = vcvt.s32.f32 %v630_v35  ;;  %v1146_v42 = vcvt.s32.f32 %v634_v36  ;;  %v758_v43 = vunpack.c.2.s8 %v262_v32  ;;  %v762_v44 = vunpack.c.3.s8 %v262_v32 }
  0x51   :  { %1642 = vmatpush.bf16.msrb.mxu3 %v1542_v37  ;;  %v1442_v45 = vpack.c.bf16 %v1082_v38, %v1078_v34  ;;  %v1206_v46 = vcvt.s32.f32 %v694_v39  ;;  %v1210_v47 = vcvt.s32.f32 %v698_v40  ;;  %v558_v48 = vunpack.c.0.s8 %v214_v13  ;;  %v118_v39 = vld.sshfl [vmem:[#allocation1] sm:$0xff pattern:$0x73625140] }
  0x52   :  { %v1474_v50 = vpack.c.bf16 %v1146_v42, %v1142_v41  ;;  %v1270_v51 = vcvt.s32.f32 %v758_v43  ;;  %v1274_v52 = vcvt.s32.f32 %v762_v44  ;;  %v562_v53 = vunpack.c.1.s8 %v214_v13  ;;  %v258_v13 = vld [vmem:[#allocation5 + $0x3a0] sm:$0xff]  ;;  %v121_v44 = vld.sshfl [vmem:[#allocation1 + $0x18] sm:$0xff pattern:$0x73625140] }
  0x53   :  { %1604 = vmatpush.bf16.msrb.mxu0 %v1442_v45  ;;  %v1506_v54 = vpack.c.bf16 %v1210_v47, %v1206_v46  ;;  %v1070_v55 = vcvt.s32.f32 %v558_v48  ;;  %v622_v56 = vunpack.c.0.s8 %v230_v22  ;;  %v626_v57 = vunpack.c.1.s8 %v230_v22 }
  0x54   :  { %1617 = vmatpush.bf16.msrb.mxu1 %v1474_v50  ;;  %v1538_v59 = vpack.c.bf16 %v1274_v52, %v1270_v51  ;;  %v1074_v60 = vcvt.s32.f32 %v562_v53  ;;  %v686_v61 = vunpack.c.0.s8 %v246_v27  ;;  %v690_v62 = vunpack.c.1.s8 %v246_v27  ;;  %v206_v50 = vld [vmem:[#allocation5 + $0x200] sm:$0xff] }
  0x55   :  { %1630 = vmatpush.bf16.msrb.mxu2 %v1506_v54  ;;  %v1134_v63 = vcvt.s32.f32 %v622_v56  ;;  %v1138_v0 = vcvt.s32.f32 %v626_v57  ;;  %v750_v1 = vunpack.c.0.s8 %v262_v32  ;;  %v754_v2 = vunpack.c.1.s8 %v262_v32  ;;  %v238_v56 = vld [vmem:[#allocation5 + $0x300] sm:$0xff] }
  0x56   :  { %1643 = vmatpush.bf16.msrb.mxu3 %v1538_v59  ;;  %v1438_v4 = vpack.c.bf16 %v1074_v60, %v1070_v55  ;;  %v1198_v5 = vcvt.s32.f32 %v686_v61  ;;  %v1202_v6 = vcvt.s32.f32 %v690_v62  ;;  %v550_v7 = vunpack.c.2.s8 %v210_v58  ;;  %v222_v55 = vld [vmem:[#allocation5 + $0x280] sm:$0xff] }
  0x57   :  { %v1470_v9 = vpack.c.bf16 %v1138_v0, %v1134_v63  ;;  %v1262_v10 = vcvt.s32.f32 %v750_v1  ;;  %v1266_v11 = vcvt.s32.f32 %v754_v2  ;;  %v554_v12 = vunpack.c.3.s8 %v210_v58  ;;  %v254_v61 = vld [vmem:[#allocation5 + $0x380] sm:$0xff] }
  0x58   :  { %1605 = vmatpush.bf16.msrb.mxu0 %v1438_v4  ;;  %v1502_v14 = vpack.c.bf16 %v1202_v6, %v1198_v5  ;;  %v1062_v15 = vcvt.s32.f32 %v550_v7  ;;  %v614_v16 = vunpack.c.2.s8 %v226_v3  ;;  %v618_v17 = vunpack.c.3.s8 %v226_v3 }
  0x59   :  { %1618 = vmatpush.bf16.msrb.mxu1 %v1470_v9  ;;  %v1534_v19 = vpack.c.bf16 %v1266_v11, %v1262_v10  ;;  %v1066_v20 = vcvt.s32.f32 %v554_v12  ;;  %v678_v21 = vunpack.c.2.s8 %v242_v8  ;;  %v682_v22 = vunpack.c.3.s8 %v242_v8 }
  0x5a   :  { %1631 = vmatpush.bf16.msrb.mxu2 %v1502_v14  ;;  %v1126_v23 = vcvt.s32.f32 %v614_v16  ;;  %v1130_v24 = vcvt.s32.f32 %v618_v17  ;;  %v742_v25 = vunpack.c.2.s8 %v258_v13  ;;  %v746_v26 = vunpack.c.3.s8 %v258_v13 }
  0x5b   :  { %1644 = vmatpush.bf16.msrb.mxu3 %v1534_v19  ;;  %v1434_v27 = vpack.c.bf16 %v1066_v20, %v1062_v15  ;;  %v1190_v28 = vcvt.s32.f32 %v678_v21  ;;  %v1194_v29 = vcvt.s32.f32 %v682_v22  ;;  %v5253_v30 = vpack.c.bf16 %v120_v18, %v120_v18 }
  0x5c   :  { %v1466_v31 = vpack.c.bf16 %v1130_v24, %v1126_v23  ;;  %v1254_v32 = vcvt.s32.f32 %v742_v25  ;;  %v1258_v33 = vcvt.s32.f32 %v746_v26  ;;  %v542_v34 = vunpack.c.0.s8 %v210_v58  ;;  %v155_v26 = vld [vmem:[#allocation5 + $0x68] sm:$0xff] }
  0x5d   :  { %1606 = vmatpush.bf16.msrb.mxu0 %v1434_v27  ;;  %v1498_v35 = vpack.c.bf16 %v1194_v29, %v1190_v28  ;;  %1584 = vmatmul.bf16.vlgmr.msra.gmra.mxu2 %v5253_v30  ;;  %v546_v36 = vunpack.c.1.s8 %v210_v58  ;;  %v606_v37 = vunpack.c.0.s8 %v226_v3  ;;  %v610_v38 = vunpack.c.1.s8 %v226_v3 }
  0x5e   :  { %1619 = vmatpush.bf16.msrb.mxu1 %v1466_v31  ;;  %v1530_v40 = vpack.c.bf16 %v1258_v33, %v1254_v32  ;;  %v1054_v41 = vcvt.s32.f32 %v542_v34  ;;  %v670_v42 = vunpack.c.0.s8 %v242_v8  ;;  %v674_v43 = vunpack.c.1.s8 %v242_v8 }
  0x5f   :  { %1632 = vmatpush.bf16.msrb.mxu2 %v1498_v35  ;;  %v1058_v45 = vcvt.s32.f32 %v546_v36  ;;  %v1118_v46 = vcvt.s32.f32 %v606_v37  ;;  %v1122_v47 = vcvt.s32.f32 %v610_v38  ;;  %v734_v48 = vunpack.c.0.s8 %v258_v13  ;;  %v171_v36 = vld [vmem:[#allocation5 + $0xe8] sm:$0xff] }
  0x60   :  { %1645 = vmatpush.bf16.msrb.mxu3 %v1530_v40  ;;  %v1182_v51 = vcvt.s32.f32 %v670_v42  ;;  %v1186_v52 = vcvt.s32.f32 %v674_v43  ;;  %v738_v53 = vunpack.c.1.s8 %v258_v13  ;;  %v5256_v54 = vpack.c.bf16 %v118_v39, %v118_v39 }
  0x61   :  { %v1430_v57 = vpack.c.bf16 %v1058_v45, %v1054_v41  ;;  %v1462_v58 = vpack.c.bf16 %v1122_v47, %v1118_v46  ;;  %v1246_v59 = vcvt.s32.f32 %v734_v48  ;;  %v5258_v60 = vpack.c.bf16 %v121_v44, %v121_v44  ;;  %v187_v41 = vld [vmem:[#allocation5 + $0x168] sm:$0xff] }
  0x62   :  { %v1494_v62 = vpack.c.bf16 %v1186_v52, %v1182_v51  ;;  %v1250_v63 = vcvt.s32.f32 %v738_v53  ;;  %1558 = vmatmul.bf16.vlgmr.msra.gmra.mxu0 %v5256_v54  ;;  %v5261_v0 = vpack.c.bf16 %v119_v49, %v119_v49  ;;  %v534_v1 = vunpack.c.2.s8 %v206_v50  ;;  %v203_v46 = vld [vmem:[#allocation5 + $0x1e8] sm:$0xff] }
  0x63   :  { %1607 = vmatpush.bf16.msrb.mxu0 %v1430_v57  ;;  %1620 = vmatpush.bf16.msrb.mxu1 %v1462_v58  ;;  %v538_v2 = vunpack.c.3.s8 %v206_v50  ;;  %v598_v3 = vunpack.c.2.s8 %v222_v55  ;;  %v602_v4 = vunpack.c.3.s8 %v222_v55  ;;  %v662_v5 = vunpack.c.2.s8 %v238_v56 }
  0x64   :  { %1633 = vmatpush.bf16.msrb.mxu2 %v1494_v62  ;;  %v1526_v6 = vpack.c.bf16 %v1250_v63, %v1246_v59  ;;  %1597 = vmatmul.bf16.vlgmr.msra.gmra.mxu3 %v5258_v60  ;;  %v1046_v7 = vcvt.s32.f32 %v534_v1  ;;  %v666_v8 = vunpack.c.3.s8 %v238_v56  ;;  %v726_v9 = vunpack.c.2.s8 %v254_v61 }
  0x65   :  { %1571 = vmatmul.bf16.vlgmr.msra.gmra.mxu1 %v5261_v0  ;;  %v1050_v10 = vcvt.s32.f32 %v538_v2  ;;  %v1110_v11 = vcvt.s32.f32 %v598_v3  ;;  %v1114_v12 = vcvt.s32.f32 %v602_v4  ;;  %v1174_v13 = vcvt.s32.f32 %v662_v5 }
  0x66   :  { %1646 = vmatpush.bf16.msrb.mxu3 %v1526_v6  ;;  %v1178_v14 = vcvt.s32.f32 %v666_v8  ;;  %v730_v15 = vunpack.c.3.s8 %v254_v61  ;;  %v1238_v16 = vcvt.s32.f32 %v726_v9  ;;  %v526_v17 = vunpack.c.0.s8 %v206_v50 }
  0x67   :  { %v1426_v18 = vpack.c.bf16 %v1050_v10, %v1046_v7  ;;  %v1458_v19 = vpack.c.bf16 %v1114_v12, %v1110_v11  ;;  %v530_v20 = vunpack.c.1.s8 %v206_v50  ;;  %v590_v21 = vunpack.c.0.s8 %v222_v55  ;;  %v124_v10 = vld.sshfl [vmem:[#allocation1 + $0x30] sm:$0xff pattern:$0x73625140] }
  0x68   :  { %v1490_v22 = vpack.c.bf16 %v1178_v14, %v1174_v13  ;;  %v1242_v23 = vcvt.s32.f32 %v730_v15  ;;  %v1038_v24 = vcvt.s32.f32 %v526_v17  ;;  %v594_v25 = vunpack.c.1.s8 %v222_v55  ;;  %v122_v15 = vld.sshfl [vmem:[#allocation1 + $0x20] sm:$0xff pattern:$0x73625140] }
  0x69   :  { %1608 = vmatpush.bf16.msrb.mxu0 %v1426_v18  ;;  %1621 = vmatpush.bf16.msrb.mxu1 %v1458_v19  ;;  %v1042_v27 = vcvt.s32.f32 %v530_v20  ;;  %v1102_v28 = vcvt.s32.f32 %v590_v21  ;;  %v654_v29 = vunpack.c.0.s8 %v238_v56  ;;  %v658_v31 = vunpack.c.1.s8 %v238_v56  ;;  %v125_v20 = vld.sshfl [vmem:[#allocation1 + $0x38] sm:$0xff pattern:$0x73625140]  ;;  %v151_v21 = vld [vmem:[#allocation5 + $0x48] sm:$0xff] }
  0x6a   :  { %1634 = vmatpush.bf16.msrb.mxu2 %v1490_v22  ;;  %v1522_v32 = vpack.c.bf16 %v1242_v23, %v1238_v16  ;;  %v1106_v33 = vcvt.s32.f32 %v594_v25  ;;  %v718_v34 = vunpack.c.0.s8 %v254_v61  ;;  %v722_v35 = vunpack.c.1.s8 %v254_v61 }
  0x6b   :  { %v1422_v37 = vpack.c.bf16 %v1042_v27, %v1038_v24  ;;  %v1166_v38 = vcvt.s32.f32 %v654_v29  ;;  %v1170_v39 = vcvt.s32.f32 %v658_v31  ;;  %v327_v40 = vunpack.c.2.s8 %v155_v26  ;;  %v183_v27 = vld [vmem:[#allocation5 + $0x148] sm:$0xff] }
  0x6c   :  { %1647 = vmatpush.bf16.msrb.mxu3 %v1522_v32  ;;  %v1454_v42 = vpack.c.bf16 %v1106_v33, %v1102_v28  ;;  %v1230_v43 = vcvt.s32.f32 %v718_v34  ;;  %v1234_v44 = vcvt.s32.f32 %v722_v35  ;;  %v331_v45 = vunpack.c.3.s8 %v155_v26  ;;  %v5269_v33 = vld [vmem:[#allocation5 + $0x1c8] sm:$0xff] }
  0x6d   :  { %1609 = vmatpush.bf16.msrb.mxu0 %v1422_v37  ;;  %v1486_v47 = vpack.c.bf16 %v1170_v39, %v1166_v38  ;;  %v839_v48 = vcvt.s32.f32 %v327_v40  ;;  %v391_v49 = vunpack.c.2.s8 %v171_v36  ;;  %v395_v50 = vunpack.c.3.s8 %v171_v36 }
  0x6e   :  { %1622 = vmatpush.bf16.msrb.mxu1 %v1454_v42  ;;  %v1518_v51 = vpack.c.bf16 %v1234_v44, %v1230_v43  ;;  %v843_v52 = vcvt.s32.f32 %v331_v45  ;;  %v455_v53 = vunpack.c.2.s8 %v187_v41  ;;  %v459_v55 = vunpack.c.3.s8 %v187_v41  ;;  %v123_v42 = vld.sshfl [vmem:[#allocation1 + $0x28] sm:$0xff pattern:$0x73625140] }
  0x6f   :  { %1635 = vmatpush.bf16.msrb.mxu2 %v1486_v47  ;;  %v903_v56 = vcvt.s32.f32 %v391_v49  ;;  %v907_v57 = vcvt.s32.f32 %v395_v50  ;;  %v519_v58 = vunpack.c.2.s8 %v203_v46  ;;  %v523_v59 = vunpack.c.3.s8 %v203_v46 }
  0x70   :  { %1648 = vmatpush.bf16.msrb.mxu3 %v1518_v51  ;;  %v1323_v61 = vpack.c.bf16 %v843_v52, %v839_v48  ;;  %v967_v62 = vcvt.s32.f32 %v455_v53  ;;  %v971_v63 = vcvt.s32.f32 %v459_v55  ;;  %v319_v1 = vunpack.c.0.s8 %v155_v26 }
  0x71   :  { %v1355_v2 = vpack.c.bf16 %v907_v57, %v903_v56  ;;  %v1031_v3 = vcvt.s32.f32 %v519_v58  ;;  %v1035_v4 = vcvt.s32.f32 %v523_v59  ;;  %v323_v5 = vunpack.c.1.s8 %v155_v26  ;;  %v167_v26 = vld [vmem:[#allocation5 + $0xc8] sm:$0xff] }
  0x72   :  { %1654 = vmatpush.bf16.msra.mxu0 %v1323_v61  ;;  %v1387_v6 = vpack.c.bf16 %v971_v63, %v967_v62  ;;  %v831_v7 = vcvt.s32.f32 %v319_v1  ;;  %v383_v8 = vunpack.c.0.s8 %v171_v36  ;;  %v387_v9 = vunpack.c.1.s8 %v171_v36 }
  0x73   :  { %1667 = vmatpush.bf16.msra.mxu1 %v1355_v2  ;;  %v1419_v11 = vpack.c.bf16 %v1035_v4, %v1031_v3  ;;  %v835_v12 = vcvt.s32.f32 %v323_v5  ;;  %v447_v13 = vunpack.c.0.s8 %v187_v41  ;;  %v451_v14 = vunpack.c.1.s8 %v187_v41  ;;  %v147_v2 = vld [vmem:[#allocation5 + $0x28] sm:$0xff] }
  0x74   :  { %1680 = vmatpush.bf16.msra.mxu2 %v1387_v6  ;;  %v895_v16 = vcvt.s32.f32 %v383_v8  ;;  %v899_v17 = vcvt.s32.f32 %v387_v9  ;;  %v511_v18 = vunpack.c.0.s8 %v203_v46  ;;  %v515_v19 = vunpack.c.1.s8 %v203_v46 }
  0x75   :  { %1693 = vmatpush.bf16.msra.mxu3 %v1419_v11  ;;  %v1319_v22 = vpack.c.bf16 %v835_v12, %v831_v7  ;;  %v959_v23 = vcvt.s32.f32 %v447_v13  ;;  %v963_v24 = vcvt.s32.f32 %v451_v14  ;;  %v5265_v25 = vpack.c.bf16 %v124_v10, %v124_v10  ;;  %v163_v7 = vld [vmem:[#allocation5 + $0xa8] sm:$0xff] }
  0x76   :  { %v1351_v28 = vpack.c.bf16 %v899_v17, %v895_v16  ;;  %v1023_v29 = vcvt.s32.f32 %v511_v18  ;;  %v1027_v31 = vcvt.s32.f32 %v515_v19  ;;  %v5267_v32 = vpack.c.bf16 %v122_v15, %v122_v15  ;;  %v179_v16 = vld [vmem:[#allocation5 + $0x128] sm:$0xff] }
  0x77   :  { %1655 = vmatpush.bf16.msra.mxu0 %v1319_v22  ;;  %v1383_v34 = vpack.c.bf16 %v963_v24, %v959_v23  ;;  %1636 = vmatmul.bf16.vlgmr.msrb.gmra.mxu2 %v5265_v25  ;;  %v5272_v35 = vpack.c.bf16 %v125_v20, %v125_v20  ;;  %v311_v36 = vunpack.c.2.s8 %v151_v21  ;;  %v315_v37 = vunpack.c.3.s8 %v151_v21 }
  0x78   :  { %1668 = vmatpush.bf16.msra.mxu1 %v1351_v28  ;;  %v1415_v38 = vpack.c.bf16 %v1027_v31, %v1023_v29  ;;  %1610 = vmatmul.bf16.vlgmr.msrb.gmra.mxu0 %v5267_v32  ;;  %v375_v39 = vunpack.c.2.s8 %v167_v26  ;;  %v379_v40 = vunpack.c.3.s8 %v167_v26  ;;  %v439_v41 = vunpack.c.2.s8 %v183_v27 }
  0x79   :  { %1681 = vmatpush.bf16.msra.mxu2 %v1383_v34  ;;  %1649 = vmatmul.bf16.vlgmr.msrb.gmra.mxu3 %v5272_v35  ;;  %v823_v43 = vcvt.s32.f32 %v311_v36  ;;  %v827_v44 = vcvt.s32.f32 %v315_v37  ;;  %v443_v45 = vunpack.c.3.s8 %v183_v27  ;;  %v503_v46 = vunpack.c.2.s8 %v5269_v33 }
  0x7a   :  { %1694 = vmatpush.bf16.msra.mxu3 %v1415_v38  ;;  %v887_v47 = vcvt.s32.f32 %v375_v39  ;;  %v891_v48 = vcvt.s32.f32 %v379_v40  ;;  %v951_v49 = vcvt.s32.f32 %v439_v41  ;;  %v507_v50 = vunpack.c.3.s8 %v5269_v33 }
  0x7b   :  { %v1315_v51 = vpack.c.bf16 %v827_v44, %v823_v43  ;;  %v955_v52 = vcvt.s32.f32 %v443_v45  ;;  %v1015_v53 = vcvt.s32.f32 %v503_v46  ;;  %v5278_v55 = vpack.c.bf16 %v123_v42, %v123_v42 }
  0x7c   :  { %v1347_v56 = vpack.c.bf16 %v891_v48, %v887_v47  ;;  %v1019_v57 = vcvt.s32.f32 %v507_v50  ;;  %v303_v58 = vunpack.c.0.s8 %v151_v21  ;;  %v307_v59 = vunpack.c.1.s8 %v151_v21  ;;  %v195_v21 = vld [vmem:[#allocation5 + $0x1a8] sm:$0xff] }
  0x7d   :  { %1656 = vmatpush.bf16.msra.mxu0 %v1315_v51  ;;  %v1379_v61 = vpack.c.bf16 %v955_v52, %v951_v49  ;;  %1623 = vmatmul.bf16.vlgmr.msrb.gmra.mxu1 %v5278_v55  ;;  %v367_v62 = vunpack.c.0.s8 %v167_v26  ;;  %v371_v63 = vunpack.c.1.s8 %v167_v26  ;;  %v431_v1 = vunpack.c.0.s8 %v183_v27  ;;  %v143_v50 = vld [vmem:[#allocation5 + $0x8] sm:$0xff] }
  0x7e   :  { %1669 = vmatpush.bf16.msra.mxu1 %v1347_v56  ;;  %v1411_v3 = vpack.c.bf16 %v1019_v57, %v1015_v53  ;;  %v815_v4 = vcvt.s32.f32 %v303_v58  ;;  %v819_v5 = vcvt.s32.f32 %v307_v59  ;;  %v435_v6 = vunpack.c.1.s8 %v183_v27 }
  0x7f   :  { %1682 = vmatpush.bf16.msra.mxu2 %v1379_v61  ;;  %v879_v8 = vcvt.s32.f32 %v367_v62  ;;  %v883_v9 = vcvt.s32.f32 %v371_v63  ;;  %v943_v10 = vcvt.s32.f32 %v431_v1  ;;  %v495_v11 = vunpack.c.0.s8 %v5269_v33  ;;  %v159_v62 = vld [vmem:[#allocation5 + $0x88] sm:$0xff] }
  0x80   :  { %1695 = vmatpush.bf16.msra.mxu3 %v1411_v3  ;;  %v1311_v12 = vpack.c.bf16 %v819_v5, %v815_v4  ;;  %v947_v13 = vcvt.s32.f32 %v435_v6  ;;  %v499_v14 = vunpack.c.1.s8 %v5269_v33  ;;  %v295_v15 = vunpack.c.2.s8 %v147_v2  ;;  %v175_v4 = vld [vmem:[#allocation5 + $0x108] sm:$0xff] }
  0x81   :  { %v1343_v17 = vpack.c.bf16 %v883_v9, %v879_v8  ;;  %v1007_v18 = vcvt.s32.f32 %v495_v11  ;;  %v299_v19 = vunpack.c.3.s8 %v147_v2  ;;  %v359_v20 = vunpack.c.2.s8 %v163_v7  ;;  %v191_v9 = vld [vmem:[#allocation5 + $0x188] sm:$0xff] }
  0x82   :  { %1657 = vmatpush.bf16.msra.mxu0 %v1311_v12  ;;  %v1375_v22 = vpack.c.bf16 %v947_v13, %v943_v10  ;;  %v1011_v23 = vcvt.s32.f32 %v499_v14  ;;  %v807_v24 = vcvt.s32.f32 %v295_v15  ;;  %v363_v26 = vunpack.c.3.s8 %v163_v7 }
  0x83   :  { %1670 = vmatpush.bf16.msra.mxu1 %v1343_v17  ;;  %v811_v27 = vcvt.s32.f32 %v299_v19  ;;  %v871_v28 = vcvt.s32.f32 %v359_v20  ;;  %v423_v29 = vunpack.c.2.s8 %v179_v16  ;;  %v427_v31 = vunpack.c.3.s8 %v179_v16 }
  0x84   :  { %1683 = vmatpush.bf16.msra.mxu2 %v1375_v22  ;;  %v1407_v34 = vpack.c.bf16 %v1011_v23, %v1007_v18  ;;  %v875_v33 = vcvt.s32.f32 %v363_v26  ;;  %v487_v36 = vunpack.c.2.s8 %v195_v21  ;;  %v491_v37 = vunpack.c.3.s8 %v195_v21 }
  0x85   :  { %v1307_v38 = vpack.c.bf16 %v811_v27, %v807_v24  ;;  %v935_v39 = vcvt.s32.f32 %v423_v29  ;;  %v939_v40 = vcvt.s32.f32 %v427_v31  ;;  %v287_v41 = vunpack.c.0.s8 %v147_v2 }
  0x86   :  { %1696 = vmatpush.bf16.msra.mxu3 %v1407_v34  ;;  %v1339_v42 = vpack.c.bf16 %v875_v33, %v871_v28  ;;  %v999_v43 = vcvt.s32.f32 %v487_v36  ;;  %v1003_v44 = vcvt.s32.f32 %v491_v37  ;;  %v291_v45 = vunpack.c.1.s8 %v147_v2 }
  0x87   :  { %1658 = vmatpush.bf16.msra.mxu0 %v1307_v38  ;;  %v1371_v46 = vpack.c.bf16 %v939_v40, %v935_v39  ;;  %v799_v47 = vcvt.s32.f32 %v287_v41  ;;  %v351_v48 = vunpack.c.0.s8 %v163_v7  ;;  %v355_v49 = vunpack.c.1.s8 %v163_v7  ;;  %v219_v38 = vld [vmem:[#allocation5 + $0x268] sm:$0xff] }
  0x88   :  { %1671 = vmatpush.bf16.msra.mxu1 %v1339_v42  ;;  %v1403_v51 = vpack.c.bf16 %v1003_v44, %v999_v43  ;;  %v803_v52 = vcvt.s32.f32 %v291_v45  ;;  %v415_v53 = vunpack.c.0.s8 %v179_v16  ;;  %v419_v56 = vunpack.c.1.s8 %v179_v16 }
  0x89   :  { %1684 = vmatpush.bf16.msra.mxu2 %v1371_v46  ;;  %v863_v57 = vcvt.s32.f32 %v351_v48  ;;  %v867_v58 = vcvt.s32.f32 %v355_v49  ;;  %v479_v59 = vunpack.c.0.s8 %v195_v21  ;;  %v483_v61 = vunpack.c.1.s8 %v195_v21 }
  0x8a   :  { %1697 = vmatpush.bf16.msra.mxu3 %v1403_v51  ;;  %v1303_v63 = vpack.c.bf16 %v803_v52, %v799_v47  ;;  %v927_v1 = vcvt.s32.f32 %v415_v53  ;;  %v931_v2 = vcvt.s32.f32 %v419_v56  ;;  %v279_v3 = vunpack.c.2.s8 %v143_v50  ;;  %v235_v47 = vld [vmem:[#allocation5 + $0x2e8] sm:$0xff] }
  0x8b   :  { %v1335_v5 = vpack.c.bf16 %v867_v58, %v863_v57  ;;  %v991_v6 = vcvt.s32.f32 %v479_v59  ;;  %v995_v7 = vcvt.s32.f32 %v483_v61  ;;  %v283_v8 = vunpack.c.3.s8 %v143_v50  ;;  %v251_v52 = vld [vmem:[#allocation5 + $0x368] sm:$0xff] }
  0x8c   :  { %1659 = vmatpush.bf16.msra.mxu0 %v1303_v63  ;;  %v1367_v10 = vpack.c.bf16 %v931_v2, %v927_v1  ;;  %v791_v11 = vcvt.s32.f32 %v279_v3  ;;  %v343_v12 = vunpack.c.2.s8 %v159_v62  ;;  %v347_v13 = vunpack.c.3.s8 %v159_v62  ;;  %v267_v59 = vld [vmem:[#allocation5 + $0x3e8] sm:$0xff] }
  0x8d   :  { %1672 = vmatpush.bf16.msra.mxu1 %v1335_v5  ;;  %v1399_v14 = vpack.c.bf16 %v995_v7, %v991_v6  ;;  %v795_v15 = vcvt.s32.f32 %v283_v8  ;;  %v407_v16 = vunpack.c.2.s8 %v175_v4  ;;  %v411_v17 = vunpack.c.3.s8 %v175_v4 }
  0x8e   :  { %1685 = vmatpush.bf16.msra.mxu2 %v1367_v10  ;;  %v855_v18 = vcvt.s32.f32 %v343_v12  ;;  %v859_v19 = vcvt.s32.f32 %v347_v13  ;;  %v471_v20 = vunpack.c.2.s8 %v191_v9  ;;  %v475_v21 = vunpack.c.3.s8 %v191_v9 }
  0x8f   :  { %1698 = vmatpush.bf16.msra.mxu3 %v1399_v14  ;;  %v1299_v22 = vpack.c.bf16 %v795_v15, %v791_v11  ;;  %v919_v23 = vcvt.s32.f32 %v407_v16  ;;  %v923_v24 = vcvt.s32.f32 %v411_v17  ;;  %v271_v26 = vunpack.c.0.s8 %v143_v50 }
  0x90   :  { %v1331_v27 = vpack.c.bf16 %v859_v19, %v855_v18  ;;  %v983_v28 = vcvt.s32.f32 %v471_v20  ;;  %v987_v29 = vcvt.s32.f32 %v475_v21  ;;  %v275_v31 = vunpack.c.1.s8 %v143_v50 }
  0x91   :  { %1660 = vmatpush.bf16.msra.mxu0 %v1299_v22  ;;  %v1363_v34 = vpack.c.bf16 %v923_v24, %v919_v23  ;;  %v783_v33 = vcvt.s32.f32 %v271_v26  ;;  %v335_v36 = vunpack.c.0.s8 %v159_v62  ;;  %v339_v37 = vunpack.c.1.s8 %v159_v62  ;;  %v215_v22 = vld [vmem:[#allocation5 + $0x248] sm:$0xff] }
  0x92   :  { %1673 = vmatpush.bf16.msra.mxu1 %v1331_v27  ;;  %v1395_v39 = vpack.c.bf16 %v987_v29, %v983_v28  ;;  %v787_v40 = vcvt.s32.f32 %v275_v31  ;;  %v399_v41 = vunpack.c.0.s8 %v175_v4  ;;  %v403_v42 = vunpack.c.1.s8 %v175_v4 }
  0x93   :  { %1686 = vmatpush.bf16.msra.mxu2 %v1363_v34  ;;  %v847_v43 = vcvt.s32.f32 %v335_v36  ;;  %v851_v44 = vcvt.s32.f32 %v339_v37  ;;  %v463_v45 = vunpack.c.0.s8 %v191_v9  ;;  %v467_v46 = vunpack.c.1.s8 %v191_v9 }
  0x94   :  { %1699 = vmatpush.bf16.msra.mxu3 %v1395_v39  ;;  %v1295_v48 = vpack.c.bf16 %v787_v40, %v783_v33  ;;  %v911_v49 = vcvt.s32.f32 %v399_v41  ;;  %v915_v50 = vcvt.s32.f32 %v403_v42  ;;  %v583_v51 = vunpack.c.2.s8 %v219_v38  ;;  %v231_v33 = vld [vmem:[#allocation5 + $0x2c8] sm:$0xff] }
  0x95   :  { %v1327_v53 = vpack.c.bf16 %v851_v44, %v847_v43  ;;  %v975_v56 = vcvt.s32.f32 %v463_v45  ;;  %v979_v57 = vcvt.s32.f32 %v467_v46  ;;  %v587_v58 = vunpack.c.3.s8 %v219_v38  ;;  %v247_v40 = vld [vmem:[#allocation5 + $0x348] sm:$0xff] }
  0x96   :  { %1661 = vmatpush.bf16.msra.mxu0 %v1295_v48  ;;  %v1359_v61 = vpack.c.bf16 %v915_v50, %v911_v49  ;;  %v1095_v62 = vcvt.s32.f32 %v583_v51  ;;  %v647_v63 = vunpack.c.2.s8 %v235_v47  ;;  %v651_v1 = vunpack.c.3.s8 %v235_v47  ;;  %v263_v45 = vld [vmem:[#allocation5 + $0x3c8] sm:$0xff] }
  0x97   :  { %1674 = vmatpush.bf16.msra.mxu1 %v1327_v53  ;;  %v1391_v2 = vpack.c.bf16 %v979_v57, %v975_v56  ;;  %v1099_v3 = vcvt.s32.f32 %v587_v58  ;;  %v711_v4 = vunpack.c.2.s8 %v251_v52  ;;  %v715_v5 = vunpack.c.3.s8 %v251_v52 }
  0x98   :  { %1687 = vmatpush.bf16.msra.mxu2 %v1359_v61  ;;  %v1159_v6 = vcvt.s32.f32 %v647_v63  ;;  %v1163_v7 = vcvt.s32.f32 %v651_v1  ;;  %v775_v8 = vunpack.c.2.s8 %v267_v59  ;;  %v779_v9 = vunpack.c.3.s8 %v267_v59 }
  0x99   :  { %1700 = vmatpush.bf16.msra.mxu3 %v1391_v2  ;;  %v1451_v10 = vpack.c.bf16 %v1099_v3, %v1095_v62  ;;  %v1223_v11 = vcvt.s32.f32 %v711_v4  ;;  %v1227_v12 = vcvt.s32.f32 %v715_v5  ;;  %v575_v13 = vunpack.c.0.s8 %v219_v38  ;;  %1662 = vmatmul.bf16.vlgmr.msra.gmra.mxu0 %v5256_v54 }
  0x9a   :  { %v1483_v14 = vpack.c.bf16 %v1163_v7, %v1159_v6  ;;  %v1287_v15 = vcvt.s32.f32 %v775_v8  ;;  %v1291_v16 = vcvt.s32.f32 %v779_v9  ;;  %v579_v17 = vunpack.c.1.s8 %v219_v38  ;;  %1675 = vmatmul.bf16.vlgmr.msra.gmra.mxu1 %v5261_v0 }
  0x9b   :  { %1706 = vmatpush.bf16.msrb.mxu0 %v1451_v10  ;;  %v1515_v18 = vpack.c.bf16 %v1227_v12, %v1223_v11  ;;  %v1087_v19 = vcvt.s32.f32 %v575_v13  ;;  %v639_v20 = vunpack.c.0.s8 %v235_v47  ;;  %v643_v21 = vunpack.c.1.s8 %v235_v47  ;;  %1688 = vmatmul.bf16.vlgmr.msra.gmra.mxu2 %v5253_v30  ;;  %v211_v10 = vld [vmem:[#allocation5 + $0x228] sm:$0xff] }
  0x9c   :  { %1719 = vmatpush.bf16.msrb.mxu1 %v1483_v14  ;;  %v1547_v23 = vpack.c.bf16 %v1291_v16, %v1287_v15  ;;  %v1091_v24 = vcvt.s32.f32 %v579_v17  ;;  %v703_v26 = vunpack.c.0.s8 %v251_v52  ;;  %v707_v27 = vunpack.c.1.s8 %v251_v52  ;;  %1701 = vmatmul.bf16.vlgmr.msra.gmra.mxu3 %v5258_v60 }
  0x9d   :  { %1732 = vmatpush.bf16.msrb.mxu2 %v1515_v18  ;;  %v1151_v28 = vcvt.s32.f32 %v639_v20  ;;  %v1155_v29 = vcvt.s32.f32 %v643_v21  ;;  %v767_v31 = vunpack.c.0.s8 %v267_v59  ;;  %v771_v34 = vunpack.c.1.s8 %v267_v59 }
  0x9e   :  { %1745 = vmatpush.bf16.msrb.mxu3 %v1547_v23  ;;  %v1447_v36 = vpack.c.bf16 %v1091_v24, %v1087_v19  ;;  %v1215_v37 = vcvt.s32.f32 %v703_v26  ;;  %v1219_v38 = vcvt.s32.f32 %v707_v27  ;;  %v567_v39 = vunpack.c.2.s8 %v215_v22  ;;  %v227_v19 = vld [vmem:[#allocation5 + $0x2a8] sm:$0xff] }
  0x9f   :  { %v1479_v41 = vpack.c.bf16 %v1155_v29, %v1151_v28  ;;  %v1279_v42 = vcvt.s32.f32 %v767_v31  ;;  %v1283_v43 = vcvt.s32.f32 %v771_v34  ;;  %v571_v44 = vunpack.c.3.s8 %v215_v22  ;;  %v243_v24 = vld [vmem:[#allocation5 + $0x328] sm:$0xff] }
  0xa0   :  { %1707 = vmatpush.bf16.msrb.mxu0 %v1447_v36  ;;  %v1511_v46 = vpack.c.bf16 %v1219_v38, %v1215_v37  ;;  %v1079_v47 = vcvt.s32.f32 %v567_v39  ;;  %v631_v48 = vunpack.c.2.s8 %v231_v33  ;;  %v635_v49 = vunpack.c.3.s8 %v231_v33  ;;  %v259_v31 = vld [vmem:[#allocation5 + $0x3a8] sm:$0xff] }
  0xa1   :  { %1720 = vmatpush.bf16.msrb.mxu1 %v1479_v41  ;;  %v1543_v50 = vpack.c.bf16 %v1283_v43, %v1279_v42  ;;  %v1083_v51 = vcvt.s32.f32 %v571_v44  ;;  %v695_v52 = vunpack.c.2.s8 %v247_v40  ;;  %v699_v53 = vunpack.c.3.s8 %v247_v40 }
  0xa2   :  { %1733 = vmatpush.bf16.msrb.mxu2 %v1511_v46  ;;  %v1143_v56 = vcvt.s32.f32 %v631_v48  ;;  %v1147_v57 = vcvt.s32.f32 %v635_v49  ;;  %v759_v58 = vunpack.c.2.s8 %v263_v45  ;;  %v763_v59 = vunpack.c.3.s8 %v263_v45 }
  0xa3   :  { %1746 = vmatpush.bf16.msrb.mxu3 %v1543_v50  ;;  %v1443_v61 = vpack.c.bf16 %v1083_v51, %v1079_v47  ;;  %v1207_v62 = vcvt.s32.f32 %v695_v52  ;;  %v1211_v63 = vcvt.s32.f32 %v699_v53  ;;  %v559_v1 = vunpack.c.0.s8 %v215_v22 }
  0xa4   :  { %v1475_v2 = vpack.c.bf16 %v1147_v57, %v1143_v56  ;;  %v1271_v3 = vcvt.s32.f32 %v759_v58  ;;  %v1275_v4 = vcvt.s32.f32 %v763_v59  ;;  %v563_v5 = vunpack.c.1.s8 %v215_v22 }
  0xa5   :  { %1708 = vmatpush.bf16.msrb.mxu0 %v1443_v61  ;;  %v1507_v6 = vpack.c.bf16 %v1211_v63, %v1207_v62  ;;  %v1071_v7 = vcvt.s32.f32 %v559_v1  ;;  %v623_v8 = vunpack.c.0.s8 %v231_v33  ;;  %v627_v9 = vunpack.c.1.s8 %v231_v33  ;;  %v207_v61 = vld [vmem:[#allocation5 + $0x208] sm:$0xff] }
  0xa6   :  { %1721 = vmatpush.bf16.msrb.mxu1 %v1475_v2  ;;  %v1539_v11 = vpack.c.bf16 %v1275_v4, %v1271_v3  ;;  %v1075_v12 = vcvt.s32.f32 %v563_v5  ;;  %v687_v13 = vunpack.c.0.s8 %v247_v40  ;;  %v691_v14 = vunpack.c.1.s8 %v247_v40 }
  0xa7   :  { %1734 = vmatpush.bf16.msrb.mxu2 %v1507_v6  ;;  %v1135_v15 = vcvt.s32.f32 %v623_v8  ;;  %v1139_v16 = vcvt.s32.f32 %v627_v9  ;;  %v751_v17 = vunpack.c.0.s8 %v263_v45  ;;  %v755_v18 = vunpack.c.1.s8 %v263_v45 }
  0xa8   :  { %1747 = vmatpush.bf16.msrb.mxu3 %v1539_v11  ;;  %v1439_v20 = vpack.c.bf16 %v1075_v12, %v1071_v7  ;;  %v1199_v21 = vcvt.s32.f32 %v687_v13  ;;  %v1203_v22 = vcvt.s32.f32 %v691_v14  ;;  %v551_v23 = vunpack.c.2.s8 %v211_v10  ;;  %v223_v7 = vld [vmem:[#allocation5 + $0x288] sm:$0xff] }
  0xa9   :  { %v1471_v26 = vpack.c.bf16 %v1139_v16, %v1135_v15  ;;  %v1263_v27 = vcvt.s32.f32 %v751_v17  ;;  %v1267_v28 = vcvt.s32.f32 %v755_v18  ;;  %v555_v29 = vunpack.c.3.s8 %v211_v10  ;;  %v239_v12 = vld [vmem:[#allocation5 + $0x308] sm:$0xff] }
  0xaa   :  { %1709 = vmatpush.bf16.msrb.mxu0 %v1439_v20  ;;  %v1503_v34 = vpack.c.bf16 %v1203_v22, %v1199_v21  ;;  %v1063_v33 = vcvt.s32.f32 %v551_v23  ;;  %v615_v36 = vunpack.c.2.s8 %v227_v19  ;;  %v619_v37 = vunpack.c.3.s8 %v227_v19  ;;  %v255_v17 = vld [vmem:[#allocation5 + $0x388] sm:$0xff] }
  0xab   :  { %1722 = vmatpush.bf16.msrb.mxu1 %v1471_v26  ;;  %v1535_v38 = vpack.c.bf16 %v1267_v28, %v1263_v27  ;;  %v1067_v39 = vcvt.s32.f32 %v555_v29  ;;  %v679_v40 = vunpack.c.2.s8 %v243_v24  ;;  %v683_v41 = vunpack.c.3.s8 %v243_v24 }
  0xac   :  { %1735 = vmatpush.bf16.msrb.mxu2 %v1503_v34  ;;  %v1127_v42 = vcvt.s32.f32 %v615_v36  ;;  %v1131_v43 = vcvt.s32.f32 %v619_v37  ;;  %v743_v44 = vunpack.c.2.s8 %v259_v31  ;;  %v747_v45 = vunpack.c.3.s8 %v259_v31 }
  0xad   :  { %1748 = vmatpush.bf16.msrb.mxu3 %v1535_v38  ;;  %v1435_v46 = vpack.c.bf16 %v1067_v39, %v1063_v33  ;;  %v1191_v47 = vcvt.s32.f32 %v679_v40  ;;  %v1195_v48 = vcvt.s32.f32 %v683_v41  ;;  %v543_v49 = vunpack.c.0.s8 %v211_v10 }
  0xae   :  { %v1467_v50 = vpack.c.bf16 %v1131_v43, %v1127_v42  ;;  %v1255_v51 = vcvt.s32.f32 %v743_v44  ;;  %v1259_v52 = vcvt.s32.f32 %v747_v45  ;;  %v547_v53 = vunpack.c.1.s8 %v211_v10 }
  0xaf   :  { %1710 = vmatpush.bf16.msrb.mxu0 %v1435_v46  ;;  %v1499_v56 = vpack.c.bf16 %v1195_v48, %v1191_v47  ;;  %v1055_v57 = vcvt.s32.f32 %v543_v49  ;;  %v607_v58 = vunpack.c.0.s8 %v227_v19  ;;  %v611_v59 = vunpack.c.1.s8 %v227_v19  ;;  %v156_v46 = vld [vmem:[#allocation5 + $0x70] sm:$0xff] }
  0xb0   :  { %1723 = vmatpush.bf16.msrb.mxu1 %v1467_v50  ;;  %v1531_v62 = vpack.c.bf16 %v1259_v52, %v1255_v51  ;;  %v1059_v63 = vcvt.s32.f32 %v547_v53  ;;  %v671_v1 = vunpack.c.0.s8 %v243_v24  ;;  %v675_v2 = vunpack.c.1.s8 %v243_v24 }
  0xb1   :  { %1736 = vmatpush.bf16.msrb.mxu2 %v1499_v56  ;;  %v1119_v3 = vcvt.s32.f32 %v607_v58  ;;  %v1123_v4 = vcvt.s32.f32 %v611_v59  ;;  %v735_v5 = vunpack.c.0.s8 %v259_v31  ;;  %v739_v6 = vunpack.c.1.s8 %v259_v31 }
  0xb2   :  { %1749 = vmatpush.bf16.msrb.mxu3 %v1531_v62  ;;  %v1431_v8 = vpack.c.bf16 %v1059_v63, %v1055_v57  ;;  %v1183_v9 = vcvt.s32.f32 %v671_v1  ;;  %v1187_v10 = vcvt.s32.f32 %v675_v2  ;;  %v535_v11 = vunpack.c.2.s8 %v207_v61  ;;  %v172_v57 = vld [vmem:[#allocation5 + $0xf0] sm:$0xff] }
  0xb3   :  { %v1463_v13 = vpack.c.bf16 %v1123_v4, %v1119_v3  ;;  %v1247_v14 = vcvt.s32.f32 %v735_v5  ;;  %v1251_v15 = vcvt.s32.f32 %v739_v6  ;;  %v539_v16 = vunpack.c.3.s8 %v207_v61  ;;  %v188_v63 = vld [vmem:[#allocation5 + $0x170] sm:$0xff] }
  0xb4   :  { %1711 = vmatpush.bf16.msrb.mxu0 %v1431_v8  ;;  %v1495_v18 = vpack.c.bf16 %v1187_v10, %v1183_v9  ;;  %v1047_v19 = vcvt.s32.f32 %v535_v11  ;;  %v599_v20 = vunpack.c.2.s8 %v223_v7  ;;  %v603_v21 = vunpack.c.3.s8 %v223_v7  ;;  %v204_v5 = vld [vmem:[#allocation5 + $0x1f0] sm:$0xff] }
  0xb5   :  { %1724 = vmatpush.bf16.msrb.mxu1 %v1463_v13  ;;  %v1527_v22 = vpack.c.bf16 %v1251_v15, %v1247_v14  ;;  %v1051_v23 = vcvt.s32.f32 %v539_v16  ;;  %v663_v24 = vunpack.c.2.s8 %v239_v12  ;;  %v667_v26 = vunpack.c.3.s8 %v239_v12 }
  0xb6   :  { %1737 = vmatpush.bf16.msrb.mxu2 %v1495_v18  ;;  %v1111_v27 = vcvt.s32.f32 %v599_v20  ;;  %v1115_v28 = vcvt.s32.f32 %v603_v21  ;;  %v727_v29 = vunpack.c.2.s8 %v255_v17  ;;  %v731_v31 = vunpack.c.3.s8 %v255_v17 }
  0xb7   :  { %1750 = vmatpush.bf16.msrb.mxu3 %v1527_v22  ;;  %v1427_v34 = vpack.c.bf16 %v1051_v23, %v1047_v19  ;;  %v1175_v33 = vcvt.s32.f32 %v663_v24  ;;  %v1179_v36 = vcvt.s32.f32 %v667_v26  ;;  %v527_v37 = vunpack.c.0.s8 %v207_v61 }
  0xb8   :  { %v1459_v38 = vpack.c.bf16 %v1115_v28, %v1111_v27  ;;  %v1239_v39 = vcvt.s32.f32 %v727_v29  ;;  %v1243_v40 = vcvt.s32.f32 %v731_v31  ;;  %v531_v41 = vunpack.c.1.s8 %v207_v61 }
  0xb9   :  { %1712 = vmatpush.bf16.msrb.mxu0 %v1427_v34  ;;  %v1491_v42 = vpack.c.bf16 %v1179_v36, %v1175_v33  ;;  %v1039_v43 = vcvt.s32.f32 %v527_v37  ;;  %v591_v44 = vunpack.c.0.s8 %v223_v7  ;;  %v595_v45 = vunpack.c.1.s8 %v223_v7  ;;  %v152_v34 = vld [vmem:[#allocation5 + $0x50] sm:$0xff] }
  0xba   :  { %1725 = vmatpush.bf16.msrb.mxu1 %v1459_v38  ;;  %v1523_v47 = vpack.c.bf16 %v1243_v40, %v1239_v39  ;;  %v1043_v48 = vcvt.s32.f32 %v531_v41  ;;  %v655_v49 = vunpack.c.0.s8 %v239_v12  ;;  %v659_v50 = vunpack.c.1.s8 %v239_v12 }
  0xbb   :  { %1738 = vmatpush.bf16.msrb.mxu2 %v1491_v42  ;;  %v1103_v51 = vcvt.s32.f32 %v591_v44  ;;  %v1107_v52 = vcvt.s32.f32 %v595_v45  ;;  %v719_v53 = vunpack.c.0.s8 %v255_v17  ;;  %v723_v56 = vunpack.c.1.s8 %v255_v17 }
  0xbc   :  { %1751 = vmatpush.bf16.msrb.mxu3 %v1523_v47  ;;  %v1423_v58 = vpack.c.bf16 %v1043_v48, %v1039_v43  ;;  %v1167_v59 = vcvt.s32.f32 %v655_v49  ;;  %v1171_v61 = vcvt.s32.f32 %v659_v50  ;;  %v328_v62 = vunpack.c.2.s8 %v156_v46  ;;  %v168_v43 = vld [vmem:[#allocation5 + $0xd0] sm:$0xff] }
  0xbd   :  { %v1455_v1 = vpack.c.bf16 %v1107_v52, %v1103_v51  ;;  %v1231_v2 = vcvt.s32.f32 %v719_v53  ;;  %v1235_v3 = vcvt.s32.f32 %v723_v56  ;;  %v332_v4 = vunpack.c.3.s8 %v156_v46  ;;  %v184_v48 = vld [vmem:[#allocation5 + $0x150] sm:$0xff] }
  0xbe   :  { %1713 = vmatpush.bf16.msrb.mxu0 %v1423_v58  ;;  %v1487_v6 = vpack.c.bf16 %v1171_v61, %v1167_v59  ;;  %v840_v7 = vcvt.s32.f32 %v328_v62  ;;  %v392_v8 = vunpack.c.2.s8 %v172_v57  ;;  %v396_v9 = vunpack.c.3.s8 %v172_v57  ;;  %v200_v53 = vld [vmem:[#allocation5 + $0x1d0] sm:$0xff] }
  0xbf   :  { %1726 = vmatpush.bf16.msrb.mxu1 %v1455_v1  ;;  %v1519_v10 = vpack.c.bf16 %v1235_v3, %v1231_v2  ;;  %v844_v11 = vcvt.s32.f32 %v332_v4  ;;  %v456_v12 = vunpack.c.2.s8 %v188_v63  ;;  %v460_v13 = vunpack.c.3.s8 %v188_v63 }
  0xc0   :  { %1739 = vmatpush.bf16.msrb.mxu2 %v1487_v6  ;;  %v904_v14 = vcvt.s32.f32 %v392_v8  ;;  %v908_v15 = vcvt.s32.f32 %v396_v9  ;;  %v520_v16 = vunpack.c.2.s8 %v204_v5  ;;  %v524_v17 = vunpack.c.3.s8 %v204_v5 }
  0xc1   :  { %1752 = vmatpush.bf16.msrb.mxu3 %v1519_v10  ;;  %v1324_v18 = vpack.c.bf16 %v844_v11, %v840_v7  ;;  %v968_v19 = vcvt.s32.f32 %v456_v12  ;;  %v972_v20 = vcvt.s32.f32 %v460_v13  ;;  %v320_v21 = vunpack.c.0.s8 %v156_v46  ;;  %1714 = vmatmul.bf16.vlgmr.msrb.gmra.mxu0 %v5267_v32 }
  0xc2   :  { %v1356_v22 = vpack.c.bf16 %v908_v15, %v904_v14  ;;  %v1032_v23 = vcvt.s32.f32 %v520_v16  ;;  %v1036_v24 = vcvt.s32.f32 %v524_v17  ;;  %v324_v26 = vunpack.c.1.s8 %v156_v46  ;;  %1727 = vmatmul.bf16.vlgmr.msrb.gmra.mxu1 %v5278_v55 }
  0xc3   :  { %1758 = vmatpush.bf16.msra.mxu0 %v1324_v18  ;;  %v1388_v27 = vpack.c.bf16 %v972_v20, %v968_v19  ;;  %1740 = vmatmul.bf16.vlgmr.msrb.gmra.mxu2 %v5265_v25  ;;  %v832_v28 = vcvt.s32.f32 %v320_v21  ;;  %v384_v29 = vunpack.c.0.s8 %v172_v57  ;;  %v388_v31 = vunpack.c.1.s8 %v172_v57  ;;  %v148_v18 = vld [vmem:[#allocation5 + $0x30] sm:$0xff] }
  0xc4   :  { %1771 = vmatpush.bf16.msra.mxu1 %v1356_v22  ;;  %v1420_v33 = vpack.c.bf16 %v1036_v24, %v1032_v23  ;;  %v836_v36 = vcvt.s32.f32 %v324_v26  ;;  %v448_v37 = vunpack.c.0.s8 %v188_v63  ;;  %v452_v38 = vunpack.c.1.s8 %v188_v63  ;;  %1753 = vmatmul.bf16.vlgmr.msrb.gmra.mxu3 %v5272_v35 }
  0xc5   :  { %1784 = vmatpush.bf16.msra.mxu2 %v1388_v27  ;;  %v896_v39 = vcvt.s32.f32 %v384_v29  ;;  %v900_v40 = vcvt.s32.f32 %v388_v31  ;;  %v512_v41 = vunpack.c.0.s8 %v204_v5  ;;  %v516_v42 = vunpack.c.1.s8 %v204_v5 }
  0xc6   :  { %1797 = vmatpush.bf16.msra.mxu3 %v1420_v33  ;;  %v1320_v44 = vpack.c.bf16 %v836_v36, %v832_v28  ;;  %v960_v45 = vcvt.s32.f32 %v448_v37  ;;  %v964_v46 = vcvt.s32.f32 %v452_v38  ;;  %v312_v47 = vunpack.c.2.s8 %v152_v34  ;;  %v164_v28 = vld [vmem:[#allocation5 + $0xb0] sm:$0xff] }
  0xc7   :  { %v1352_v49 = vpack.c.bf16 %v900_v40, %v896_v39  ;;  %v1024_v50 = vcvt.s32.f32 %v512_v41  ;;  %v1028_v51 = vcvt.s32.f32 %v516_v42  ;;  %v316_v52 = vunpack.c.3.s8 %v152_v34  ;;  %v180_v36 = vld [vmem:[#allocation5 + $0x130] sm:$0xff] }
  0xc8   :  { %1759 = vmatpush.bf16.msra.mxu0 %v1320_v44  ;;  %v1384_v56 = vpack.c.bf16 %v964_v46, %v960_v45  ;;  %v824_v57 = vcvt.s32.f32 %v312_v47  ;;  %v376_v58 = vunpack.c.2.s8 %v168_v43  ;;  %v380_v59 = vunpack.c.3.s8 %v168_v43  ;;  %v196_v41 = vld [vmem:[#allocation5 + $0x1b0] sm:$0xff] }
  0xc9   :  { %1772 = vmatpush.bf16.msra.mxu1 %v1352_v49  ;;  %v1416_v61 = vpack.c.bf16 %v1028_v51, %v1024_v50  ;;  %v828_v62 = vcvt.s32.f32 %v316_v52  ;;  %v440_v63 = vunpack.c.2.s8 %v184_v48  ;;  %v444_v1 = vunpack.c.3.s8 %v184_v48 }
  0xca   :  { %1785 = vmatpush.bf16.msra.mxu2 %v1384_v56  ;;  %v888_v2 = vcvt.s32.f32 %v376_v58  ;;  %v892_v3 = vcvt.s32.f32 %v380_v59  ;;  %v504_v4 = vunpack.c.2.s8 %v200_v53  ;;  %v508_v5 = vunpack.c.3.s8 %v200_v53 }
  0xcb   :  { %1798 = vmatpush.bf16.msra.mxu3 %v1416_v61  ;;  %v1316_v6 = vpack.c.bf16 %v828_v62, %v824_v57  ;;  %v952_v7 = vcvt.s32.f32 %v440_v63  ;;  %v956_v8 = vcvt.s32.f32 %v444_v1  ;;  %v304_v9 = vunpack.c.0.s8 %v152_v34 }
  0xcc   :  { %v1348_v10 = vpack.c.bf16 %v892_v3, %v888_v2  ;;  %v1016_v11 = vcvt.s32.f32 %v504_v4  ;;  %v1020_v12 = vcvt.s32.f32 %v508_v5  ;;  %v308_v13 = vunpack.c.1.s8 %v152_v34 }
  0xcd   :  { %1760 = vmatpush.bf16.msra.mxu0 %v1316_v6  ;;  %v1380_v14 = vpack.c.bf16 %v956_v8, %v952_v7  ;;  %v816_v15 = vcvt.s32.f32 %v304_v9  ;;  %v368_v16 = vunpack.c.0.s8 %v168_v43  ;;  %v372_v17 = vunpack.c.1.s8 %v168_v43  ;;  %v144_v6 = vld [vmem:[#allocation5 + $0x10] sm:$0xff] }
  0xce   :  { %1773 = vmatpush.bf16.msra.mxu1 %v1348_v10  ;;  %v1412_v19 = vpack.c.bf16 %v1020_v12, %v1016_v11  ;;  %v820_v20 = vcvt.s32.f32 %v308_v13  ;;  %v432_v21 = vunpack.c.0.s8 %v184_v48  ;;  %v436_v22 = vunpack.c.1.s8 %v184_v48 }
  0xcf   :  { %1786 = vmatpush.bf16.msra.mxu2 %v1380_v14  ;;  %v880_v23 = vcvt.s32.f32 %v368_v16  ;;  %v884_v24 = vcvt.s32.f32 %v372_v17  ;;  %v496_v26 = vunpack.c.0.s8 %v200_v53  ;;  %v500_v27 = vunpack.c.1.s8 %v200_v53 }
  0xd0   :  { %1799 = vmatpush.bf16.msra.mxu3 %v1412_v19  ;;  %v1312_v29 = vpack.c.bf16 %v820_v20, %v816_v15  ;;  %v944_v31 = vcvt.s32.f32 %v432_v21  ;;  %v948_v34 = vcvt.s32.f32 %v436_v22  ;;  %v296_v33 = vunpack.c.2.s8 %v148_v18  ;;  %v160_v15 = vld [vmem:[#allocation5 + $0x90] sm:$0xff] }
  0xd1   :  { %v1344_v37 = vpack.c.bf16 %v884_v24, %v880_v23  ;;  %v1008_v38 = vcvt.s32.f32 %v496_v26  ;;  %v1012_v39 = vcvt.s32.f32 %v500_v27  ;;  %v300_v40 = vunpack.c.3.s8 %v148_v18  ;;  %v176_v20 = vld [vmem:[#allocation5 + $0x110] sm:$0xff] }
  0xd2   :  { %1761 = vmatpush.bf16.msra.mxu0 %v1312_v29  ;;  %v1376_v42 = vpack.c.bf16 %v948_v34, %v944_v31  ;;  %v808_v43 = vcvt.s32.f32 %v296_v33  ;;  %v360_v44 = vunpack.c.2.s8 %v164_v28  ;;  %v364_v45 = vunpack.c.3.s8 %v164_v28  ;;  %v192_v26 = vld [vmem:[#allocation5 + $0x190] sm:$0xff] }
  0xd3   :  { %1774 = vmatpush.bf16.msra.mxu1 %v1344_v37  ;;  %v1408_v46 = vpack.c.bf16 %v1012_v39, %v1008_v38  ;;  %v812_v47 = vcvt.s32.f32 %v300_v40  ;;  %v424_v48 = vunpack.c.2.s8 %v180_v36  ;;  %v428_v49 = vunpack.c.3.s8 %v180_v36 }
  0xd4   :  { %1787 = vmatpush.bf16.msra.mxu2 %v1376_v42  ;;  %v872_v50 = vcvt.s32.f32 %v360_v44  ;;  %v876_v51 = vcvt.s32.f32 %v364_v45  ;;  %v488_v52 = vunpack.c.2.s8 %v196_v41  ;;  %v492_v53 = vunpack.c.3.s8 %v196_v41 }
  0xd5   :  { %1800 = vmatpush.bf16.msra.mxu3 %v1408_v46  ;;  %v1308_v56 = vpack.c.bf16 %v812_v47, %v808_v43  ;;  %v936_v57 = vcvt.s32.f32 %v424_v48  ;;  %v940_v58 = vcvt.s32.f32 %v428_v49  ;;  %v288_v59 = vunpack.c.0.s8 %v148_v18 }
  0xd6   :  { %v1340_v61 = vpack.c.bf16 %v876_v51, %v872_v50  ;;  %v1000_v62 = vcvt.s32.f32 %v488_v52  ;;  %v1004_v63 = vcvt.s32.f32 %v492_v53  ;;  %v292_v1 = vunpack.c.1.s8 %v148_v18 }
  0xd7   :  { %1762 = vmatpush.bf16.msra.mxu0 %v1308_v56  ;;  %v1372_v2 = vpack.c.bf16 %v940_v58, %v936_v57  ;;  %v800_v3 = vcvt.s32.f32 %v288_v59  ;;  %v352_v4 = vunpack.c.0.s8 %v164_v28  ;;  %v356_v5 = vunpack.c.1.s8 %v164_v28  ;;  %v220_v56 = vld [vmem:[#allocation5 + $0x270] sm:$0xff] }
  0xd8   :  { %1775 = vmatpush.bf16.msra.mxu1 %v1340_v61  ;;  %v1404_v7 = vpack.c.bf16 %v1004_v63, %v1000_v62  ;;  %v804_v8 = vcvt.s32.f32 %v292_v1  ;;  %v416_v9 = vunpack.c.0.s8 %v180_v36  ;;  %v420_v10 = vunpack.c.1.s8 %v180_v36 }
  0xd9   :  { %1788 = vmatpush.bf16.msra.mxu2 %v1372_v2  ;;  %v864_v11 = vcvt.s32.f32 %v352_v4  ;;  %v868_v12 = vcvt.s32.f32 %v356_v5  ;;  %v480_v13 = vunpack.c.0.s8 %v196_v41  ;;  %v484_v14 = vunpack.c.1.s8 %v196_v41 }
  0xda   :  { %1801 = vmatpush.bf16.msra.mxu3 %v1404_v7  ;;  %v1304_v16 = vpack.c.bf16 %v804_v8, %v800_v3  ;;  %v928_v17 = vcvt.s32.f32 %v416_v9  ;;  %v932_v18 = vcvt.s32.f32 %v420_v10  ;;  %v280_v19 = vunpack.c.2.s8 %v144_v6  ;;  %v236_v3 = vld [vmem:[#allocation5 + $0x2f0] sm:$0xff] }
  0xdb   :  { %v1336_v21 = vpack.c.bf16 %v868_v12, %v864_v11  ;;  %v992_v22 = vcvt.s32.f32 %v480_v13  ;;  %v996_v23 = vcvt.s32.f32 %v484_v14  ;;  %v284_v24 = vunpack.c.3.s8 %v144_v6  ;;  %v252_v8 = vld [vmem:[#allocation5 + $0x370] sm:$0xff] }
  0xdc   :  { %1763 = vmatpush.bf16.msra.mxu0 %v1304_v16  ;;  %v1368_v27 = vpack.c.bf16 %v932_v18, %v928_v17  ;;  %v792_v28 = vcvt.s32.f32 %v280_v19  ;;  %v344_v29 = vunpack.c.2.s8 %v160_v15  ;;  %v348_v31 = vunpack.c.3.s8 %v160_v15  ;;  %v268_v13 = vld [vmem:[#allocation5 + $0x3f0] sm:$0xff] }
  0xdd   :  { %1776 = vmatpush.bf16.msra.mxu1 %v1336_v21  ;;  %v1400_v34 = vpack.c.bf16 %v996_v23, %v992_v22  ;;  %v796_v33 = vcvt.s32.f32 %v284_v24  ;;  %v408_v36 = vunpack.c.2.s8 %v176_v20  ;;  %v412_v37 = vunpack.c.3.s8 %v176_v20 }
  0xde   :  { %1789 = vmatpush.bf16.msra.mxu2 %v1368_v27  ;;  %v856_v38 = vcvt.s32.f32 %v344_v29  ;;  %v860_v39 = vcvt.s32.f32 %v348_v31  ;;  %v472_v40 = vunpack.c.2.s8 %v192_v26  ;;  %v476_v41 = vunpack.c.3.s8 %v192_v26 }
  0xdf   :  { %1802 = vmatpush.bf16.msra.mxu3 %v1400_v34  ;;  %v1300_v42 = vpack.c.bf16 %v796_v33, %v792_v28  ;;  %v920_v43 = vcvt.s32.f32 %v408_v36  ;;  %v924_v44 = vcvt.s32.f32 %v412_v37  ;;  %v272_v45 = vunpack.c.0.s8 %v144_v6 }
  0xe0   :  { %v1332_v46 = vpack.c.bf16 %v860_v39, %v856_v38  ;;  %v984_v47 = vcvt.s32.f32 %v472_v40  ;;  %v988_v48 = vcvt.s32.f32 %v476_v41  ;;  %v276_v49 = vunpack.c.1.s8 %v144_v6 }
  0xe1   :  { %1764 = vmatpush.bf16.msra.mxu0 %v1300_v42  ;;  %v1364_v50 = vpack.c.bf16 %v924_v44, %v920_v43  ;;  %v784_v51 = vcvt.s32.f32 %v272_v45  ;;  %v336_v52 = vunpack.c.0.s8 %v160_v15  ;;  %v340_v53 = vunpack.c.1.s8 %v160_v15  ;;  %v216_v42 = vld [vmem:[#allocation5 + $0x250] sm:$0xff] }
  0xe2   :  { %1777 = vmatpush.bf16.msra.mxu1 %v1332_v46  ;;  %v1396_v57 = vpack.c.bf16 %v988_v48, %v984_v47  ;;  %v788_v58 = vcvt.s32.f32 %v276_v49  ;;  %v400_v59 = vunpack.c.0.s8 %v176_v20  ;;  %v404_v61 = vunpack.c.1.s8 %v176_v20 }
  0xe3   :  { %1790 = vmatpush.bf16.msra.mxu2 %v1364_v50  ;;  %v848_v62 = vcvt.s32.f32 %v336_v52  ;;  %v852_v63 = vcvt.s32.f32 %v340_v53  ;;  %v464_v1 = vunpack.c.0.s8 %v192_v26  ;;  %v468_v2 = vunpack.c.1.s8 %v192_v26 }
  0xe4   :  { %1803 = vmatpush.bf16.msra.mxu3 %v1396_v57  ;;  %v1296_v4 = vpack.c.bf16 %v788_v58, %v784_v51  ;;  %v912_v5 = vcvt.s32.f32 %v400_v59  ;;  %v916_v6 = vcvt.s32.f32 %v404_v61  ;;  %v584_v7 = vunpack.c.2.s8 %v220_v56  ;;  %v232_v51 = vld [vmem:[#allocation5 + $0x2d0] sm:$0xff] }
  0xe5   :  { %v1328_v9 = vpack.c.bf16 %v852_v63, %v848_v62  ;;  %v976_v10 = vcvt.s32.f32 %v464_v1  ;;  %v980_v11 = vcvt.s32.f32 %v468_v2  ;;  %v588_v12 = vunpack.c.3.s8 %v220_v56  ;;  %v248_v58 = vld [vmem:[#allocation5 + $0x350] sm:$0xff] }
  0xe6   :  { %1765 = vmatpush.bf16.msra.mxu0 %v1296_v4  ;;  %v1360_v14 = vpack.c.bf16 %v916_v6, %v912_v5  ;;  %v1096_v15 = vcvt.s32.f32 %v584_v7  ;;  %v648_v16 = vunpack.c.2.s8 %v236_v3  ;;  %v652_v17 = vunpack.c.3.s8 %v236_v3  ;;  %v264_v1 = vld [vmem:[#allocation5 + $0x3d0] sm:$0xff] }
  0xe7   :  { %1778 = vmatpush.bf16.msra.mxu1 %v1328_v9  ;;  %v1392_v18 = vpack.c.bf16 %v980_v11, %v976_v10  ;;  %v1100_v19 = vcvt.s32.f32 %v588_v12  ;;  %v712_v20 = vunpack.c.2.s8 %v252_v8  ;;  %v716_v21 = vunpack.c.3.s8 %v252_v8 }
  0xe8   :  { %1791 = vmatpush.bf16.msra.mxu2 %v1360_v14  ;;  %v1160_v22 = vcvt.s32.f32 %v648_v16  ;;  %v1164_v23 = vcvt.s32.f32 %v652_v17  ;;  %v776_v24 = vunpack.c.2.s8 %v268_v13  ;;  %v780_v26 = vunpack.c.3.s8 %v268_v13 }
  0xe9   :  { %1804 = vmatpush.bf16.msra.mxu3 %v1392_v18  ;;  %v1452_v27 = vpack.c.bf16 %v1100_v19, %v1096_v15  ;;  %v1224_v28 = vcvt.s32.f32 %v712_v20  ;;  %v1228_v29 = vcvt.s32.f32 %v716_v21  ;;  %v576_v31 = vunpack.c.0.s8 %v220_v56  ;;  %1766 = vmatmul.bf16.vlgmr.msra.gmra.mxu0 %v5256_v54 }
  0xea   :  { %v1484_v34 = vpack.c.bf16 %v1164_v23, %v1160_v22  ;;  %v1288_v33 = vcvt.s32.f32 %v776_v24  ;;  %v1292_v36 = vcvt.s32.f32 %v780_v26  ;;  %v580_v37 = vunpack.c.1.s8 %v220_v56  ;;  %1779 = vmatmul.bf16.vlgmr.msra.gmra.mxu1 %v5261_v0 }
  0xeb   :  { %1810 = vmatpush.bf16.msrb.mxu0 %v1452_v27  ;;  %v1516_v38 = vpack.c.bf16 %v1228_v29, %v1224_v28  ;;  %v1088_v39 = vcvt.s32.f32 %v576_v31  ;;  %v640_v40 = vunpack.c.0.s8 %v236_v3  ;;  %v644_v41 = vunpack.c.1.s8 %v236_v3  ;;  %1792 = vmatmul.bf16.vlgmr.msra.gmra.mxu2 %v5253_v30  ;;  %v212_v27 = vld [vmem:[#allocation5 + $0x230] sm:$0xff] }
  0xec   :  { %1823 = vmatpush.bf16.msrb.mxu1 %v1484_v34  ;;  %v1548_v43 = vpack.c.bf16 %v1292_v36, %v1288_v33  ;;  %v1092_v44 = vcvt.s32.f32 %v580_v37  ;;  %v704_v45 = vunpack.c.0.s8 %v252_v8  ;;  %v708_v46 = vunpack.c.1.s8 %v252_v8  ;;  %1805 = vmatmul.bf16.vlgmr.msra.gmra.mxu3 %v5258_v60  ;;  %v5295_v33 = vpop.f32.mrf.mxu0  ;;  %v5297_v36 = vpop.f32.mrf.mxu1 }
  0xed   :  { %1836 = vmatpush.bf16.msrb.mxu2 %v1516_v38  ;;  %v1152_v47 = vcvt.s32.f32 %v640_v40  ;;  %v1156_v48 = vcvt.s32.f32 %v644_v41  ;;  %v768_v49 = vunpack.c.0.s8 %v268_v13  ;;  %v772_v50 = vunpack.c.1.s8 %v268_v13  ;;  %v228_v41 = vld [vmem:[#allocation5 + $0x2b0] sm:$0xff] }
  0xee   :  { %1849 = vmatpush.bf16.msrb.mxu3 %v1548_v43  ;;  %v1448_v52 = vpack.c.bf16 %v1092_v44, %v1088_v39  ;;  %v1216_v53 = vcvt.s32.f32 %v704_v45  ;;  %v1220_v56 = vcvt.s32.f32 %v708_v46  ;;  %v568_v57 = vunpack.c.2.s8 %v216_v42  ;;  %v244_v46 = vld [vmem:[#allocation5 + $0x330] sm:$0xff] }
  0xef   :  { %v1480_v59 = vpack.c.bf16 %v1156_v48, %v1152_v47  ;;  %v1280_v61 = vcvt.s32.f32 %v768_v49  ;;  %v1284_v62 = vcvt.s32.f32 %v772_v50  ;;  %v572_v63 = vunpack.c.3.s8 %v216_v42 }
  0xf0   :  { %1811 = vmatpush.bf16.msrb.mxu0 %v1448_v52  ;;  %v1512_v2 = vpack.c.bf16 %v1220_v56, %v1216_v53  ;;  %v1080_v3 = vcvt.s32.f32 %v568_v57  ;;  %v632_v4 = vunpack.c.2.s8 %v232_v51  ;;  %v636_v5 = vunpack.c.3.s8 %v232_v51 }
  0xf1   :  { %1824 = vmatpush.bf16.msrb.mxu1 %v1480_v59  ;;  %v1544_v6 = vpack.c.bf16 %v1284_v62, %v1280_v61  ;;  %v1084_v7 = vcvt.s32.f32 %v572_v63  ;;  %v696_v8 = vunpack.c.2.s8 %v248_v58  ;;  %v700_v9 = vunpack.c.3.s8 %v248_v58 }
  0xf2   :  { %1837 = vmatpush.bf16.msrb.mxu2 %v1512_v2  ;;  %v1144_v10 = vcvt.s32.f32 %v632_v4  ;;  %v1148_v11 = vcvt.s32.f32 %v636_v5  ;;  %v760_v12 = vunpack.c.2.s8 %v264_v1  ;;  %v764_v13 = vunpack.c.3.s8 %v264_v1  ;;  %v5299_v4 = vpop.f32.mrf.mxu2  ;;  %v5301_v5 = vpop.f32.mrf.mxu3 }
  0xf3   :  { %1850 = vmatpush.bf16.msrb.mxu3 %v1544_v6  ;;  %v1444_v14 = vpack.c.bf16 %v1084_v7, %v1080_v3  ;;  %v1208_v15 = vcvt.s32.f32 %v696_v8  ;;  %v1212_v16 = vcvt.s32.f32 %v700_v9  ;;  %v560_v17 = vunpack.c.0.s8 %v216_v42 }
  0xf4   :  { %v1476_v18 = vpack.c.bf16 %v1148_v11, %v1144_v10  ;;  %v1272_v19 = vcvt.s32.f32 %v760_v12  ;;  %v1276_v20 = vcvt.s32.f32 %v764_v13  ;;  %v564_v21 = vunpack.c.1.s8 %v216_v42 }
  0xf5   :  { %1812 = vmatpush.bf16.msrb.mxu0 %v1444_v14  ;;  %v1508_v22 = vpack.c.bf16 %v1212_v16, %v1208_v15  ;;  %v1072_v23 = vcvt.s32.f32 %v560_v17  ;;  %v624_v24 = vunpack.c.0.s8 %v232_v51  ;;  %v628_v26 = vunpack.c.1.s8 %v232_v51  ;;  %v260_v51 = vld [vmem:[#allocation5 + $0x3b0] sm:$0xff]  ;;  %v1561_v14 = vpop.f32.mrf.mxu0  ;;  %v1574_v15 = vpop.f32.mrf.mxu1 }
  0xf6   :  { %1825 = vmatpush.bf16.msrb.mxu1 %v1476_v18  ;;  %v1540_v28 = vpack.c.bf16 %v1276_v20, %v1272_v19  ;;  %v1076_v29 = vcvt.s32.f32 %v564_v21  ;;  %v688_v31 = vunpack.c.0.s8 %v248_v58  ;;  %v692_v34 = vunpack.c.1.s8 %v248_v58  ;;  %v208_v20 = vld [vmem:[#allocation5 + $0x210] sm:$0xff]  ;;  %v5303_v14 = vld [vmem:[#allocation5 + $0x78] sm:$0xff] }
  0xf7   :  { %1838 = vmatpush.bf16.msrb.mxu2 %v1508_v22  ;;  %v1136_v37 = vcvt.s32.f32 %v624_v24  ;;  %v1140_v38 = vcvt.s32.f32 %v628_v26  ;;  %v752_v39 = vunpack.c.0.s8 %v264_v1  ;;  %v756_v40 = vunpack.c.1.s8 %v264_v1 }
  0xf8   :  { %1851 = vmatpush.bf16.msrb.mxu3 %v1540_v28  ;;  %v1440_v42 = vpack.c.bf16 %v1076_v29, %v1072_v23  ;;  %v1200_v43 = vcvt.s32.f32 %v688_v31  ;;  %v1204_v44 = vcvt.s32.f32 %v692_v34  ;;  %v552_v45 = vunpack.c.2.s8 %v212_v27  ;;  %v224_v34 = vld [vmem:[#allocation5 + $0x290] sm:$0xff] }
  0xf9   :  { %v1472_v47 = vpack.c.bf16 %v1140_v38, %v1136_v37  ;;  %v1264_v48 = vcvt.s32.f32 %v752_v39  ;;  %v1268_v49 = vcvt.s32.f32 %v756_v40  ;;  %v556_v50 = vunpack.c.3.s8 %v212_v27  ;;  %v240_v40 = vld [vmem:[#allocation5 + $0x310] sm:$0xff] }
  0xfa   :  { %1813 = vmatpush.bf16.msrb.mxu0 %v1440_v42  ;;  %v1504_v52 = vpack.c.bf16 %v1204_v44, %v1200_v43  ;;  %v1064_v53 = vcvt.s32.f32 %v552_v45  ;;  %v616_v56 = vunpack.c.2.s8 %v228_v41  ;;  %v620_v57 = vunpack.c.3.s8 %v228_v41  ;;  %v256_v45 = vld [vmem:[#allocation5 + $0x390] sm:$0xff] }
  0xfb   :  { %1826 = vmatpush.bf16.msrb.mxu1 %v1472_v47  ;;  %v1536_v58 = vpack.c.bf16 %v1268_v49, %v1264_v48  ;;  %v1068_v59 = vcvt.s32.f32 %v556_v50  ;;  %v680_v61 = vunpack.c.2.s8 %v244_v46  ;;  %v684_v62 = vunpack.c.3.s8 %v244_v46  ;;  %v1587_v50 = vpop.f32.mrf.mxu2 }
  0xfc   :  { %1839 = vmatpush.bf16.msrb.mxu2 %v1504_v52  ;;  %v1128_v63 = vcvt.s32.f32 %v616_v56  ;;  %v1132_v1 = vcvt.s32.f32 %v620_v57  ;;  %v744_v2 = vunpack.c.2.s8 %v260_v51  ;;  %v748_v3 = vunpack.c.3.s8 %v260_v51  ;;  %v1600_v52 = vpop.f32.mrf.mxu3 }
  0xfd   :  { %1852 = vmatpush.bf16.msrb.mxu3 %v1536_v58  ;;  %v1436_v6 = vpack.c.bf16 %v1068_v59, %v1064_v53  ;;  %v1192_v7 = vcvt.s32.f32 %v680_v61  ;;  %v1196_v8 = vcvt.s32.f32 %v684_v62  ;;  %v544_v9 = vunpack.c.0.s8 %v212_v27 }
  0xfe   :  { %v1468_v10 = vpack.c.bf16 %v1132_v1, %v1128_v63  ;;  %v1256_v11 = vcvt.s32.f32 %v744_v2  ;;  %v1260_v12 = vcvt.s32.f32 %v748_v3  ;;  %v548_v13 = vunpack.c.1.s8 %v212_v27 }
  0xff   :  { %1814 = vmatpush.bf16.msrb.mxu0 %v1436_v6  ;;  %v1500_v16 = vpack.c.bf16 %v1196_v8, %v1192_v7  ;;  %v1056_v17 = vcvt.s32.f32 %v544_v9  ;;  %v608_v18 = vunpack.c.0.s8 %v228_v41  ;;  %v612_v19 = vunpack.c.1.s8 %v228_v41 }
 0x100   :  { %1827 = vmatpush.bf16.msrb.mxu1 %v1468_v10  ;;  %v1532_v21 = vpack.c.bf16 %v1260_v12, %v1256_v11  ;;  %v1060_v22 = vcvt.s32.f32 %v548_v13  ;;  %v672_v23 = vunpack.c.0.s8 %v244_v46  ;;  %v676_v24 = vunpack.c.1.s8 %v244_v46 }
 0x101   :  { %1840 = vmatpush.bf16.msrb.mxu2 %v1500_v16  ;;  %v1120_v26 = vcvt.s32.f32 %v608_v18  ;;  %v1124_v28 = vcvt.s32.f32 %v612_v19  ;;  %v736_v29 = vunpack.c.0.s8 %v260_v51  ;;  %v740_v31 = vunpack.c.1.s8 %v260_v51 }
 0x102   :  { %1853 = vmatpush.bf16.msrb.mxu3 %v1532_v21  ;;  %v1432_v27 = vpack.c.bf16 %v1060_v22, %v1056_v17  ;;  %v1184_v37 = vcvt.s32.f32 %v672_v23  ;;  %v1188_v38 = vcvt.s32.f32 %v676_v24  ;;  %v536_v39 = vunpack.c.2.s8 %v208_v20  ;;  %v173_v24 = vld [vmem:[#allocation5 + $0xf8] sm:$0xff] }
 0x103   :  { %v1464_v42 = vpack.c.bf16 %v1124_v28, %v1120_v26  ;;  %v1248_v41 = vcvt.s32.f32 %v736_v29  ;;  %v1252_v43 = vcvt.s32.f32 %v740_v31  ;;  %v540_v44 = vunpack.c.3.s8 %v208_v20  ;;  %v5305_v26 = vpop.f32.mrf.mxu0 }
 0x104   :  { %1815 = vmatpush.bf16.msrb.mxu0 %v1432_v27  ;;  %v1496_v47 = vpack.c.bf16 %v1188_v38, %v1184_v37  ;;  %v1048_v46 = vcvt.s32.f32 %v536_v39  ;;  %v600_v48 = vunpack.c.2.s8 %v224_v34  ;;  %v604_v49 = vunpack.c.3.s8 %v224_v34  ;;  %v189_v27 = vld [vmem:[#allocation5 + $0x178] sm:$0xff] }
 0x105   :  { %1828 = vmatpush.bf16.msrb.mxu1 %v1464_v42  ;;  %v1528_v51 = vpack.c.bf16 %v1252_v43, %v1248_v41  ;;  %v1052_v53 = vcvt.s32.f32 %v540_v44  ;;  %v664_v56 = vunpack.c.2.s8 %v240_v40  ;;  %v668_v57 = vunpack.c.3.s8 %v240_v40  ;;  %v205_v42 = vld [vmem:[#allocation5 + $0x1f8] sm:$0xff] }
 0x106   :  { %1841 = vmatpush.bf16.msrb.mxu2 %v1496_v47  ;;  %v1112_v58 = vcvt.s32.f32 %v600_v48  ;;  %v1116_v59 = vcvt.s32.f32 %v604_v49  ;;  %v728_v61 = vunpack.c.2.s8 %v256_v45  ;;  %v732_v62 = vunpack.c.3.s8 %v256_v45 }
 0x107   :  { %1854 = vmatpush.bf16.msrb.mxu3 %v1528_v51  ;;  %v1428_v63 = vpack.c.bf16 %v1052_v53, %v1048_v46  ;;  %v1176_v1 = vcvt.s32.f32 %v664_v56  ;;  %v1180_v2 = vcvt.s32.f32 %v668_v57  ;;  %v528_v3 = vunpack.c.0.s8 %v208_v20  ;;  %v5311_v56 = vpop.f32.mrf.mxu2  ;;  %v5313_v57 = vpop.f32.mrf.mxu3 }
 0x108   :  { %v1460_v6 = vpack.c.bf16 %v1116_v59, %v1112_v58  ;;  %v1240_v7 = vcvt.s32.f32 %v728_v61  ;;  %v1244_v8 = vcvt.s32.f32 %v732_v62  ;;  %v532_v9 = vunpack.c.1.s8 %v208_v20  ;;  %v5307_v20 = vpop.f32.mrf.mxu1 }
 0x109   :  { %1816 = vmatpush.bf16.msrb.mxu0 %v1428_v63  ;;  %v1492_v10 = vpack.c.bf16 %v1180_v2, %v1176_v1  ;;  %v1040_v11 = vcvt.s32.f32 %v528_v3  ;;  %v592_v12 = vunpack.c.0.s8 %v224_v34  ;;  %v596_v13 = vunpack.c.1.s8 %v224_v34 }
 0x10a   :  { %1829 = vmatpush.bf16.msrb.mxu1 %v1460_v6  ;;  %v1524_v15 = vpack.c.bf16 %v1244_v8, %v1240_v7  ;;  %v1044_v16 = vcvt.s32.f32 %v532_v9  ;;  %v656_v17 = vunpack.c.0.s8 %v240_v40  ;;  %v660_v18 = vunpack.c.1.s8 %v240_v40 }
 0x10b   :  { %1842 = vmatpush.bf16.msrb.mxu2 %v1492_v10  ;;  %v1104_v19 = vcvt.s32.f32 %v592_v12  ;;  %v1108_v21 = vcvt.s32.f32 %v596_v13  ;;  %v720_v22 = vunpack.c.0.s8 %v256_v45  ;;  %v724_v23 = vunpack.c.1.s8 %v256_v45  ;;  %v1613_v10 = vpop.f32.mrf.mxu0 }
 0x10c   :  { %1855 = vmatpush.bf16.msrb.mxu3 %v1524_v15  ;;  %v1424_v28 = vpack.c.bf16 %v1044_v16, %v1040_v11  ;;  %v1168_v29 = vcvt.s32.f32 %v656_v17  ;;  %v1172_v31 = vcvt.s32.f32 %v660_v18  ;;  %v329_v34 = vunpack.c.2.s8 %v5303_v14  ;;  %v153_v15 = vld [vmem:[#allocation5 + $0x58] sm:$0xff] }
 0x10d   :  { %v1456_v37 = vpack.c.bf16 %v1108_v21, %v1104_v19  ;;  %v1232_v38 = vcvt.s32.f32 %v720_v22  ;;  %v1236_v39 = vcvt.s32.f32 %v724_v23  ;;  %v333_v40 = vunpack.c.3.s8 %v5303_v14  ;;  %v149_v10 = vld [vmem:[#allocation5 + $0x38] sm:$0xff] }
 0x10e   :  { %1817 = vmatpush.bf16.msrb.mxu0 %v1424_v28  ;;  %v1488_v41 = vpack.c.bf16 %v1172_v31, %v1168_v29  ;;  %v841_v43 = vcvt.s32.f32 %v329_v34  ;;  %v393_v44 = vunpack.c.2.s8 %v173_v24  ;;  %v397_v45 = vunpack.c.3.s8 %v173_v24  ;;  %v185_v28 = vld [vmem:[#allocation5 + $0x158] sm:$0xff] }
 0x10f   :  { %1830 = vmatpush.bf16.msrb.mxu1 %v1456_v37  ;;  %v1520_v47 = vpack.c.bf16 %v1236_v39, %v1232_v38  ;;  %v845_v46 = vcvt.s32.f32 %v333_v40  ;;  %v457_v48 = vunpack.c.2.s8 %v189_v27  ;;  %v461_v49 = vunpack.c.3.s8 %v189_v27  ;;  %v201_v38 = vld [vmem:[#allocation5 + $0x1d8] sm:$0xff] }
 0x110   :  { %1843 = vmatpush.bf16.msrb.mxu2 %v1488_v41  ;;  %v905_v50 = vcvt.s32.f32 %v393_v44  ;;  %v909_v52 = vcvt.s32.f32 %v397_v45  ;;  %v521_v51 = vunpack.c.2.s8 %v205_v42  ;;  %v525_v53 = vunpack.c.3.s8 %v205_v42  ;;  %v1626_v11 = vpop.f32.mrf.mxu1  ;;  %v1652_v44 = vpop.f32.mrf.mxu3 }
 0x111   :  { %1856 = vmatpush.bf16.msrb.mxu3 %v1520_v47  ;;  %v1325_v58 = vpack.c.bf16 %v845_v46, %v841_v43  ;;  %v969_v59 = vcvt.s32.f32 %v457_v48  ;;  %v973_v61 = vcvt.s32.f32 %v461_v49  ;;  %v1573_v62 = vadd.f32 %v5297_v36, %v5295_v33  ;;  %1818 = vmatmul.bf16.vlgmr.msrb.gmra.mxu0 %v5267_v32  ;;  %v1639_v43 = vpop.f32.mrf.mxu2 }
 0x112   :  { %v1357_v63 = vpack.c.bf16 %v909_v52, %v905_v50  ;;  %v1033_v1 = vcvt.s32.f32 %v521_v51  ;;  %v1037_v2 = vcvt.s32.f32 %v525_v53  ;;  %v321_v3 = vunpack.c.0.s8 %v5303_v14  ;;  %1831 = vmatmul.bf16.vlgmr.msrb.gmra.mxu1 %v5278_v55 }
 0x113   :  { %1862 = vmatpush.bf16.msra.mxu0 %v1325_v58  ;;  %v1389_v6 = vpack.c.bf16 %v973_v61, %v969_v59  ;;  %1844 = vmatmul.bf16.vlgmr.msrb.gmra.mxu2 %v5265_v25  ;;  %v325_v7 = vunpack.c.1.s8 %v5303_v14  ;;  %v385_v8 = vunpack.c.0.s8 %v173_v24  ;;  %v389_v9 = vunpack.c.1.s8 %v173_v24  ;;  %v169_v24 = vld [vmem:[#allocation5 + $0xd8] sm:$0xff] }
 0x114   :  { %1875 = vmatpush.bf16.msra.mxu1 %v1357_v63  ;;  %v1421_v33 = vpack.c.bf16 %v1037_v2, %v1033_v1  ;;  %1857 = vmatmul.bf16.vlgmr.msrb.gmra.mxu3 %v5272_v35  ;;  %v833_v36 = vcvt.s32.f32 %v321_v3  ;;  %v449_v12 = vunpack.c.0.s8 %v189_v27  ;;  %v453_v13 = vunpack.c.1.s8 %v189_v27 }
 0x115   :  { %1888 = vmatpush.bf16.msra.mxu2 %v1389_v6  ;;  %v837_v16 = vcvt.s32.f32 %v325_v7  ;;  %v897_v17 = vcvt.s32.f32 %v385_v8  ;;  %v901_v18 = vcvt.s32.f32 %v389_v9  ;;  %v513_v19 = vunpack.c.0.s8 %v205_v42 }
 0x116   :  { %1901 = vmatpush.bf16.msra.mxu3 %v1421_v33  ;;  %v961_v21 = vcvt.s32.f32 %v449_v12  ;;  %v965_v14 = vcvt.s32.f32 %v453_v13  ;;  %v517_v22 = vunpack.c.1.s8 %v205_v42  ;;  %v1586_v23 = vadd.f32 %v5299_v4, %v1573_v62  ;;  %v165_v13 = vld [vmem:[#allocation5 + $0xb8] sm:$0xff] }
 0x117   :  { %v1321_v29 = vpack.c.bf16 %v837_v16, %v833_v36  ;;  %v1353_v31 = vpack.c.bf16 %v901_v18, %v897_v17  ;;  %v1025_v34 = vcvt.s32.f32 %v513_v19  ;;  %v313_v37 = vunpack.c.2.s8 %v153_v15 }
 0x118   :  { %v1385_v27 = vpack.c.bf16 %v965_v14, %v961_v21  ;;  %v1029_v39 = vcvt.s32.f32 %v517_v22  ;;  %v5325_v40 = vadd.f32 %v5301_v5, %v1586_v23  ;;  %v317_v41 = vunpack.c.3.s8 %v153_v15  ;;  %v181_v23 = vld [vmem:[#allocation5 + $0x138] sm:$0xff] }
 0x119   :  { %1863 = vmatpush.bf16.msra.mxu0 %v1321_v29  ;;  %1876 = vmatpush.bf16.msra.mxu1 %v1353_v31  ;;  %v825_v42 = vcvt.s32.f32 %v313_v37  ;;  %v377_v45 = vunpack.c.2.s8 %v169_v24  ;;  %v381_v4 = vunpack.c.3.s8 %v169_v24  ;;  %v441_v47 = vunpack.c.2.s8 %v185_v28  ;;  %v197_v37 = vld [vmem:[#allocation5 + $0x1b8] sm:$0xff] }
 0x11a   :  { %1889 = vmatpush.bf16.msra.mxu2 %v1385_v27  ;;  %v1417_v46 = vpack.c.bf16 %v1029_v39, %v1025_v34  ;;  %v829_v48 = vcvt.s32.f32 %v317_v41  ;;  %v445_v49 = vunpack.c.3.s8 %v185_v28  ;;  %v505_v50 = vunpack.c.2.s8 %v201_v38 }
 0x11b   :  { %v889_v52 = vcvt.s32.f32 %v377_v45  ;;  %v893_v51 = vcvt.s32.f32 %v381_v4  ;;  %v953_v53 = vcvt.s32.f32 %v441_v47  ;;  %v509_v58 = vunpack.c.3.s8 %v201_v38 }
 0x11c   :  { %1902 = vmatpush.bf16.msra.mxu3 %v1417_v46  ;;  %v1317_v5 = vpack.c.bf16 %v829_v48, %v825_v42  ;;  %v957_v59 = vcvt.s32.f32 %v445_v49  ;;  %v1017_v61 = vcvt.s32.f32 %v505_v50  ;;  %v305_v62 = vunpack.c.0.s8 %v153_v15 }
 0x11d   :  { %v1349_v63 = vpack.c.bf16 %v893_v51, %v889_v52  ;;  %v1021_v1 = vcvt.s32.f32 %v509_v58  ;;  %v309_v2 = vunpack.c.1.s8 %v153_v15  ;;  %v369_v3 = vunpack.c.0.s8 %v169_v24 }
 0x11e   :  { %1864 = vmatpush.bf16.msra.mxu0 %v1317_v5  ;;  %v1381_v6 = vpack.c.bf16 %v957_v59, %v953_v53  ;;  %v817_v7 = vcvt.s32.f32 %v305_v62  ;;  %v373_v8 = vunpack.c.1.s8 %v169_v24  ;;  %v433_v9 = vunpack.c.0.s8 %v185_v28 }
 0x11f   :  { %1877 = vmatpush.bf16.msra.mxu1 %v1349_v63  ;;  %v1413_v11 = vpack.c.bf16 %v1021_v1, %v1017_v61  ;;  %v821_v33 = vcvt.s32.f32 %v309_v2  ;;  %v881_v36 = vcvt.s32.f32 %v369_v3  ;;  %v437_v12 = vunpack.c.1.s8 %v185_v28 }
 0x120   :  { %1890 = vmatpush.bf16.msra.mxu2 %v1381_v6  ;;  %v885_v16 = vcvt.s32.f32 %v373_v8  ;;  %v945_v17 = vcvt.s32.f32 %v433_v9  ;;  %v497_v18 = vunpack.c.0.s8 %v201_v38  ;;  %v501_v19 = vunpack.c.1.s8 %v201_v38 }
 0x121   :  { %1903 = vmatpush.bf16.msra.mxu3 %v1413_v11  ;;  %v1313_v15 = vpack.c.bf16 %v821_v33, %v817_v7  ;;  %v949_v21 = vcvt.s32.f32 %v437_v12  ;;  %v297_v14 = vunpack.c.2.s8 %v149_v10  ;;  %v301_v22 = vunpack.c.3.s8 %v149_v10  ;;  %v145_v11 = vld [vmem:[#allocation5 + $0x18] sm:$0xff] }
 0x122   :  { %v1345_v24 = vpack.c.bf16 %v885_v16, %v881_v36  ;;  %v1009_v29 = vcvt.s32.f32 %v497_v18  ;;  %v1013_v31 = vcvt.s32.f32 %v501_v19  ;;  %v361_v34 = vunpack.c.2.s8 %v165_v13  ;;  %v161_v12 = vld [vmem:[#allocation5 + $0x98] sm:$0xff] }
 0x123   :  { %1865 = vmatpush.bf16.msra.mxu0 %v1313_v15  ;;  %v1377_v27 = vpack.c.bf16 %v949_v21, %v945_v17  ;;  %v809_v28 = vcvt.s32.f32 %v297_v14  ;;  %v813_v39 = vcvt.s32.f32 %v301_v22  ;;  %v365_v41 = vunpack.c.3.s8 %v165_v13  ;;  %v177_v17 = vld [vmem:[#allocation5 + $0x118] sm:$0xff] }
 0x124   :  { %1878 = vmatpush.bf16.msra.mxu1 %v1345_v24  ;;  %v1409_v43 = vpack.c.bf16 %v1013_v31, %v1009_v29  ;;  %v873_v44 = vcvt.s32.f32 %v361_v34  ;;  %v425_v38 = vunpack.c.2.s8 %v181_v23  ;;  %v429_v42 = vunpack.c.3.s8 %v181_v23  ;;  %v193_v15 = vld [vmem:[#allocation5 + $0x198] sm:$0xff] }
 0x125   :  { %1891 = vmatpush.bf16.msra.mxu2 %v1377_v27  ;;  %v1309_v45 = vpack.c.bf16 %v813_v39, %v809_v28  ;;  %v877_v4 = vcvt.s32.f32 %v365_v41  ;;  %v489_v47 = vunpack.c.2.s8 %v197_v37  ;;  %v493_v46 = vunpack.c.3.s8 %v197_v37 }
 0x126   :  { %1904 = vmatpush.bf16.msra.mxu3 %v1409_v43  ;;  %v937_v48 = vcvt.s32.f32 %v425_v38  ;;  %v941_v49 = vcvt.s32.f32 %v429_v42  ;;  %v289_v50 = vunpack.c.0.s8 %v149_v10  ;;  %v293_v58 = vunpack.c.1.s8 %v149_v10 }
 0x127   :  { %1866 = vmatpush.bf16.msra.mxu0 %v1309_v45  ;;  %v1341_v52 = vpack.c.bf16 %v877_v4, %v873_v44  ;;  %v1001_v51 = vcvt.s32.f32 %v489_v47  ;;  %v1005_v53 = vcvt.s32.f32 %v493_v46  ;;  %v1612_v59 = vadd.f32 %v5305_v26, %v5325_v40 }
 0x128   :  { %v1373_v5 = vpack.c.bf16 %v941_v49, %v937_v48  ;;  %v801_v61 = vcvt.s32.f32 %v289_v50  ;;  %v353_v62 = vunpack.c.0.s8 %v165_v13  ;;  %v805_v1 = vcvt.s32.f32 %v293_v58 }
 0x129   :  { %1879 = vmatpush.bf16.msra.mxu1 %v1341_v52  ;;  %v1405_v63 = vpack.c.bf16 %v1005_v53, %v1001_v51  ;;  %v357_v2 = vunpack.c.1.s8 %v165_v13  ;;  %v417_v3 = vunpack.c.0.s8 %v181_v23  ;;  %v421_v7 = vunpack.c.1.s8 %v181_v23  ;;  %v221_v51 = vld [vmem:[#allocation5 + $0x278] sm:$0xff] }
 0x12a   :  { %1892 = vmatpush.bf16.msra.mxu2 %v1373_v5  ;;  %v865_v6 = vcvt.s32.f32 %v353_v62  ;;  %v481_v8 = vunpack.c.0.s8 %v197_v37  ;;  %v485_v9 = vunpack.c.1.s8 %v197_v37  ;;  %v1305_v33 = vpack.c.bf16 %v805_v1, %v801_v61  ;;  %v237_v1 = vld [vmem:[#allocation5 + $0x2f8] sm:$0xff] }
 0x12b   :  { %1905 = vmatpush.bf16.msra.mxu3 %v1405_v63  ;;  %v869_v10 = vcvt.s32.f32 %v357_v2  ;;  %v929_v36 = vcvt.s32.f32 %v417_v3  ;;  %v933_v16 = vcvt.s32.f32 %v421_v7  ;;  %v1625_v18 = vadd.f32 %v5307_v20, %v1612_v59 }
 0x12c   :  { %v993_v26 = vcvt.s32.f32 %v481_v8  ;;  %v997_v40 = vcvt.s32.f32 %v485_v9  ;;  %1867 = vmatpush.bf16.msra.mxu0 %v1305_v33  ;;  %v281_v19 = vunpack.c.2.s8 %v145_v11  ;;  %v285_v22 = vunpack.c.3.s8 %v145_v11  ;;  %v253_v8 = vld [vmem:[#allocation5 + $0x378] sm:$0xff] }
 0x12d   :  { %v1337_v13 = vpack.c.bf16 %v869_v10, %v865_v6  ;;  %v1369_v21 = vpack.c.bf16 %v933_v16, %v929_v36  ;;  %v345_v23 = vunpack.c.2.s8 %v161_v12  ;;  %v349_v29 = vunpack.c.3.s8 %v161_v12  ;;  %v269_v10 = vld [vmem:[#allocation5 + $0x3f8] sm:$0xff] }
 0x12e   :  { %v1401_v14 = vpack.c.bf16 %v997_v40, %v993_v26  ;;  %v793_v24 = vcvt.s32.f32 %v281_v19  ;;  %v409_v31 = vunpack.c.2.s8 %v177_v17  ;;  %v797_v34 = vcvt.s32.f32 %v285_v22 }
 0x12f   :  { %1880 = vmatpush.bf16.msra.mxu1 %v1337_v13  ;;  %1893 = vmatpush.bf16.msra.mxu2 %v1369_v21  ;;  %v857_v37 = vcvt.s32.f32 %v345_v23  ;;  %v413_v27 = vunpack.c.3.s8 %v177_v17  ;;  %v473_v28 = vunpack.c.2.s8 %v193_v15  ;;  %v1638_v20 = vadd.f32 %v5311_v56, %v1625_v18 }
 0x130   :  { %1906 = vmatpush.bf16.msra.mxu3 %v1401_v14  ;;  %v861_v39 = vcvt.s32.f32 %v349_v29  ;;  %v921_v41 = vcvt.s32.f32 %v409_v31  ;;  %v477_v43 = vunpack.c.3.s8 %v193_v15  ;;  %v1301_v44 = vpack.c.bf16 %v797_v34, %v793_v24 }
 0x131   :  { %v925_v38 = vcvt.s32.f32 %v413_v27  ;;  %v985_v42 = vcvt.s32.f32 %v473_v28  ;;  %v273_v45 = vunpack.c.0.s8 %v145_v11  ;;  %v277_v46 = vunpack.c.1.s8 %v145_v11 }
 0x132   :  { %v1333_v4 = vpack.c.bf16 %v861_v39, %v857_v37  ;;  %v989_v47 = vcvt.s32.f32 %v477_v43  ;;  %1868 = vmatpush.bf16.msra.mxu0 %v1301_v44  ;;  %v337_v50 = vunpack.c.0.s8 %v161_v12  ;;  %v341_v52 = vunpack.c.1.s8 %v161_v12 }
 0x133   :  { %v1365_v48 = vpack.c.bf16 %v925_v38, %v921_v41  ;;  %v785_v49 = vcvt.s32.f32 %v273_v45  ;;  %v5332_v53 = vadd.f32 %v5313_v57, %v1638_v20  ;;  %v789_v58 = vcvt.s32.f32 %v277_v46 }
 0x134   :  { %1881 = vmatpush.bf16.msra.mxu1 %v1333_v4  ;;  %v1397_v56 = vpack.c.bf16 %v989_v47, %v985_v42  ;;  %v401_v5 = vunpack.c.0.s8 %v177_v17  ;;  %v849_v59 = vcvt.s32.f32 %v337_v50  ;;  %v853_v61 = vcvt.s32.f32 %v341_v52 }
 0x135   :  { %1894 = vmatpush.bf16.msra.mxu2 %v1365_v48  ;;  %v405_v62 = vunpack.c.1.s8 %v177_v17  ;;  %v465_v63 = vunpack.c.0.s8 %v193_v15  ;;  %v1297_v2 = vpack.c.bf16 %v789_v58, %v785_v49  ;;  %v469_v6 = vunpack.c.1.s8 %v193_v15  ;;  %v233_v48 = vld [vmem:[#allocation5 + $0x2d8] sm:$0xff] }
 0x136   :  { %1907 = vmatpush.bf16.msra.mxu3 %v1397_v56  ;;  %v913_v3 = vcvt.s32.f32 %v401_v5  ;;  %v585_v7 = vunpack.c.2.s8 %v221_v51  ;;  %v1329_v9 = vpack.c.bf16 %v853_v61, %v849_v59  ;;  %v589_v33 = vunpack.c.3.s8 %v221_v51  ;;  %v249_v56 = vld [vmem:[#allocation5 + $0x358] sm:$0xff] }
 0x137   :  { %v917_v11 = vcvt.s32.f32 %v405_v62  ;;  %v977_v57 = vcvt.s32.f32 %v465_v63  ;;  %1869 = vmatpush.bf16.msra.mxu0 %v1297_v2  ;;  %v981_v36 = vcvt.s32.f32 %v469_v6  ;;  %v649_v16 = vunpack.c.2.s8 %v237_v1  ;;  %v265_v61 = vld [vmem:[#allocation5 + $0x3d8] sm:$0xff] }
 0x138   :  { %v1097_v12 = vcvt.s32.f32 %v585_v7  ;;  %v653_v26 = vunpack.c.3.s8 %v237_v1  ;;  %1882 = vmatpush.bf16.msra.mxu1 %v1329_v9  ;;  %v1101_v17 = vcvt.s32.f32 %v589_v33  ;;  %v713_v18 = vunpack.c.2.s8 %v253_v8  ;;  %v5340_v33 = vpop.f32.mrf.mxu1 }
 0x139   :  { %v1361_v40 = vpack.c.bf16 %v917_v11, %v913_v3  ;;  %v717_v13 = vunpack.c.3.s8 %v253_v8  ;;  %v1393_v19 = vpack.c.bf16 %v981_v36, %v977_v57  ;;  %v1161_v21 = vcvt.s32.f32 %v649_v16 }
 0x13a   :  { %v1165_v15 = vcvt.s32.f32 %v653_v26  ;;  %v777_v14 = vunpack.c.2.s8 %v269_v10  ;;  %v1453_v22 = vpack.c.bf16 %v1101_v17, %v1097_v12  ;;  %v1225_v23 = vcvt.s32.f32 %v713_v18  ;;  %1870 = vmatmul.bf16.vlgmr.msra.gmra.mxu0 %v5256_v54  ;;  %v217_v54 = vld [vmem:[#allocation5 + $0x258] sm:$0xff] }
 0x13b   :  { %1895 = vmatpush.bf16.msra.mxu2 %v1361_v40  ;;  %v1229_v24 = vcvt.s32.f32 %v717_v13  ;;  %v781_v29 = vunpack.c.3.s8 %v269_v10  ;;  %1908 = vmatpush.bf16.msra.mxu3 %v1393_v19  ;;  %v577_v37 = vunpack.c.0.s8 %v221_v51  ;;  %v581_v27 = vunpack.c.1.s8 %v221_v51 }
 0x13c   :  { %v1485_v31 = vpack.c.bf16 %v1165_v15, %v1161_v21  ;;  %v1289_v34 = vcvt.s32.f32 %v777_v14  ;;  %1883 = vmatmul.bf16.vlgmr.msra.gmra.mxu1 %v5261_v0  ;;  %1914 = vmatpush.bf16.msrb.mxu0 %v1453_v22  ;;  %v641_v39 = vunpack.c.0.s8 %v237_v1  ;;  %v645_v41 = vunpack.c.1.s8 %v237_v1  ;;  %v5338_v0 = vpop.f32.mrf.mxu0  ;;  %v5342_v14 = vpop.f32.mrf.mxu2 }
 0x13d   :  { %v1517_v28 = vpack.c.bf16 %v1229_v24, %v1225_v23  ;;  %v1293_v20 = vcvt.s32.f32 %v781_v29  ;;  %v1089_v43 = vcvt.s32.f32 %v577_v37  ;;  %v1093_v44 = vcvt.s32.f32 %v581_v27  ;;  %v5344_v22 = vpop.f32.mrf.mxu3 }
 0x13e   :  { %1927 = vmatpush.bf16.msrb.mxu1 %v1485_v31  ;;  %v705_v38 = vunpack.c.0.s8 %v253_v8  ;;  %v709_v42 = vunpack.c.1.s8 %v253_v8  ;;  %1896 = vmatmul.bf16.vlgmr.msra.gmra.mxu2 %v5253_v30  ;;  %v1153_v4 = vcvt.s32.f32 %v641_v39  ;;  %v1157_v47 = vcvt.s32.f32 %v645_v41  ;;  %v229_v41 = vld [vmem:[#allocation5 + $0x2b8] sm:$0xff] }
 0x13f   :  { %1940 = vmatpush.bf16.msrb.mxu2 %v1517_v28  ;;  %v1549_v45 = vpack.c.bf16 %v1293_v20, %v1289_v34  ;;  %v769_v46 = vunpack.c.0.s8 %v269_v10  ;;  %1909 = vmatmul.bf16.vlgmr.msra.gmra.mxu3 %v5258_v60  ;;  %v1449_v49 = vpack.c.bf16 %v1093_v44, %v1089_v43  ;;  %v773_v51 = vunpack.c.1.s8 %v269_v10  ;;  %v213_v34 = vld [vmem:[#allocation5 + $0x238] sm:$0xff] }
 0x140   :  { %v1217_v50 = vcvt.s32.f32 %v705_v38  ;;  %v1221_v52 = vcvt.s32.f32 %v709_v42  ;;  %v1481_v58 = vpack.c.bf16 %v1157_v47, %v1153_v4  ;;  %v569_v30 = vunpack.c.2.s8 %v217_v54 }
 0x141   :  { %1953 = vmatpush.bf16.msrb.mxu3 %v1549_v45  ;;  %v1281_v5 = vcvt.s32.f32 %v769_v46  ;;  %v573_v59 = vunpack.c.3.s8 %v217_v54  ;;  %1915 = vmatpush.bf16.msrb.mxu0 %v1449_v49  ;;  %v1285_v63 = vcvt.s32.f32 %v773_v51  ;;  %v633_v1 = vunpack.c.2.s8 %v233_v48 }
 0x142   :  { %v1513_v62 = vpack.c.bf16 %v1221_v52, %v1217_v50  ;;  %v637_v2 = vunpack.c.3.s8 %v233_v48  ;;  %1928 = vmatpush.bf16.msrb.mxu1 %v1481_v58  ;;  %v1081_v60 = vcvt.s32.f32 %v569_v30  ;;  %v697_v6 = vunpack.c.2.s8 %v249_v56 }
 0x143   :  { %v1085_v3 = vcvt.s32.f32 %v573_v59  ;;  %v701_v7 = vunpack.c.3.s8 %v249_v56  ;;  %v1545_v8 = vpack.c.bf16 %v1285_v63, %v1281_v5  ;;  %v1145_v9 = vcvt.s32.f32 %v633_v1 }
 0x144   :  { %1941 = vmatpush.bf16.msrb.mxu2 %v1513_v62  ;;  %v1149_v11 = vcvt.s32.f32 %v637_v2  ;;  %v761_v57 = vunpack.c.2.s8 %v265_v61  ;;  %v1209_v36 = vcvt.s32.f32 %v697_v6  ;;  %v765_v16 = vunpack.c.3.s8 %v265_v61  ;;  %v1665_v37 = vpop.f32.mrf.mxu0 }
 0x145   :  { %v1445_v10 = vpack.c.bf16 %v1085_v3, %v1081_v60  ;;  %v1213_v12 = vcvt.s32.f32 %v701_v7  ;;  %1954 = vmatpush.bf16.msrb.mxu3 %v1545_v8  ;;  %v561_v17 = vunpack.c.0.s8 %v217_v54  ;;  %v565_v18 = vunpack.c.1.s8 %v217_v54  ;;  %v245_v54 = vld [vmem:[#allocation5 + $0x338] sm:$0xff]  ;;  %v1691_v7 = vpop.f32.mrf.mxu2  ;;  %v1704_v8 = vpop.f32.mrf.mxu3 }
 0x146   :  { %v1477_v26 = vpack.c.bf16 %v1149_v11, %v1145_v9  ;;  %v1273_v40 = vcvt.s32.f32 %v761_v57  ;;  %v1277_v19 = vcvt.s32.f32 %v765_v16  ;;  %v625_v21 = vunpack.c.0.s8 %v233_v48 }
 0x147   :  { %1916 = vmatpush.bf16.msrb.mxu0 %v1445_v10  ;;  %v1509_v13 = vpack.c.bf16 %v1213_v12, %v1209_v36  ;;  %v629_v15 = vunpack.c.1.s8 %v233_v48  ;;  %v1073_v23 = vcvt.s32.f32 %v561_v17  ;;  %v1077_v24 = vcvt.s32.f32 %v565_v18  ;;  %v261_v48 = vld [vmem:[#allocation5 + $0x3b8] sm:$0xff] }
 0x148   :  { %1929 = vmatpush.bf16.msrb.mxu1 %v1477_v26  ;;  %v689_v29 = vunpack.c.0.s8 %v249_v56  ;;  %v693_v31 = vunpack.c.1.s8 %v249_v56  ;;  %v1541_v27 = vpack.c.bf16 %v1277_v19, %v1273_v40  ;;  %v1137_v28 = vcvt.s32.f32 %v625_v21  ;;  %v1678_v56 = vpop.f32.mrf.mxu1  ;;  %v209_v19 = vld [vmem:[#allocation5 + $0x218] sm:$0xff] }
 0x149   :  { %1942 = vmatpush.bf16.msrb.mxu2 %v1509_v13  ;;  %v1141_v20 = vcvt.s32.f32 %v629_v15  ;;  %v753_v39 = vunpack.c.0.s8 %v265_v61  ;;  %v1441_v43 = vpack.c.bf16 %v1077_v24, %v1073_v23  ;;  %v757_v42 = vunpack.c.1.s8 %v265_v61 }
 0x14a   :  { %v1201_v44 = vcvt.s32.f32 %v689_v29  ;;  %v1205_v38 = vcvt.s32.f32 %v693_v31  ;;  %1955 = vmatpush.bf16.msrb.mxu3 %v1541_v27  ;;  %v553_v47 = vunpack.c.2.s8 %v213_v34  ;;  %v557_v46 = vunpack.c.3.s8 %v213_v34  ;;  %v225_v29 = vld [vmem:[#allocation5 + $0x298] sm:$0xff] }
 0x14b   :  { %v1473_v45 = vpack.c.bf16 %v1141_v20, %v1137_v28  ;;  %v1265_v4 = vcvt.s32.f32 %v753_v39  ;;  %1917 = vmatpush.bf16.msrb.mxu0 %v1441_v43  ;;  %v1269_v50 = vcvt.s32.f32 %v757_v42  ;;  %v617_v52 = vunpack.c.2.s8 %v229_v41  ;;  %v241_v20 = vld [vmem:[#allocation5 + $0x318] sm:$0xff] }
 0x14c   :  { %v1505_v49 = vpack.c.bf16 %v1205_v38, %v1201_v44  ;;  %v621_v51 = vunpack.c.3.s8 %v229_v41  ;;  %v1065_v58 = vcvt.s32.f32 %v553_v47  ;;  %v1069_v5 = vcvt.s32.f32 %v557_v46  ;;  %v5346_v31 = vpop.f32.mrf.mxu0  ;;  %v257_v42 = vld [vmem:[#allocation5 + $0x398] sm:$0xff] }
 0x14d   :  { %1930 = vmatpush.bf16.msrb.mxu1 %v1473_v45  ;;  %v681_v30 = vunpack.c.2.s8 %v245_v54  ;;  %v685_v59 = vunpack.c.3.s8 %v245_v54  ;;  %v1537_v61 = vpack.c.bf16 %v1269_v50, %v1265_v4  ;;  %v1129_v62 = vcvt.s32.f32 %v617_v52 }
 0x14e   :  { %1943 = vmatpush.bf16.msrb.mxu2 %v1505_v49  ;;  %v1133_v63 = vcvt.s32.f32 %v621_v51  ;;  %v745_v1 = vunpack.c.2.s8 %v261_v48  ;;  %v1437_v2 = vpack.c.bf16 %v1069_v5, %v1065_v58  ;;  %v749_v6 = vunpack.c.3.s8 %v261_v48  ;;  %v5352_v51 = vpop.f32.mrf.mxu3 }
 0x14f   :  { %v1193_v60 = vcvt.s32.f32 %v681_v30  ;;  %v1197_v3 = vcvt.s32.f32 %v685_v59  ;;  %1956 = vmatpush.bf16.msrb.mxu3 %v1537_v61  ;;  %v545_v57 = vunpack.c.0.s8 %v213_v34  ;;  %v549_v10 = vunpack.c.1.s8 %v213_v34 }
 0x150   :  { %v1469_v9 = vpack.c.bf16 %v1133_v63, %v1129_v62  ;;  %v1257_v11 = vcvt.s32.f32 %v745_v1  ;;  %1918 = vmatpush.bf16.msrb.mxu0 %v1437_v2  ;;  %v1261_v12 = vcvt.s32.f32 %v749_v6  ;;  %v609_v16 = vunpack.c.0.s8 %v229_v41  ;;  %v5348_v39 = vpop.f32.mrf.mxu1 }
 0x151   :  { %v1501_v36 = vpack.c.bf16 %v1197_v3, %v1193_v60  ;;  %v613_v26 = vunpack.c.1.s8 %v229_v41  ;;  %v1057_v40 = vcvt.s32.f32 %v545_v57  ;;  %v1061_v17 = vcvt.s32.f32 %v549_v10 }
 0x152   :  { %1931 = vmatpush.bf16.msrb.mxu1 %v1469_v9  ;;  %v673_v18 = vunpack.c.0.s8 %v245_v54  ;;  %v677_v13 = vunpack.c.1.s8 %v245_v54  ;;  %v1533_v21 = vpack.c.bf16 %v1261_v12, %v1257_v11  ;;  %v1121_v15 = vcvt.s32.f32 %v609_v16  ;;  %v2000_v16 = vld [vmem:[%s6340_s3 + $0x30] sm:$0xff] }
 0x153   :  { %1944 = vmatpush.bf16.msrb.mxu2 %v1501_v36  ;;  %v1125_v23 = vcvt.s32.f32 %v613_v26  ;;  %v737_v24 = vunpack.c.0.s8 %v261_v48  ;;  %v1433_v34 = vpack.c.bf16 %v1061_v17, %v1057_v40  ;;  %v741_v28 = vunpack.c.1.s8 %v261_v48  ;;  %v5350_v48 = vpop.f32.mrf.mxu2 }
 0x154   :  { %v1185_v37 = vcvt.s32.f32 %v673_v18  ;;  %v1189_v27 = vcvt.s32.f32 %v677_v13  ;;  %1957 = vmatpush.bf16.msrb.mxu3 %v1533_v21  ;;  %v537_v44 = vunpack.c.2.s8 %v209_v19  ;;  %v541_v38 = vunpack.c.3.s8 %v209_v19  ;;  %v1717_v11 = vpop.f32.mrf.mxu0 }
 0x155   :  { %v1465_v41 = vpack.c.bf16 %v1125_v23, %v1121_v15  ;;  %v1249_v43 = vcvt.s32.f32 %v737_v24  ;;  %1919 = vmatpush.bf16.msrb.mxu0 %v1433_v34  ;;  %v1253_v45 = vcvt.s32.f32 %v741_v28  ;;  %v601_v4 = vunpack.c.2.s8 %v225_v29 }
 0x156   :  { %v1497_v54 = vpack.c.bf16 %v1189_v27, %v1185_v37  ;;  %v605_v47 = vunpack.c.3.s8 %v225_v29  ;;  %v1049_v46 = vcvt.s32.f32 %v537_v44  ;;  %v1053_v49 = vcvt.s32.f32 %v541_v38 }
 0x157   :  { %1932 = vmatpush.bf16.msrb.mxu1 %v1465_v41  ;;  %v665_v50 = vunpack.c.2.s8 %v241_v20  ;;  %v669_v52 = vunpack.c.3.s8 %v241_v20  ;;  %v1529_v56 = vpack.c.bf16 %v1253_v45, %v1249_v43  ;;  %v1113_v58 = vcvt.s32.f32 %v601_v4 }
 0x158   :  { %1945 = vmatpush.bf16.msrb.mxu2 %v1497_v54  ;;  %v1117_v5 = vcvt.s32.f32 %v605_v47  ;;  %v729_v30 = vunpack.c.2.s8 %v257_v42  ;;  %v1429_v59 = vpack.c.bf16 %v1053_v49, %v1049_v46  ;;  %v733_v63 = vunpack.c.3.s8 %v257_v42  ;;  %v1730_v26 = vpop.f32.mrf.mxu1 }
 0x159   :  { %v1177_v61 = vcvt.s32.f32 %v665_v50  ;;  %v1181_v62 = vcvt.s32.f32 %v669_v52  ;;  %1958 = vmatpush.bf16.msrb.mxu3 %v1529_v56  ;;  %v529_v60 = vunpack.c.0.s8 %v209_v19  ;;  %v533_v3 = vunpack.c.1.s8 %v209_v19  ;;  %v2008_v19 = vld [vmem:[%s6340_s3 + $0x70] sm:$0xff]  ;;  %v2006_v50 = vld [vmem:[%s6340_s3 + $0x60] sm:$0xff] }
 0x15a   :  { %v1461_v1 = vpack.c.bf16 %v1117_v5, %v1113_v58  ;;  %v1241_v2 = vcvt.s32.f32 %v729_v30  ;;  %1920 = vmatpush.bf16.msrb.mxu0 %v1429_v59  ;;  %v1245_v7 = vcvt.s32.f32 %v733_v63  ;;  %v593_v8 = vunpack.c.0.s8 %v225_v29 }
 0x15b   :  { %v1493_v6 = vpack.c.bf16 %v1181_v62, %v1177_v61  ;;  %v597_v9 = vunpack.c.1.s8 %v225_v29  ;;  %v1041_v57 = vcvt.s32.f32 %v529_v60  ;;  %v1045_v10 = vcvt.s32.f32 %v533_v3  ;;  %v1743_v28 = vpop.f32.mrf.mxu2 }
 0x15c   :  { %1933 = vmatpush.bf16.msrb.mxu1 %v1461_v1  ;;  %v657_v36 = vunpack.c.0.s8 %v241_v20  ;;  %v661_v12 = vunpack.c.1.s8 %v241_v20  ;;  %v1525_v40 = vpack.c.bf16 %v1245_v7, %v1241_v2  ;;  %v1105_v17 = vcvt.s32.f32 %v593_v8  ;;  %v1756_v20 = vpop.f32.mrf.mxu3 }
 0x15d   :  { %1946 = vmatpush.bf16.msrb.mxu2 %v1493_v6  ;;  %v1109_v18 = vcvt.s32.f32 %v597_v9  ;;  %v721_v13 = vunpack.c.0.s8 %v257_v42  ;;  %v1425_v21 = vpack.c.bf16 %v1045_v10, %v1041_v57  ;;  %v725_v24 = vunpack.c.1.s8 %v257_v42 }
 0x15e   :  { %v1169_v15 = vcvt.s32.f32 %v657_v36  ;;  %v1173_v23 = vcvt.s32.f32 %v661_v12  ;;  %1959 = vmatpush.bf16.msrb.mxu3 %v1525_v40  ;;  %v1677_v37 = vadd.f32 %v5340_v33, %v5338_v0  ;;  %v2054_v27 = vunpack.c.2.s8 %v2000_v16  ;;  %v1998_v0 = vld [vmem:[%s6340_s3 + $0x20] sm:$0xff]  ;;  %v2004_v36 = vld [vmem:[%s6340_s3 + $0x50] sm:$0xff] }
 0x15f   :  { %v1457_v29 = vpack.c.bf16 %v1109_v18, %v1105_v17  ;;  %v1233_v34 = vcvt.s32.f32 %v721_v13  ;;  %1921 = vmatpush.bf16.msrb.mxu0 %v1425_v21  ;;  %v1237_v43 = vcvt.s32.f32 %v725_v24  ;;  %v2056_v44 = vunpack.c.3.s8 %v2000_v16 }
 0x160   :  { %v1489_v41 = vpack.c.bf16 %v1173_v23, %v1169_v15  ;;  %v2086_v38 = vunpack.c.2.s8 %v2008_v19  ;;  %v2182_v54 = vcvt.s32.f32 %v2054_v27  ;;  %v2088_v45 = vunpack.c.3.s8 %v2008_v19 }
 0x161   :  { %1934 = vmatpush.bf16.msrb.mxu1 %v1457_v29  ;;  %v1690_v42 = vadd.f32 %v5342_v14, %v1677_v37  ;;  %v2050_v4 = vunpack.c.0.s8 %v2000_v16  ;;  %v1521_v33 = vpack.c.bf16 %v1237_v43, %v1233_v34  ;;  %v2184_v47 = vcvt.s32.f32 %v2056_v44 }
 0x162   :  { %1947 = vmatpush.bf16.msrb.mxu2 %v1489_v41  ;;  %v2214_v46 = vcvt.s32.f32 %v2086_v38  ;;  %v2052_v49 = vunpack.c.1.s8 %v2000_v16  ;;  %v2216_v52 = vcvt.s32.f32 %v2088_v45  ;;  %1922 = vmatmul.bf16.vlgmr.msrb.gmra.mxu0 %v5267_v32  ;;  %v2082_v58 = vunpack.c.0.s8 %v2008_v19  ;;  %v5385_v16 = vld [vmem:[#allocation9] sm:$0xf]  ;;  %v1994_v41 = vld [vmem:[%s6340_s3] sm:$0xff] }
 0x163   :  { %v1703_v56 = vadd.f32 %v5344_v22, %v1690_v42  ;;  %v2178_v14 = vcvt.s32.f32 %v2050_v4  ;;  %1960 = vmatpush.bf16.msrb.mxu3 %v1521_v33  ;;  %v2296_v5 = vpack.c.bf16 %v2184_v47, %v2182_v54  ;;  %v2084_v59 = vunpack.c.1.s8 %v2008_v19 }
 0x164   :  { %1935 = vmatmul.bf16.vlgmr.msrb.gmra.mxu1 %v5278_v55  ;;  %v2180_v30 = vcvt.s32.f32 %v2052_v49  ;;  %v2046_v61 = vunpack.c.2.s8 %v1998_v0  ;;  %v2312_v62 = vpack.c.bf16 %v2216_v52, %v2214_v46  ;;  %v2210_v63 = vcvt.s32.f32 %v2082_v58 }
 0x165   :  { %1948 = vmatmul.bf16.vlgmr.msrb.gmra.mxu2 %v5265_v25  ;;  %v2048_v1 = vunpack.c.3.s8 %v1998_v0  ;;  %v2078_v2 = vunpack.c.2.s8 %v2006_v50  ;;  %2346 = vmatpush.bf16.msra.mxu0 %v2296_v5  ;;  %v2212_v32 = vcvt.s32.f32 %v2084_v59  ;;  %v2080_v3 = vunpack.c.3.s8 %v2006_v50  ;;  %v1996_v25 = vld [vmem:[%s6340_s3 + $0x10] sm:$0xff]  ;;  %v2001_v59 = vld [vmem:[%s6340_s3 + $0x38] sm:$0xff] }
 0x166   :  { %v2294_v60 = vpack.c.bf16 %v2180_v30, %v2178_v14  ;;  %v2174_v22 = vcvt.s32.f32 %v2046_v61  ;;  %2359 = vmatpush.bf16.msra.mxu1 %v2312_v62  ;;  %1961 = vmatmul.bf16.vlgmr.msrb.gmra.mxu3 %v5272_v35  ;;  %v2042_v7 = vunpack.c.0.s8 %v1998_v0  ;;  %v2044_v8 = vunpack.c.1.s8 %v1998_v0 }
 0x167   :  { %v2176_v6 = vcvt.s32.f32 %v2048_v1  ;;  %v2206_v55 = vcvt.s32.f32 %v2078_v2  ;;  %v2310_v9 = vpack.c.bf16 %v2212_v32, %v2210_v63  ;;  %v2208_v11 = vcvt.s32.f32 %v2080_v3  ;;  %v2009_v3 = vld [vmem:[%s6340_s3 + $0x78] sm:$0xff] }
 0x168   :  { %v2074_v57 = vunpack.c.0.s8 %v2006_v50  ;;  %v2076_v10 = vunpack.c.1.s8 %v2006_v50  ;;  %v5383_v12 = vstv %s5362_s30  ;;  %v2170_v35 = vcvt.s32.f32 %v2042_v7  ;;  %s5007_s30 = sld [smem:[#allocation2 + $0x1]] }
 0x169   :  { %v2172_v26 = vcvt.s32.f32 %v2044_v8  ;;  %v1716_v40 = vadd.f32 %v5346_v31, %v1703_v56  ;;  %2347 = vmatpush.bf16.msra.mxu0 %v2294_v60  ;;  %v2292_v17 = vpack.c.bf16 %v2176_v6, %v2174_v22  ;;  %v2308_v18 = vpack.c.bf16 %v2208_v11, %v2206_v55 }
 0x16a   :  { %v2202_v13 = vcvt.s32.f32 %v2074_v57  ;;  %v2038_v19 = vunpack.c.2.s8 %v1996_v25  ;;  %2360 = vmatpush.bf16.msra.mxu1 %v2310_v9  ;;  %v2204_v21 = vcvt.s32.f32 %v2076_v10  ;;  %v2040_v23 = vunpack.c.3.s8 %v1996_v25  ;;  %v1999_v10 = vld [vmem:[%s6340_s3 + $0x28] sm:$0xff] }
 0x16b   :  { %v1729_v15 = vadd.f32 %v5348_v39, %v1716_v40  ;;  %v2070_v24 = vunpack.c.2.s8 %v2004_v36  ;;  %v1968_v29 = vmul.f32 %v5383_v12, %v5332_v53  ;;  %v1974_v34 = vperm.slane %v5385_v16, 0 }
 0x16c   :  { %v2072_v37 = vunpack.c.3.s8 %v2004_v36  ;;  %v2290_v27 = vpack.c.bf16 %v2172_v26, %v2170_v35  ;;  %v2166_v28 = vcvt.s32.f32 %v2038_v19  ;;  %v2034_v20 = vunpack.c.0.s8 %v1996_v25 }
 0x16d   :  { %v1742_v31 = vadd.f32 %v5350_v48, %v1729_v15  ;;  %2348 = vmatpush.bf16.msra.mxu0 %v2292_v17  ;;  %v2168_v43 = vcvt.s32.f32 %v2040_v23  ;;  %v2036_v39 = vunpack.c.1.s8 %v1996_v25  ;;  %v2066_v44 = vunpack.c.0.s8 %v2004_v36  ;;  %v2002_v48 = vld [vmem:[%s6340_s3 + $0x40] sm:$0xff] }
 0x16e   :  { %v2068_v38 = vunpack.c.1.s8 %v2004_v36  ;;  %2361 = vmatpush.bf16.msra.mxu1 %v2308_v18  ;;  %v2306_v54 = vpack.c.bf16 %v2204_v21, %v2202_v13  ;;  %v2198_v53 = vcvt.s32.f32 %v2070_v24  ;;  %v2200_v45 = vcvt.s32.f32 %v2072_v37  ;;  %v5417_v21 = vld [vmem:[%s6340_s3 + $0x68] sm:$0xff] }
 0x16f   :  { %v1755_v42 = vadd.f32 %v5352_v51, %v1742_v31  ;;  %v1975_v4 = vperm.slane %v5385_v16, 1  ;;  %v2162_v0 = vcvt.s32.f32 %v2034_v20  ;;  %v2164_v33 = vcvt.s32.f32 %v2036_v39  ;;  %v2016_v39 = vld [vmem:[%s6340_s3 + $0xb0] sm:$0xff] }
 0x170   :  { %v2030_v47 = vunpack.c.2.s8 %v1994_v41  ;;  %v2194_v49 = vcvt.s32.f32 %v2066_v44  ;;  %v2196_v50 = vcvt.s32.f32 %v2068_v38  ;;  %v2032_v52 = vunpack.c.3.s8 %v1994_v41  ;;  %v5424_v44 = vpop.f32.mrf.mxu0  ;;  %v5426_v38 = vpop.f32.mrf.mxu1 }
 0x171   :  { %v1969_v46 = vmul.f32 %v5383_v12, %v1755_v42  ;;  %2349 = vmatpush.bf16.msra.mxu0 %v2290_v27  ;;  %v2288_v56 = vpack.c.bf16 %v2168_v43, %v2166_v28  ;;  %v2062_v14 = vunpack.c.2.s8 %v2002_v48  ;;  %v2064_v58 = vunpack.c.3.s8 %v2002_v48 }
 0x172   :  { %2362 = vmatpush.bf16.msra.mxu1 %v2306_v54  ;;  %v2304_v51 = vpack.c.bf16 %v2200_v45, %v2198_v53  ;;  %v2026_v5 = vunpack.c.0.s8 %v1994_v41  ;;  %v2028_v30 = vunpack.c.1.s8 %v1994_v41  ;;  %v1982_v61 = vadd.f32 %v1974_v34, %v1968_v29 }
 0x173   :  { %v5405_v62 = vadd.f32 %v1975_v4, %v1969_v46  ;;  %v2058_v63 = vunpack.c.0.s8 %v2002_v48  ;;  %v2060_v1 = vunpack.c.1.s8 %v2002_v48  ;;  %v2286_v2 = vpack.c.bf16 %v2164_v33, %v2162_v0 }
 0x174   :  { %v2302_v60 = vpack.c.bf16 %v2196_v50, %v2194_v49  ;;  %v2158_v32 = vcvt.s32.f32 %v2030_v47  ;;  %v2160_v22 = vcvt.s32.f32 %v2032_v52  ;;  %v2190_v6 = vcvt.s32.f32 %v2062_v14 }
 0x175   :  { %2350 = vmatpush.bf16.msra.mxu0 %v2288_v56  ;;  %v2192_v55 = vcvt.s32.f32 %v2064_v58  ;;  %v2055_v7 = vunpack.c.2.s8 %v2001_v59  ;;  %v2057_v8 = vunpack.c.3.s8 %v2001_v59  ;;  %v2154_v25 = vcvt.s32.f32 %v2026_v5  ;;  %v5438_v58 = vpop.f32.mrf.mxu2 }
 0x176   :  { %2363 = vmatpush.bf16.msra.mxu1 %v2304_v51  ;;  %v2156_v9 = vcvt.s32.f32 %v2028_v30  ;;  %v2186_v11 = vcvt.s32.f32 %v2058_v63  ;;  %v2188_v57 = vcvt.s32.f32 %v2060_v1  ;;  %v1986_v36 = vmax.f32 %v1982_v61, 0.0  ;;  %v1997_v61 = vld [vmem:[%s6340_s3 + $0x18] sm:$0xff] }
 0x177   :  { %v1987_v35 = vmax.f32 %v5405_v62, 0.0  ;;  %v2087_v26 = vunpack.c.2.s8 %v2009_v3  ;;  %v2089_v40 = vunpack.c.3.s8 %v2009_v3  ;;  %v2051_v17 = vunpack.c.0.s8 %v2001_v59 }
 0x178   :  { %v2053_v18 = vunpack.c.1.s8 %v2001_v59  ;;  %v2083_v13 = vunpack.c.0.s8 %v2009_v3  ;;  %v2085_v19 = vunpack.c.1.s8 %v2009_v3  ;;  %v2284_v15 = vpack.c.bf16 %v2160_v22, %v2158_v32 }
 0x179   :  { %2351 = vmatpush.bf16.msra.mxu0 %v2286_v2  ;;  %v2183_v23 = vcvt.s32.f32 %v2055_v7  ;;  %v2185_v24 = vcvt.s32.f32 %v2057_v8  ;;  %v2047_v29 = vunpack.c.2.s8 %v1999_v10  ;;  %v2300_v34 = vpack.c.bf16 %v2192_v55, %v2190_v6  ;;  %v5458_v55 = vpop.f32.mrf.mxu3 }
 0x17a   :  { %2364 = vmatpush.bf16.msra.mxu1 %v2302_v60  ;;  %v2282_v37 = vpack.c.bf16 %v2156_v9, %v2154_v25  ;;  %v2298_v27 = vpack.c.bf16 %v2188_v57, %v2186_v11  ;;  %v2049_v28 = vunpack.c.3.s8 %v1999_v10  ;;  %v2215_v31 = vcvt.s32.f32 %v2087_v26  ;;  %v2005_v60 = vld [vmem:[%s6340_s3 + $0x58] sm:$0xff]  ;;  %v2014_v11 = vld [vmem:[%s6340_s3 + $0xa0] sm:$0xff]  ;;  %v1769_v57 = vpop.f32.mrf.mxu0 }
 0x17b   :  { %v2217_v20 = vcvt.s32.f32 %v2089_v40  ;;  %v2079_v41 = vunpack.c.2.s8 %v5417_v21  ;;  %v2081_v43 = vunpack.c.3.s8 %v5417_v21  ;;  %v2179_v54 = vcvt.s32.f32 %v2051_v17 }
 0x17c   :  { %v2181_v53 = vcvt.s32.f32 %v2053_v18  ;;  %v2211_v45 = vcvt.s32.f32 %v2083_v13  ;;  %v2213_v42 = vcvt.s32.f32 %v2085_v19  ;;  %v2297_v48 = vpack.c.bf16 %v2185_v24, %v2183_v23 }
 0x17d   :  { %2352 = vmatpush.bf16.msra.mxu0 %v2284_v15  ;;  %v5428_v4 = vcvt.s32.f32 %v2047_v29  ;;  %v5430_v0 = vcvt.s32.f32 %v2049_v28  ;;  %v2043_v33 = vunpack.c.0.s8 %v1999_v10  ;;  %v5432_v47 = vcvt.s32.f32 %v2079_v41  ;;  %v5470_v28 = vld [vmem:[%s6340_s3 + $0x8] sm:$0xff] }
 0x17e   :  { %2365 = vmatpush.bf16.msra.mxu1 %v2300_v34  ;;  %v5434_v46 = vcvt.s32.f32 %v2081_v43  ;;  %v2045_v49 = vunpack.c.1.s8 %v1999_v10  ;;  %v2118_v50 = vunpack.c.2.s8 %v2016_v39  ;;  %v5436_v52 = vpack.c.bf16 %v1986_v36, %v1986_v36  ;;  %v1782_v10 = vpop.f32.mrf.mxu1 }
 0x17f   :  { %v2313_v56 = vpack.c.bf16 %v2217_v20, %v2215_v31  ;;  %v2120_v14 = vunpack.c.3.s8 %v2016_v39  ;;  %v5440_v51 = vpack.c.bf16 %v1987_v35, %v1987_v35  ;;  %v2295_v5 = vpack.c.bf16 %v2181_v53, %v2179_v54  ;;  %v1795_v31 = vpop.f32.mrf.mxu2 }
 0x180   :  { %v2311_v30 = vpack.c.bf16 %v2213_v42, %v2211_v45  ;;  %v2246_v59 = vcvt.s32.f32 %v2118_v50  ;;  %v2293_v62 = vpack.c.bf16 %v5430_v0, %v5428_v4  ;;  %v5447_v63 = vcvt.s32.f32 %v2043_v33  ;;  %v5484_v0 = vld [vmem:[%s6340_s3 + $0x48] sm:$0xff] }
 0x181   :  { %2353 = vmatpush.bf16.msra.mxu0 %v2282_v37  ;;  %v2075_v1 = vunpack.c.0.s8 %v5417_v21  ;;  %v2248_v2 = vcvt.s32.f32 %v2120_v14  ;;  %v2309_v32 = vpack.c.bf16 %v5434_v46, %v5432_v47  ;;  %v5455_v22 = vcvt.s32.f32 %v2045_v49  ;;  %v1808_v46 = vpop.f32.mrf.mxu3  ;;  %v2012_v14 = vld [vmem:[%s6340_s3 + $0x90] sm:$0xff] }
 0x182   :  { %2366 = vmatpush.bf16.msra.mxu1 %v2298_v27  ;;  %v2077_v3 = vunpack.c.1.s8 %v5417_v21  ;;  %v2114_v6 = vunpack.c.0.s8 %v2016_v39  ;;  %v2039_v8 = vunpack.c.2.s8 %v1997_v61  ;;  %v2041_v25 = vunpack.c.3.s8 %v1997_v61 }
 0x183   :  { %v2328_v7 = vpack.c.bf16 %v2248_v2, %v2246_v59  ;;  %v2116_v9 = vunpack.c.1.s8 %v2016_v39  ;;  %v2071_v36 = vunpack.c.2.s8 %v2005_v60  ;;  %v2073_v35 = vunpack.c.3.s8 %v2005_v60 }
 0x184   :  { %2354 = vmatmul.bf16.vlgmr.msra.gmra.mxu0 %v5436_v52  ;;  %v2242_v26 = vcvt.s32.f32 %v2114_v6  ;;  %v2035_v40 = vunpack.c.0.s8 %v1997_v61  ;;  %v2037_v18 = vunpack.c.1.s8 %v1997_v61  ;;  %v2067_v13 = vunpack.c.0.s8 %v2005_v60 }
 0x185   :  { %2398 = vmatpush.bf16.msrb.mxu0 %v2297_v48  ;;  %2367 = vmatmul.bf16.vlgmr.msra.gmra.mxu1 %v5440_v51  ;;  %v2244_v17 = vcvt.s32.f32 %v2116_v9  ;;  %v2069_v19 = vunpack.c.1.s8 %v2005_v60  ;;  %v2203_v21 = vcvt.s32.f32 %v2075_v1  ;;  %v2205_v15 = vcvt.s32.f32 %v2077_v3  ;;  %v2010_v3 = vld [vmem:[%s6340_s3 + $0x80] sm:$0xff] }
 0x186   :  { %2411 = vmatpush.bf16.msrb.mxu1 %v2313_v56  ;;  %2372 = vmatpush.bf16.msra.mxu2 %v2328_v7  ;;  %v2110_v23 = vunpack.c.2.s8 %v2014_v11  ;;  %v2112_v24 = vunpack.c.3.s8 %v2014_v11  ;;  %v2291_v29 = vpack.c.bf16 %v5455_v22, %v5447_v63  ;;  %v2167_v34 = vcvt.s32.f32 %v2039_v8 }
 0x187   :  { %v2169_v37 = vcvt.s32.f32 %v2041_v25  ;;  %v2326_v27 = vpack.c.bf16 %v2244_v17, %v2242_v26  ;;  %v2199_v20 = vcvt.s32.f32 %v2071_v36  ;;  %v2201_v41 = vcvt.s32.f32 %v2073_v35 }
 0x188   :  { %v2238_v43 = vcvt.s32.f32 %v2110_v23  ;;  %v2240_v39 = vcvt.s32.f32 %v2112_v24  ;;  %v5472_v54 = vcvt.s32.f32 %v2035_v40  ;;  %v5474_v53 = vcvt.s32.f32 %v2037_v18 }
 0x189   :  { %2399 = vmatpush.bf16.msrb.mxu0 %v2295_v5  ;;  %v5476_v45 = vcvt.s32.f32 %v2067_v13  ;;  %v5478_v42 = vcvt.s32.f32 %v2069_v19  ;;  %v2031_v4 = vunpack.c.2.s8 %v5470_v28  ;;  %v2106_v33 = vunpack.c.0.s8 %v2014_v11 }
 0x18a   :  { %2412 = vmatpush.bf16.msrb.mxu1 %v2311_v30  ;;  %2373 = vmatpush.bf16.msra.mxu2 %v2326_v27  ;;  %v2324_v48 = vpack.c.bf16 %v2240_v39, %v2238_v43  ;;  %v2108_v47 = vunpack.c.1.s8 %v2014_v11  ;;  %v2307_v49 = vpack.c.bf16 %v2205_v15, %v2203_v21  ;;  %v2033_v50 = vunpack.c.3.s8 %v5470_v28 }
 0x18b   :  { %v1781_v56 = vadd.f32 %v5426_v38, %v5424_v44  ;;  %v2289_v5 = vpack.c.bf16 %v2169_v37, %v2167_v34  ;;  %v2234_v30 = vcvt.s32.f32 %v2106_v33  ;;  %v2287_v63 = vpack.c.bf16 %v5474_v53, %v5472_v54 }
 0x18c   :  { %v2236_v59 = vcvt.s32.f32 %v2108_v47  ;;  %v2303_v1 = vpack.c.bf16 %v5478_v42, %v5476_v45  ;;  %v2063_v2 = vunpack.c.2.s8 %v5484_v0  ;;  %v2159_v44 = vcvt.s32.f32 %v2031_v4 }
 0x18d   :  { %2400 = vmatpush.bf16.msrb.mxu0 %v2293_v62  ;;  %v2305_v62 = vpack.c.bf16 %v2201_v41, %v2199_v20  ;;  %v2102_v22 = vunpack.c.2.s8 %v2012_v14  ;;  %v2161_v6 = vcvt.s32.f32 %v2033_v50  ;;  %v2065_v7 = vunpack.c.3.s8 %v5484_v0 }
 0x18e   :  { %2413 = vmatpush.bf16.msrb.mxu1 %v2309_v32  ;;  %v1819_v61 = vpop.f32.mrf.mxu0  ;;  %2374 = vmatpush.bf16.msra.mxu2 %v2324_v48  ;;  %v2322_v38 = vpack.c.bf16 %v2236_v59, %v2234_v30  ;;  %v1794_v32 = vadd.f32 %v5438_v58, %v1781_v56  ;;  %v2104_v8 = vunpack.c.3.s8 %v2012_v14  ;;  %v2098_v25 = vunpack.c.0.s8 %v2012_v14  ;;  %v2015_v30 = vld [vmem:[%s6340_s3 + $0xa8] sm:$0xff] }
 0x18f   :  { %v1832_v60 = vpop.f32.mrf.mxu1  ;;  %v2027_v9 = vunpack.c.0.s8 %v5470_v28  ;;  %v2230_v11 = vcvt.s32.f32 %v2102_v22  ;;  %v2100_v10 = vunpack.c.1.s8 %v2012_v14  ;;  %v2191_v36 = vcvt.s32.f32 %v2063_v2 }
 0x190   :  { %v1807_v57 = vadd.f32 %v5458_v55, %v1794_v32  ;;  %v2232_v58 = vcvt.s32.f32 %v2104_v8  ;;  %v2226_v35 = vcvt.s32.f32 %v2098_v25  ;;  %v2094_v26 = vunpack.c.2.s8 %v2010_v3  ;;  %v2017_v55 = vld [vmem:[%s6340_s3 + $0xb8] sm:$0xff]  ;;  %v2024_v25 = vld [vmem:[%s6340_s3 + $0xf0] sm:$0xff] }
 0x191   :  { %2401 = vmatpush.bf16.msrb.mxu0 %v2291_v29  ;;  %v2029_v40 = vunpack.c.1.s8 %v5470_v28  ;;  %v2228_v17 = vcvt.s32.f32 %v2100_v10  ;;  %v2096_v18 = vunpack.c.3.s8 %v2010_v3  ;;  %v2193_v19 = vcvt.s32.f32 %v2065_v7 }
 0x192   :  { %2414 = vmatpush.bf16.msrb.mxu1 %v2307_v49  ;;  %2375 = vmatpush.bf16.msra.mxu2 %v2322_v38  ;;  %v1820_v13 = vadd.f32 %v1819_v61, %v1807_v57  ;;  %v2059_v21 = vunpack.c.0.s8 %v5484_v0  ;;  %v2061_v15 = vunpack.c.1.s8 %v5484_v0  ;;  %v2320_v23 = vpack.c.bf16 %v2232_v58, %v2230_v11 }
 0x193   :  { %v2285_v24 = vpack.c.bf16 %v2161_v6, %v2159_v44  ;;  %v2155_v29 = vcvt.s32.f32 %v2027_v9  ;;  %v2090_v34 = vunpack.c.0.s8 %v2010_v3  ;;  %v2318_v31 = vpack.c.bf16 %v2228_v17, %v2226_v35 }
 0x194   :  { %v1833_v37 = vadd.f32 %v1832_v60, %v1820_v13  ;;  %v2222_v20 = vcvt.s32.f32 %v2094_v26  ;;  %v2224_v41 = vcvt.s32.f32 %v2096_v18  ;;  %v2092_v43 = vunpack.c.1.s8 %v2010_v3  ;;  %v2022_v13 = vld [vmem:[%s6340_s3 + $0xe0] sm:$0xff] }
 0x195   :  { %2402 = vmatpush.bf16.msrb.mxu0 %v2289_v5  ;;  %v2157_v53 = vcvt.s32.f32 %v2029_v40  ;;  %v2119_v45 = vunpack.c.2.s8 %v2017_v55  ;;  %v2121_v42 = vunpack.c.3.s8 %v2017_v55  ;;  %v2301_v4 = vpack.c.bf16 %v2193_v19, %v2191_v36  ;;  %v2013_v40 = vld [vmem:[%s6340_s3 + $0x98] sm:$0xff] }
 0x196   :  { %2415 = vmatpush.bf16.msrb.mxu1 %v2305_v62  ;;  %v1845_v27 = vpop.f32.mrf.mxu2  ;;  %v1821_v28 = vpop.f32.mrf.mxu0  ;;  %2376 = vmatpush.bf16.msra.mxu2 %v2320_v23  ;;  %v2187_v0 = vcvt.s32.f32 %v2059_v21  ;;  %v2189_v33 = vcvt.s32.f32 %v2061_v15  ;;  %v2218_v47 = vcvt.s32.f32 %v2090_v34  ;;  %v1976_v49 = vperm.slane %v5385_v16, 2 }
 0x197   :  { %v1858_v39 = vpop.f32.mrf.mxu3  ;;  %v1834_v54 = vpop.f32.mrf.mxu1  ;;  %v1846_v48 = vadd.f32 %v1845_v27, %v1833_v37  ;;  %v2316_v50 = vpack.c.bf16 %v2224_v41, %v2222_v20  ;;  %v2220_v56 = vcvt.s32.f32 %v2092_v43  ;;  %v2115_v14 = vunpack.c.0.s8 %v2017_v55 }
 0x198   :  { %v2117_v5 = vunpack.c.1.s8 %v2017_v55  ;;  %v2283_v59 = vpack.c.bf16 %v2157_v53, %v2155_v29  ;;  %v2247_v61 = vcvt.s32.f32 %v2119_v45  ;;  %v2249_v62 = vcvt.s32.f32 %v2121_v42  ;;  %v2020_v53 = vld [vmem:[%s6340_s3 + $0xd0] sm:$0xff] }
 0x199   :  { %2403 = vmatpush.bf16.msrb.mxu0 %v2287_v63  ;;  %v1859_v46 = vadd.f32 %v1858_v39, %v1846_v48  ;;  %v2111_v60 = vunpack.c.2.s8 %v2015_v30  ;;  %v2113_v44 = vunpack.c.3.s8 %v2015_v30  ;;  %v2314_v32 = vpack.c.bf16 %v2220_v56, %v2218_v47  ;;  %v2011_v48 = vld [vmem:[%s6340_s3 + $0x88] sm:$0xff] }
 0x19a   :  { %2416 = vmatpush.bf16.msrb.mxu1 %v2303_v1  ;;  %2377 = vmatpush.bf16.msra.mxu2 %v2318_v31  ;;  %v2299_v1 = vpack.c.bf16 %v2189_v33, %v2187_v0  ;;  %v2243_v22 = vcvt.s32.f32 %v2115_v14  ;;  %v2245_v3 = vcvt.s32.f32 %v2117_v5  ;;  %v2329_v7 = vpack.c.bf16 %v2249_v62, %v2247_v61 }
 0x19b   :  { %v1970_v63 = vmul.f32 %v5383_v12, %v1859_v46  ;;  %v2107_v9 = vunpack.c.0.s8 %v2015_v30  ;;  %v2150_v11 = vunpack.c.2.s8 %v2024_v25  ;;  %v2239_v10 = vcvt.s32.f32 %v2111_v60 }
 0x19c   :  { %v2241_v36 = vcvt.s32.f32 %v2113_v44  ;;  %v2152_v58 = vunpack.c.3.s8 %v2024_v25  ;;  %v2327_v35 = vpack.c.bf16 %v2245_v3, %v2243_v22  ;;  %v2109_v26 = vunpack.c.1.s8 %v2015_v30 }
 0x19d   :  { %2404 = vmatpush.bf16.msrb.mxu0 %v2285_v24  ;;  %v1984_v2 = vadd.f32 %v1976_v49, %v1970_v63  ;;  %v2278_v17 = vcvt.s32.f32 %v2150_v11  ;;  %v2146_v18 = vunpack.c.0.s8 %v2024_v25  ;;  %v2148_v21 = vunpack.c.1.s8 %v2024_v25 }
 0x19e   :  { %2417 = vmatpush.bf16.msrb.mxu1 %v2301_v4  ;;  %v1847_v38 = vpop.f32.mrf.mxu2  ;;  %2378 = vmatpush.bf16.msra.mxu2 %v2316_v50  ;;  %v2280_v19 = vcvt.s32.f32 %v2152_v58  ;;  %v2142_v15 = vunpack.c.2.s8 %v2022_v13  ;;  %v2235_v55 = vcvt.s32.f32 %v2107_v9  ;;  %v2103_v24 = vunpack.c.2.s8 %v2013_v40 }
 0x19f   :  { %v1860_v6 = vpop.f32.mrf.mxu3  ;;  %v1988_v8 = vmax.f32 %v1984_v2, 0.0  ;;  %v2274_v23 = vcvt.s32.f32 %v2146_v18  ;;  %v2276_v34 = vcvt.s32.f32 %v2148_v21  ;;  %v2325_v37 = vpack.c.bf16 %v2241_v36, %v2239_v10  ;;  %v2018_v2 = vld [vmem:[%s6340_s3 + $0xc0] sm:$0xff] }
 0x1a0   :  { %v2344_v29 = vpack.c.bf16 %v2280_v19, %v2278_v17  ;;  %v2105_v27 = vunpack.c.3.s8 %v2013_v40  ;;  %v2138_v28 = vunpack.c.0.s8 %v2022_v13  ;;  %v2140_v31 = vunpack.c.1.s8 %v2022_v13 }
 0x1a1   :  { %2405 = vmatpush.bf16.msrb.mxu0 %v2283_v59  ;;  %v5518_v57 = vpack.c.bf16 %v1988_v8, %v1988_v8  ;;  %v2237_v20 = vcvt.s32.f32 %v2109_v26  ;;  %v2270_v41 = vcvt.s32.f32 %v2142_v15  ;;  %v2231_v39 = vcvt.s32.f32 %v2103_v24 }
 0x1a2   :  { %2418 = vmatpush.bf16.msrb.mxu1 %v2299_v1  ;;  %2379 = vmatpush.bf16.msra.mxu2 %v2314_v32  ;;  %v2099_v54 = vunpack.c.0.s8 %v2013_v40  ;;  %v2233_v45 = vcvt.s32.f32 %v2105_v27  ;;  %v2101_v42 = vunpack.c.1.s8 %v2013_v40  ;;  %v2266_v4 = vcvt.s32.f32 %v2138_v28 }
 0x1a3   :  { %2385 = vmatpush.bf16.msra.mxu3 %v2344_v29  ;;  %v2268_v0 = vcvt.s32.f32 %v2140_v31  ;;  %v2323_v33 = vpack.c.bf16 %v2237_v20, %v2235_v55  ;;  %v2134_v46 = vunpack.c.2.s8 %v2020_v53  ;;  %v2136_v49 = vunpack.c.3.s8 %v2020_v53  ;;  %v2025_v55 = vld [vmem:[%s6340_s3 + $0xf8] sm:$0xff] }
 0x1a4   :  { %2406 = vmatmul.bf16.vlgmr.msrb.gmra.mxu0 %v5436_v52  ;;  %v2144_v52 = vunpack.c.3.s8 %v2022_v13  ;;  %v2227_v50 = vcvt.s32.f32 %v2099_v54  ;;  %v2095_v56 = vunpack.c.2.s8 %v2011_v48  ;;  %v2321_v14 = vpack.c.bf16 %v2233_v45, %v2231_v39 }
 0x1a5   :  { %2419 = vmatmul.bf16.vlgmr.msrb.gmra.mxu1 %v5440_v51  ;;  %2380 = vmatmul.bf16.vlgmr.msra.gmra.mxu2 %v5518_v57  ;;  %v2342_v51 = vpack.c.bf16 %v2276_v34, %v2274_v23  ;;  %v2229_v5 = vcvt.s32.f32 %v2101_v42  ;;  %v2097_v30 = vunpack.c.3.s8 %v2011_v48  ;;  %v2338_v59 = vpack.c.bf16 %v2268_v0, %v2266_v4 }
 0x1a6   :  { %2424 = vmatpush.bf16.msrb.mxu2 %v2329_v7  ;;  %v2272_v43 = vcvt.s32.f32 %v2144_v52  ;;  %v2262_v61 = vcvt.s32.f32 %v2134_v46  ;;  %v2264_v62 = vcvt.s32.f32 %v2136_v49  ;;  %v2130_v63 = vunpack.c.0.s8 %v2020_v53 }
 0x1a7   :  { %2386 = vmatpush.bf16.msra.mxu3 %v2342_v51  ;;  %v2132_v1 = vunpack.c.1.s8 %v2020_v53  ;;  %v2223_v60 = vcvt.s32.f32 %v2095_v56  ;;  %v2091_v44 = vunpack.c.0.s8 %v2011_v48  ;;  %v2319_v38 = vpack.c.bf16 %v2229_v5, %v2227_v50  ;;  %v2023_v53 = vld [vmem:[%s6340_s3 + $0xe8] sm:$0xff]  ;;  %v2021_v56 = vld [vmem:[%s6340_s3 + $0xd8] sm:$0xff] }
 0x1a8   :  { %v2340_v47 = vpack.c.bf16 %v2272_v43, %v2270_v41  ;;  %v2225_v32 = vcvt.s32.f32 %v2097_v30  ;;  %v2093_v22 = vunpack.c.1.s8 %v2011_v48  ;;  %v2126_v3 = vunpack.c.2.s8 %v2018_v2 }
 0x1a9   :  { %v2336_v6 = vpack.c.bf16 %v2264_v62, %v2262_v61  ;;  %v2258_v7 = vcvt.s32.f32 %v2130_v63  ;;  %v2260_v8 = vcvt.s32.f32 %v2132_v1  ;;  %v2128_v25 = vunpack.c.3.s8 %v2018_v2  ;;  %v2019_v62 = vld [vmem:[%s6340_s3 + $0xc8] sm:$0xff] }
 0x1aa   :  { %2425 = vmatpush.bf16.msrb.mxu2 %v2327_v35  ;;  %v2317_v9 = vpack.c.bf16 %v2225_v32, %v2223_v60  ;;  %v2219_v11 = vcvt.s32.f32 %v2091_v44  ;;  %v2221_v10 = vcvt.s32.f32 %v2093_v22  ;;  %v2254_v58 = vcvt.s32.f32 %v2126_v3 }
 0x1ab   :  { %2387 = vmatpush.bf16.msra.mxu3 %v2340_v47  ;;  %v2334_v36 = vpack.c.bf16 %v2260_v8, %v2258_v7  ;;  %v2256_v35 = vcvt.s32.f32 %v2128_v25  ;;  %v2122_v52 = vunpack.c.0.s8 %v2018_v2  ;;  %v2124_v23 = vunpack.c.1.s8 %v2018_v2 }
 0x1ac   :  { %v2315_v17 = vpack.c.bf16 %v2221_v10, %v2219_v11  ;;  %v2151_v24 = vunpack.c.2.s8 %v2025_v55  ;;  %v2153_v29 = vunpack.c.3.s8 %v2025_v55  ;;  %v2147_v51 = vunpack.c.0.s8 %v2025_v55 }
 0x1ad   :  { %v2332_v18 = vpack.c.bf16 %v2256_v35, %v2254_v58  ;;  %v2250_v34 = vcvt.s32.f32 %v2122_v52  ;;  %v2149_v41 = vunpack.c.1.s8 %v2025_v55  ;;  %v2143_v42 = vunpack.c.2.s8 %v2023_v53 }
 0x1ae   :  { %2426 = vmatpush.bf16.msrb.mxu2 %v2325_v37  ;;  %v2252_v37 = vcvt.s32.f32 %v2124_v23  ;;  %v2279_v27 = vcvt.s32.f32 %v2151_v24  ;;  %v2281_v28 = vcvt.s32.f32 %v2153_v29  ;;  %v2275_v39 = vcvt.s32.f32 %v2147_v51 }
 0x1af   :  { %2388 = vmatpush.bf16.msra.mxu3 %v2338_v59  ;;  %v2277_v54 = vcvt.s32.f32 %v2149_v41  ;;  %v2145_v48 = vunpack.c.3.s8 %v2023_v53  ;;  %v2271_v4 = vcvt.s32.f32 %v2143_v42  ;;  %v2139_v47 = vunpack.c.0.s8 %v2023_v53  ;;  %v2477_v42 = vld [vmem:[%s6341_s4 + $0x68] sm:$0xff] }
 0x1b0   :  { %v2330_v31 = vpack.c.bf16 %v2252_v37, %v2250_v34  ;;  %v2345_v20 = vpack.c.bf16 %v2281_v28, %v2279_v27  ;;  %v2141_v46 = vunpack.c.1.s8 %v2023_v53  ;;  %v2135_v5 = vunpack.c.2.s8 %v2021_v56 }
 0x1b1   :  { %v2343_v45 = vpack.c.bf16 %v2277_v54, %v2275_v39  ;;  %v2273_v0 = vcvt.s32.f32 %v2145_v48  ;;  %v2267_v49 = vcvt.s32.f32 %v2139_v47  ;;  %v2137_v30 = vunpack.c.3.s8 %v2021_v56  ;;  %v2493_v47 = vld [vmem:[%s6341_s4 + $0xe8] sm:$0xff] }
 0x1b2   :  { %2427 = vmatpush.bf16.msrb.mxu2 %v2323_v33  ;;  %v2269_v50 = vcvt.s32.f32 %v2141_v46  ;;  %v2131_v59 = vunpack.c.0.s8 %v2021_v56  ;;  %v2133_v61 = vunpack.c.1.s8 %v2021_v56  ;;  %v2263_v63 = vcvt.s32.f32 %v2135_v5  ;;  %v2475_v46 = vld [vmem:[%s6341_s4 + $0x58] sm:$0xff]  ;;  %v2472_v56 = vld [vmem:[%s6341_s4 + $0x40] sm:$0xff]  ;;  %v2470_v5 = vld [vmem:[%s6341_s4 + $0x30] sm:$0xff] }
 0x1b3   :  { %2389 = vmatpush.bf16.msra.mxu3 %v2336_v6  ;;  %v2341_v33 = vpack.c.bf16 %v2273_v0, %v2271_v4  ;;  %v2265_v1 = vcvt.s32.f32 %v2137_v30  ;;  %v2127_v2 = vunpack.c.2.s8 %v2019_v62  ;;  %v2129_v60 = vunpack.c.3.s8 %v2019_v62  ;;  %v2495_v4 = vld [vmem:[%s6341_s4 + $0xf8] sm:$0xff]  ;;  %v2494_v0 = vld [vmem:[%s6341_s4 + $0xf0] sm:$0xff]  ;;  %v2469_v30 = vld [vmem:[%s6341_s4 + $0x28] sm:$0xff] }
 0x1b4   :  { %v2259_v44 = vcvt.s32.f32 %v2131_v59  ;;  %v2123_v11 = vunpack.c.0.s8 %v2019_v62  ;;  %v2125_v10 = vunpack.c.1.s8 %v2019_v62  ;;  %v1977_v24 = vperm.slane %v5385_v16, 3  ;;  %2520 = vmatpush.msra.mxu1 %v2495_v4 }
 0x1b5   :  { %v2337_v32 = vpack.c.bf16 %v2265_v1, %v2263_v63  ;;  %v2255_v6 = vcvt.s32.f32 %v2127_v2  ;;  %v2257_v7 = vcvt.s32.f32 %v2129_v60  ;;  %v2468_v63 = vld [vmem:[%s6341_s4 + $0x20] sm:$0xff]  ;;  %v2467_v2 = vld [vmem:[%s6341_s4 + $0x18] sm:$0xff]  ;;  %vm4984_vm4 = vcmask 1043456  }
 0x1b6   :  { %2428 = vmatpush.bf16.msrb.mxu2 %v2321_v14  ;;  %v2339_v14 = vpack.c.bf16 %v2269_v50, %v2267_v49  ;;  %v2251_v35 = vcvt.s32.f32 %v2123_v11  ;;  %2521 = vmatpush.msra.mxu1 %v2494_v0  ;;  %v2474_v49 = vld [vmem:[%s6341_s4 + $0x50] sm:$0xff]  ;;  %v2473_v50 = vld [vmem:[%s6341_s4 + $0x48] sm:$0xff]  ;;  %v2492_v1 = vld [vmem:[%s6341_s4 + $0xe0] sm:$0xff] }
 0x1b7   :  { %v1871_v26 = vpop.f32.mrf.mxu0  ;;  %2390 = vmatpush.bf16.msra.mxu3 %v2334_v36  ;;  %v2333_v25 = vpack.c.bf16 %v2257_v7, %v2255_v6  ;;  %v2491_v60 = vld [vmem:[%s6341_s4 + $0xd8] sm:$0xff]  ;;  %v2488_v6 = vld [vmem:[%s6341_s4 + $0xc0] sm:$0xff] }
 0x1b8   :  { %2522 = vmatpush.msra.mxu1 %v2493_v47  ;;  %v2487_v7 = vld [vmem:[%s6341_s4 + $0xb8] sm:$0xff]  ;;  %v2554_v47 = vld [vmem:[#allocation6] sm:$0xff] }
 0x1b9   :  { %v1884_v40 = vpop.f32.mrf.mxu1  ;;  %v2483_v11 = vld [vmem:[%s6341_s4 + $0x98] sm:$0xff] }
 0x1ba   :  { %2429 = vmatpush.bf16.msrb.mxu2 %v2319_v38  ;;  %v2261_v38 = vcvt.s32.f32 %v2133_v61  ;;  %v1885_v22 = vadd.f32 %v1884_v40, %v1871_v26  ;;  %2523 = vmatpush.msra.mxu1 %v2492_v1 }
 0x1bb   :  { %2391 = vmatpush.bf16.msra.mxu3 %v2332_v18 }
 0x1bc   :  { %v2335_v3 = vpack.c.bf16 %v2261_v38, %v2259_v44  ;;  %2524 = vmatpush.msra.mxu1 %v2491_v60  ;;  %v2466_v44 = vld [vmem:[%s6341_s4 + $0x10] sm:$0xff] }
 0x1bd   :  { %v2490_v38 = vld [vmem:[%s6341_s4 + $0xd0] sm:$0xff] }
 0x1be   :  { %2430 = vmatpush.bf16.msrb.mxu2 %v2317_v9  ;;  %2525 = vmatpush.msra.mxu1 %v2490_v38 }
 0x1bf   :  { %v1873_v13 = vpop.f32.mrf.mxu0  ;;  %2392 = vmatpush.bf16.msra.mxu3 %v2330_v31 }
 0x1c1   :  { %v1897_v19 = vpop.f32.mrf.mxu2  ;;  %v1886_v21 = vpop.f32.mrf.mxu1 }
 0x1c2   :  { %2431 = vmatpush.bf16.msrb.mxu2 %v2315_v17  ;;  %v1910_v15 = vpop.f32.mrf.mxu3  ;;  %v1898_v8 = vadd.f32 %v1897_v19, %v1885_v22  ;;  %v2253_v17 = vcvt.s32.f32 %v2125_v10  ;;  %v2489_v22 = vld [vmem:[%s6341_s4 + $0xc8] sm:$0xff]  ;;  %v2482_v10 = vld [vmem:[%s6341_s4 + $0x90] sm:$0xff] }
 0x1c3   :  { %2437 = vmatpush.bf16.msrb.mxu3 %v2345_v20  ;;  %2526 = vmatpush.msra.mxu1 %v2489_v22 }
 0x1c4   :  { %v1911_v36 = vadd.f32 %v1910_v15, %v1898_v8  ;;  %v2331_v13 = vpack.c.bf16 %v2253_v17, %v2251_v35  ;;  %v2486_v8 = vld [vmem:[%s6341_s4 + $0xb0] sm:$0xff]  ;;  %v2543_v35 = vld [vmem:[%s6346_s9] sm:$0x3] }
 0x1c5   :  { %2432 = vmatmul.bf16.vlgmr.msrb.gmra.mxu2 %v5518_v57  ;;  %2527 = vmatpush.msra.mxu1 %v2488_v6 }
 0x1c6   :  { %2545 = vrot.lane.b32.xlu0 %v2543_v35, %s5165_s0  ;;  %s5170_s0 = smov 96  }
 0x1c7   :  { %2438 = vmatpush.bf16.msrb.mxu3 %v2343_v45  ;;  %v2478_v45 = vld [vmem:[%s6341_s4 + $0x70] sm:$0xff]  ;;  %2528 = vmatpush.msra.mxu1 %v2487_v7 }
 0x1c9   :  { %v1899_v43 = vpop.f32.mrf.mxu2  ;;  %2529 = vmatpush.msra.mxu1 %v2486_v8 }
 0x1ca   :  { %v1912_v57 = vpop.f32.mrf.mxu3 }
 0x1cb   :  { %2439 = vmatpush.bf16.msrb.mxu3 %v2341_v33  ;;  %v2476_v33 = vld [vmem:[%s6341_s4 + $0x60] sm:$0xff] }
 0x1cf   :  { %2440 = vmatpush.bf16.msrb.mxu3 %v2339_v14  ;;  %v2471_v14 = vld [vmem:[%s6341_s4 + $0x38] sm:$0xff] }
 0x1d3   :  { %2441 = vmatpush.bf16.msrb.mxu3 %v2337_v32  ;;  %v2465_v32 = vld [vmem:[%s6341_s4 + $0x8] sm:$0xff] }
 0x1d7   :  { %2442 = vmatpush.bf16.msrb.mxu3 %v2335_v3  ;;  %v2464_v3 = vld [vmem:[%s6341_s4] sm:$0xff] }
 0x1db   :  { %2443 = vmatpush.bf16.msrb.mxu3 %v2333_v25  ;;  %v2485_v25 = vld [vmem:[%s6341_s4 + $0xa8] sm:$0xff] }
 0x1dc   :  { %2530 = vmatpush.msra.mxu1 %v2485_v25 }
 0x1df   :  { %v1923_v9 = vpop.f32.mrf.mxu0  ;;  %2444 = vmatpush.bf16.msrb.mxu3 %v2331_v13 }
 0x1e0   :  { %v1924_v18 = vadd.f32 %v1923_v9, %v1911_v36  ;;  %v2484_v9 = vld [vmem:[%s6341_s4 + $0xa0] sm:$0xff]  ;;  %v2481_v36 = vld [vmem:[%s6341_s4 + $0x88] sm:$0xff] }
 0x1e1   :  { %v1936_v58 = vpop.f32.mrf.mxu1  ;;  %2531 = vmatpush.msra.mxu1 %v2484_v9 }
 0x1e2   :  { %v1937_v21 = vadd.f32 %v1936_v58, %v1924_v18  ;;  %v2480_v58 = vld [vmem:[%s6341_s4 + $0x80] sm:$0xff]  ;;  %v2454_v18 = vld [vmem:[#allocation9 + $0x4] sm:$0x3] }
 0x1e3   :  { %2532 = vmatpush.msra.mxu1 %v2483_v11 }
 0x1e5   :  { %2533 = vmatpush.msra.mxu1 %v2482_v10 }
 0x1e7   :  { %v1925_v40 = vpop.f32.mrf.mxu0  ;;  %2534 = vmatpush.msra.mxu1 %v2481_v36 }
 0x1e8   :  { %v1949_v26 = vpop.f32.mrf.mxu2 }
 0x1e9   :  { %v1950_v52 = vadd.f32 %v1949_v26, %v1937_v21  ;;  %v1938_v23 = vpop.f32.mrf.mxu1  ;;  %v1962_v55 = vpop.f32.mrf.mxu3  ;;  %2535 = vmatpush.msra.mxu1 %v2480_v58  ;;  %v2451_v26 = vstv %s5007_s30 }
 0x1eb   :  { %v1963_v19 = vadd.f32 %v1962_v55, %v1950_v52  ;;  %v2456_v52 = vperm.slane %v2454_v18, 0 }
 0x1ed   :  { %v1971_v29 = vmul.f32 %v5383_v12, %v1963_v19  ;;  %v2479_v12 = vld [vmem:[%s6341_s4 + $0x78] sm:$0xff] }
 0x1ee   :  { %2500 = vmatpush.msra.mxu0 %v2479_v12 }
 0x1ef   :  { %v1985_v34 = vadd.f32 %v1977_v24, %v1971_v29 }
 0x1f0   :  { %v1951_v15 = vpop.f32.mrf.mxu2  ;;  %2501 = vmatpush.msra.mxu0 %v2478_v45 }
 0x1f1   :  { %v1989_v37 = vmax.f32 %v1985_v34, 0.0  ;;  %v1964_v27 = vpop.f32.mrf.mxu3  ;;  %v2457_v15 = vperm.slane %v2454_v18, 1 }
 0x1f2   :  { %2502 = vmatpush.msra.mxu0 %v2477_v42 }
 0x1f3   :  { %v1993_v28 = vpack.c.bf16 %v1989_v37, %v1989_v37 }
 0x1f4   :  { %2503 = vmatpush.msra.mxu0 %v2476_v33 }
 0x1f5   :  { %2393 = vmatmul.bf16.vlgmr.msra.gmra.mxu3 %v1993_v28 }
 0x1f6   :  { %2504 = vmatpush.msra.mxu0 %v2475_v46  ;;  %v2555_v46 = vld [vmem:[#allocation6 + $0x8] sm:$0xff] }
 0x1f8   :  { %2505 = vmatpush.msra.mxu0 %v2474_v49  ;;  %v2626_v49 = vld [vmem:[%s6343_s6 + $0x60] sm:$0xff] }
 0x1f9   :  { %v2694_v9 = vunpack.c.0.s8 %v2626_v49  ;;  %v2698_v11 = vunpack.c.1.s8 %v2626_v49 }
 0x1fa   :  { %2506 = vmatpush.msra.mxu0 %v2473_v50  ;;  %v2642_v50 = vld [vmem:[%s6343_s6 + $0xe0] sm:$0xff] }
 0x1fb   :  { %v2758_v58 = vunpack.c.0.s8 %v2642_v50  ;;  %v2762_v35 = vunpack.c.1.s8 %v2642_v50  ;;  %v2822_v18 = vcvt.s32.f32 %v2694_v9 }
 0x1fc   :  { %2507 = vmatpush.msra.mxu0 %v2472_v56  ;;  %v2627_v56 = vld [vmem:[%s6343_s6 + $0x68] sm:$0xff] }
 0x1fe   :  { %2508 = vmatpush.msra.mxu0 %v2471_v14  ;;  %v2702_v14 = vunpack.c.2.s8 %v2626_v49 }
 0x200   :  { %2509 = vmatpush.msra.mxu0 %v2470_v5  ;;  %v2706_v5 = vunpack.c.3.s8 %v2626_v49  ;;  %v2830_v60 = vcvt.s32.f32 %v2702_v14 }
 0x201   :  { %v5553_v31 = vpop.f32.mrf.mxu0 }
 0x202   :  { %v5555_v20 = vpop.f32.mrf.mxu1  ;;  %2510 = vmatpush.msra.mxu0 %v2469_v30  ;;  %v2766_v30 = vunpack.c.2.s8 %v2642_v50 }
 0x203   :  { %v2369_v17 = vadd.f32 %v5555_v20, %v5553_v31  ;;  %v2560_v31 = vld [vmem:[#allocation6 + $0x30] sm:$0xff]  ;;  %v2561_v20 = vld [vmem:[#allocation6 + $0x38] sm:$0xff] }
 0x204   :  { %2511 = vmatpush.msra.mxu0 %v2468_v63  ;;  %2584 = vmatpush.msra.mxu2 %v2560_v31  ;;  %v2707_v63 = vunpack.c.3.s8 %v2627_v56  ;;  %v2894_v38 = vcvt.s32.f32 %v2766_v30 }
 0x205   :  { %2445 = vmatmul.bf16.vlgmr.msrb.gmra.mxu3 %v1993_v28 }
 0x206   :  { %2512 = vmatpush.msra.mxu0 %v2467_v2  ;;  %2604 = vmatpush.msra.mxu3 %v2561_v20  ;;  %v2639_v20 = vld [vmem:[%s6343_s6 + $0xc8] sm:$0xff] }
 0x208   :  { %2513 = vmatpush.msra.mxu0 %v2466_v44  ;;  %v2834_v44 = vcvt.s32.f32 %v2706_v5 }
 0x209   :  { %v2357_v51 = vpop.f32.mrf.mxu0 }
 0x20a   :  { %v2370_v41 = vpop.f32.mrf.mxu1  ;;  %2514 = vmatpush.msra.mxu0 %v2465_v32  ;;  %v2930_v8 = vpack.c.bf16 %v2834_v44, %v2830_v60 }
 0x20b   :  { %v2558_v41 = vld [vmem:[#allocation6 + $0x20] sm:$0xff] }
 0x20c   :  { %2515 = vmatpush.msra.mxu0 %v2464_v3  ;;  %2585 = vmatpush.msra.mxu2 %v2558_v41  ;;  %v2835_v3 = vcvt.s32.f32 %v2707_v63  ;;  %v2618_v63 = vld [vmem:[%s6343_s6 + $0x20] sm:$0xff] }
 0x20d   :  { %v2670_v9 = vunpack.c.2.s8 %v2618_v63 }
 0x221   :  { %v2407_v43 = vpop.f32.mrf.mxu0 }
 0x222   :  { %v2420_v57 = vpop.f32.mrf.mxu1 }
 0x223   :  { %v2421_v39 = vadd.f32 %v2420_v57, %v2407_v43  ;;  %v2559_v43 = vld [vmem:[#allocation6 + $0x28] sm:$0xff]  ;;  %v2556_v57 = vld [vmem:[#allocation6 + $0x10] sm:$0xff] }
 0x224   :  { %2605 = vmatpush.msra.mxu3 %v2559_v43  ;;  %2586 = vmatpush.msra.mxu2 %v2556_v57 }
 0x226   :  { %2587 = vmatpush.msra.mxu2 %v2554_v47 }
 0x228   :  { %v5557_v53 = vpop.f32.mrf.mxu2  ;;  %2966 = vmatpush.bf16.msrb.mxu2 %v2930_v8 }
 0x229   :  { %v2409_v54 = vpop.f32.mrf.mxu0  ;;  %v2382_v13 = vadd.f32 %v5557_v53, %v2369_v17  ;;  %v2622_v17 = vld [vmem:[%s6343_s6 + $0x40] sm:$0xff] }
 0x22a   :  { %v2422_v16 = vpop.f32.mrf.mxu1  ;;  %v5024_v54 = vld [vmem:[#allocation9 + $0x14] ss:$0 sm:$0xff]  ;;  %v2690_v31 = vunpack.c.3.s8 %v2622_v17  ;;  %v2678_v49 = vunpack.c.0.s8 %v2622_v17  ;;  %v2682_v5 = vunpack.c.1.s8 %v2622_v17 }
 0x230   :  { %v2383_v48 = vpop.f32.mrf.mxu2 }
 0x238   :  { %v2546_v4 = vpop.permute.xlu0 %2545 }
 0x248   :  { %v2433_v59 = vpop.f32.mrf.mxu2 }
 0x249   :  { %v2434_v61 = vadd.f32 %v2433_v59, %v2421_v39  ;;  %v2557_v39 = vld [vmem:[#allocation6 + $0x18] sm:$0xff]  ;;  %v2770_v59 = vunpack.c.3.s8 %v2642_v50 }
 0x24a   :  { %2606 = vmatpush.msra.mxu3 %v2557_v39 }
 0x24b   :  { %v2898_v32 = vcvt.s32.f32 %v2770_v59  ;;  %v2806_v59 = vcvt.s32.f32 %v2678_v49 }
 0x24c   :  { %2607 = vmatpush.msra.mxu3 %v2555_v46 }
 0x24d   :  { %v2962_v25 = vpack.c.bf16 %v2898_v32, %v2894_v38 }
 0x24f   :  { %2979 = vmatpush.bf16.msrb.mxu3 %v2962_v25 }
 0x250   :  { %v2435_v62 = vpop.f32.mrf.mxu2 }
 0x251   :  { %v2703_v62 = vunpack.c.2.s8 %v2627_v56 }
 0x253   :  { %v2831_v22 = vcvt.s32.f32 %v2703_v62 }
 0x255   :  { %v2931_v10 = vpack.c.bf16 %v2835_v3, %v2831_v22  ;;  %v2743_v22 = vunpack.c.0.s8 %v2639_v20  ;;  %v2747_v3 = vunpack.c.1.s8 %v2639_v20 }
 0x257   :  { %2992 = vmatpush.bf16.msrb.mxu0 %v2931_v10 }
 0x278   :  { %v2394_v21 = vpop.f32.mrf.mxu3 }
 0x279   :  { %v2395_v40 = vadd.f32 %v2394_v21, %v2382_v13  ;;  %v2826_v13 = vcvt.s32.f32 %v2698_v11  ;;  %v2695_v21 = vunpack.c.0.s8 %v2627_v56  ;;  %v2619_v11 = vld [vmem:[%s6343_s6 + $0x28] sm:$0xff] }
 0x27b   :  { %v2452_v23 = vmul.f32 %v2451_v26, %v2395_v40  ;;  %v2886_v40 = vcvt.s32.f32 %v2758_v58  ;;  %v2875_v58 = vcvt.s32.f32 %v2747_v3 }
 0x27d   :  { %v2460_v55 = vadd.f32 %v2456_v52, %v2452_v23  ;;  %v2890_v52 = vcvt.s32.f32 %v2762_v35  ;;  %v2674_v35 = vunpack.c.3.s8 %v2618_v63 }
 0x27f   :  { %v2462_v19 = vmax.f32 %v2460_v55, 0.0 }
 0x280   :  { %v2396_v24 = vpop.f32.mrf.mxu3 }
 0x281   :  { %2516 = vmatmul.f32.vlgmr.msra.gmra.mxu0 %v2462_v19  ;;  %v2638_v19 = vld [vmem:[%s6343_s6 + $0xc0] sm:$0xff]  ;;  %v2926_v24 = vpack.c.bf16 %v2826_v13, %v2822_v18  ;;  %v2798_v13 = vcvt.s32.f32 %v2670_v9 }
 0x282   :  { %v2750_v57 = vunpack.c.2.s8 %v2638_v19  ;;  %v2754_v39 = vunpack.c.3.s8 %v2638_v19  ;;  %v2746_v62 = vunpack.c.1.s8 %v2638_v19 }
 0x283   :  { %2967 = vmatpush.bf16.msrb.mxu2 %v2926_v24 }
 0x284   :  { %v2874_v32 = vcvt.s32.f32 %v2746_v62 }
 0x288   :  { %v2446_v29 = vpop.f32.mrf.mxu3 }
 0x289   :  { %v2447_v34 = vadd.f32 %v2446_v29, %v2434_v61  ;;  %v2643_v61 = vld [vmem:[%s6343_s6 + $0xe8] sm:$0xff]  ;;  %v2823_v29 = vcvt.s32.f32 %v2695_v21 }
 0x28a   :  { %v2767_v1 = vunpack.c.2.s8 %v2643_v61  ;;  %v2771_v2 = vunpack.c.3.s8 %v2643_v61  ;;  %v2759_v23 = vunpack.c.0.s8 %v2643_v61  ;;  %v2763_v55 = vunpack.c.1.s8 %v2643_v61 }
 0x28b   :  { %v2453_v37 = vmul.f32 %v2451_v26, %v2447_v34  ;;  %v2699_v26 = vunpack.c.1.s8 %v2627_v56  ;;  %v2742_v61 = vunpack.c.0.s8 %v2638_v19 }
 0x28c   :  { %v2895_v6 = vcvt.s32.f32 %v2767_v1  ;;  %v2899_v7 = vcvt.s32.f32 %v2771_v2  ;;  %v2810_v2 = vcvt.s32.f32 %v2682_v5 }
 0x28d   :  { %v2461_v27 = vadd.f32 %v2457_v15, %v2453_v37  ;;  %v2827_v34 = vcvt.s32.f32 %v2699_v26  ;;  %v2686_v15 = vunpack.c.2.s8 %v2622_v17  ;;  %v2623_v37 = vld [vmem:[%s6343_s6 + $0x48] sm:$0xff]  ;;  %v2870_v38 = vcvt.s32.f32 %v2742_v61 }
 0x28e   :  { %v2963_v36 = vpack.c.bf16 %v2899_v7, %v2895_v6  ;;  %v2679_v60 = vunpack.c.0.s8 %v2623_v37  ;;  %v2683_v44 = vunpack.c.1.s8 %v2623_v37  ;;  %v2634_v6 = vld [vmem:[%s6343_s6 + $0xa0] sm:$0xff]  ;;  %v2918_v7 = vpack.c.bf16 %v2810_v2, %v2806_v59  ;;  %v2635_v17 = vld [vmem:[%s6343_s6 + $0xa8] sm:$0xff] }
 0x28f   :  { %v2463_v28 = vmax.f32 %v2461_v27, 0.0  ;;  %v2958_v27 = vpack.c.bf16 %v2890_v52, %v2886_v40  ;;  %v2927_v41 = vpack.c.bf16 %v2827_v34, %v2823_v29  ;;  %v2814_v43 = vcvt.s32.f32 %v2686_v15 }
 0x290   :  { %v2448_v51 = vpop.f32.mrf.mxu3  ;;  %3005 = vmatpush.bf16.msrb.mxu1 %v2963_v36  ;;  %v2807_v8 = vcvt.s32.f32 %v2679_v60  ;;  %v2811_v25 = vcvt.s32.f32 %v2683_v44  ;;  %v2950_v10 = vpack.c.bf16 %v2874_v32, %v2870_v38  ;;  %v2871_v36 = vcvt.s32.f32 %v2743_v22 }
 0x291   :  { %2536 = vmatmul.f32.vlgmr.msra.gmra.mxu1 %v2463_v28  ;;  %v2887_v28 = vcvt.s32.f32 %v2759_v23  ;;  %v2891_v51 = vcvt.s32.f32 %v2763_v55  ;;  %2980 = vmatpush.bf16.msrb.mxu3 %v2958_v27  ;;  %v2734_v21 = vunpack.c.2.s8 %v2634_v6  ;;  %v2738_v26 = vunpack.c.3.s8 %v2634_v6 }
 0x292   :  { %2993 = vmatpush.bf16.msrb.mxu0 %v2927_v41  ;;  %v2919_v18 = vpack.c.bf16 %v2811_v25, %v2807_v8  ;;  %v2951_v40 = vpack.c.bf16 %v2875_v58, %v2871_v36  ;;  %v2802_v52 = vcvt.s32.f32 %v2674_v35  ;;  %v2671_v23 = vunpack.c.2.s8 %v2619_v11 }
 0x293   :  { %v2675_v55 = vunpack.c.3.s8 %v2619_v11  ;;  %v2862_v19 = vcvt.s32.f32 %v2734_v21  ;;  %v2866_v24 = vcvt.s32.f32 %v2738_v26  ;;  %v2735_v29 = vunpack.c.2.s8 %v2635_v17 }
 0x294   :  { %v2739_v34 = vunpack.c.3.s8 %v2635_v17  ;;  %v2914_v15 = vpack.c.bf16 %v2802_v52, %v2798_v13  ;;  %v2666_v41 = vunpack.c.1.s8 %v2618_v63  ;;  %v2628_v52 = vld [vmem:[%s6343_s6 + $0x70] sm:$0xff] }
 0x295   :  { %v2803_v27 = vcvt.s32.f32 %v2675_v55 }
 0x2fe   :  { %v2517_v16 = vpop.f32.mrf.mxu0 }
 0x2ff   :  { %v2518_v53 = vadd.f32 %v5024_v54, %v2517_v16  ;;  %v2959_v54 = vpack.c.bf16 %v2891_v51, %v2887_v28  ;;  %v2818_v16 = vcvt.s32.f32 %v2690_v31  ;;  %v2662_v28 = vunpack.c.0.s8 %v2618_v63 }
 0x300   :  { %v2946_v51 = vpack.c.bf16 %v2866_v24, %v2862_v19  ;;  %v2863_v31 = vcvt.s32.f32 %v2735_v29 }
 0x301   :  { %3006 = vmatpush.bf16.msrb.mxu1 %v2959_v54  ;;  %v2730_v54 = vunpack.c.1.s8 %v2634_v6 }
 0x30e   :  { %v2537_v12 = vpop.f32.mrf.mxu1 }
 0x30f   :  { %v5662_v45 = vadd.f32 %v2537_v12, %v2518_v53  ;;  %v2687_v53 = vunpack.c.2.s8 %v2623_v37  ;;  %v2691_v12 = vunpack.c.3.s8 %v2623_v37  ;;  %v2799_v37 = vcvt.s32.f32 %v2671_v23 }
 0x311   :  { %v2540_v42 = vmul.f32 0.5, %v5662_v45  ;;  %4994 = vst.msk [vmem:[%s6348_s11] sm:$0x3] %vm4993_vm0, %v5662_v45  ;;  %v2815_v47 = vcvt.s32.f32 %v2687_v53  ;;  %v2819_v46 = vcvt.s32.f32 %v2691_v12  ;;  %v2794_v12 = vcvt.s32.f32 %v2666_v41  ;;  %v2629_v41 = vld [vmem:[%s6343_s6 + $0x78] sm:$0xff] }
 0x313   :  { %v2541_v48 = vmul.f32 1.442695, %v2540_v42  ;;  %v2878_v42 = vcvt.s32.f32 %v2750_v57  ;;  %v2923_v30 = vpack.c.bf16 %v2819_v46, %v2815_v47  ;;  %v2790_v57 = vcvt.s32.f32 %v2662_v28  ;;  %v2630_v46 = vld [vmem:[%s6343_s6 + $0x80] sm:$0xff] }
 0x314   :  { %v2731_v47 = vunpack.c.1.s8 %v2635_v17  ;;  %v2718_v38 = vunpack.c.2.s8 %v2630_v46  ;;  %v2722_v22 = vunpack.c.3.s8 %v2630_v46  ;;  %v2714_v19 = vunpack.c.1.s8 %v2630_v46 }
 0x315   :  { %5025 = vpow2.f32 %v2541_v48  ;;  %v2882_v48 = vcvt.s32.f32 %v2754_v39  ;;  %2994 = vmatpush.bf16.msrb.mxu0 %v2923_v30  ;;  %v2726_v39 = vunpack.c.0.s8 %v2634_v6  ;;  %v2615_v30 = vld [vmem:[%s6343_s6 + $0x8] sm:$0xff] }
 0x316   :  { %v2859_v63 = vcvt.s32.f32 %v2731_v47  ;;  %v2655_v3 = vunpack.c.2.s8 %v2615_v30  ;;  %v2850_v9 = vcvt.s32.f32 %v2722_v22  ;;  %v2647_v24 = vunpack.c.0.s8 %v2615_v30 }
 0x317   :  { %v2954_v50 = vpack.c.bf16 %v2882_v48, %v2878_v42  ;;  %v2663_v42 = vunpack.c.0.s8 %v2619_v11  ;;  %v2667_v48 = vunpack.c.1.s8 %v2619_v11  ;;  %v2705_v47 = vunpack.c.2.s8 %v2629_v41 }
 0x318   :  { %v2783_v11 = vcvt.s32.f32 %v2655_v3  ;;  %v2697_v3 = vunpack.c.0.s8 %v2629_v41 }
 0x319   :  { %2981 = vmatpush.bf16.msrb.mxu3 %v2954_v50  ;;  %2995 = vmatpush.bf16.msrb.mxu0 %v2919_v18  ;;  %v2910_v50 = vpack.c.bf16 %v2794_v12, %v2790_v57 }
 0x31b   :  { %v5026_v0 = vpop.eup %5025 }
 0x31c   :  { %v2548_v33 = vmul.f32 %v5026_v0, %v2546_v4  ;;  %v2751_v4 = vunpack.c.2.s8 %v2639_v20  ;;  %v2755_v0 = vunpack.c.3.s8 %v2639_v20  ;;  %v2867_v20 = vcvt.s32.f32 %v2739_v34 }
 0x31d   :  { %2982 = vmatpush.bf16.msrb.mxu3 %v2950_v10  ;;  %v2651_v34 = vunpack.c.1.s8 %v2615_v30 }
 0x31e   :  { %2550 = vrot.lane.b32.xlu0 %v2548_v33, %s5170_s0  ;;  %v2922_v33 = vpack.c.bf16 %v2818_v16, %v2814_v43  ;;  %v2879_v56 = vcvt.s32.f32 %v2751_v4  ;;  %v2883_v14 = vcvt.s32.f32 %v2755_v0  ;;  %v2915_v43 = vpack.c.bf16 %v2803_v27, %v2799_v37  ;;  %v2614_v16 = vld [vmem:[%s6343_s6] sm:$0xff]  ;;  %v2644_v27 = vld [vmem:[%s6343_s6 + $0xf0] sm:$0xff] }
 0x31f   :  { %v2947_v53 = vpack.c.bf16 %v2867_v20, %v2863_v31  ;;  %v2854_v4 = vcvt.s32.f32 %v2726_v39  ;;  %v2858_v0 = vcvt.s32.f32 %v2730_v54  ;;  %v2654_v5 = vunpack.c.2.s8 %v2614_v16 }
 0x320   :  { %2968 = vmatpush.bf16.msrb.mxu2 %v2922_v33  ;;  %v2955_v1 = vpack.c.bf16 %v2883_v14, %v2879_v56  ;;  %2996 = vmatpush.bf16.msrb.mxu0 %v2915_v43  ;;  %v2727_v33 = vunpack.c.0.s8 %v2635_v17  ;;  %v2791_v56 = vcvt.s32.f32 %v2663_v42  ;;  %v2795_v14 = vcvt.s32.f32 %v2667_v48 }
 0x321   :  { %2983 = vmatpush.bf16.msrb.mxu3 %v2946_v51  ;;  %v2942_v61 = vpack.c.bf16 %v2858_v0, %v2854_v4  ;;  %v2658_v60 = vunpack.c.3.s8 %v2614_v16  ;;  %v2782_v44 = vcvt.s32.f32 %v2654_v5  ;;  %v2646_v36 = vunpack.c.0.s8 %v2614_v16 }
 0x322   :  { %3007 = vmatpush.bf16.msrb.mxu1 %v2955_v1  ;;  %v2855_v62 = vcvt.s32.f32 %v2727_v33  ;;  %v2631_v1 = vld [vmem:[%s6343_s6 + $0x88] sm:$0xff]  ;;  %v2911_v2 = vpack.c.bf16 %v2795_v14, %v2791_v56  ;;  %v2650_v18 = vunpack.c.1.s8 %v2614_v16  ;;  %v2842_v51 = vcvt.s32.f32 %v2714_v19  ;;  %v2645_v16 = vld [vmem:[%s6343_s6 + $0xf8] sm:$0xff] }
 0x323   :  { %v2786_v6 = vcvt.s32.f32 %v2658_v60  ;;  %v2719_v8 = vunpack.c.2.s8 %v2631_v1  ;;  %v2723_v25 = vunpack.c.3.s8 %v2631_v1  ;;  %v2774_v26 = vcvt.s32.f32 %v2646_v36 }
 0x324   :  { %2969 = vmatpush.bf16.msrb.mxu2 %v2918_v7  ;;  %v2943_v32 = vpack.c.bf16 %v2859_v63, %v2855_v62  ;;  %2997 = vmatpush.bf16.msrb.mxu0 %v2911_v2  ;;  %v2846_v7 = vcvt.s32.f32 %v2718_v38  ;;  %v2778_v55 = vcvt.s32.f32 %v2650_v18  ;;  %v2715_v37 = vunpack.c.1.s8 %v2631_v1 }
 0x325   :  { %2984 = vmatpush.bf16.msrb.mxu3 %v2942_v61  ;;  %v2906_v58 = vpack.c.bf16 %v2786_v6, %v2782_v44  ;;  %v2847_v35 = vcvt.s32.f32 %v2719_v8  ;;  %v2851_v17 = vcvt.s32.f32 %v2723_v25  ;;  %v2775_v31 = vcvt.s32.f32 %v2647_v24  ;;  %v2624_v6 = vld [vmem:[%s6343_s6 + $0x50] sm:$0xff] }
 0x326   :  { %3008 = vmatpush.bf16.msrb.mxu1 %v2951_v40  ;;  %v2938_v13 = vpack.c.bf16 %v2850_v9, %v2846_v7  ;;  %v2710_v40 = vunpack.c.0.s8 %v2630_v46  ;;  %v2902_v28 = vpack.c.bf16 %v2778_v55, %v2774_v26  ;;  %v2704_v20 = vunpack.c.2.s8 %v2628_v52 }
 0x327   :  { %v2939_v23 = vpack.c.bf16 %v2851_v17, %v2847_v35  ;;  %v2779_v43 = vcvt.s32.f32 %v2651_v34  ;;  %v2843_v39 = vcvt.s32.f32 %v2715_v37  ;;  %v2708_v54 = vunpack.c.3.s8 %v2628_v52  ;;  %v2625_v17 = vld [vmem:[%s6343_s6 + $0x58] sm:$0xff] }
 0x328   :  { %2970 = vmatpush.bf16.msrb.mxu2 %v2914_v15  ;;  %v2838_v29 = vcvt.s32.f32 %v2710_v40  ;;  %v2711_v15 = vunpack.c.0.s8 %v2631_v1  ;;  %v2832_v12 = vcvt.s32.f32 %v2704_v20  ;;  %v2768_v42 = vunpack.c.2.s8 %v2644_v27  ;;  %v2641_v40 = vld [vmem:[%s6343_s6 + $0xd8] sm:$0xff] }
 0x329   :  { %2985 = vmatpush.bf16.msrb.mxu3 %v2938_v13  ;;  %v2772_v48 = vunpack.c.3.s8 %v2644_v27  ;;  %v2903_v4 = vpack.c.bf16 %v2779_v43, %v2775_v31  ;;  %v2836_v33 = vcvt.s32.f32 %v2708_v54  ;;  %v2769_v56 = vunpack.c.2.s8 %v2645_v16 }
 0x32a   :  { %3009 = vmatpush.bf16.msrb.mxu1 %v2947_v53  ;;  %v2839_v57 = vcvt.s32.f32 %v2711_v15  ;;  %v2934_v53 = vpack.c.bf16 %v2842_v51, %v2838_v29  ;;  %v2896_v46 = vcvt.s32.f32 %v2768_v42  ;;  %v2833_v5 = vcvt.s32.f32 %v2705_v47 }
 0x32b   :  { %v2932_v14 = vpack.c.bf16 %v2836_v33, %v2832_v12  ;;  %v2897_v63 = vcvt.s32.f32 %v2769_v56  ;;  %v2700_v1 = vunpack.c.1.s8 %v2628_v52  ;;  %v2760_v44 = vunpack.c.0.s8 %v2644_v27  ;;  %v5744_v12 = vld [vmem:[#allocation9 + $0x12] sm:$0x3] }
 0x32c   :  { %2971 = vmatpush.bf16.msrb.mxu2 %v2910_v50  ;;  %v2935_v0 = vpack.c.bf16 %v2843_v39, %v2839_v57  ;;  %v2709_v50 = vunpack.c.3.s8 %v2629_v41  ;;  %v2764_v38 = vunpack.c.1.s8 %v2644_v27  ;;  %v2761_v9 = vunpack.c.0.s8 %v2645_v16 }
 0x32d   :  { %2986 = vmatpush.bf16.msrb.mxu3 %v2934_v53  ;;  %v2828_v22 = vcvt.s32.f32 %v2700_v1  ;;  %v2888_v8 = vcvt.s32.f32 %v2760_v44  ;;  %v2825_v36 = vcvt.s32.f32 %v2697_v3  ;;  %v2765_v35 = vunpack.c.1.s8 %v2645_v16  ;;  %v2636_v1 = vld [vmem:[%s6343_s6 + $0xb0] sm:$0xff] }
 0x32e   :  { %3010 = vmatpush.bf16.msrb.mxu1 %v2943_v32  ;;  %v2837_v62 = vcvt.s32.f32 %v2709_v50  ;;  %v2892_v25 = vcvt.s32.f32 %v2764_v38  ;;  %v2889_v13 = vcvt.s32.f32 %v2761_v9  ;;  %v2692_v26 = vunpack.c.3.s8 %v2624_v6 }
 0x32f   :  { %v2689_v34 = vunpack.c.2.s8 %v2625_v17  ;;  %v2693_v15 = vunpack.c.3.s8 %v2625_v17  ;;  %v2753_v51 = vunpack.c.2.s8 %v2641_v40  ;;  %v2757_v43 = vunpack.c.3.s8 %v2641_v40 }
 0x330   :  { %2972 = vmatpush.bf16.msrb.mxu2 %v2906_v58  ;;  %v2933_v32 = vpack.c.bf16 %v2837_v62, %v2833_v5  ;;  %v2960_v18 = vpack.c.bf16 %v2892_v25, %v2888_v8  ;;  %v2820_v29 = vcvt.s32.f32 %v2692_v26  ;;  %v2680_v42 = vunpack.c.0.s8 %v2624_v6 }
 0x331   :  { %v2817_v20 = vcvt.s32.f32 %v2689_v34  ;;  %v2881_v39 = vcvt.s32.f32 %v2753_v51  ;;  %v2681_v33 = vunpack.c.0.s8 %v2625_v17  ;;  %v2685_v47 = vunpack.c.1.s8 %v2625_v17 }
 0x332   :  { %3011 = vmatpush.bf16.msrb.mxu1 %v2939_v23  ;;  %v2893_v23 = vcvt.s32.f32 %v2765_v35  ;;  %v2808_v50 = vcvt.s32.f32 %v2680_v42 }
 0x334   :  { %2973 = vmatpush.bf16.msrb.mxu2 %v2902_v28  ;;  %v2961_v37 = vpack.c.bf16 %v2893_v23, %v2889_v13 }
 0x336   :  { %3012 = vmatpush.bf16.msrb.mxu1 %v2935_v0 }
 0x390   :  { %v2551_v49 = vpop.permute.xlu0 %2550 }
 0x391   :  { %v2553_v59 = vadd.f32 %v2551_v49, %v5662_v45  ;;  %v2659_v45 = vunpack.c.3.s8 %v2615_v30  ;;  %v2900_v49 = vcvt.s32.f32 %v2772_v48  ;;  %v2773_v30 = vunpack.c.3.s8 %v2645_v16 }
 0x392   :  { %v2885_v16 = vcvt.s32.f32 %v2757_v43  ;;  %v2684_v48 = vunpack.c.1.s8 %v2624_v6  ;;  %v2632_v43 = vld [vmem:[%s6343_s6 + $0x90] sm:$0xff] }
 0x393   :  { %5008 = vmatmul.msk.f32.vlgmr.msra.gmra.mxu2 %vm2568_vm1, %v2553_v59  ;;  %5009 = vmatmul.msk.f32.vlgmr.msra.gmra.mxu3 %vm2568_vm1, %v2553_v59  ;;  %v2787_v10 = vcvt.s32.f32 %v2659_v45  ;;  %v2696_v59 = vunpack.c.0.s8 %v2628_v52  ;;  %v2964_v61 = vpack.c.bf16 %v2900_v49, %v2896_v46  ;;  %v2901_v2 = vcvt.s32.f32 %v2773_v30 }
 0x394   :  { %3018 = vmatpush.bf16.msra.mxu2 %v2932_v14  ;;  %v2701_v45 = vunpack.c.1.s8 %v2629_v41  ;;  %v2821_v41 = vcvt.s32.f32 %v2693_v15  ;;  %v2957_v53 = vpack.c.bf16 %v2885_v16, %v2881_v39  ;;  %v2745_v46 = vunpack.c.0.s8 %v2641_v40 }
 0x395   :  { %v2907_v21 = vpack.c.bf16 %v2787_v10, %v2783_v11  ;;  %v2824_v60 = vcvt.s32.f32 %v2696_v59  ;;  %3031 = vmatpush.bf16.msra.mxu3 %v2964_v61  ;;  %v2965_v7 = vpack.c.bf16 %v2901_v2, %v2897_v63  ;;  %v2640_v11 = vld [vmem:[%s6343_s6 + $0xd0] sm:$0xff]  ;;  %v2749_v49 = vunpack.c.1.s8 %v2641_v40  ;;  %v2621_v2 = vld [vmem:[%s6343_s6 + $0x38] sm:$0xff] }
 0x396   :  { %v2829_v58 = vcvt.s32.f32 %v2701_v45  ;;  %v2752_v55 = vunpack.c.2.s8 %v2640_v11  ;;  %v2756_v19 = vunpack.c.3.s8 %v2640_v11  ;;  %v2925_v54 = vpack.c.bf16 %v2821_v41, %v2817_v20  ;;  %v2620_v63 = vld [vmem:[%s6343_s6 + $0x30] sm:$0xff] }
 0x397   :  { %2998 = vmatpush.bf16.msrb.mxu0 %v2907_v21  ;;  %v2928_v10 = vpack.c.bf16 %v2828_v22, %v2824_v60  ;;  %3057 = vmatpush.bf16.msra.mxu1 %v2965_v7  ;;  %v2688_v21 = vunpack.c.2.s8 %v2624_v6  ;;  %v2748_v0 = vunpack.c.1.s8 %v2640_v11  ;;  %v2812_v56 = vcvt.s32.f32 %v2684_v48  ;;  %v2637_v22 = vld [vmem:[%s6343_s6 + $0xb8] sm:$0xff] }
 0x398   :  { %v2929_v52 = vpack.c.bf16 %v2829_v58, %v2825_v36  ;;  %v2880_v27 = vcvt.s32.f32 %v2752_v55  ;;  %v2884_v28 = vcvt.s32.f32 %v2756_v19  ;;  %v2564_v30 = vperm.slane %v5744_v12, 0 }
 0x399   :  { %3019 = vmatpush.bf16.msra.mxu2 %v2928_v10  ;;  %3032 = vmatpush.bf16.msra.mxu3 %v2960_v18  ;;  %v2816_v24 = vcvt.s32.f32 %v2688_v21  ;;  %v2876_v5 = vcvt.s32.f32 %v2748_v0  ;;  %v2809_v59 = vcvt.s32.f32 %v2681_v33  ;;  %v2813_v61 = vcvt.s32.f32 %v2685_v47  ;;  %v2633_v33 = vld [vmem:[%s6343_s6 + $0x98] sm:$0xff] }
 0x39a   :  { %v2956_v57 = vpack.c.bf16 %v2884_v28, %v2880_v27  ;;  %v2873_v62 = vcvt.s32.f32 %v2745_v46  ;;  %v2920_v60 = vpack.c.bf16 %v2812_v56, %v2808_v50  ;;  %v2877_v38 = vcvt.s32.f32 %v2749_v49  ;;  %v2616_v28 = vld [vmem:[%s6343_s6 + $0x10] sm:$0xff] }
 0x39b   :  { %2999 = vmatpush.bf16.msrb.mxu0 %v2903_v4  ;;  %v2924_v31 = vpack.c.bf16 %v2820_v29, %v2816_v24  ;;  %3058 = vmatpush.bf16.msra.mxu1 %v2961_v37  ;;  %v2744_v4 = vunpack.c.0.s8 %v2640_v11  ;;  %v2921_v3 = vpack.c.bf16 %v2813_v61, %v2809_v59  ;;  %v2676_v45 = vunpack.c.3.s8 %v2620_v63 }
 0x39c   :  { %v2736_v6 = vunpack.c.2.s8 %v2636_v1  ;;  %v2740_v7 = vunpack.c.3.s8 %v2636_v1  ;;  %v2953_v8 = vpack.c.bf16 %v2877_v38, %v2873_v62  ;;  %v2673_v9 = vunpack.c.2.s8 %v2621_v2 }
 0x39d   :  { %3020 = vmatpush.bf16.msra.mxu2 %v2924_v31  ;;  %3033 = vmatpush.bf16.msra.mxu3 %v2956_v57  ;;  %v2872_v14 = vcvt.s32.f32 %v2744_v4  ;;  %v2677_v11 = vunpack.c.3.s8 %v2621_v2  ;;  %v2804_v10 = vcvt.s32.f32 %v2676_v45  ;;  %v2737_v35 = vunpack.c.2.s8 %v2637_v22 }
 0x39e   :  { %v2864_v36 = vcvt.s32.f32 %v2736_v6  ;;  %v2868_v58 = vcvt.s32.f32 %v2740_v7  ;;  %v2801_v17 = vcvt.s32.f32 %v2673_v9  ;;  %v2741_v13 = vunpack.c.3.s8 %v2637_v22 }
 0x39f   :  { %3044 = vmatpush.bf16.msra.mxu0 %v2933_v32  ;;  %3059 = vmatpush.bf16.msra.mxu1 %v2957_v53  ;;  %v2952_v44 = vpack.c.bf16 %v2876_v5, %v2872_v14  ;;  %v2672_v32 = vunpack.c.2.s8 %v2620_v63  ;;  %v2805_v18 = vcvt.s32.f32 %v2677_v11  ;;  %v2664_v21 = vunpack.c.0.s8 %v2620_v63  ;;  %v2617_v53 = vld [vmem:[%s6343_s6 + $0x18] sm:$0xff]  ;;  %s5010_s6 = sld [smem:[#allocation2 + $0x2]] }
 0x3a0   :  { %v2948_v40 = vpack.c.bf16 %v2868_v58, %v2864_v36  ;;  %v2668_v23 = vunpack.c.1.s8 %v2620_v63  ;;  %v2869_v19 = vcvt.s32.f32 %v2741_v13  ;;  %v2728_v29 = vunpack.c.0.s8 %v2636_v1  ;;  %v3154_v13 = vld [vmem:[#allocation8 + $0x1c0] sm:$0xff] }
 0x3a1   :  { %3021 = vmatpush.bf16.msra.mxu2 %v2920_v60  ;;  %3034 = vmatpush.bf16.msra.mxu3 %v2952_v44  ;;  %v2800_v25 = vcvt.s32.f32 %v2672_v32  ;;  %v2917_v55 = vpack.c.bf16 %v2805_v18, %v2801_v17  ;;  %v2792_v24 = vcvt.s32.f32 %v2664_v21  ;;  %v2732_v15 = vunpack.c.1.s8 %v2636_v1 }
 0x3a2   :  { %v2796_v34 = vcvt.s32.f32 %v2668_v23  ;;  %v2665_v37 = vunpack.c.0.s8 %v2621_v2  ;;  %v2669_v27 = vunpack.c.1.s8 %v2621_v2  ;;  %v2856_v31 = vcvt.s32.f32 %v2728_v29  ;;  %v3122_v23 = vld [vmem:[#allocation8 + $0xc0] sm:$0xff] }
 0x3a3   :  { %3045 = vmatpush.bf16.msra.mxu0 %v2929_v52  ;;  %3060 = vmatpush.bf16.msra.mxu1 %v2953_v8  ;;  %v2916_v26 = vpack.c.bf16 %v2804_v10, %v2800_v25  ;;  %v2865_v52 = vcvt.s32.f32 %v2737_v35  ;;  %v2729_v20 = vunpack.c.0.s8 %v2637_v22  ;;  %v2733_v41 = vunpack.c.1.s8 %v2637_v22 }
 0x3a4   :  { %v2912_v57 = vpack.c.bf16 %v2796_v34, %v2792_v24  ;;  %v2860_v39 = vcvt.s32.f32 %v2732_v15  ;;  %v2797_v16 = vcvt.s32.f32 %v2669_v27  ;;  %v2656_v4 = vunpack.c.2.s8 %v2616_v28  ;;  %v3146_v34 = vld [vmem:[#allocation8 + $0x180] sm:$0xff] }
 0x3a5   :  { %3022 = vmatpush.bf16.msra.mxu2 %v2916_v26  ;;  %3035 = vmatpush.bf16.msra.mxu3 %v2948_v40  ;;  %v2949_v51 = vpack.c.bf16 %v2869_v19, %v2865_v52  ;;  %v2857_v42 = vcvt.s32.f32 %v2729_v20  ;;  %v2861_v48 = vcvt.s32.f32 %v2733_v41  ;;  %v2660_v0 = vunpack.c.3.s8 %v2616_v28 }
 0x3a6   :  { %v2944_v47 = vpack.c.bf16 %v2860_v39, %v2856_v31  ;;  %v2720_v49 = vunpack.c.2.s8 %v2632_v43  ;;  %v2724_v50 = vunpack.c.3.s8 %v2632_v43  ;;  %v2784_v14 = vcvt.s32.f32 %v2656_v4  ;;  %v3114_v4 = vld [vmem:[#allocation8 + $0x80] sm:$0xff] }
 0x3a7   :  { %3046 = vmatpush.bf16.msra.mxu0 %v2925_v54  ;;  %v2793_v54 = vcvt.s32.f32 %v2665_v37  ;;  %3061 = vmatpush.bf16.msra.mxu1 %v2949_v51  ;;  %v2945_v56 = vpack.c.bf16 %v2861_v48, %v2857_v42  ;;  %v2788_v5 = vcvt.s32.f32 %v2660_v0  ;;  %v2657_v59 = vunpack.c.2.s8 %v2617_v53 }
 0x3a8   :  { %v2848_v61 = vcvt.s32.f32 %v2720_v49  ;;  %v2852_v62 = vcvt.s32.f32 %v2724_v50  ;;  %v2661_v63 = vunpack.c.3.s8 %v2617_v53  ;;  %v2721_v1 = vunpack.c.2.s8 %v2633_v33  ;;  %v3138_v49 = vld [vmem:[#allocation8 + $0x140] sm:$0xff] }
 0x3a9   :  { %3023 = vmatpush.bf16.msra.mxu2 %v2912_v57  ;;  %v2913_v46 = vpack.c.bf16 %v2797_v16, %v2793_v54  ;;  %3036 = vmatpush.bf16.msra.mxu3 %v2944_v47  ;;  %v2908_v2 = vpack.c.bf16 %v2788_v5, %v2784_v14  ;;  %v2785_v60 = vcvt.s32.f32 %v2657_v59  ;;  %v2725_v44 = vunpack.c.3.s8 %v2633_v33 }
 0x3aa   :  { %v2648_v38 = vunpack.c.0.s8 %v2616_v28  ;;  %v2940_v32 = vpack.c.bf16 %v2852_v62, %v2848_v61  ;;  %v2789_v22 = vcvt.s32.f32 %v2661_v63  ;;  %v2652_v45 = vunpack.c.1.s8 %v2616_v28 }
 0x3ab   :  { %3047 = vmatpush.bf16.msra.mxu0 %v2921_v3  ;;  %3062 = vmatpush.bf16.msra.mxu1 %v2945_v56  ;;  %v2849_v3 = vcvt.s32.f32 %v2721_v1  ;;  %v2853_v6 = vcvt.s32.f32 %v2725_v44  ;;  %v2712_v8 = vunpack.c.0.s8 %v2632_v43  ;;  %v2716_v25 = vunpack.c.1.s8 %v2632_v43 }
 0x3ac   :  { %v2776_v7 = vcvt.s32.f32 %v2648_v38  ;;  %v2909_v9 = vpack.c.bf16 %v2789_v22, %v2785_v60  ;;  %v2780_v11 = vcvt.s32.f32 %v2652_v45  ;;  %v2649_v10 = vunpack.c.0.s8 %v2617_v53  ;;  %v3218_v22 = vld [vmem:[#allocation8 + $0x3c0] sm:$0xff] }
 0x3ad   :  { %3024 = vmatpush.bf16.msra.mxu2 %v2908_v2  ;;  %3037 = vmatpush.bf16.msra.mxu3 %v2940_v32  ;;  %v2653_v36 = vunpack.c.1.s8 %v2617_v53  ;;  %v2941_v58 = vpack.c.bf16 %v2853_v6, %v2849_v3  ;;  %v2840_v35 = vcvt.s32.f32 %v2712_v8  ;;  %v2844_v17 = vcvt.s32.f32 %v2716_v25 }
 0x3ae   :  { %v2713_v18 = vunpack.c.0.s8 %v2633_v33  ;;  %v2904_v21 = vpack.c.bf16 %v2780_v11, %v2776_v7  ;;  %v2777_v26 = vcvt.s32.f32 %v2649_v10  ;;  %v2717_v52 = vunpack.c.1.s8 %v2633_v33 }
 0x3af   :  { %3048 = vmatpush.bf16.msra.mxu0 %v2917_v55  ;;  %v2781_v40 = vcvt.s32.f32 %v2653_v36  ;;  %3063 = vmatpush.bf16.msra.mxu1 %v2941_v58  ;;  %v2936_v55 = vpack.c.bf16 %v2844_v17, %v2840_v35  ;;  %v3466_v24 = vunpack.c.2.s8 %v3154_v13  ;;  %v3474_v29 = vunpack.c.3.s8 %v3154_v13 }
 0x3b0   :  { %v2841_v19 = vcvt.s32.f32 %v2713_v18  ;;  %v2845_v37 = vcvt.s32.f32 %v2717_v52  ;;  %v3450_v27 = vunpack.c.0.s8 %v3154_v13  ;;  %v3458_v28 = vunpack.c.1.s8 %v3154_v13  ;;  %v3106_v52 = vld [vmem:[#allocation8 + $0x40] sm:$0xff] }
 0x3b1   :  { %3025 = vmatpush.bf16.msra.mxu2 %v2904_v21  ;;  %v2905_v15 = vpack.c.bf16 %v2781_v40, %v2777_v26  ;;  %3038 = vmatpush.bf16.msra.mxu3 %v2936_v55  ;;  %v5771_v51 = vcvt.s32.f32 %v3466_v24  ;;  %v5773_v31 = vcvt.s32.f32 %v3474_v29  ;;  %v3338_v20 = vunpack.c.2.s8 %v3122_v23  ;;  %v3186_v29 = vld [vmem:[#allocation8 + $0x2c0] sm:$0xff] }
 0x3b2   :  { %v3346_v41 = vunpack.c.3.s8 %v3122_v23  ;;  %v2937_v43 = vpack.c.bf16 %v2845_v37, %v2841_v19  ;;  %v5775_v57 = vcvt.s32.f32 %v3450_v27  ;;  %v5777_v39 = vcvt.s32.f32 %v3458_v28  ;;  %v3130_v28 = vld [vmem:[#allocation8 + $0x100] sm:$0xff] }
 0x3b3   :  { %3049 = vmatpush.bf16.msra.mxu0 %v2913_v46  ;;  %v3434_v54 = vunpack.c.2.s8 %v3146_v34  ;;  %v2565_v16 = vperm.slane %v5744_v12, 1  ;;  %v3850_v53 = vcvt.s32.f32 %v3338_v20  ;;  %v3442_v48 = vunpack.c.3.s8 %v3146_v34 }
 0x3b4   :  { %v3858_v42 = vcvt.s32.f32 %v3346_v41  ;;  %3064 = vmatpush.bf16.msra.mxu1 %v2937_v43  ;;  %v4370_v0 = vpack.c.bf16 %v5773_v31, %v5771_v51  ;;  %v3322_v47 = vunpack.c.0.s8 %v3122_v23  ;;  %v3330_v46 = vunpack.c.1.s8 %v3122_v23  ;;  %v3210_v43 = vld [vmem:[#allocation8 + $0x380] sm:$0xff] }
 0x3b5   :  { %v5782_v33 = vcvt.s32.f32 %v3434_v54  ;;  %v4362_v50 = vpack.c.bf16 %v5777_v39, %v5775_v57  ;;  %v5786_v56 = vcvt.s32.f32 %v3442_v48  ;;  %v3418_v14 = vunpack.c.0.s8 %v3146_v34 }
 0x3b6   :  { %v3426_v5 = vunpack.c.1.s8 %v3146_v34  ;;  %v5788_v59 = vcvt.s32.f32 %v3322_v47  ;;  %v3842_v61 = vcvt.s32.f32 %v3330_v46  ;;  %v3306_v62 = vunpack.c.2.s8 %v3114_v4 }
 0x3b7   :  { %3050 = vmatpush.bf16.msra.mxu0 %v2909_v9  ;;  %v3314_v63 = vunpack.c.3.s8 %v3114_v4  ;;  %v4306_v60 = vpack.c.bf16 %v3858_v42, %v3850_v53  ;;  %v5790_v44 = vcvt.s32.f32 %v3418_v14  ;;  %v3402_v32 = vunpack.c.2.s8 %v3138_v49 }
 0x3b8   :  { %v5792_v38 = vcvt.s32.f32 %v3426_v5  ;;  %v4354_v6 = vpack.c.bf16 %v5786_v56, %v5782_v33  ;;  %v4298_v7 = vpack.c.bf16 %v3842_v61, %v5788_v59  ;;  %v5799_v8 = vcvt.s32.f32 %v3306_v62 }
 0x3b9   :  { %v5801_v25 = vcvt.s32.f32 %v3314_v63  ;;  %v3410_v9 = vunpack.c.3.s8 %v3138_v49  ;;  %v5803_v11 = vcvt.s32.f32 %v3402_v32  ;;  %v3722_v58 = vunpack.c.2.s8 %v3218_v22 }
 0x3ba   :  { %v3730_v12 = vunpack.c.3.s8 %v3218_v22  ;;  %v3290_v17 = vunpack.c.0.s8 %v3114_v4  ;;  %v3298_v18 = vunpack.c.1.s8 %v3114_v4  ;;  %v3386_v26 = vunpack.c.0.s8 %v3138_v49 }
 0x3bb   :  { %3051 = vmatpush.bf16.msra.mxu0 %v2905_v15  ;;  %v5811_v35 = vcvt.s32.f32 %v3410_v9  ;;  %v4234_v13 = vcvt.s32.f32 %v3722_v58  ;;  %v3394_v40 = vunpack.c.1.s8 %v3138_v49  ;;  %v4290_v23 = vpack.c.bf16 %v5801_v25, %v5799_v8  ;;  %v5853_v25 = vld [vmem:[#allocation8 + $0x1c8] sm:$0xff] }
 0x3bc   :  { %v4242_v21 = vcvt.s32.f32 %v3730_v12  ;;  %v5819_v55 = vcvt.s32.f32 %v3290_v17  ;;  %v5821_v19 = vcvt.s32.f32 %v3298_v18  ;;  %v3706_v24 = vunpack.c.0.s8 %v3218_v22  ;;  %v3098_v18 = vld [vmem:[#allocation8] sm:$0xff] }
 0x3bd   :  { %v4338_v34 = vpack.c.bf16 %v5811_v35, %v5803_v11  ;;  %v5825_v37 = vcvt.s32.f32 %v3386_v26  ;;  %v3714_v27 = vunpack.c.1.s8 %v3218_v22  ;;  %v5827_v51 = vcvt.s32.f32 %v3394_v40 }
 0x3be   :  { %v4498_v15 = vpack.c.bf16 %v4242_v21, %v4234_v13  ;;  %v4218_v31 = vcvt.s32.f32 %v3706_v24  ;;  %v3274_v20 = vunpack.c.2.s8 %v3106_v52  ;;  %v3282_v41 = vunpack.c.3.s8 %v3106_v52  ;;  %v3178_v21 = vld [vmem:[#allocation8 + $0x280] sm:$0xff] }
 0x3bf   :  { %v4282_v54 = vpack.c.bf16 %v5821_v19, %v5819_v55  ;;  %v3594_v53 = vunpack.c.2.s8 %v3186_v29  ;;  %v3602_v42 = vunpack.c.3.s8 %v3186_v29  ;;  %v3378_v47 = vunpack.c.3.s8 %v3130_v28  ;;  %v5863_v55 = vld [vmem:[#allocation8 + $0x340] sm:$0xff] }
 0x3c0   :  { %v5831_v48 = vcvt.s32.f32 %v3274_v20  ;;  %v5833_v4 = vcvt.s32.f32 %v3282_v41  ;;  %v3690_v5 = vunpack.c.2.s8 %v3210_v43  ;;  %v4330_v59 = vpack.c.bf16 %v5827_v51, %v5825_v37 }
 0x3c1   :  { %v4106_v49 = vcvt.s32.f32 %v3594_v53  ;;  %v4114_v14 = vcvt.s32.f32 %v3602_v42  ;;  %v5842_v62 = vcvt.s32.f32 %v3378_v47  ;;  %v3698_v63 = vunpack.c.3.s8 %v3210_v43 }
 0x3c2   :  { %v3266_v32 = vunpack.c.1.s8 %v3106_v52  ;;  %v4274_v57 = vpack.c.bf16 %v5833_v4, %v5831_v48  ;;  %v3586_v22 = vunpack.c.1.s8 %v3186_v29  ;;  %v3362_v8 = vunpack.c.1.s8 %v3130_v28  ;;  %v3123_v4 = vld [vmem:[#allocation8 + $0xc8] sm:$0xff] }
 0x3c3   :  { %v4210_v39 = vcvt.s32.f32 %v3698_v63  ;;  %v3674_v17 = vunpack.c.0.s8 %v3210_v43  ;;  %v3570_v20 = vunpack.c.3.s8 %v3178_v21  ;;  %v3658_v41 = vunpack.c.2.s8 %v5863_v55 }
 0x3c4   :  { %v4098_v12 = vcvt.s32.f32 %v3586_v22  ;;  %v5859_v56 = vcvt.s32.f32 %v3362_v8  ;;  %v3666_v53 = vunpack.c.3.s8 %v5863_v55  ;;  %v3546_v11 = vunpack.c.0.s8 %v3178_v21  ;;  %v3170_v22 = vld [vmem:[#allocation8 + $0x240] sm:$0xff] }
 0x3c5   :  { %v4186_v40 = vcvt.s32.f32 %v3674_v17  ;;  %v4170_v48 = vcvt.s32.f32 %v3658_v41  ;;  %v3554_v35 = vunpack.c.1.s8 %v3178_v21  ;;  %v3650_v8 = vunpack.c.1.s8 %v5863_v55 }
 0x3c6   :  { %v4178_v47 = vcvt.s32.f32 %v3666_v53  ;;  %v3538_v17 = vunpack.c.3.s8 %v3170_v22  ;;  %v3514_v41 = vunpack.c.0.s8 %v3170_v22 }
 0x3c7   :  { %v4162_v51 = vcvt.s32.f32 %v3650_v8 }
 0x416   :  { %v2589_v1 = vpop.f32.mrf.mxu2  ;;  %v2609_v2 = vpop.f32.mrf.mxu3 }
 0x417   :  { %v2590_v3 = vadd.f32 %v2589_v1, %v2564_v30  ;;  %v2610_v45 = vadd.f32 %v2609_v2, %v2565_v16  ;;  %v4346_v30 = vpack.c.bf16 %v5792_v38, %v5790_v44  ;;  %v4226_v16 = vcvt.s32.f32 %v3714_v27 }
 0x418   :  { %v4434_v1 = vpack.c.bf16 %v4114_v14, %v4106_v49  ;;  %v4202_v2 = vcvt.s32.f32 %v3690_v5  ;;  %v3234_v49 = vunpack.c.1.s8 %v3098_v18 }
 0x419   :  { %v5805_v10 = vpack.c.bf16 %v2590_v3, %v2590_v3  ;;  %v5807_v36 = vpack.c.bf16 %v2610_v45, %v2610_v45  ;;  %v4490_v46 = vpack.c.bf16 %v4226_v16, %v4218_v31  ;;  %v5851_v45 = vcvt.s32.f32 %v3266_v32 }
 0x41a   :  { %v4482_v9 = vpack.c.bf16 %v4210_v39, %v4202_v2  ;;  %v3562_v31 = vunpack.c.2.s8 %v3178_v21  ;;  %v4082_v16 = vcvt.s32.f32 %v3570_v20  ;;  %v3339_v2 = vunpack.c.2.s8 %v3123_v4  ;;  %v5903_v20 = vld [vmem:[#allocation8 + $0x88] sm:$0xff] }
 0x41b   :  { %2974 = vmatmul.bf16.vlgmr.msrb.gmra.mxu2 %v5805_v10  ;;  %2987 = vmatmul.bf16.vlgmr.msrb.gmra.mxu3 %v5807_v36  ;;  %v4066_v39 = vcvt.s32.f32 %v3554_v35 }
 0x41c   :  { %3000 = vmatmul.bf16.vlgmr.msrb.gmra.mxu0 %v5805_v10  ;;  %3013 = vmatmul.bf16.vlgmr.msrb.gmra.mxu1 %v5807_v36 }
 0x41d   :  { %4519 = vmatpush.bf16.msrb.mxu3 %v4370_v0  ;;  %4506 = vmatpush.bf16.msrb.mxu2 %v4306_v60  ;;  %v3370_v0 = vunpack.c.2.s8 %v3130_v28  ;;  %v3258_v60 = vunpack.c.0.s8 %v3106_v52  ;;  %v3467_v52 = vunpack.c.2.s8 %v5853_v25 }
 0x41e   :  { %4545 = vmatpush.bf16.msrb.mxu1 %v4498_v15  ;;  %4532 = vmatpush.bf16.msrb.mxu0 %v4434_v1  ;;  %v3250_v15 = vunpack.c.3.s8 %v3098_v18  ;;  %v3746_v1 = vcvt.s32.f32 %v3234_v49 }
 0x41f   :  { %v5840_v61 = vcvt.s32.f32 %v3370_v0  ;;  %v5849_v3 = vcvt.s32.f32 %v3258_v60  ;;  %v5870_v27 = vcvt.s32.f32 %v3467_v52  ;;  %v3147_v60 = vld [vmem:[#allocation8 + $0x188] sm:$0xff] }
 0x421   :  { %4520 = vmatpush.bf16.msrb.mxu3 %v4362_v50  ;;  %4507 = vmatpush.bf16.msrb.mxu2 %v4298_v7  ;;  %v3578_v50 = vunpack.c.0.s8 %v3186_v29  ;;  %v3354_v7 = vunpack.c.0.s8 %v3130_v28  ;;  %v4322_v13 = vpack.c.bf16 %v5842_v62, %v5840_v61  ;;  %v4266_v19 = vpack.c.bf16 %v5851_v45, %v5849_v3 }
 0x422   :  { %4546 = vmatpush.bf16.msrb.mxu1 %v4490_v46  ;;  %v3242_v29 = vunpack.c.2.s8 %v3098_v18  ;;  %v3226_v46 = vunpack.c.0.s8 %v3098_v18  ;;  %v3851_v45 = vcvt.s32.f32 %v3339_v2  ;;  %v3194_v18 = vld [vmem:[#allocation8 + $0x300] sm:$0xff] }
 0x423   :  { %v4090_v58 = vcvt.s32.f32 %v3578_v50  ;;  %v5857_v33 = vcvt.s32.f32 %v3354_v7  ;;  %v3347_v50 = vunpack.c.3.s8 %v3123_v4  ;;  %v3642_v7 = vunpack.c.0.s8 %v5863_v55 }
 0x424   :  { %v3754_v38 = vcvt.s32.f32 %v3242_v29  ;;  %v3738_v63 = vcvt.s32.f32 %v3226_v46  ;;  %v4050_v55 = vcvt.s32.f32 %v3538_v17  ;;  %v3610_v49 = vunpack.c.0.s8 %v3194_v18 }
 0x425   :  { %4521 = vmatpush.bf16.msrb.mxu3 %v4354_v6  ;;  %4508 = vmatpush.bf16.msrb.mxu2 %v4290_v23  ;;  %v3682_v6 = vunpack.c.1.s8 %v3210_v43  ;;  %v4426_v26 = vpack.c.bf16 %v4098_v12, %v4090_v58  ;;  %v3475_v23 = vunpack.c.3.s8 %v5853_v25  ;;  %v4314_v43 = vpack.c.bf16 %v5859_v56, %v5857_v33 }
 0x426   :  { %4547 = vmatpush.bf16.msrb.mxu1 %v4482_v9  ;;  %v4250_v3 = vpack.c.bf16 %v3746_v1, %v3738_v63  ;;  %v3859_v9 = vcvt.s32.f32 %v3347_v50  ;;  %v3435_v58 = vunpack.c.2.s8 %v3147_v60  ;;  %v3443_v12 = vunpack.c.3.s8 %v3147_v60 }
 0x427   :  { %v4194_v24 = vcvt.s32.f32 %v3682_v6  ;;  %4533 = vmatpush.bf16.msrb.mxu0 %v4426_v26  ;;  %v5872_v28 = vcvt.s32.f32 %v3475_v23  ;;  %v4154_v37 = vcvt.s32.f32 %v3642_v7  ;;  %v4026_v33 = vcvt.s32.f32 %v3514_v41 }
 0x428   :  { %v4307_v6 = vpack.c.bf16 %v3859_v9, %v3851_v45  ;;  %v3947_v21 = vcvt.s32.f32 %v3435_v58  ;;  %v3955_v26 = vcvt.s32.f32 %v3443_v12  ;;  %v4122_v35 = vcvt.s32.f32 %v3610_v49 }
 0x429   :  { %4522 = vmatpush.bf16.msrb.mxu3 %v4346_v30  ;;  %4509 = vmatpush.bf16.msrb.mxu2 %v4282_v54  ;;  %v4474_v44 = vpack.c.bf16 %v4194_v24, %v4186_v40  ;;  %v3762_v30 = vcvt.s32.f32 %v3250_v15  ;;  %v4074_v54 = vcvt.s32.f32 %v3562_v31  ;;  %v4371_v42 = vpack.c.bf16 %v5872_v28, %v5870_v27  ;;  %v3162_v27 = vld [vmem:[#allocation8 + $0x200] sm:$0xff] }
 0x42a   :  { %v3323_v40 = vunpack.c.0.s8 %v3123_v4  ;;  %v4458_v52 = vpack.c.bf16 %v4162_v51, %v4154_v37  ;;  %v3626_v15 = vunpack.c.2.s8 %v3194_v18  ;;  %v3634_v31 = vunpack.c.3.s8 %v3194_v18 }
 0x42b   :  { %3026 = vmatmul.bf16.vlgmr.msra.gmra.mxu2 %v5805_v10  ;;  %3039 = vmatmul.bf16.vlgmr.msra.gmra.mxu3 %v5807_v36  ;;  %v4418_v0 = vpack.c.bf16 %v4082_v16, %v4074_v54  ;;  %v4258_v14 = vpack.c.bf16 %v3762_v30, %v3754_v38  ;;  %v3522_v54 = vunpack.c.1.s8 %v3170_v22  ;;  %v4355_v16 = vpack.c.bf16 %v3955_v26, %v3947_v21 }
 0x42c   :  { %3052 = vmatmul.bf16.vlgmr.msra.gmra.mxu0 %v5805_v10  ;;  %3065 = vmatmul.bf16.vlgmr.msra.gmra.mxu1 %v5807_v36  ;;  %v3451_v10 = vunpack.c.0.s8 %v5853_v25  ;;  %v3459_v36 = vunpack.c.1.s8 %v5853_v25  ;;  %v3835_v29 = vcvt.s32.f32 %v3323_v40  ;;  %v4138_v38 = vcvt.s32.f32 %v3626_v15 }
 0x42d   :  { %4523 = vmatpush.bf16.msrb.mxu3 %v4338_v34  ;;  %4510 = vmatpush.bf16.msrb.mxu2 %v4274_v57  ;;  %v4466_v34 = vpack.c.bf16 %v4178_v47, %v4170_v48  ;;  %v4058_v57 = vcvt.s32.f32 %v3546_v11  ;;  %v4146_v30 = vcvt.s32.f32 %v3634_v31  ;;  %v4034_v56 = vcvt.s32.f32 %v3522_v54  ;;  %v3211_v54 = vld [vmem:[#allocation8 + $0x388] sm:$0xff] }
 0x42e   :  { %4548 = vmatpush.bf16.msrb.mxu1 %v4474_v44  ;;  %v5889_v5 = vcvt.s32.f32 %v3451_v10  ;;  %4534 = vmatpush.bf16.msrb.mxu0 %v4418_v0  ;;  %v5894_v32 = vcvt.s32.f32 %v3459_v36  ;;  %v3427_v44 = vunpack.c.1.s8 %v3147_v60  ;;  %v3307_v10 = vunpack.c.2.s8 %v5903_v20  ;;  %v3139_v36 = vld [vmem:[#allocation8 + $0x148] sm:$0xff] }
 0x42f   :  { %v4410_v25 = vpack.c.bf16 %v4066_v39, %v4058_v57  ;;  %v3219_v0 = vld [vmem:[#allocation8 + $0x3c8] sm:$0xff]  ;;  %v4394_v28 = vpack.c.bf16 %v4034_v56, %v4026_v33  ;;  %v3411_v11 = vunpack.c.3.s8 %v3139_v36  ;;  %v3506_v50 = vunpack.c.3.s8 %v3162_v27 }
 0x430   :  { %v4363_v24 = vpack.c.bf16 %v5894_v32, %v5889_v5  ;;  %v3939_v47 = vcvt.s32.f32 %v3427_v44  ;;  %v3819_v46 = vcvt.s32.f32 %v3307_v10  ;;  %v3403_v5 = vunpack.c.2.s8 %v3139_v36 }
 0x431   :  { %4524 = vmatpush.bf16.msrb.mxu3 %v4330_v59  ;;  %4511 = vmatpush.bf16.msrb.mxu2 %v4266_v19  ;;  %v3530_v59 = vunpack.c.2.s8 %v3170_v22  ;;  %v3331_v19 = vunpack.c.1.s8 %v3123_v4  ;;  %v4450_v4 = vpack.c.bf16 %v4146_v30, %v4138_v38  ;;  %v3723_v63 = vunpack.c.2.s8 %v3219_v0 }
 0x432   :  { %4549 = vmatpush.bf16.msrb.mxu1 %v4466_v34  ;;  %4535 = vmatpush.bf16.msrb.mxu0 %v4410_v25  ;;  %v3731_v1 = vunpack.c.3.s8 %v3219_v0  ;;  %v3915_v45 = vcvt.s32.f32 %v3403_v5  ;;  %v3923_v7 = vcvt.s32.f32 %v3411_v11  ;;  %v4018_v25 = vcvt.s32.f32 %v3506_v50 }
 0x433   :  { %v4042_v23 = vcvt.s32.f32 %v3530_v59  ;;  %v3843_v62 = vcvt.s32.f32 %v3331_v19  ;;  %v4235_v57 = vcvt.s32.f32 %v3723_v63  ;;  %v3291_v12 = vunpack.c.0.s8 %v5903_v20 }
 0x434   :  { %v4243_v39 = vcvt.s32.f32 %v3731_v1  ;;  %v4339_v58 = vpack.c.bf16 %v3923_v7, %v3915_v45  ;;  %v3299_v37 = vunpack.c.1.s8 %v5903_v20  ;;  %v3387_v17 = vunpack.c.0.s8 %v3139_v36 }
 0x435   :  { %4525 = vmatpush.bf16.msrb.mxu3 %v4322_v13  ;;  %4512 = vmatpush.bf16.msrb.mxu2 %v4258_v14  ;;  %v4402_v61 = vpack.c.bf16 %v4050_v55, %v4042_v23  ;;  %v3419_v13 = vunpack.c.0.s8 %v3147_v60  ;;  %v4299_v53 = vpack.c.bf16 %v3843_v62, %v3835_v29  ;;  %v3618_v14 = vunpack.c.1.s8 %v3194_v18  ;;  %v3187_v23 = vld [vmem:[#allocation8 + $0x2c8] sm:$0xff] }
 0x436   :  { %4550 = vmatpush.bf16.msrb.mxu1 %v4458_v52  ;;  %v3498_v60 = vunpack.c.2.s8 %v3162_v27  ;;  %v4499_v8 = vpack.c.bf16 %v4243_v39, %v4235_v57  ;;  %v3803_v51 = vcvt.s32.f32 %v3291_v12  ;;  %v3811_v59 = vcvt.s32.f32 %v3299_v37  ;;  %v3107_v52 = vld [vmem:[#allocation8 + $0x48] sm:$0xff] }
 0x437   :  { %v3931_v48 = vcvt.s32.f32 %v3419_v13  ;;  %4536 = vmatpush.bf16.msrb.mxu0 %v4402_v61  ;;  %v4130_v34 = vcvt.s32.f32 %v3618_v14  ;;  %v3395_v18 = vunpack.c.1.s8 %v3139_v36  ;;  %v3715_v21 = vunpack.c.1.s8 %v3219_v0  ;;  %v5917_v13 = vld [vmem:[#allocation9 + $0xe] sm:$0xf] }
 0x438   :  { %v3482_v26 = vunpack.c.0.s8 %v3162_v27  ;;  %v3490_v40 = vunpack.c.1.s8 %v3162_v27  ;;  %v5915_v55 = vstv %s5010_s6  ;;  %v4283_v19 = vpack.c.bf16 %v3811_v59, %v3803_v51  ;;  %v3179_v37 = vld [vmem:[#allocation8 + $0x288] sm:$0xff] }
 0x439   :  { %4526 = vmatpush.bf16.msrb.mxu3 %v4314_v43  ;;  %4513 = vmatpush.bf16.msrb.mxu2 %v4250_v3  ;;  %v3315_v43 = vunpack.c.3.s8 %v5903_v20  ;;  %v4442_v32 = vpack.c.bf16 %v4130_v34, %v4122_v35  ;;  %v4347_v22 = vpack.c.bf16 %v3939_v47, %v3931_v48  ;;  %v4010_v3 = vcvt.s32.f32 %v3498_v60  ;;  %v3131_v20 = vld [vmem:[#allocation8 + $0x108] sm:$0xff]  ;;  %v3156_v60 = vld [vmem:[#allocation8 + $0x1d0] sm:$0xff] }
 0x43a   :  { %4551 = vmatpush.bf16.msrb.mxu1 %v4450_v4  ;;  %v3907_v29 = vcvt.s32.f32 %v3395_v18  ;;  %v4227_v31 = vcvt.s32.f32 %v3715_v21  ;;  %v3994_v61 = vcvt.s32.f32 %v3482_v26  ;;  %v4002_v62 = vcvt.s32.f32 %v3490_v40 }
 0x43b   :  { %4537 = vmatpush.bf16.msrb.mxu0 %v4394_v28  ;;  %v4386_v9 = vpack.c.bf16 %v4018_v25, %v4010_v3  ;;  %v3275_v38 = vunpack.c.2.s8 %v3107_v52  ;;  %v3283_v30 = vunpack.c.3.s8 %v3107_v52  ;;  %v3595_v41 = vunpack.c.2.s8 %v3187_v23 }
 0x43c   :  { %v4378_v48 = vpack.c.bf16 %v4002_v62, %v3994_v61  ;;  %v3603_v10 = vunpack.c.3.s8 %v3187_v23  ;;  %v3371_v56 = vunpack.c.2.s8 %v3131_v20  ;;  %v3691_v47 = vunpack.c.2.s8 %v3211_v54 }
 0x43d   :  { %4571 = vmatpush.bf16.msra.mxu3 %v4371_v42  ;;  %4558 = vmatpush.bf16.msra.mxu2 %v4307_v6  ;;  %v3827_v42 = vcvt.s32.f32 %v3315_v43  ;;  %v3707_v6 = vunpack.c.0.s8 %v3219_v0  ;;  %v3787_v36 = vcvt.s32.f32 %v3275_v38  ;;  %v3795_v4 = vcvt.s32.f32 %v3283_v30 }
 0x43e   :  { %4552 = vmatpush.bf16.msrb.mxu1 %v4442_v32  ;;  %v4107_v33 = vcvt.s32.f32 %v3595_v41  ;;  %v4115_v43 = vcvt.s32.f32 %v3603_v10  ;;  %v3379_v0 = vunpack.c.3.s8 %v3131_v20  ;;  %v3883_v14 = vcvt.s32.f32 %v3371_v56  ;;  %v3124_v10 = vld [vmem:[#allocation8 + $0xd0] sm:$0xff] }
 0x43f   :  { %v4291_v2 = vpack.c.bf16 %v3827_v42, %v3819_v46  ;;  %4538 = vmatpush.bf16.msrb.mxu0 %v4386_v9  ;;  %v4219_v15 = vcvt.s32.f32 %v3707_v6  ;;  %v3699_v46 = vunpack.c.3.s8 %v3211_v54  ;;  %v4275_v49 = vpack.c.bf16 %v3795_v4, %v3787_v36  ;;  %v3203_v6 = vld [vmem:[#allocation8 + $0x348] sm:$0xff] }
 0x440   :  { %v3259_v27 = vunpack.c.0.s8 %v3107_v52  ;;  %v3267_v28 = vunpack.c.1.s8 %v3107_v52  ;;  %v4435_v42 = vpack.c.bf16 %v4115_v43, %v4107_v33  ;;  %v3891_v5 = vcvt.s32.f32 %v3379_v0 }
 0x441   :  { %4572 = vmatpush.bf16.msra.mxu3 %v4363_v24  ;;  %4559 = vmatpush.bf16.msra.mxu2 %v4299_v53  ;;  %v3899_v24 = vcvt.s32.f32 %v3387_v17  ;;  %v4491_v53 = vpack.c.bf16 %v4227_v31, %v4219_v15  ;;  %v4203_v11 = vcvt.s32.f32 %v3691_v47  ;;  %v4211_v35 = vcvt.s32.f32 %v3699_v46 }
 0x442   :  { %4597 = vmatpush.bf16.msra.mxu1 %v4499_v8  ;;  %v3078_v34 = vperm.slane %v5917_v13, 0  ;;  %v3771_v63 = vcvt.s32.f32 %v3259_v27  ;;  %v3779_v1 = vcvt.s32.f32 %v3267_v28  ;;  %v4323_v32 = vpack.c.bf16 %v3891_v5, %v3883_v14 }
 0x443   :  { %v4331_v44 = vpack.c.bf16 %v3907_v29, %v3899_v24  ;;  %4539 = vmatpush.bf16.msrb.mxu0 %v4378_v48  ;;  %v4483_v57 = vpack.c.bf16 %v4211_v35, %v4203_v11  ;;  %v3587_v39 = vunpack.c.1.s8 %v3187_v23  ;;  %v3355_v50 = vunpack.c.0.s8 %v3131_v20 }
 0x444   :  { %v4267_v3 = vpack.c.bf16 %v3779_v1, %v3771_v63  ;;  %v3363_v7 = vunpack.c.1.s8 %v3131_v20  ;;  %v3675_v8 = vunpack.c.0.s8 %v3211_v54  ;;  %v3468_v12 = vunpack.c.2.s8 %v3156_v60  ;;  %v3171_v1 = vld [vmem:[#allocation8 + $0x248] sm:$0xff] }
 0x445   :  { %4573 = vmatpush.bf16.msra.mxu3 %v4355_v16  ;;  %4560 = vmatpush.bf16.msra.mxu2 %v4291_v2  ;;  %v3079_v16 = vperm.slane %v5917_v13, 1  ;;  %v3579_v2 = vunpack.c.0.s8 %v3187_v23  ;;  %v4099_v25 = vcvt.s32.f32 %v3587_v39  ;;  %v3867_v9 = vcvt.s32.f32 %v3355_v50 }
 0x446   :  { %4598 = vmatpush.bf16.msra.mxu1 %v4491_v53  ;;  %v3875_v51 = vcvt.s32.f32 %v3363_v7  ;;  %v4187_v59 = vcvt.s32.f32 %v3675_v8  ;;  %v3476_v17 = vunpack.c.3.s8 %v3156_v60  ;;  %v5921_v40 = vcvt.s32.f32 %v3468_v12 }
 0x447   :  { %4584 = vmatpush.bf16.msra.mxu0 %v4435_v42  ;;  %v4091_v45 = vcvt.s32.f32 %v3579_v2  ;;  %v3563_v29 = vunpack.c.2.s8 %v3179_v37  ;;  %v3571_v61 = vunpack.c.3.s8 %v3179_v37  ;;  %v3659_v62 = vunpack.c.2.s8 %v3203_v6  ;;  %v3148_v42 = vld [vmem:[#allocation8 + $0x190] sm:$0xff] }
 0x448   :  { %v4315_v23 = vpack.c.bf16 %v3875_v51, %v3867_v9  ;;  %v3667_v38 = vunpack.c.3.s8 %v3203_v6  ;;  %v3452_v30 = vunpack.c.0.s8 %v3156_v60  ;;  %v3460_v48 = vunpack.c.1.s8 %v3156_v60  ;;  %v3195_v9 = vld [vmem:[#allocation8 + $0x308] sm:$0xff] }
 0x449   :  { %4574 = vmatpush.bf16.msra.mxu3 %v4347_v22  ;;  %4561 = vmatpush.bf16.msra.mxu2 %v4283_v19  ;;  %v3099_v22 = vld [vmem:[#allocation8 + $0x8] sm:$0xff]  ;;  %v4427_v21 = vpack.c.bf16 %v4099_v25, %v4091_v45  ;;  %v5923_v19 = vcvt.s32.f32 %v3476_v17  ;;  %v4171_v53 = vcvt.s32.f32 %v3659_v62  ;;  %v3081_v33 = vperm.slane %v5917_v13, 3 }
 0x44a   :  { %4599 = vmatpush.bf16.msra.mxu1 %v4483_v57  ;;  %v3243_v18 = vunpack.c.2.s8 %v3099_v22  ;;  %v3251_v52 = vunpack.c.3.s8 %v3099_v22  ;;  %v4179_v36 = vcvt.s32.f32 %v3667_v38  ;;  %v5927_v4 = vcvt.s32.f32 %v3452_v30 }
 0x44b   :  { %4585 = vmatpush.bf16.msra.mxu0 %v4427_v21  ;;  %v4372_v20 = vpack.c.bf16 %v5923_v19, %v5921_v40  ;;  %v3227_v56 = vunpack.c.0.s8 %v3099_v22  ;;  %v5930_v0 = vcvt.s32.f32 %v3460_v48  ;;  %v3235_v47 = vunpack.c.1.s8 %v3099_v22  ;;  %v6018_v19 = vld [vmem:[#allocation8 + $0x110] sm:$0xff] }
 0x44c   :  { %v3755_v24 = vcvt.s32.f32 %v3243_v18  ;;  %v3763_v31 = vcvt.s32.f32 %v3251_v52  ;;  %v3547_v46 = vunpack.c.0.s8 %v3179_v37  ;;  %v3555_v27 = vunpack.c.1.s8 %v3179_v37 }
 0x44d   :  { %4575 = vmatpush.bf16.msra.mxu3 %v4339_v58  ;;  %4562 = vmatpush.bf16.msra.mxu2 %v4275_v49  ;;  %v3683_v58 = vunpack.c.1.s8 %v3211_v54  ;;  %v4083_v54 = vcvt.s32.f32 %v3571_v61  ;;  %v4467_v49 = vpack.c.bf16 %v4179_v36, %v4171_v53  ;;  %v3739_v14 = vcvt.s32.f32 %v3227_v56  ;;  %v5951_v61 = vld [vmem:[#allocation8 + $0x90] sm:$0xff] }
 0x44e   :  { %v4259_v41 = vpack.c.bf16 %v3763_v31, %v3755_v24  ;;  %v3340_v28 = vunpack.c.2.s8 %v3124_v10  ;;  %v4364_v5 = vpack.c.bf16 %v5930_v0, %v5927_v4  ;;  %v3747_v11 = vcvt.s32.f32 %v3235_v47 }
 0x44f   :  { %v4195_v26 = vcvt.s32.f32 %v3683_v58  ;;  %v4059_v35 = vcvt.s32.f32 %v3547_v46  ;;  %v3348_v63 = vunpack.c.3.s8 %v3124_v10  ;;  %v4067_v2 = vcvt.s32.f32 %v3555_v27 }
 0x450   :  { %v5934_v60 = vcvt.s32.f32 %v3340_v28  ;;  %v3651_v57 = vunpack.c.1.s8 %v3203_v6  ;;  %v4251_v39 = vpack.c.bf16 %v3747_v11, %v3739_v14  ;;  %v3436_v22 = vunpack.c.2.s8 %v3148_v42  ;;  %v3220_v11 = vld [vmem:[#allocation8 + $0x3d0] sm:$0xff] }
 0x451   :  { %4576 = vmatpush.bf16.msra.mxu3 %v4331_v44  ;;  %4563 = vmatpush.bf16.msra.mxu2 %v4267_v3  ;;  %v4475_v15 = vpack.c.bf16 %v4195_v26, %v4187_v59  ;;  %v4075_v44 = vcvt.s32.f32 %v3563_v29  ;;  %v5936_v50 = vcvt.s32.f32 %v3348_v63  ;;  %v3444_v3 = vunpack.c.3.s8 %v3148_v42 }
 0x452   :  { %v4411_v45 = vpack.c.bf16 %v4067_v2, %v4059_v35  ;;  %v4163_v8 = vcvt.s32.f32 %v3651_v57  ;;  %v3531_v25 = vunpack.c.2.s8 %v3171_v1  ;;  %v5940_v12 = vcvt.s32.f32 %v3436_v22 }
 0x453   :  { %4600 = vmatpush.bf16.msra.mxu1 %v4475_v15  ;;  %v4419_v43 = vpack.c.bf16 %v4083_v54, %v4075_v44  ;;  %v4308_v58 = vpack.c.bf16 %v5936_v50, %v5934_v60  ;;  %v5942_v37 = vcvt.s32.f32 %v3444_v3  ;;  %v3539_v51 = vunpack.c.3.s8 %v3171_v1 }
 0x454   :  { %v4043_v17 = vcvt.s32.f32 %v3531_v25  ;;  %v3324_v18 = vunpack.c.0.s8 %v3124_v10  ;;  %v3080_v52 = vperm.slane %v5917_v13, 2  ;;  %v3635_v15 = vunpack.c.3.s8 %v3195_v9 }
 0x455   :  { %4577 = vmatpush.bf16.msra.mxu3 %v4323_v32  ;;  %4564 = vmatpush.bf16.msra.mxu2 %v4259_v41  ;;  %v3643_v32 = vunpack.c.0.s8 %v3203_v6  ;;  %v3332_v6 = vunpack.c.1.s8 %v3124_v10  ;;  %v4356_v21 = vpack.c.bf16 %v5942_v37, %v5940_v12  ;;  %v4051_v26 = vcvt.s32.f32 %v3539_v51 }
 0x456   :  { %4586 = vmatpush.bf16.msra.mxu0 %v4419_v43  ;;  %v5947_v24 = vcvt.s32.f32 %v3324_v18  ;;  %v3420_v31 = vunpack.c.0.s8 %v3148_v42  ;;  %v3428_v38 = vunpack.c.1.s8 %v3148_v42  ;;  %v3515_v30 = vunpack.c.0.s8 %v3171_v1 }
 0x457   :  { %4601 = vmatpush.bf16.msra.mxu1 %v4467_v49  ;;  %v4155_v7 = vcvt.s32.f32 %v3643_v32  ;;  %v5949_v29 = vcvt.s32.f32 %v3332_v6  ;;  %v4403_v62 = vpack.c.bf16 %v4051_v26, %v4043_v17  ;;  %v4147_v54 = vcvt.s32.f32 %v3635_v15  ;;  %v3140_v49 = vld [vmem:[#allocation8 + $0x150] sm:$0xff]  ;;  %v5967_v32 = vld [vmem:[#allocation8 + $0x208] sm:$0xff] }
 0x458   :  { %v5955_v53 = vcvt.s32.f32 %v3420_v31  ;;  %v3523_v48 = vunpack.c.1.s8 %v3171_v1  ;;  %v5957_v56 = vcvt.s32.f32 %v3428_v38  ;;  %v4027_v43 = vcvt.s32.f32 %v3515_v30 }
 0x459   :  { %4578 = vmatpush.bf16.msra.mxu3 %v4315_v23  ;;  %4565 = vmatpush.bf16.msra.mxu2 %v4251_v39  ;;  %v4459_v59 = vpack.c.bf16 %v4163_v8, %v4155_v7  ;;  %v3627_v23 = vunpack.c.2.s8 %v3195_v9  ;;  %v4300_v41 = vpack.c.bf16 %v5949_v29, %v5947_v24  ;;  %v3308_v47 = vunpack.c.2.s8 %v5951_v61 }
 0x45a   :  { %4587 = vmatpush.bf16.msra.mxu0 %v4411_v45  ;;  %v3316_v46 = vunpack.c.3.s8 %v5951_v61  ;;  %v4035_v28 = vcvt.s32.f32 %v3523_v48  ;;  %v3611_v42 = vunpack.c.0.s8 %v3195_v9  ;;  %v4348_v35 = vpack.c.bf16 %v5957_v56, %v5955_v53 }
 0x45b   :  { %4602 = vmatpush.bf16.msra.mxu1 %v4459_v59  ;;  %v4139_v44 = vcvt.s32.f32 %v3627_v23  ;;  %v5963_v63 = vcvt.s32.f32 %v3308_v47  ;;  %v3619_v2 = vunpack.c.1.s8 %v3195_v9  ;;  %v3404_v3 = vunpack.c.2.s8 %v3140_v49 }
 0x45c   :  { %v5965_v1 = vcvt.s32.f32 %v3316_v46  ;;  %v4395_v39 = vpack.c.bf16 %v4035_v28, %v4027_v43  ;;  %v4123_v22 = vcvt.s32.f32 %v3611_v42  ;;  %v3412_v8 = vunpack.c.3.s8 %v3140_v49 }
 0x45d   :  { %v4451_v27 = vpack.c.bf16 %v4147_v54, %v4139_v44  ;;  %v4131_v7 = vcvt.s32.f32 %v3619_v2  ;;  %v3724_v25 = vunpack.c.2.s8 %v3220_v11  ;;  %v5974_v9 = vcvt.s32.f32 %v3404_v3 }
 0x45e   :  { %4588 = vmatpush.bf16.msra.mxu0 %v4403_v62  ;;  %v4292_v45 = vpack.c.bf16 %v5965_v1, %v5963_v63  ;;  %v3732_v18 = vunpack.c.3.s8 %v3220_v11  ;;  %v3499_v6 = vunpack.c.2.s8 %v5967_v32  ;;  %v5977_v15 = vcvt.s32.f32 %v3412_v8 }
 0x45f   :  { %4603 = vmatpush.bf16.msra.mxu1 %v4451_v27  ;;  %v4443_v23 = vpack.c.bf16 %v4131_v7, %v4123_v22  ;;  %v5979_v31 = vcvt.s32.f32 %v3724_v25  ;;  %v3507_v38 = vunpack.c.3.s8 %v5967_v32  ;;  %v3300_v43 = vunpack.c.1.s8 %v5951_v61 }
 0x460   :  { %v5981_v44 = vcvt.s32.f32 %v3732_v18  ;;  %v3388_v27 = vunpack.c.0.s8 %v3140_v49  ;;  %v3708_v3 = vunpack.c.0.s8 %v3220_v11  ;;  %v3716_v7 = vunpack.c.1.s8 %v3220_v11 }
 0x461   :  { %v5997_v2 = vcvt.s32.f32 %v3300_v43  ;;  %v3491_v11 = vunpack.c.1.s8 %v5967_v32  ;;  %v3364_v29 = vunpack.c.1.s8 %v6018_v19 }
 0x462   :  { %4589 = vmatpush.bf16.msra.mxu0 %v4395_v39  ;;  %v4500_v46 = vpack.c.bf16 %v5981_v44, %v5979_v31  ;;  %v5999_v39 = vld [vmem:[#allocation8 + $0x50] sm:$0xff]  ;;  %v6002_v22 = vcvt.s32.f32 %v3388_v27  ;;  %v6012_v18 = vcvt.s32.f32 %v3708_v3  ;;  %v3372_v27 = vunpack.c.2.s8 %v6018_v19 }
 0x463   :  { %4604 = vmatpush.bf16.msra.mxu1 %v4443_v23  ;;  %v3276_v40 = vunpack.c.2.s8 %v5999_v39  ;;  %v6101_v53 = vcvt.s32.f32 %v3364_v29 }
 0x499   :  { %v3001_v10 = vpop.f32.mrf.mxu0  ;;  %v3014_v36 = vpop.f32.mrf.mxu1 }
 0x49a   :  { %v3015_v14 = vadd.f32 %v3014_v36, %v3001_v10  ;;  %v4340_v10 = vpack.c.bf16 %v5977_v15, %v5974_v9  ;;  %v3292_v36 = vunpack.c.0.s8 %v5951_v61 }
 0x49c   :  { %v3073_v57 = vmul.f32 %v5915_v55, %v3015_v14  ;;  %v4019_v14 = vcvt.s32.f32 %v3507_v38  ;;  %v5995_v42 = vcvt.s32.f32 %v3292_v36  ;;  %v6025_v38 = vld [vmem:[#allocation8 + $0x390] sm:$0xff] }
 0x49d   :  { %v3692_v4 = vunpack.c.2.s8 %v6025_v38  ;;  %v3700_v60 = vunpack.c.3.s8 %v6025_v38  ;;  %v3684_v56 = vunpack.c.1.s8 %v6025_v38 }
 0x49e   :  { %v3087_v51 = vadd.f32 %v3079_v16, %v3073_v57  ;;  %v2975_v59 = vpop.f32.mrf.mxu2  ;;  %v2988_v17 = vpop.f32.mrf.mxu3  ;;  %v4011_v16 = vcvt.s32.f32 %v3499_v6  ;;  %v3396_v57 = vunpack.c.1.s8 %v3140_v49  ;;  %v3483_v49 = vunpack.c.0.s8 %v5967_v32 }
 0x49f   :  { %v2989_v26 = vadd.f32 %v2988_v17, %v2975_v59  ;;  %v6014_v6 = vcvt.s32.f32 %v3716_v7  ;;  %v6049_v7 = vcvt.s32.f32 %v3372_v27  ;;  %v6055_v50 = vcvt.s32.f32 %v3692_v4 }
 0x4a0   :  { %v3091_v62 = vmax.f32 %v3087_v51, 0.0  ;;  %v4387_v61 = vpack.c.bf16 %v4019_v14, %v4011_v16  ;;  %v6009_v25 = vcvt.s32.f32 %v3396_v57  ;;  %v3188_v51 = vld [vmem:[#allocation8 + $0x2d0] sm:$0xff]  ;;  %v3995_v23 = vcvt.s32.f32 %v3483_v49 }
 0x4a1   :  { %v3072_v30 = vmul.f32 %v5915_v55, %v2989_v26  ;;  %v3003_v54 = vpop.f32.mrf.mxu0  ;;  %v3016_v48 = vpop.f32.mrf.mxu1  ;;  %v4492_v16 = vpack.c.bf16 %v6014_v6, %v6012_v18  ;;  %v3596_v32 = vunpack.c.2.s8 %v3188_v51  ;;  %v3604_v14 = vunpack.c.3.s8 %v3188_v51 }
 0x4a2   :  { %v5989_v47 = vpack.c.bf16 %v3091_v62, %v3091_v62  ;;  %4590 = vmatpush.bf16.msra.mxu0 %v4387_v61  ;;  %v4332_v26 = vpack.c.bf16 %v6009_v25, %v6002_v22  ;;  %v3284_v62 = vunpack.c.3.s8 %v5999_v39  ;;  %v6029_v54 = vcvt.s32.f32 %v3276_v40 }
 0x4a3   :  { %v3086_v28 = vadd.f32 %v3078_v34, %v3072_v30  ;;  %v4284_v34 = vpack.c.bf16 %v5997_v2, %v5995_v42  ;;  %v4003_v30 = vcvt.s32.f32 %v3491_v11  ;;  %v6042_v3 = vcvt.s32.f32 %v3596_v32 }
 0x4a4   :  { %4527 = vmatmul.bf16.vlgmr.msrb.gmra.mxu3 %v5989_v47  ;;  %v6035_v43 = vcvt.s32.f32 %v3284_v62  ;;  %v3268_v11 = vunpack.c.1.s8 %v5999_v39  ;;  %v3580_v40 = vunpack.c.0.s8 %v3188_v51  ;;  %v6071_v12 = vcvt.s32.f32 %v3700_v60 }
 0x4a5   :  { %v3090_v8 = vmax.f32 %v3086_v28, 0.0  ;;  %4623 = vmatpush.bf16.msrb.mxu3 %v4372_v20  ;;  %v3380_v28 = vunpack.c.3.s8 %v6018_v19  ;;  %v4379_v61 = vpack.c.bf16 %v4003_v30, %v3995_v23  ;;  %v3676_v4 = vunpack.c.0.s8 %v6025_v38  ;;  %v6114_v38 = vld [vmem:[#allocation8 + $0x350] sm:$0xff] }
 0x4a6   :  { %v2977_v59 = vpop.f32.mrf.mxu2  ;;  %v2990_v17 = vpop.f32.mrf.mxu3  ;;  %v4276_v0 = vpack.c.bf16 %v6035_v43, %v6029_v54  ;;  %v6112_v1 = vcvt.s32.f32 %v3684_v56  ;;  %v3660_v42 = vunpack.c.2.s8 %v6114_v38  ;;  %v3125_v56 = vld [vmem:[#allocation8 + $0xd8] sm:$0xff] }
 0x4a7   :  { %v6020_v20 = vpack.c.bf16 %v3090_v8, %v3090_v8  ;;  %v6051_v8 = vcvt.s32.f32 %v3380_v28  ;;  %4591 = vmatpush.bf16.msra.mxu0 %v4379_v61 }
 0x4a9   :  { %4624 = vmatpush.bf16.msrb.mxu3 %v4364_v5  ;;  %v3053_v48 = vpop.f32.mrf.mxu0  ;;  %v3066_v36 = vpop.f32.mrf.mxu1  ;;  %4514 = vmatmul.bf16.vlgmr.msrb.gmra.mxu2 %v6020_v20  ;;  %v6047_v5 = vcvt.s32.f32 %v3604_v14  ;;  %v4324_v17 = vpack.c.bf16 %v6051_v8, %v6049_v7 }
 0x4aa   :  { %v3067_v57 = vadd.f32 %v3066_v36, %v3053_v48  ;;  %4610 = vmatpush.bf16.msrb.mxu2 %v4308_v58  ;;  %v3260_v58 = vunpack.c.0.s8 %v5999_v39  ;;  %v6075_v48 = vcvt.s32.f32 %v3268_v11  ;;  %v6077_v36 = vcvt.s32.f32 %v3580_v40 }
 0x4ab   :  { %v4436_v59 = vpack.c.bf16 %v6047_v5, %v6042_v3  ;;  %v3356_v39 = vunpack.c.0.s8 %v6018_v19 }
 0x4ac   :  { %v3075_v49 = vmul.f32 %v5915_v55, %v3067_v57  ;;  %v6073_v37 = vcvt.s32.f32 %v3260_v58  ;;  %v6106_v58 = vcvt.s32.f32 %v3676_v4 }
 0x4ad   :  { %4625 = vmatpush.bf16.msrb.mxu3 %v4356_v21  ;;  %v3588_v21 = vunpack.c.1.s8 %v3188_v51  ;;  %v6091_v61 = vcvt.s32.f32 %v3356_v39 }
 0x4ae   :  { %v3089_v23 = vadd.f32 %v3081_v33, %v3075_v49  ;;  %4611 = vmatpush.bf16.msrb.mxu2 %v4300_v41  ;;  %v3027_v62 = vpop.f32.mrf.mxu2  ;;  %v3040_v30 = vpop.f32.mrf.mxu3  ;;  %v4484_v33 = vpack.c.bf16 %v6071_v12, %v6055_v50  ;;  %v3157_v41 = vld [vmem:[#allocation8 + $0x1d8] sm:$0xff]  ;;  %v4268_v57 = vpack.c.bf16 %v6075_v48, %v6073_v37  ;;  %v3100_v49 = vld [vmem:[#allocation8 + $0x10] sm:$0xff]  ;;  %v4476_v39 = vpack.c.bf16 %v6112_v1, %v6106_v58 }
 0x4af   :  { %v3041_v32 = vadd.f32 %v3040_v30, %v3027_v62  ;;  %v6082_v24 = vcvt.s32.f32 %v3588_v21  ;;  %v3469_v11 = vunpack.c.2.s8 %v3157_v41  ;;  %v3477_v40 = vunpack.c.3.s8 %v3157_v41  ;;  %v3196_v12 = vld [vmem:[#allocation8 + $0x310] sm:$0xff] }
 0x4b0   :  { %v3093_v14 = vmax.f32 %v3089_v23, 0.0  ;;  %v4316_v63 = vpack.c.bf16 %v6101_v53, %v6091_v61  ;;  %v3252_v23 = vunpack.c.3.s8 %v3100_v49  ;;  %v3453_v29 = vunpack.c.0.s8 %v3157_v41 }
 0x4b1   :  { %v3074_v27 = vmul.f32 %v5915_v55, %v3041_v32  ;;  %4626 = vmatpush.bf16.msrb.mxu3 %v4348_v35  ;;  %v3055_v51 = vpop.f32.mrf.mxu0  ;;  %v3068_v28 = vpop.f32.mrf.mxu1  ;;  %v4428_v55 = vpack.c.bf16 %v6082_v24, %v6077_v36  ;;  %v3180_v35 = vld [vmem:[#allocation8 + $0x290] sm:$0xff]  ;;  %v6122_v13 = vcvt.s32.f32 %v3469_v11  ;;  %v3236_v4 = vunpack.c.1.s8 %v3100_v49 }
 0x4b2   :  { %v6094_v60 = vpack.c.bf16 %v3093_v14, %v3093_v14  ;;  %4612 = vmatpush.bf16.msrb.mxu2 %v4292_v45  ;;  %v3244_v45 = vunpack.c.2.s8 %v3100_v49  ;;  %v3564_v30 = vunpack.c.2.s8 %v3180_v35  ;;  %v6133_v15 = vcvt.s32.f32 %v3252_v23 }
 0x4b3   :  { %v3088_v19 = vadd.f32 %v3080_v52, %v3074_v27  ;;  %v6124_v52 = vcvt.s32.f32 %v3477_v40  ;;  %v3572_v31 = vunpack.c.3.s8 %v3180_v35  ;;  %v3668_v14 = vunpack.c.3.s8 %v6114_v38 }
 0x4b4   :  { %4553 = vmatmul.bf16.vlgmr.msrb.gmra.mxu1 %v6094_v60  ;;  %4579 = vmatmul.bf16.vlgmr.msra.gmra.mxu3 %v5989_v47  ;;  %v6131_v9 = vcvt.s32.f32 %v3244_v45  ;;  %v6151_v27 = vcvt.s32.f32 %v3660_v42  ;;  %v3461_v51 = vunpack.c.1.s8 %v3157_v41  ;;  %v3228_v28 = vunpack.c.0.s8 %v3100_v49  ;;  %v3172_v45 = vld [vmem:[#allocation8 + $0x250] sm:$0xff] }
 0x4b5   :  { %v3092_v62 = vmax.f32 %v3088_v19, 0.0  ;;  %4627 = vmatpush.bf16.msrb.mxu3 %v4340_v10  ;;  %4649 = vmatpush.bf16.msrb.mxu1 %v4500_v46  ;;  %v4373_v10 = vpack.c.bf16 %v6124_v52, %v6122_v13  ;;  %v6139_v46 = vcvt.s32.f32 %v3564_v30  ;;  %v4180_v58 = vcvt.s32.f32 %v3668_v14 }
 0x4b6   :  { %4613 = vmatpush.bf16.msrb.mxu2 %v4284_v34  ;;  %v3029_v21 = vpop.f32.mrf.mxu2  ;;  %v3042_v32 = vpop.f32.mrf.mxu3  ;;  %v4260_v2 = vpack.c.bf16 %v6133_v15, %v6131_v9  ;;  %v4084_v34 = vcvt.s32.f32 %v3572_v31  ;;  %v6156_v11 = vcvt.s32.f32 %v3453_v29  ;;  %v3548_v22 = vunpack.c.0.s8 %v3180_v35  ;;  %v3117_v31 = vld [vmem:[#allocation8 + $0x98] sm:$0xff] }
 0x4b7   :  { %v6135_v44 = vpack.c.bf16 %v3092_v62, %v3092_v62  ;;  %v3973_v25 = vcvt.s32.f32 %v3461_v51  ;;  %v6164_v18 = vcvt.s32.f32 %v3228_v28  ;;  %v6166_v6 = vcvt.s32.f32 %v3236_v4 }
 0x4b8   :  { %v4420_v19 = vpack.c.bf16 %v4084_v34, %v6139_v46  ;;  %v4468_v41 = vpack.c.bf16 %v4180_v58, %v6151_v27  ;;  %v4060_v49 = vcvt.s32.f32 %v3548_v22  ;;  %v3341_v40 = vunpack.c.2.s8 %v3125_v56  ;;  %v3221_v58 = vld [vmem:[#allocation8 + $0x3d8] sm:$0xff] }
 0x4b9   :  { %4628 = vmatpush.bf16.msrb.mxu3 %v4332_v26  ;;  %4650 = vmatpush.bf16.msrb.mxu1 %v4492_v16  ;;  %v3556_v26 = vunpack.c.1.s8 %v3180_v35  ;;  %v3149_v16 = vld [vmem:[#allocation8 + $0x198] sm:$0xff]  ;;  %v3349_v1 = vunpack.c.3.s8 %v3125_v56  ;;  %v4365_v54 = vpack.c.bf16 %v3973_v25, %v6156_v11  ;;  %v4252_v43 = vpack.c.bf16 %v6166_v6, %v6164_v18  ;;  %v3164_v6 = vld [vmem:[#allocation8 + $0x210] sm:$0xff] }
 0x4ba   :  { %4540 = vmatmul.bf16.vlgmr.msrb.gmra.mxu0 %v6135_v44  ;;  %4566 = vmatmul.bf16.vlgmr.msra.gmra.mxu2 %v6020_v20  ;;  %v3853_v5 = vcvt.s32.f32 %v3341_v40  ;;  %v3652_v35 = vunpack.c.1.s8 %v6114_v38  ;;  %v3437_v23 = vunpack.c.2.s8 %v3149_v16  ;;  %v3445_v50 = vunpack.c.3.s8 %v3149_v16 }
 0x4bb   :  { %4614 = vmatpush.bf16.msrb.mxu2 %v4276_v0  ;;  %4636 = vmatpush.bf16.msrb.mxu0 %v4436_v59  ;;  %v4068_v3 = vcvt.s32.f32 %v3556_v26  ;;  %v3644_v0 = vunpack.c.0.s8 %v6114_v38  ;;  %v3861_v59 = vcvt.s32.f32 %v3349_v1  ;;  %v3540_v52 = vunpack.c.3.s8 %v3172_v45 }
 0x4bc   :  { %v4164_v62 = vcvt.s32.f32 %v3652_v35  ;;  %v3949_v13 = vcvt.s32.f32 %v3437_v23  ;;  %v3957_v37 = vcvt.s32.f32 %v3445_v50  ;;  %v3333_v38 = vunpack.c.1.s8 %v3125_v56 }
 0x4bd   :  { %4629 = vmatpush.bf16.msrb.mxu3 %v4324_v17  ;;  %4651 = vmatpush.bf16.msrb.mxu1 %v4484_v33  ;;  %v4412_v7 = vpack.c.bf16 %v4068_v3, %v4060_v49  ;;  %v4156_v8 = vcvt.s32.f32 %v3644_v0  ;;  %v3532_v17 = vunpack.c.2.s8 %v3172_v45  ;;  %v4309_v33 = vpack.c.bf16 %v3861_v59, %v3853_v5 }
 0x4be   :  { %v4052_v24 = vcvt.s32.f32 %v3540_v52  ;;  %v3636_v30 = vunpack.c.3.s8 %v3196_v12  ;;  %v4357_v21 = vpack.c.bf16 %v3957_v37, %v3949_v13  ;;  %v3845_v9 = vcvt.s32.f32 %v3333_v38  ;;  %v3109_v37 = vld [vmem:[#allocation8 + $0x58] sm:$0xff] }
 0x4bf   :  { %4615 = vmatpush.bf16.msrb.mxu2 %v4268_v57  ;;  %4637 = vmatpush.bf16.msrb.mxu0 %v4428_v55  ;;  %v4044_v48 = vcvt.s32.f32 %v3532_v17  ;;  %v3325_v57 = vunpack.c.0.s8 %v3125_v56  ;;  %v4460_v36 = vpack.c.bf16 %v4164_v62, %v4156_v8  ;;  %v3628_v55 = vunpack.c.2.s8 %v3196_v12 }
 0x4c0   :  { %v3421_v15 = vunpack.c.0.s8 %v3149_v16  ;;  %v3516_v42 = vunpack.c.0.s8 %v3172_v45  ;;  %v3524_v34 = vunpack.c.1.s8 %v3172_v45  ;;  %v3309_v27 = vunpack.c.2.s8 %v3117_v31 }
 0x4c1   :  { %4630 = vmatpush.bf16.msrb.mxu3 %v4316_v63  ;;  %4652 = vmatpush.bf16.msrb.mxu1 %v4476_v39  ;;  %v3837_v32 = vcvt.s32.f32 %v3325_v57  ;;  %v4404_v61 = vpack.c.bf16 %v4052_v24, %v4044_v48  ;;  %v4140_v53 = vcvt.s32.f32 %v3628_v55  ;;  %v4148_v63 = vcvt.s32.f32 %v3636_v30  ;;  %v3189_v24 = vld [vmem:[#allocation8 + $0x2d8] sm:$0xff] }
 0x4c2   :  { %v3429_v39 = vunpack.c.1.s8 %v3149_v16  ;;  %v3933_v46 = vcvt.s32.f32 %v3421_v15  ;;  %v3317_v51 = vunpack.c.3.s8 %v3117_v31  ;;  %v4028_v28 = vcvt.s32.f32 %v3516_v42  ;;  %v3213_v42 = vld [vmem:[#allocation8 + $0x398] sm:$0xff] }
 0x4c3   :  { %4616 = vmatpush.bf16.msrb.mxu2 %v4260_v2  ;;  %4638 = vmatpush.bf16.msrb.mxu0 %v4420_v19  ;;  %v3141_v2 = vld [vmem:[#allocation8 + $0x158] sm:$0xff]  ;;  %v4452_v14 = vpack.c.bf16 %v4148_v63, %v4140_v53  ;;  %v4036_v4 = vcvt.s32.f32 %v3524_v34  ;;  %v3612_v56 = vunpack.c.0.s8 %v3196_v12  ;;  %v3620_v19 = vunpack.c.1.s8 %v3196_v12 }
 0x4c4   :  { %4605 = vmatmul.bf16.vlgmr.msra.gmra.mxu1 %v6094_v60  ;;  %4631 = vmatmul.bf16.vlgmr.msrb.gmra.mxu3 %v5989_v47  ;;  %v3941_v29 = vcvt.s32.f32 %v3429_v39  ;;  %v3821_v22 = vcvt.s32.f32 %v3309_v27  ;;  %v3829_v25 = vcvt.s32.f32 %v3317_v51  ;;  %v3405_v18 = vunpack.c.2.s8 %v3141_v2  ;;  %v3133_v53 = vld [vmem:[#allocation8 + $0x118] sm:$0xff] }
 0x4c5   :  { %4675 = vmatpush.bf16.msra.mxu3 %v4373_v10  ;;  %4653 = vmatpush.bf16.msrb.mxu1 %v4468_v41  ;;  %v4301_v10 = vpack.c.bf16 %v3845_v9, %v3837_v32  ;;  %v4396_v26 = vpack.c.bf16 %v4036_v4, %v4028_v28  ;;  %v4124_v16 = vcvt.s32.f32 %v3612_v56  ;;  %v4132_v41 = vcvt.s32.f32 %v3620_v19 }
 0x4c6   :  { %v4349_v11 = vpack.c.bf16 %v3941_v29, %v3933_v46  ;;  %v3413_v49 = vunpack.c.3.s8 %v3141_v2  ;;  %v4293_v40 = vpack.c.bf16 %v3829_v25, %v3821_v22  ;;  %v3917_v1 = vcvt.s32.f32 %v3405_v18 }
 0x4c7   :  { %4617 = vmatpush.bf16.msrb.mxu2 %v4252_v43  ;;  %4639 = vmatpush.bf16.msrb.mxu0 %v4412_v7  ;;  %v3725_v45 = vunpack.c.2.s8 %v3221_v58  ;;  %v4444_v43 = vpack.c.bf16 %v4132_v41, %v4124_v16  ;;  %v3500_v0 = vunpack.c.2.s8 %v3164_v6  ;;  %v3508_v5 = vunpack.c.3.s8 %v3164_v6 }
 0x4c8   :  { %v3925_v3 = vcvt.s32.f32 %v3413_v49  ;;  %v3293_v23 = vunpack.c.0.s8 %v3117_v31  ;;  %v3301_v7 = vunpack.c.1.s8 %v3117_v31  ;;  %v3389_v12 = vunpack.c.0.s8 %v3141_v2 }
 0x4c9   :  { %4676 = vmatpush.bf16.msra.mxu3 %v4365_v54  ;;  %4654 = vmatpush.bf16.msrb.mxu1 %v4460_v36  ;;  %v3733_v54 = vunpack.c.3.s8 %v3221_v58  ;;  %v4237_v59 = vcvt.s32.f32 %v3725_v45  ;;  %v4012_v50 = vcvt.s32.f32 %v3500_v0  ;;  %v4020_v17 = vcvt.s32.f32 %v3508_v5 }
 0x4ca   :  { %4592 = vmatmul.bf16.vlgmr.msra.gmra.mxu0 %v6135_v44  ;;  %4618 = vmatmul.bf16.vlgmr.msrb.gmra.mxu2 %v6020_v20  ;;  %v4341_v8 = vpack.c.bf16 %v3925_v3, %v3917_v1  ;;  %v3805_v62 = vcvt.s32.f32 %v3293_v23  ;;  %v3813_v13 = vcvt.s32.f32 %v3301_v7  ;;  %v3397_v52 = vunpack.c.1.s8 %v3141_v2 }
 0x4cb   :  { %4662 = vmatpush.bf16.msra.mxu2 %v4309_v33  ;;  %4640 = vmatpush.bf16.msrb.mxu0 %v4404_v61  ;;  %v4245_v35 = vcvt.s32.f32 %v3733_v54  ;;  %v4388_v48 = vpack.c.bf16 %v4020_v17, %v4012_v50  ;;  %v3901_v57 = vcvt.s32.f32 %v3389_v12  ;;  %v3709_v38 = vunpack.c.0.s8 %v3221_v58 }
 0x4cc   :  { %v3717_v36 = vunpack.c.1.s8 %v3221_v58  ;;  %v4285_v55 = vpack.c.bf16 %v3813_v13, %v3805_v62  ;;  %v3909_v30 = vcvt.s32.f32 %v3397_v52  ;;  %v3492_v32 = vunpack.c.1.s8 %v3164_v6  ;;  %v3181_v13 = vld [vmem:[#allocation8 + $0x298] sm:$0xff] }
 0x4cd   :  { %4677 = vmatpush.bf16.msra.mxu3 %v4357_v21  ;;  %4655 = vmatpush.bf16.msrb.mxu1 %v4452_v14  ;;  %v4501_v33 = vpack.c.bf16 %v4245_v35, %v4237_v59  ;;  %v3484_v21 = vunpack.c.0.s8 %v3164_v6  ;;  %v4221_v9 = vcvt.s32.f32 %v3709_v38  ;;  %v3277_v31 = vunpack.c.2.s8 %v3109_v37  ;;  %v3101_v35 = vld [vmem:[#allocation8 + $0x18] sm:$0xff] }
 0x4ce   :  { %v4229_v15 = vcvt.s32.f32 %v3717_v36  ;;  %v3285_v61 = vunpack.c.3.s8 %v3109_v37  ;;  %v4333_v63 = vpack.c.bf16 %v3909_v30, %v3901_v57  ;;  %v3597_v46 = vunpack.c.2.s8 %v3189_v24  ;;  %v3205_v38 = vld [vmem:[#allocation8 + $0x358] sm:$0xff] }
 0x4cf   :  { %4663 = vmatpush.bf16.msra.mxu2 %v4301_v10  ;;  %4641 = vmatpush.bf16.msrb.mxu0 %v4396_v26  ;;  %v3996_v39 = vcvt.s32.f32 %v3484_v21  ;;  %v4004_v10 = vcvt.s32.f32 %v3492_v32  ;;  %v3789_v2 = vcvt.s32.f32 %v3277_v31  ;;  %v3605_v29 = vunpack.c.3.s8 %v3189_v24 }
 0x4d0   :  { %v4493_v34 = vpack.c.bf16 %v4229_v15, %v4221_v9  ;;  %v3797_v14 = vcvt.s32.f32 %v3285_v61  ;;  %v4109_v51 = vcvt.s32.f32 %v3597_v46  ;;  %v3373_v28 = vunpack.c.2.s8 %v3133_v53 }
 0x4d1   :  { %4678 = vmatpush.bf16.msra.mxu3 %v4349_v11  ;;  %4656 = vmatpush.bf16.msrb.mxu1 %v4444_v43  ;;  %v4380_v27 = vpack.c.bf16 %v4004_v10, %v3996_v39  ;;  %v3381_v4 = vunpack.c.3.s8 %v3133_v53  ;;  %v4117_v19 = vcvt.s32.f32 %v3605_v29  ;;  %v3693_v58 = vunpack.c.2.s8 %v3213_v42  ;;  %v3158_v43 = vld [vmem:[#allocation8 + $0x1e0] sm:$0xff] }
 0x4d2   :  { %v4277_v56 = vpack.c.bf16 %v3797_v14, %v3789_v2  ;;  %v3701_v11 = vunpack.c.3.s8 %v3213_v42  ;;  %v3885_v22 = vcvt.s32.f32 %v3373_v28  ;;  %v3261_v18 = vunpack.c.0.s8 %v3109_v37 }
 0x4d3   :  { %4664 = vmatpush.bf16.msra.mxu2 %v4293_v40  ;;  %4642 = vmatpush.bf16.msrb.mxu0 %v4388_v48  ;;  %v3893_v25 = vcvt.s32.f32 %v3381_v4  ;;  %v3269_v6 = vunpack.c.1.s8 %v3109_v37  ;;  %v4437_v26 = vpack.c.bf16 %v4117_v19, %v4109_v51  ;;  %v4205_v16 = vcvt.s32.f32 %v3693_v58 }
 0x4d4   :  { %4657 = vmatmul.bf16.vlgmr.msrb.gmra.mxu1 %v6094_v60  ;;  %v4213_v41 = vcvt.s32.f32 %v3701_v11  ;;  %v3581_v49 = vunpack.c.0.s8 %v3189_v24  ;;  %v3773_v1 = vcvt.s32.f32 %v3261_v18  ;;  %v3589_v54 = vunpack.c.1.s8 %v3189_v24 }
 0x4d5   :  { %4679 = vmatpush.bf16.msra.mxu3 %v4341_v8  ;;  %4701 = vmatpush.bf16.msra.mxu1 %v4501_v33  ;;  %v4325_v40 = vpack.c.bf16 %v3893_v25, %v3885_v22  ;;  %v3781_v45 = vcvt.s32.f32 %v3269_v6  ;;  %v3357_v5 = vunpack.c.0.s8 %v3133_v53  ;;  %v3365_v59 = vunpack.c.1.s8 %v3133_v53  ;;  %v3150_v25 = vld [vmem:[#allocation8 + $0x1a0] sm:$0xff] }
 0x4d6   :  { %v4485_v3 = vpack.c.bf16 %v4213_v41, %v4205_v16  ;;  %v4093_v0 = vcvt.s32.f32 %v3581_v49  ;;  %v4101_v7 = vcvt.s32.f32 %v3589_v54  ;;  %v3677_v8 = vunpack.c.0.s8 %v3213_v42 }
 0x4d7   :  { %4665 = vmatpush.bf16.msra.mxu2 %v4285_v55  ;;  %4643 = vmatpush.bf16.msrb.mxu0 %v4380_v27  ;;  %v4269_v23 = vpack.c.bf16 %v3781_v45, %v3773_v1  ;;  %v3685_v50 = vunpack.c.1.s8 %v3213_v42  ;;  %v3869_v17 = vcvt.s32.f32 %v3357_v5  ;;  %v3877_v12 = vcvt.s32.f32 %v3365_v59  ;;  %v3126_v27 = vld [vmem:[#allocation8 + $0xe0] sm:$0xff]  ;;  %v3173_v45 = vld [vmem:[#allocation8 + $0x258] sm:$0xff] }
 0x4d8   :  { %v3470_v33 = vunpack.c.2.s8 %v3158_v43  ;;  %v3478_v62 = vunpack.c.3.s8 %v3158_v43  ;;  %v4429_v52 = vpack.c.bf16 %v4101_v7, %v4093_v0  ;;  %v4189_v37 = vcvt.s32.f32 %v3677_v8  ;;  %v3197_v7 = vld [vmem:[#allocation8 + $0x318] sm:$0xff] }
 0x4d9   :  { %4680 = vmatpush.bf16.msra.mxu3 %v4333_v63  ;;  %4702 = vmatpush.bf16.msra.mxu1 %v4493_v34  ;;  %v4197_v48 = vcvt.s32.f32 %v3685_v50  ;;  %v3245_v57 = vunpack.c.2.s8 %v3101_v35  ;;  %v4317_v36 = vpack.c.bf16 %v3877_v12, %v3869_v17  ;;  %v3253_v30 = vunpack.c.3.s8 %v3101_v35 }
 0x4da   :  { %4644 = vmatmul.bf16.vlgmr.msrb.gmra.mxu0 %v6135_v44  ;;  %v3982_v24 = vcvt.s32.f32 %v3470_v33  ;;  %v3990_v55 = vcvt.s32.f32 %v3478_v62  ;;  %v3565_v9 = vunpack.c.2.s8 %v3181_v13  ;;  %v3573_v15 = vunpack.c.3.s8 %v3181_v13 }
 0x4db   :  { %4666 = vmatpush.bf16.msra.mxu2 %v4277_v56  ;;  %4688 = vmatpush.bf16.msra.mxu0 %v4437_v26  ;;  %v4477_v21 = vpack.c.bf16 %v4197_v48, %v4189_v37  ;;  %v3757_v32 = vcvt.s32.f32 %v3245_v57  ;;  %v3765_v61 = vcvt.s32.f32 %v3253_v30  ;;  %v3661_v53 = vunpack.c.2.s8 %v3205_v38 }
 0x4dc   :  { %v4374_v31 = vpack.c.bf16 %v3990_v55, %v3982_v24  ;;  %v3669_v63 = vunpack.c.3.s8 %v3205_v38  ;;  %v4077_v39 = vcvt.s32.f32 %v3565_v9  ;;  %v4085_v10 = vcvt.s32.f32 %v3573_v15 }
 0x4dd   :  { %4681 = vmatpush.bf16.msra.mxu3 %v4325_v40  ;;  %4703 = vmatpush.bf16.msra.mxu1 %v4485_v3  ;;  %v3454_v46 = vunpack.c.0.s8 %v3158_v43  ;;  %v3462_v42 = vunpack.c.1.s8 %v3158_v43  ;;  %v4261_v34 = vpack.c.bf16 %v3765_v61, %v3757_v32  ;;  %v4173_v2 = vcvt.s32.f32 %v3661_v53 }
 0x4de   :  { %v4181_v14 = vcvt.s32.f32 %v3669_v63  ;;  %v3229_v29 = vunpack.c.0.s8 %v3101_v35  ;;  %v4421_v51 = vpack.c.bf16 %v4085_v10, %v4077_v39  ;;  %v3237_v56 = vunpack.c.1.s8 %v3101_v35  ;;  %v3142_v10 = vld [vmem:[#allocation8 + $0x160] sm:$0xff] }
 0x4df   :  { %4667 = vmatpush.bf16.msra.mxu2 %v4269_v23  ;;  %4689 = vmatpush.bf16.msra.mxu0 %v4429_v52  ;;  %v3966_v28 = vcvt.s32.f32 %v3454_v46  ;;  %v3974_v4 = vcvt.s32.f32 %v3462_v42  ;;  %v3549_v11 = vunpack.c.0.s8 %v3181_v13  ;;  %v3557_v22 = vunpack.c.1.s8 %v3181_v13 }
 0x4e0   :  { %v4469_v19 = vpack.c.bf16 %v4181_v14, %v4173_v2  ;;  %v3741_v58 = vcvt.s32.f32 %v3229_v29  ;;  %v3749_v6 = vcvt.s32.f32 %v3237_v56  ;;  %v3342_v26 = vunpack.c.2.s8 %v3126_v27 }
 0x4e1   :  { %4682 = vmatpush.bf16.msra.mxu3 %v4317_v36  ;;  %4704 = vmatpush.bf16.msra.mxu1 %v4477_v21  ;;  %v4366_v18 = vpack.c.bf16 %v3974_v4, %v3966_v28  ;;  %v3350_v16 = vunpack.c.3.s8 %v3126_v27  ;;  %v4061_v41 = vcvt.s32.f32 %v3549_v11  ;;  %v4069_v49 = vcvt.s32.f32 %v3557_v22  ;;  %v3118_v21 = vld [vmem:[#allocation8 + $0xa0] sm:$0xff]  ;;  %v3165_v11 = vld [vmem:[#allocation8 + $0x218] sm:$0xff] }
 0x4e2   :  { %v3645_v40 = vunpack.c.0.s8 %v3205_v38  ;;  %v3653_v1 = vunpack.c.1.s8 %v3205_v38  ;;  %v4253_v54 = vpack.c.bf16 %v3749_v6, %v3741_v58  ;;  %v3854_v43 = vcvt.s32.f32 %v3342_v26  ;;  %v3222_v28 = vld [vmem:[#allocation8 + $0x3e0] sm:$0xff] }
 0x4e3   :  { %4668 = vmatpush.bf16.msra.mxu2 %v4261_v34  ;;  %4690 = vmatpush.bf16.msra.mxu0 %v4421_v51  ;;  %v3862_v3 = vcvt.s32.f32 %v3350_v16  ;;  %v3438_v0 = vunpack.c.2.s8 %v3150_v25  ;;  %v4413_v5 = vpack.c.bf16 %v4069_v49, %v4061_v41  ;;  %v3446_v23 = vunpack.c.3.s8 %v3150_v25 }
 0x4e4   :  { %4683 = vmatmul.bf16.vlgmr.msra.gmra.mxu3 %v5989_v47  ;;  %v4157_v59 = vcvt.s32.f32 %v3645_v40  ;;  %v4165_v35 = vcvt.s32.f32 %v3653_v1  ;;  %v3533_v17 = vunpack.c.2.s8 %v3173_v45  ;;  %v3541_v12 = vunpack.c.3.s8 %v3173_v45 }
 0x4e5   :  { %4727 = vmatpush.bf16.msrb.mxu3 %v4374_v31  ;;  %4705 = vmatpush.bf16.msra.mxu1 %v4469_v19  ;;  %v4310_v8 = vpack.c.bf16 %v3862_v3, %v3854_v43  ;;  %v3950_v50 = vcvt.s32.f32 %v3438_v0  ;;  %v3958_v62 = vcvt.s32.f32 %v3446_v23  ;;  %v3326_v13 = vunpack.c.0.s8 %v3126_v27 }
 0x4e6   :  { %v4461_v33 = vpack.c.bf16 %v4165_v35, %v4157_v59  ;;  %v3334_v52 = vunpack.c.1.s8 %v3126_v27  ;;  %v4045_v37 = vcvt.s32.f32 %v3533_v17  ;;  %v4053_v48 = vcvt.s32.f32 %v3541_v12 }
 0x4e7   :  { %4669 = vmatpush.bf16.msra.mxu2 %v4253_v54  ;;  %4691 = vmatpush.bf16.msra.mxu0 %v4413_v5  ;;  %v3629_v57 = vunpack.c.2.s8 %v3197_v7  ;;  %v3637_v38 = vunpack.c.3.s8 %v3197_v7  ;;  %v4358_v36 = vpack.c.bf16 %v3958_v62, %v3950_v50  ;;  %v3838_v24 = vcvt.s32.f32 %v3326_v13 }
 0x4e8   :  { %v3846_v55 = vcvt.s32.f32 %v3334_v52  ;;  %v3422_v30 = vunpack.c.0.s8 %v3150_v25  ;;  %v4405_v32 = vpack.c.bf16 %v4053_v48, %v4045_v37  ;;  %v3430_v31 = vunpack.c.1.s8 %v3150_v25  ;;  %v3190_v48 = vld [vmem:[#allocation8 + $0x2e0] sm:$0xff] }
 0x4e9   :  { %4728 = vmatpush.bf16.msrb.mxu3 %v4366_v18  ;;  %4706 = vmatpush.bf16.msra.mxu1 %v4461_v33  ;;  %v4141_v9 = vcvt.s32.f32 %v3629_v57  ;;  %v4149_v15 = vcvt.s32.f32 %v3637_v38  ;;  %v3517_v63 = vunpack.c.0.s8 %v3173_v45  ;;  %v3525_v39 = vunpack.c.1.s8 %v3173_v45  ;;  %v3110_v33 = vld [vmem:[#allocation8 + $0x60] sm:$0xff] }
 0x4ea   :  { %4670 = vmatmul.bf16.vlgmr.msra.gmra.mxu2 %v6020_v20  ;;  %v4302_v61 = vpack.c.bf16 %v3846_v55, %v3838_v24  ;;  %v3934_v53 = vcvt.s32.f32 %v3422_v30  ;;  %v3942_v42 = vcvt.s32.f32 %v3430_v31  ;;  %v3310_v34 = vunpack.c.2.s8 %v3118_v21 }
 0x4eb   :  { %4714 = vmatpush.bf16.msrb.mxu2 %v4310_v8  ;;  %4692 = vmatpush.bf16.msra.mxu0 %v4405_v32  ;;  %v4453_v46 = vpack.c.bf16 %v4149_v15, %v4141_v9  ;;  %v3318_v2 = vunpack.c.3.s8 %v3118_v21  ;;  %v4029_v14 = vcvt.s32.f32 %v3517_v63  ;;  %v4037_v29 = vcvt.s32.f32 %v3525_v39  ;;  %v3134_v9 = vld [vmem:[#allocation8 + $0x120] sm:$0xff] }
 0x4ec   :  { %v3613_v27 = vunpack.c.0.s8 %v3197_v7  ;;  %v3621_v51 = vunpack.c.1.s8 %v3197_v7  ;;  %v4350_v4 = vpack.c.bf16 %v3942_v42, %v3934_v53  ;;  %v3822_v56 = vcvt.s32.f32 %v3310_v34  ;;  %v3214_v63 = vld [vmem:[#allocation8 + $0x3a0] sm:$0xff] }
 0x4ed   :  { %4729 = vmatpush.bf16.msrb.mxu3 %v4358_v36  ;;  %4707 = vmatpush.bf16.msra.mxu1 %v4453_v46  ;;  %v3830_v19 = vcvt.s32.f32 %v3318_v2  ;;  %v3406_v58 = vunpack.c.2.s8 %v3142_v10  ;;  %v4397_v22 = vpack.c.bf16 %v4037_v29, %v4029_v14  ;;  %v3414_v6 = vunpack.c.3.s8 %v3142_v10 }
 0x4ee   :  { %v4125_v25 = vcvt.s32.f32 %v3613_v27  ;;  %v4133_v18 = vcvt.s32.f32 %v3621_v51  ;;  %v3726_v41 = vunpack.c.2.s8 %v3222_v28  ;;  %v3734_v49 = vunpack.c.3.s8 %v3222_v28 }
 0x4ef   :  { %4715 = vmatpush.bf16.msrb.mxu2 %v4302_v61  ;;  %v4294_v26 = vpack.c.bf16 %v3830_v19, %v3822_v56  ;;  %v3918_v16 = vcvt.s32.f32 %v3406_v58  ;;  %4693 = vmatpush.bf16.msra.mxu0 %v4397_v22  ;;  %v3926_v1 = vcvt.s32.f32 %v3414_v6  ;;  %v3501_v45 = vunpack.c.2.s8 %v3165_v11 }
 0x4f0   :  { %v4445_v40 = vpack.c.bf16 %v4133_v18, %v4125_v25  ;;  %v3509_v54 = vunpack.c.3.s8 %v3165_v11  ;;  %v4238_v43 = vcvt.s32.f32 %v3726_v41  ;;  %v4246_v3 = vcvt.s32.f32 %v3734_v49 }
 0x4f1   :  { %4730 = vmatpush.bf16.msrb.mxu3 %v4350_v4  ;;  %v3294_v0 = vunpack.c.0.s8 %v3118_v21  ;;  %v3302_v5 = vunpack.c.1.s8 %v3118_v21  ;;  %v4342_v59 = vpack.c.bf16 %v3926_v1, %v3918_v16  ;;  %v4013_v35 = vcvt.s32.f32 %v3501_v45 }
 0x4f2   :  { %4708 = vmatpush.bf16.msra.mxu1 %v4445_v40  ;;  %v4021_v23 = vcvt.s32.f32 %v3509_v54  ;;  %v3390_v7 = vunpack.c.0.s8 %v3142_v10  ;;  %v4502_v8 = vpack.c.bf16 %v4246_v3, %v4238_v43  ;;  %v3398_v12 = vunpack.c.1.s8 %v3142_v10  ;;  %v3159_v40 = vld [vmem:[#allocation8 + $0x1e8] sm:$0xff]  ;;  %v3102_v3 = vld [vmem:[#allocation8 + $0x20] sm:$0xff] }
 0x4f3   :  { %4716 = vmatpush.bf16.msrb.mxu2 %v4294_v26  ;;  %v3806_v50 = vcvt.s32.f32 %v3294_v0  ;;  %v3814_v17 = vcvt.s32.f32 %v3302_v5  ;;  %v3710_v52 = vunpack.c.0.s8 %v3222_v28  ;;  %v3718_v37 = vunpack.c.1.s8 %v3222_v28 }
 0x4f4   :  { %v4389_v62 = vpack.c.bf16 %v4021_v23, %v4013_v35  ;;  %v3902_v13 = vcvt.s32.f32 %v3390_v7  ;;  %v3910_v38 = vcvt.s32.f32 %v3398_v12  ;;  %v3485_v36 = vunpack.c.0.s8 %v3165_v11 }
 0x4f5   :  { %4731 = vmatpush.bf16.msrb.mxu3 %v4342_v59  ;;  %v4286_v57 = vpack.c.bf16 %v3814_v17, %v3806_v50  ;;  %v3493_v24 = vunpack.c.1.s8 %v3165_v11  ;;  %4709 = vmatmul.bf16.vlgmr.msra.gmra.mxu1 %v6094_v60  ;;  %v4222_v55 = vcvt.s32.f32 %v3710_v52  ;;  %v4230_v30 = vcvt.s32.f32 %v3718_v37  ;;  %v3182_v17 = vld [vmem:[#allocation8 + $0x2a0] sm:$0xff] }
 0x4f6   :  { %4753 = vmatpush.bf16.msrb.mxu1 %v4502_v8  ;;  %4694 = vmatpush.bf16.msra.mxu0 %v4389_v62  ;;  %v3278_v21 = vunpack.c.2.s8 %v3110_v33  ;;  %v3286_v32 = vunpack.c.3.s8 %v3110_v33  ;;  %v4334_v15 = vpack.c.bf16 %v3910_v38, %v3902_v13  ;;  %v3997_v31 = vcvt.s32.f32 %v3485_v36  ;;  %v3206_v52 = vld [vmem:[#allocation8 + $0x360] sm:$0xff] }
 0x4f7   :  { %4717 = vmatpush.bf16.msrb.mxu2 %v4286_v57  ;;  %v4005_v61 = vcvt.s32.f32 %v3493_v24  ;;  %v3598_v53 = vunpack.c.2.s8 %v3190_v48  ;;  %v4494_v39 = vpack.c.bf16 %v4230_v30, %v4222_v55  ;;  %v3606_v42 = vunpack.c.3.s8 %v3190_v48 }
 0x4f8   :  { %v3790_v10 = vcvt.s32.f32 %v3278_v21  ;;  %v3798_v46 = vcvt.s32.f32 %v3286_v32  ;;  %v3374_v14 = vunpack.c.2.s8 %v3134_v9  ;;  %v3382_v29 = vunpack.c.3.s8 %v3134_v9 }
 0x4f9   :  { %4732 = vmatpush.bf16.msrb.mxu3 %v4334_v15  ;;  %v4381_v34 = vpack.c.bf16 %v4005_v61, %v3997_v31  ;;  %v4110_v2 = vcvt.s32.f32 %v3598_v53  ;;  %v4118_v51 = vcvt.s32.f32 %v3606_v42  ;;  %v3694_v28 = vunpack.c.2.s8 %v3214_v63 }
 0x4fa   :  { %4754 = vmatpush.bf16.msrb.mxu1 %v4494_v39  ;;  %v4278_v27 = vpack.c.bf16 %v3798_v46, %v3790_v10  ;;  %v3702_v4 = vunpack.c.3.s8 %v3214_v63  ;;  %v3886_v56 = vcvt.s32.f32 %v3374_v14  ;;  %v3894_v19 = vcvt.s32.f32 %v3382_v29 }
 0x4fb   :  { %4695 = vmatpush.bf16.msra.mxu0 %v4381_v34  ;;  %v3262_v58 = vunpack.c.0.s8 %v3110_v33  ;;  %v3270_v11 = vunpack.c.1.s8 %v3110_v33  ;;  %v4438_v22 = vpack.c.bf16 %v4118_v51, %v4110_v2  ;;  %v4206_v25 = vcvt.s32.f32 %v3694_v28  ;;  %v3127_v34 = vld [vmem:[#allocation8 + $0xe8] sm:$0xff] }
 0x4fc   :  { %4718 = vmatpush.bf16.msrb.mxu2 %v4278_v27  ;;  %v4214_v18 = vcvt.s32.f32 %v3702_v4  ;;  %v3582_v6 = vunpack.c.0.s8 %v3190_v48  ;;  %v4326_v26 = vpack.c.bf16 %v3894_v19, %v3886_v56  ;;  %v3590_v49 = vunpack.c.1.s8 %v3190_v48  ;;  %v3151_v19 = vld [vmem:[#allocation8 + $0x1a8] sm:$0xff] }
 0x4fd   :  { %v3774_v16 = vcvt.s32.f32 %v3262_v58  ;;  %v3782_v41 = vcvt.s32.f32 %v3270_v11  ;;  %v3358_v54 = vunpack.c.0.s8 %v3134_v9  ;;  %v3366_v43 = vunpack.c.1.s8 %v3134_v9 }
 0x4fe   :  { %v4486_v1 = vpack.c.bf16 %v4214_v18, %v4206_v25  ;;  %v4094_v45 = vcvt.s32.f32 %v3582_v6  ;;  %4696 = vmatmul.bf16.vlgmr.msra.gmra.mxu0 %v6135_v44  ;;  %4733 = vmatpush.bf16.msrb.mxu3 %v4326_v26  ;;  %v4102_v5 = vcvt.s32.f32 %v3590_v49  ;;  %v3678_v59 = vunpack.c.0.s8 %v3214_v63 }
 0x4ff   :  { %4740 = vmatpush.bf16.msrb.mxu0 %v4438_v22  ;;  %v4270_v0 = vpack.c.bf16 %v3782_v41, %v3774_v16  ;;  %v3686_v35 = vunpack.c.1.s8 %v3214_v63  ;;  %v3870_v23 = vcvt.s32.f32 %v3358_v54  ;;  %v3878_v7 = vcvt.s32.f32 %v3366_v43  ;;  %v3174_v41 = vld [vmem:[#allocation8 + $0x260] sm:$0xff] }
 0x500   :  { %4755 = vmatpush.bf16.msrb.mxu1 %v4486_v1  ;;  %v3471_v8 = vunpack.c.2.s8 %v3159_v40  ;;  %v3479_v50 = vunpack.c.3.s8 %v3159_v40  ;;  %v4430_v12 = vpack.c.bf16 %v4102_v5, %v4094_v45  ;;  %v4190_v33 = vcvt.s32.f32 %v3678_v59  ;;  %v3198_v5 = vld [vmem:[#allocation8 + $0x320] sm:$0xff] }
 0x501   :  { %4719 = vmatpush.bf16.msrb.mxu2 %v4270_v0  ;;  %v4198_v62 = vcvt.s32.f32 %v3686_v35  ;;  %v3246_v13 = vunpack.c.2.s8 %v3102_v3  ;;  %v4318_v37 = vpack.c.bf16 %v3878_v7, %v3870_v23  ;;  %v3254_v38 = vunpack.c.3.s8 %v3102_v3 }
 0x502   :  { %v3983_v48 = vcvt.s32.f32 %v3471_v8  ;;  %v3991_v57 = vcvt.s32.f32 %v3479_v50  ;;  %v3566_v55 = vunpack.c.2.s8 %v3182_v17  ;;  %v3574_v30 = vunpack.c.3.s8 %v3182_v17 }
 0x503   :  { %4741 = vmatpush.bf16.msrb.mxu0 %v4430_v12  ;;  %v4478_v36 = vpack.c.bf16 %v4198_v62, %v4190_v33  ;;  %v3758_v24 = vcvt.s32.f32 %v3246_v13  ;;  %4734 = vmatpush.bf16.msrb.mxu3 %v4318_v37  ;;  %v3766_v32 = vcvt.s32.f32 %v3254_v38  ;;  %v3662_v9 = vunpack.c.2.s8 %v3206_v52 }
 0x504   :  { %v4375_v21 = vpack.c.bf16 %v3991_v57, %v3983_v48  ;;  %v3670_v15 = vunpack.c.3.s8 %v3206_v52  ;;  %v4078_v31 = vcvt.s32.f32 %v3566_v55  ;;  %v4086_v61 = vcvt.s32.f32 %v3574_v30 }
 0x505   :  { %4756 = vmatpush.bf16.msrb.mxu1 %v4478_v36  ;;  %v3455_v53 = vunpack.c.0.s8 %v3159_v40  ;;  %v3463_v63 = vunpack.c.1.s8 %v3159_v40  ;;  %v4262_v39 = vpack.c.bf16 %v3766_v32, %v3758_v24  ;;  %v4174_v10 = vcvt.s32.f32 %v3662_v9  ;;  %v3119_v36 = vld [vmem:[#allocation8 + $0xa8] sm:$0xff] }
 0x506   :  { %v4182_v46 = vcvt.s32.f32 %v3670_v15  ;;  %v3230_v42 = vunpack.c.0.s8 %v3102_v3  ;;  %v4422_v2 = vpack.c.bf16 %v4086_v61, %v4078_v31  ;;  %4735 = vmatmul.bf16.vlgmr.msrb.gmra.mxu3 %v5989_v47  ;;  %v3238_v27 = vunpack.c.1.s8 %v3102_v3  ;;  %v3143_v61 = vld [vmem:[#allocation8 + $0x168] sm:$0xff] }
 0x507   :  { %4779 = vmatpush.bf16.msra.mxu3 %v4375_v21  ;;  %v3967_v14 = vcvt.s32.f32 %v3455_v53  ;;  %v3975_v29 = vcvt.s32.f32 %v3463_v63  ;;  %4720 = vmatpush.bf16.msrb.mxu2 %v4262_v39  ;;  %v3550_v4 = vunpack.c.0.s8 %v3182_v17  ;;  %v3558_v56 = vunpack.c.1.s8 %v3182_v17 }
 0x508   :  { %v4470_v51 = vpack.c.bf16 %v4182_v46, %v4174_v10  ;;  %v3742_v28 = vcvt.s32.f32 %v3230_v42  ;;  %4742 = vmatpush.bf16.msrb.mxu0 %v4422_v2  ;;  %v3750_v11 = vcvt.s32.f32 %v3238_v27  ;;  %v3343_v22 = vunpack.c.2.s8 %v3127_v34 }
 0x509   :  { %v4367_v58 = vpack.c.bf16 %v3975_v29, %v3967_v14  ;;  %v3351_v25 = vunpack.c.3.s8 %v3127_v34  ;;  %v4062_v18 = vcvt.s32.f32 %v3550_v4  ;;  %v4070_v6 = vcvt.s32.f32 %v3558_v56  ;;  %v3223_v14 = vld [vmem:[#allocation8 + $0x3e8] sm:$0xff]  ;;  %v3166_v4 = vld [vmem:[#allocation8 + $0x220] sm:$0xff] }
 0x50a   :  { %4757 = vmatpush.bf16.msrb.mxu1 %v4470_v51  ;;  %v3646_v26 = vunpack.c.0.s8 %v3206_v52  ;;  %v3654_v16 = vunpack.c.1.s8 %v3206_v52  ;;  %v4254_v49 = vpack.c.bf16 %v3750_v11, %v3742_v28  ;;  %v3855_v40 = vcvt.s32.f32 %v3343_v22 }
 0x50b   :  { %4780 = vmatpush.bf16.msra.mxu3 %v4367_v58  ;;  %v3863_v1 = vcvt.s32.f32 %v3351_v25  ;;  %v3439_v45 = vunpack.c.2.s8 %v3151_v19  ;;  %v4414_v54 = vpack.c.bf16 %v4070_v6, %v4062_v18  ;;  %v3447_v0 = vunpack.c.3.s8 %v3151_v19 }
 0x50c   :  { %v4158_v43 = vcvt.s32.f32 %v3646_v26  ;;  %v4166_v3 = vcvt.s32.f32 %v3654_v16  ;;  %4721 = vmatpush.bf16.msrb.mxu2 %v4254_v49  ;;  %v3534_v23 = vunpack.c.2.s8 %v3174_v41  ;;  %v3542_v7 = vunpack.c.3.s8 %v3174_v41 }
 0x50d   :  { %v4311_v59 = vpack.c.bf16 %v3863_v1, %v3855_v40  ;;  %v3951_v35 = vcvt.s32.f32 %v3439_v45  ;;  %4743 = vmatpush.bf16.msrb.mxu0 %v4414_v54  ;;  %v3959_v50 = vcvt.s32.f32 %v3447_v0  ;;  %v3327_v17 = vunpack.c.0.s8 %v3127_v34 }
 0x50e   :  { %v4462_v8 = vpack.c.bf16 %v4166_v3, %v4158_v43  ;;  %v3335_v12 = vunpack.c.1.s8 %v3127_v34  ;;  %v4046_v33 = vcvt.s32.f32 %v3534_v23  ;;  %v4054_v62 = vcvt.s32.f32 %v3542_v7 }
 0x50f   :  { %v3630_v13 = vunpack.c.2.s8 %v3198_v5  ;;  %v3638_v52 = vunpack.c.3.s8 %v3198_v5  ;;  %4722 = vmatmul.bf16.vlgmr.msrb.gmra.mxu2 %v6020_v20  ;;  %v4359_v37 = vpack.c.bf16 %v3959_v50, %v3951_v35  ;;  %v3839_v48 = vcvt.s32.f32 %v3327_v17 }
 0x510   :  { %4766 = vmatpush.bf16.msra.mxu2 %v4311_v59  ;;  %4758 = vmatpush.bf16.msrb.mxu1 %v4462_v8  ;;  %v3847_v57 = vcvt.s32.f32 %v3335_v12  ;;  %v3423_v38 = vunpack.c.0.s8 %v3151_v19  ;;  %v4406_v24 = vpack.c.bf16 %v4054_v62, %v4046_v33  ;;  %v3431_v21 = vunpack.c.1.s8 %v3151_v19  ;;  %v3111_v8 = vld [vmem:[#allocation8 + $0x68] sm:$0xff] }
 0x511   :  { %v4142_v55 = vcvt.s32.f32 %v3630_v13  ;;  %v4150_v30 = vcvt.s32.f32 %v3638_v52  ;;  %4781 = vmatpush.bf16.msra.mxu3 %v4359_v37  ;;  %v3518_v15 = vunpack.c.0.s8 %v3174_v41  ;;  %v3526_v31 = vunpack.c.1.s8 %v3174_v41  ;;  %v3191_v62 = vld [vmem:[#allocation8 + $0x2e8] sm:$0xff] }
 0x512   :  { %v4303_v32 = vpack.c.bf16 %v3847_v57, %v3839_v48  ;;  %v3935_v9 = vcvt.s32.f32 %v3423_v38  ;;  %4744 = vmatpush.bf16.msrb.mxu0 %v4406_v24  ;;  %v3943_v63 = vcvt.s32.f32 %v3431_v21  ;;  %v3311_v39 = vunpack.c.2.s8 %v3119_v36 }
 0x513   :  { %v4454_v53 = vpack.c.bf16 %v4150_v30, %v4142_v55  ;;  %v3319_v10 = vunpack.c.3.s8 %v3119_v36  ;;  %v4030_v46 = vcvt.s32.f32 %v3518_v15  ;;  %v4038_v42 = vcvt.s32.f32 %v3526_v31  ;;  %v3135_v55 = vld [vmem:[#allocation8 + $0x128] sm:$0xff] }
 0x514   :  { %4767 = vmatpush.bf16.msra.mxu2 %v4303_v32  ;;  %v3614_v34 = vunpack.c.0.s8 %v3198_v5  ;;  %v3622_v2 = vunpack.c.1.s8 %v3198_v5  ;;  %v4351_v29 = vpack.c.bf16 %v3943_v63, %v3935_v9  ;;  %v3823_v27 = vcvt.s32.f32 %v3311_v39  ;;  %v3215_v15 = vld [vmem:[#allocation8 + $0x3a8] sm:$0xff] }
 0x515   :  { %4759 = vmatpush.bf16.msrb.mxu1 %v4454_v53  ;;  %v3831_v51 = vcvt.s32.f32 %v3319_v10  ;;  %v3407_v28 = vunpack.c.2.s8 %v3143_v61  ;;  %v4398_v56 = vpack.c.bf16 %v4038_v42, %v4030_v46  ;;  %v3415_v11 = vunpack.c.3.s8 %v3143_v61 }
 0x516   :  { %v4126_v19 = vcvt.s32.f32 %v3614_v34  ;;  %v4134_v58 = vcvt.s32.f32 %v3622_v2  ;;  %4782 = vmatpush.bf16.msra.mxu3 %v4351_v29  ;;  %v3727_v18 = vunpack.c.2.s8 %v3223_v14  ;;  %v3735_v6 = vunpack.c.3.s8 %v3223_v14 }
 0x517   :  { %v4295_v22 = vpack.c.bf16 %v3831_v51, %v3823_v27  ;;  %v3919_v25 = vcvt.s32.f32 %v3407_v28  ;;  %4745 = vmatpush.bf16.msrb.mxu0 %v4398_v56  ;;  %v3927_v16 = vcvt.s32.f32 %v3415_v11  ;;  %v3502_v41 = vunpack.c.2.s8 %v3166_v4 }
 0x518   :  { %v4446_v26 = vpack.c.bf16 %v4134_v58, %v4126_v19  ;;  %v3510_v49 = vunpack.c.3.s8 %v3166_v4  ;;  %v4239_v40 = vcvt.s32.f32 %v3727_v18  ;;  %v4247_v1 = vcvt.s32.f32 %v3735_v6 }
 0x519   :  { %4768 = vmatpush.bf16.msra.mxu2 %v4295_v22  ;;  %v3295_v45 = vunpack.c.0.s8 %v3119_v36  ;;  %v3303_v54 = vunpack.c.1.s8 %v3119_v36  ;;  %v4343_v43 = vpack.c.bf16 %v3927_v16, %v3919_v25  ;;  %v4014_v3 = vcvt.s32.f32 %v3502_v41  ;;  %v3160_v16 = vld [vmem:[#allocation8 + $0x1f0] sm:$0xff] }
 0x51a   :  { %4760 = vmatpush.bf16.msrb.mxu1 %v4446_v26  ;;  %v4022_v0 = vcvt.s32.f32 %v3510_v49  ;;  %v3391_v5 = vunpack.c.0.s8 %v3143_v61  ;;  %v4503_v59 = vpack.c.bf16 %v4247_v1, %v4239_v40  ;;  %v3399_v7 = vunpack.c.1.s8 %v3143_v61 }
 0x51b   :  { %v3807_v35 = vcvt.s32.f32 %v3295_v45  ;;  %v3815_v23 = vcvt.s32.f32 %v3303_v54  ;;  %4783 = vmatpush.bf16.msra.mxu3 %v4343_v43  ;;  %v3711_v12 = vunpack.c.0.s8 %v3223_v14  ;;  %v3719_v33 = vunpack.c.1.s8 %v3223_v14  ;;  %v3103_v45 = vld [vmem:[#allocation8 + $0x28] sm:$0xff] }
 0x51c   :  { %v4390_v50 = vpack.c.bf16 %v4022_v0, %v4014_v3  ;;  %v3903_v17 = vcvt.s32.f32 %v3391_v5  ;;  %v3911_v52 = vcvt.s32.f32 %v3399_v7  ;;  %v3486_v37 = vunpack.c.0.s8 %v3166_v4  ;;  %v3183_v7 = vld [vmem:[#allocation8 + $0x2a8] sm:$0xff] }
 0x51d   :  { %v4287_v13 = vpack.c.bf16 %v3815_v23, %v3807_v35  ;;  %v3494_v48 = vunpack.c.1.s8 %v3166_v4  ;;  %4761 = vmatmul.bf16.vlgmr.msrb.gmra.mxu1 %v6094_v60  ;;  %v4223_v57 = vcvt.s32.f32 %v3711_v12  ;;  %v4231_v38 = vcvt.s32.f32 %v3719_v33  ;;  %v3207_v33 = vld [vmem:[#allocation8 + $0x368] sm:$0xff] }
 0x51e   :  { %4805 = vmatpush.bf16.msra.mxu1 %v4503_v59  ;;  %4746 = vmatpush.bf16.msrb.mxu0 %v4390_v50  ;;  %v3279_v36 = vunpack.c.2.s8 %v3111_v8  ;;  %v3287_v24 = vunpack.c.3.s8 %v3111_v8  ;;  %v4335_v30 = vpack.c.bf16 %v3911_v52, %v3903_v17  ;;  %v3998_v21 = vcvt.s32.f32 %v3486_v37 }
 0x51f   :  { %4769 = vmatpush.bf16.msra.mxu2 %v4287_v13  ;;  %v4006_v32 = vcvt.s32.f32 %v3494_v48  ;;  %v3599_v9 = vunpack.c.2.s8 %v3191_v62  ;;  %v4495_v31 = vpack.c.bf16 %v4231_v38, %v4223_v57  ;;  %v3607_v63 = vunpack.c.3.s8 %v3191_v62 }
 0x520   :  { %v3791_v61 = vcvt.s32.f32 %v3279_v36  ;;  %v3799_v53 = vcvt.s32.f32 %v3287_v24  ;;  %4784 = vmatpush.bf16.msra.mxu3 %v4335_v30  ;;  %v3375_v46 = vunpack.c.2.s8 %v3135_v55  ;;  %v3383_v42 = vunpack.c.3.s8 %v3135_v55 }
 0x521   :  { %v4382_v39 = vpack.c.bf16 %v4006_v32, %v3998_v21  ;;  %v4111_v10 = vcvt.s32.f32 %v3599_v9  ;;  %v4119_v2 = vcvt.s32.f32 %v3607_v63  ;;  %v3695_v14 = vunpack.c.2.s8 %v3215_v15 }
 0x522   :  { %4806 = vmatpush.bf16.msra.mxu1 %v4495_v31  ;;  %v4279_v34 = vpack.c.bf16 %v3799_v53, %v3791_v61  ;;  %v3703_v29 = vunpack.c.3.s8 %v3215_v15  ;;  %v3887_v27 = vcvt.s32.f32 %v3375_v46  ;;  %v3895_v51 = vcvt.s32.f32 %v3383_v42  ;;  %v3128_v42 = vld [vmem:[#allocation8 + $0xf0] sm:$0xff] }
 0x523   :  { %4747 = vmatpush.bf16.msrb.mxu0 %v4382_v39  ;;  %v3263_v28 = vunpack.c.0.s8 %v3111_v8  ;;  %v3271_v4 = vunpack.c.1.s8 %v3111_v8  ;;  %v4439_v56 = vpack.c.bf16 %v4119_v2, %v4111_v10  ;;  %v4207_v19 = vcvt.s32.f32 %v3695_v14 }
 0x524   :  { %4770 = vmatpush.bf16.msra.mxu2 %v4279_v34  ;;  %v4215_v58 = vcvt.s32.f32 %v3703_v29  ;;  %v3583_v11 = vunpack.c.0.s8 %v3191_v62  ;;  %v4327_v25 = vpack.c.bf16 %v3895_v51, %v3887_v27  ;;  %v3591_v26 = vunpack.c.1.s8 %v3191_v62 }
 0x525   :  { %v3775_v18 = vcvt.s32.f32 %v3263_v28  ;;  %v3783_v6 = vcvt.s32.f32 %v3271_v4  ;;  %v3359_v40 = vunpack.c.0.s8 %v3135_v55  ;;  %v3367_v1 = vunpack.c.1.s8 %v3135_v55 }
 0x526   :  { %v4487_v41 = vpack.c.bf16 %v4215_v58, %v4207_v19  ;;  %v4095_v49 = vcvt.s32.f32 %v3583_v11  ;;  %4748 = vmatmul.bf16.vlgmr.msrb.gmra.mxu0 %v6135_v44  ;;  %4785 = vmatpush.bf16.msra.mxu3 %v4327_v25  ;;  %v4103_v43 = vcvt.s32.f32 %v3591_v26  ;;  %v3679_v3 = vunpack.c.0.s8 %v3215_v15 }
 0x527   :  { %v6202_v22 = vpop.f32.mrf.mxu3  ;;  %4792 = vmatpush.bf16.msra.mxu0 %v4439_v56  ;;  %v4271_v54 = vpack.c.bf16 %v3783_v6, %v3775_v18  ;;  %v3687_v0 = vunpack.c.1.s8 %v3215_v15  ;;  %v3871_v5 = vcvt.s32.f32 %v3359_v40  ;;  %v3879_v59 = vcvt.s32.f32 %v3367_v1  ;;  %v3152_v56 = vld [vmem:[#allocation8 + $0x1b0] sm:$0xff] }
 0x528   :  { %4807 = vmatpush.bf16.msra.mxu1 %v4487_v41  ;;  %v3472_v35 = vunpack.c.2.s8 %v3160_v16  ;;  %v3480_v23 = vunpack.c.3.s8 %v3160_v16  ;;  %v4431_v8 = vpack.c.bf16 %v4103_v43, %v4095_v49  ;;  %v4191_v50 = vcvt.s32.f32 %v3679_v3  ;;  %v3175_v49 = vld [vmem:[#allocation8 + $0x268] sm:$0xff] }
 0x529   :  { %4771 = vmatpush.bf16.msra.mxu2 %v4271_v54  ;;  %v4199_v17 = vcvt.s32.f32 %v3687_v0  ;;  %v3247_v12 = vunpack.c.2.s8 %v3103_v45  ;;  %v4319_v62 = vpack.c.bf16 %v3879_v59, %v3871_v5  ;;  %v3255_v37 = vunpack.c.3.s8 %v3103_v45 }
 0x52a   :  { %v3984_v13 = vcvt.s32.f32 %v3472_v35  ;;  %v3992_v52 = vcvt.s32.f32 %v3480_v23  ;;  %v3567_v36 = vunpack.c.2.s8 %v3183_v7  ;;  %v3575_v24 = vunpack.c.3.s8 %v3183_v7  ;;  %v3199_v35 = vld [vmem:[#allocation8 + $0x328] sm:$0xff] }
 0x52b   :  { %4793 = vmatpush.bf16.msra.mxu0 %v4431_v8  ;;  %v4479_v57 = vpack.c.bf16 %v4199_v17, %v4191_v50  ;;  %v3759_v38 = vcvt.s32.f32 %v3247_v12  ;;  %4786 = vmatpush.bf16.msra.mxu3 %v4319_v62  ;;  %v3767_v30 = vcvt.s32.f32 %v3255_v37  ;;  %v3663_v21 = vunpack.c.2.s8 %v3207_v33 }
 0x52c   :  { %v6205_v48 = vpop.f32.mrf.mxu2  ;;  %v4376_v55 = vpack.c.bf16 %v3992_v52, %v3984_v13  ;;  %v3671_v32 = vunpack.c.3.s8 %v3207_v33  ;;  %v4079_v15 = vcvt.s32.f32 %v3567_v36  ;;  %v4087_v31 = vcvt.s32.f32 %v3575_v24 }
 0x52d   :  { %4808 = vmatpush.bf16.msra.mxu1 %v4479_v57  ;;  %v3456_v61 = vunpack.c.0.s8 %v3160_v16  ;;  %v3464_v53 = vunpack.c.1.s8 %v3160_v16  ;;  %v4263_v63 = vpack.c.bf16 %v3767_v30, %v3759_v38  ;;  %v4175_v39 = vcvt.s32.f32 %v3663_v21  ;;  %v3120_v30 = vld [vmem:[#allocation8 + $0xb0] sm:$0xff] }
 0x52e   :  { %v4183_v10 = vcvt.s32.f32 %v3671_v32  ;;  %v3231_v46 = vunpack.c.0.s8 %v3103_v45  ;;  %v4423_v34 = vpack.c.bf16 %v4087_v31, %v4079_v15  ;;  %4787 = vmatmul.bf16.vlgmr.msra.gmra.mxu3 %v5989_v47  ;;  %v3239_v29 = vunpack.c.1.s8 %v3103_v45 }
 0x52f   :  { %v4530_v9 = vpop.f32.mrf.mxu3  ;;  %4831 = vmatpush.bf16.msrb.mxu3 %v4376_v55  ;;  %v3968_v2 = vcvt.s32.f32 %v3456_v61  ;;  %v3976_v14 = vcvt.s32.f32 %v3464_v53  ;;  %4772 = vmatpush.bf16.msra.mxu2 %v4263_v63  ;;  %v3551_v28 = vunpack.c.0.s8 %v3183_v7  ;;  %v3559_v4 = vunpack.c.1.s8 %v3183_v7 }
 0x530   :  { %v4471_v27 = vpack.c.bf16 %v4183_v10, %v4175_v39  ;;  %v3743_v51 = vcvt.s32.f32 %v3231_v46  ;;  %4794 = vmatpush.bf16.msra.mxu0 %v4423_v34  ;;  %v3751_v11 = vcvt.s32.f32 %v3239_v29  ;;  %v3344_v25 = vunpack.c.2.s8 %v3128_v42  ;;  %v3144_v46 = vld [vmem:[#allocation8 + $0x170] sm:$0xff] }
 0x531   :  { %v6208_v19 = vpop.f32.mrf.mxu1  ;;  %v4368_v58 = vpack.c.bf16 %v3976_v14, %v3968_v2  ;;  %v3352_v18 = vunpack.c.3.s8 %v3128_v42  ;;  %v4063_v6 = vcvt.s32.f32 %v3551_v28  ;;  %v4071_v26 = vcvt.s32.f32 %v3559_v4 }
 0x532   :  { %4809 = vmatpush.bf16.msra.mxu1 %v4471_v27  ;;  %v3647_v16 = vunpack.c.0.s8 %v3207_v33  ;;  %v3655_v41 = vunpack.c.1.s8 %v3207_v33  ;;  %v4255_v1 = vpack.c.bf16 %v3751_v11, %v3743_v51  ;;  %v3856_v45 = vcvt.s32.f32 %v3344_v25 }
 0x533   :  { %4832 = vmatpush.bf16.msrb.mxu3 %v4368_v58  ;;  %v3864_v54 = vcvt.s32.f32 %v3352_v18  ;;  %v3440_v43 = vunpack.c.2.s8 %v3152_v56  ;;  %v4415_v3 = vpack.c.bf16 %v4071_v26, %v4063_v6  ;;  %v3448_v59 = vunpack.c.3.s8 %v3152_v56  ;;  %v3167_v6 = vld [vmem:[#allocation8 + $0x228] sm:$0xff] }
 0x534   :  { %v4517_v40 = vpop.f32.mrf.mxu2  ;;  %v4159_v0 = vcvt.s32.f32 %v3647_v16  ;;  %v4167_v5 = vcvt.s32.f32 %v3655_v41  ;;  %4773 = vmatpush.bf16.msra.mxu2 %v4255_v1  ;;  %v3535_v8 = vunpack.c.2.s8 %v3175_v49  ;;  %v3543_v50 = vunpack.c.3.s8 %v3175_v49 }
 0x535   :  { %v4312_v23 = vpack.c.bf16 %v3864_v54, %v3856_v45  ;;  %v3952_v7 = vcvt.s32.f32 %v3440_v43  ;;  %4795 = vmatpush.bf16.msra.mxu0 %v4415_v3  ;;  %v3960_v12 = vcvt.s32.f32 %v3448_v59  ;;  %v3328_v33 = vunpack.c.0.s8 %v3128_v42 }
 0x536   :  { %v4463_v17 = vpack.c.bf16 %v4167_v5, %v4159_v0  ;;  %v3336_v62 = vunpack.c.1.s8 %v3128_v42  ;;  %v4047_v13 = vcvt.s32.f32 %v3535_v8  ;;  %v4055_v52 = vcvt.s32.f32 %v3543_v50 }
 0x537   :  { %v3631_v37 = vunpack.c.2.s8 %v3199_v35  ;;  %v3639_v57 = vunpack.c.3.s8 %v3199_v35  ;;  %4774 = vmatmul.bf16.vlgmr.msra.gmra.mxu2 %v6020_v20  ;;  %v4360_v38 = vpack.c.bf16 %v3960_v12, %v3952_v7  ;;  %v3840_v36 = vcvt.s32.f32 %v3328_v33  ;;  %v6211_v61 = vpop.f32.mrf.mxu0  ;;  %v6213_v42 = vpop.f32.mrf.mxu3 }
 0x538   :  { %4818 = vmatpush.bf16.msrb.mxu2 %v4312_v23  ;;  %4810 = vmatpush.bf16.msra.mxu1 %v4463_v17  ;;  %v3848_v24 = vcvt.s32.f32 %v3336_v62  ;;  %v3424_v55 = vunpack.c.0.s8 %v3152_v56  ;;  %v4407_v32 = vpack.c.bf16 %v4055_v52, %v4047_v13  ;;  %v3432_v31 = vunpack.c.1.s8 %v3152_v56  ;;  %v3224_v56 = vld [vmem:[#allocation8 + $0x3f0] sm:$0xff] }
 0x539   :  { %v4556_v21 = vpop.f32.mrf.mxu1  ;;  %v4143_v9 = vcvt.s32.f32 %v3631_v37  ;;  %v4151_v15 = vcvt.s32.f32 %v3639_v57  ;;  %4833 = vmatpush.bf16.msrb.mxu3 %v4360_v38  ;;  %v3519_v39 = vunpack.c.0.s8 %v3175_v49  ;;  %v3527_v10 = vunpack.c.1.s8 %v3175_v49  ;;  %v3112_v38 = vld [vmem:[#allocation8 + $0x70] sm:$0xff] }
 0x53a   :  { %v4304_v53 = vpack.c.bf16 %v3848_v24, %v3840_v36  ;;  %v3936_v63 = vcvt.s32.f32 %v3424_v55  ;;  %4796 = vmatpush.bf16.msra.mxu0 %v4407_v32  ;;  %v3944_v2 = vcvt.s32.f32 %v3432_v31  ;;  %v3312_v14 = vunpack.c.2.s8 %v3120_v30 }
 0x53b   :  { %v4455_v34 = vpack.c.bf16 %v4151_v15, %v4143_v9  ;;  %v3320_v29 = vunpack.c.3.s8 %v3120_v30  ;;  %v4031_v27 = vcvt.s32.f32 %v3519_v39  ;;  %v4039_v51 = vcvt.s32.f32 %v3527_v10 }
 0x53c   :  { %4819 = vmatpush.bf16.msrb.mxu2 %v4304_v53  ;;  %v3615_v28 = vunpack.c.0.s8 %v3199_v35  ;;  %v3623_v4 = vunpack.c.1.s8 %v3199_v35  ;;  %v4352_v58 = vpack.c.bf16 %v3944_v2, %v3936_v63  ;;  %v3824_v11 = vcvt.s32.f32 %v3312_v14 }
 0x53d   :  { %4811 = vmatpush.bf16.msra.mxu1 %v4455_v34  ;;  %v3832_v25 = vcvt.s32.f32 %v3320_v29  ;;  %v3408_v18 = vunpack.c.2.s8 %v3144_v46  ;;  %v4399_v26 = vpack.c.bf16 %v4039_v51, %v4031_v27  ;;  %v3416_v49 = vunpack.c.3.s8 %v3144_v46  ;;  %v6215_v36 = vpop.f32.mrf.mxu2  ;;  %v3136_v34 = vld [vmem:[#allocation8 + $0x130] sm:$0xff] }
 0x53e   :  { %v4127_v16 = vcvt.s32.f32 %v3615_v28  ;;  %v4135_v41 = vcvt.s32.f32 %v3623_v4  ;;  %4834 = vmatpush.bf16.msrb.mxu3 %v4352_v58  ;;  %v3728_v45 = vunpack.c.2.s8 %v3224_v56  ;;  %v3736_v54 = vunpack.c.3.s8 %v3224_v56  ;;  %v3216_v51 = vld [vmem:[#allocation8 + $0x3b0] sm:$0xff] }
 0x53f   :  { %v4296_v40 = vpack.c.bf16 %v3832_v25, %v3824_v11  ;;  %v3920_v1 = vcvt.s32.f32 %v3408_v18  ;;  %4797 = vmatpush.bf16.msra.mxu0 %v4399_v26  ;;  %v3928_v3 = vcvt.s32.f32 %v3416_v49  ;;  %v3503_v0 = vunpack.c.2.s8 %v3167_v6  ;;  %v4543_v8 = vpop.f32.mrf.mxu0  ;;  %v4582_v62 = vpop.f32.mrf.mxu3 }
 0x540   :  { %v4447_v43 = vpack.c.bf16 %v4135_v41, %v4127_v16  ;;  %v3511_v5 = vunpack.c.3.s8 %v3167_v6  ;;  %v4240_v59 = vcvt.s32.f32 %v3728_v45  ;;  %v4248_v35 = vcvt.s32.f32 %v3736_v54  ;;  %v6226_v8 = vld [vmem:[#allocation8 + $0x1f8] sm:$0xff] }
 0x541   :  { %4820 = vmatpush.bf16.msrb.mxu2 %v4296_v40  ;;  %v3296_v23 = vunpack.c.0.s8 %v3120_v30  ;;  %v3304_v7 = vunpack.c.1.s8 %v3120_v30  ;;  %v4344_v50 = vpack.c.bf16 %v3928_v3, %v3920_v1  ;;  %v4015_v17 = vcvt.s32.f32 %v3503_v0  ;;  %v3192_v30 = vld [vmem:[#allocation8 + $0x2f0] sm:$0xff] }
 0x542   :  { %4812 = vmatpush.bf16.msra.mxu1 %v4447_v43  ;;  %v4023_v12 = vcvt.s32.f32 %v3511_v5  ;;  %v3392_v33 = vunpack.c.0.s8 %v3144_v46  ;;  %v4504_v13 = vpack.c.bf16 %v4248_v35, %v4240_v59  ;;  %v3400_v57 = vunpack.c.1.s8 %v3144_v46 }
 0x543   :  { %v3808_v52 = vcvt.s32.f32 %v3296_v23  ;;  %v3816_v37 = vcvt.s32.f32 %v3304_v7  ;;  %4835 = vmatpush.bf16.msrb.mxu3 %v4344_v50  ;;  %v3712_v21 = vunpack.c.0.s8 %v3224_v56  ;;  %v3720_v32 = vunpack.c.1.s8 %v3224_v56 }
 0x544   :  { %v4391_v24 = vpack.c.bf16 %v4023_v12, %v4015_v17  ;;  %v3904_v55 = vcvt.s32.f32 %v3392_v33  ;;  %v3912_v15 = vcvt.s32.f32 %v3400_v57  ;;  %v6219_v31 = vadd.f32 %v6202_v22, %v6205_v48  ;;  %v6222_v48 = vpop.f32.mrf.mxu1  ;;  %v3104_v57 = vld [vmem:[#allocation8 + $0x30] sm:$0xff] }
 0x545   :  { %v4288_v9 = vpack.c.bf16 %v3816_v37, %v3808_v52  ;;  %v3487_v53 = vunpack.c.0.s8 %v3167_v6  ;;  %4813 = vmatmul.bf16.vlgmr.msra.gmra.mxu1 %v6094_v60  ;;  %v4224_v63 = vcvt.s32.f32 %v3712_v21  ;;  %v4232_v39 = vcvt.s32.f32 %v3720_v32  ;;  %v4569_v54 = vpop.f32.mrf.mxu2  ;;  %v6230_v32 = vld [vmem:[#allocation8 + $0x2b0] sm:$0xff] }
 0x546   :  { %4857 = vmatpush.bf16.msrb.mxu1 %v4504_v13  ;;  %4798 = vmatpush.bf16.msra.mxu0 %v4391_v24  ;;  %v3495_v10 = vunpack.c.1.s8 %v3167_v6  ;;  %v3280_v46 = vunpack.c.2.s8 %v3112_v38  ;;  %v4336_v2 = vpack.c.bf16 %v3912_v15, %v3904_v55  ;;  %v3288_v29 = vunpack.c.3.s8 %v3112_v38 }
 0x547   :  { %4821 = vmatpush.bf16.msrb.mxu2 %v4288_v9  ;;  %v3999_v14 = vcvt.s32.f32 %v3487_v53  ;;  %v3600_v27 = vunpack.c.2.s8 %v3192_v30  ;;  %v4496_v28 = vpack.c.bf16 %v4232_v39, %v4224_v63  ;;  %v3608_v22 = vunpack.c.3.s8 %v3192_v30 }
 0x548   :  { %v4007_v4 = vcvt.s32.f32 %v3495_v10  ;;  %v3792_v56 = vcvt.s32.f32 %v3280_v46  ;;  %4836 = vmatpush.bf16.msrb.mxu3 %v4336_v2  ;;  %v3800_v58 = vcvt.s32.f32 %v3288_v29  ;;  %v3376_v25 = vunpack.c.2.s8 %v3136_v34  ;;  %v6235_v10 = vpop.f32.mrf.mxu3  ;;  %v6237_v29 = vld [vmem:[#allocation9 + $0x6] sm:$0xff] }
 0x549   :  { %v4112_v11 = vcvt.s32.f32 %v3600_v27  ;;  %v3384_v18 = vunpack.c.3.s8 %v3136_v34  ;;  %v4120_v26 = vcvt.s32.f32 %v3608_v22  ;;  %v3696_v16 = vunpack.c.2.s8 %v3216_v51 }
 0x54a   :  { %4858 = vmatpush.bf16.msrb.mxu1 %v4496_v28  ;;  %v4383_v6 = vpack.c.bf16 %v4007_v4, %v3999_v14  ;;  %v3704_v41 = vunpack.c.3.s8 %v3216_v51  ;;  %v4280_v49 = vpack.c.bf16 %v3800_v58, %v3792_v56  ;;  %v3888_v40 = vcvt.s32.f32 %v3376_v25  ;;  %v3208_v56 = vld [vmem:[#allocation8 + $0x370] sm:$0xff] }
 0x54b   :  { %v3896_v1 = vcvt.s32.f32 %v3384_v18  ;;  %v3264_v45 = vunpack.c.0.s8 %v3112_v38  ;;  %v4440_v43 = vpack.c.bf16 %v4120_v26, %v4112_v11  ;;  %v4208_v3 = vcvt.s32.f32 %v3696_v16 }
 0x54c   :  { %4799 = vmatpush.bf16.msra.mxu0 %v4383_v6  ;;  %v4216_v0 = vcvt.s32.f32 %v3704_v41  ;;  %v3272_v5 = vunpack.c.1.s8 %v3112_v38  ;;  %4822 = vmatpush.bf16.msrb.mxu2 %v4280_v49  ;;  %v3584_v23 = vunpack.c.0.s8 %v3192_v30  ;;  %v3592_v7 = vunpack.c.1.s8 %v3192_v30  ;;  %v6232_v30 = vpop.f32.mrf.mxu0  ;;  %v4608_v9 = vpop.f32.mrf.mxu1 }
 0x54d   :  { %v4328_v59 = vpack.c.bf16 %v3896_v1, %v3888_v40  ;;  %v3776_v35 = vcvt.s32.f32 %v3264_v45  ;;  %v3360_v12 = vunpack.c.0.s8 %v3136_v34  ;;  %v3368_v33 = vunpack.c.1.s8 %v3136_v34  ;;  %v3176_v9 = vld [vmem:[#allocation8 + $0x270] sm:$0xff] }
 0x54e   :  { %v4488_v50 = vpack.c.bf16 %v4216_v0, %v4208_v3  ;;  %v3784_v17 = vcvt.s32.f32 %v3272_v5  ;;  %v4096_v62 = vcvt.s32.f32 %v3584_v23  ;;  %v4104_v13 = vcvt.s32.f32 %v3592_v7 }
 0x54f   :  { %4800 = vmatmul.bf16.vlgmr.msra.gmra.mxu0 %v6135_v44  ;;  %4837 = vmatpush.bf16.msrb.mxu3 %v4328_v59  ;;  %v3680_v52 = vunpack.c.0.s8 %v3216_v51  ;;  %v3688_v37 = vunpack.c.1.s8 %v3216_v51  ;;  %v3872_v24 = vcvt.s32.f32 %v3360_v12  ;;  %v3880_v55 = vcvt.s32.f32 %v3368_v33  ;;  %v3129_v59 = vld [vmem:[#allocation8 + $0xf8] sm:$0xff] }
 0x550   :  { %4844 = vmatpush.bf16.msrb.mxu0 %v4440_v43  ;;  %4859 = vmatpush.bf16.msrb.mxu1 %v4488_v50  ;;  %v4272_v38 = vpack.c.bf16 %v3784_v17, %v3776_v35  ;;  %v3473_v21 = vunpack.c.2.s8 %v6226_v8  ;;  %v4432_v15 = vpack.c.bf16 %v4104_v13, %v4096_v62  ;;  %v3481_v39 = vunpack.c.3.s8 %v6226_v8  ;;  %v4634_v17 = vpop.f32.mrf.mxu3 }
 0x551   :  { %v4192_v53 = vcvt.s32.f32 %v3680_v52  ;;  %v4200_v63 = vcvt.s32.f32 %v3688_v37  ;;  %v4320_v46 = vpack.c.bf16 %v3880_v55, %v3872_v24  ;;  %v3248_v2 = vunpack.c.2.s8 %v3104_v57  ;;  %v3145_v17 = vld [vmem:[#allocation8 + $0x178] sm:$0xff] }
 0x552   :  { %4823 = vmatpush.bf16.msrb.mxu2 %v4272_v38  ;;  %v3985_v34 = vcvt.s32.f32 %v3473_v21  ;;  %v3256_v14 = vunpack.c.3.s8 %v3104_v57  ;;  %v3993_v51 = vcvt.s32.f32 %v3481_v39  ;;  %v3568_v28 = vunpack.c.2.s8 %v6230_v32  ;;  %v3153_v38 = vld [vmem:[#allocation8 + $0x1b8] sm:$0xff] }
 0x553   :  { %v4480_v27 = vpack.c.bf16 %v4200_v63, %v4192_v53  ;;  %v3576_v4 = vunpack.c.3.s8 %v6230_v32  ;;  %4838 = vmatpush.bf16.msrb.mxu3 %v4320_v46  ;;  %v3760_v22 = vcvt.s32.f32 %v3248_v2  ;;  %v4542_v11 = vadd.f32 %v6211_v61, %v6219_v31 }
 0x554   :  { %4845 = vmatpush.bf16.msrb.mxu0 %v4432_v15  ;;  %v3768_v58 = vcvt.s32.f32 %v3256_v14  ;;  %v6244_v25 = vstv %s6224_s20  ;;  %v4377_v18 = vpack.c.bf16 %v3993_v51, %v3985_v34  ;;  %v4080_v6 = vcvt.s32.f32 %v3568_v28  ;;  %v4595_v35 = vpop.f32.mrf.mxu0  ;;  %v6256_v15 = vpop.f32.mrf.mxu2 }
 0x555   :  { %4860 = vmatpush.bf16.msrb.mxu1 %v4480_v27  ;;  %v4088_v26 = vcvt.s32.f32 %v3576_v4  ;;  %v4934_v16 = vperm.slane %v6237_v29, 0  ;;  %v4555_v49 = vadd.f32 %v6208_v19, %v4542_v11  ;;  %v3664_v40 = vunpack.c.2.s8 %v3208_v56  ;;  %v3200_v27 = vld [vmem:[#allocation8 + $0x330] sm:$0xff] }
 0x556   :  { %v4264_v41 = vpack.c.bf16 %v3768_v58, %v3760_v22  ;;  %v3672_v1 = vunpack.c.3.s8 %v3208_v56  ;;  %v3457_v54 = vunpack.c.0.s8 %v6226_v8  ;;  %v3465_v43 = vunpack.c.1.s8 %v6226_v8  ;;  %4839 = vmatmul.bf16.vlgmr.msrb.gmra.mxu3 %v5989_v47  ;;  %v6262_v58 = vpop.f32.mrf.mxu1 }
 0x557   :  { %4883 = vmatpush.bf16.msra.mxu3 %v4377_v18  ;;  %v4424_v45 = vpack.c.bf16 %v4088_v26, %v4080_v6  ;;  %v3232_v61 = vunpack.c.0.s8 %v3104_v57  ;;  %v4924_v31 = vmul.f32 %v6244_v25, %v4555_v49  ;;  %v4176_v3 = vcvt.s32.f32 %v3664_v40 }
 0x558   :  { %4824 = vmatpush.bf16.msrb.mxu2 %v4264_v41  ;;  %v4184_v0 = vcvt.s32.f32 %v3672_v1  ;;  %v3240_v5 = vunpack.c.1.s8 %v3104_v57  ;;  %v3969_v19 = vcvt.s32.f32 %v3457_v54  ;;  %v3977_v23 = vcvt.s32.f32 %v3465_v43 }
 0x559   :  { %4846 = vmatpush.bf16.msrb.mxu0 %v4424_v45  ;;  %v3744_v7 = vcvt.s32.f32 %v3232_v61  ;;  %v3552_v50 = vunpack.c.0.s8 %v6230_v32  ;;  %v3560_v33 = vunpack.c.1.s8 %v6230_v32  ;;  %v3345_v52 = vunpack.c.2.s8 %v3129_v59  ;;  %v6265_v45 = vld [vmem:[#allocation8 + $0xb8] sm:$0xff] }
 0x55a   :  { %v4472_v12 = vpack.c.bf16 %v4184_v0, %v4176_v3  ;;  %v3752_v8 = vcvt.s32.f32 %v3240_v5  ;;  %v4369_v62 = vpack.c.bf16 %v3977_v23, %v3969_v19  ;;  %v3353_v37 = vunpack.c.3.s8 %v3129_v59 }
 0x55b   :  { %v4064_v13 = vcvt.s32.f32 %v3552_v50  ;;  %v6254_v24 = vadd.f32 %v4934_v16, %v4924_v31  ;;  %v4072_v55 = vcvt.s32.f32 %v3560_v33  ;;  %v3648_v21 = vunpack.c.0.s8 %v3208_v56 }
 0x55c   :  { %4861 = vmatpush.bf16.msrb.mxu1 %v4472_v12  ;;  %v4256_v57 = vpack.c.bf16 %v3752_v8, %v3744_v7  ;;  %4884 = vmatpush.bf16.msra.mxu3 %v4369_v62  ;;  %v3857_v53 = vcvt.s32.f32 %v3345_v52  ;;  %v3865_v63 = vcvt.s32.f32 %v3353_v37  ;;  %v3656_v39 = vunpack.c.1.s8 %v3208_v56  ;;  %v4621_v35 = vpop.f32.mrf.mxu2  ;;  %v6269_v52 = vpop.f32.mrf.mxu0 }
 0x55d   :  { %v6260_v32 = vadd.f32 %v6213_v42, %v6215_v36  ;;  %v4416_v46 = vpack.c.bf16 %v4072_v55, %v4064_v13  ;;  %v4160_v34 = vcvt.s32.f32 %v3648_v21  ;;  %v3441_v2 = vunpack.c.2.s8 %v3153_v38  ;;  %v3225_v13 = vld [vmem:[#allocation8 + $0x3f8] sm:$0xff]  ;;  %v6271_v21 = vld [vmem:[#allocation8 + $0x230] sm:$0xff] }
 0x55e   :  { %4825 = vmatpush.bf16.msrb.mxu2 %v4256_v57  ;;  %v3449_v14 = vunpack.c.3.s8 %v3153_v38  ;;  %v4313_v51 = vpack.c.bf16 %v3865_v63, %v3857_v53  ;;  %v4168_v28 = vcvt.s32.f32 %v3656_v39  ;;  %v3536_v4 = vunpack.c.2.s8 %v3176_v9 }
 0x55f   :  { %v3544_v22 = vunpack.c.3.s8 %v3176_v9  ;;  %4847 = vmatpush.bf16.msrb.mxu0 %v4416_v46  ;;  %v3953_v11 = vcvt.s32.f32 %v3441_v2  ;;  %v3329_v56 = vunpack.c.0.s8 %v3129_v59  ;;  %v3337_v6 = vunpack.c.1.s8 %v3129_v59 }
 0x560   :  { %v3961_v18 = vcvt.s32.f32 %v3449_v14  ;;  %v4464_v42 = vpack.c.bf16 %v4168_v28, %v4160_v34  ;;  %v4048_v36 = vcvt.s32.f32 %v3536_v4  ;;  %v3632_v16 = vunpack.c.2.s8 %v3200_v27 }
 0x561   :  { %v4056_v26 = vcvt.s32.f32 %v3544_v22  ;;  %4826 = vmatmul.bf16.vlgmr.msrb.gmra.mxu2 %v6020_v20  ;;  %v3841_v49 = vcvt.s32.f32 %v3329_v56  ;;  %v3849_v40 = vcvt.s32.f32 %v3337_v6  ;;  %v3640_v1 = vunpack.c.3.s8 %v3200_v27 }
 0x562   :  { %4870 = vmatpush.bf16.msra.mxu2 %v4313_v51  ;;  %v4361_v41 = vpack.c.bf16 %v3961_v18, %v3953_v11  ;;  %4862 = vmatpush.bf16.msrb.mxu1 %v4464_v42  ;;  %v4144_v43 = vcvt.s32.f32 %v3632_v16  ;;  %v3425_v61 = vunpack.c.0.s8 %v3153_v38  ;;  %v3433_v31 = vunpack.c.1.s8 %v3153_v38 }
 0x563   :  { %v4408_v54 = vpack.c.bf16 %v4056_v26, %v4048_v36  ;;  %v4305_v3 = vpack.c.bf16 %v3849_v40, %v3841_v49  ;;  %v4152_v0 = vcvt.s32.f32 %v3640_v1  ;;  %v3520_v5 = vunpack.c.0.s8 %v3176_v9 }
 0x564   :  { %4885 = vmatpush.bf16.msra.mxu3 %v4361_v41  ;;  %v3528_v59 = vunpack.c.1.s8 %v3176_v9  ;;  %v3937_v19 = vcvt.s32.f32 %v3425_v61  ;;  %v3945_v23 = vcvt.s32.f32 %v3433_v31  ;;  %v3313_v7 = vunpack.c.2.s8 %v6265_v45  ;;  %v4660_v9 = vpop.f32.mrf.mxu1 }
 0x565   :  { %4848 = vmatpush.bf16.msrb.mxu0 %v4408_v54  ;;  %v3321_v50 = vunpack.c.3.s8 %v6265_v45  ;;  %v4456_v12 = vpack.c.bf16 %v4152_v0, %v4144_v43  ;;  %v4032_v8 = vcvt.s32.f32 %v3520_v5  ;;  %v3616_v62 = vunpack.c.0.s8 %v3200_v27  ;;  %v3113_v0 = vld [vmem:[#allocation8 + $0x78] sm:$0xff] }
 0x566   :  { %4871 = vmatpush.bf16.msra.mxu2 %v4305_v3  ;;  %v4040_v33 = vcvt.s32.f32 %v3528_v59  ;;  %v4353_v37 = vpack.c.bf16 %v3945_v23, %v3937_v19  ;;  %v3825_v38 = vcvt.s32.f32 %v3313_v7  ;;  %v3624_v55 = vunpack.c.1.s8 %v3200_v27  ;;  %v3217_v9 = vld [vmem:[#allocation8 + $0x3b8] sm:$0xff] }
 0x567   :  { %v3833_v57 = vcvt.s32.f32 %v3321_v50  ;;  %4863 = vmatpush.bf16.msrb.mxu1 %v4456_v12  ;;  %v4128_v63 = vcvt.s32.f32 %v3616_v62  ;;  %v3409_v39 = vunpack.c.2.s8 %v3145_v17  ;;  %v3417_v46 = vunpack.c.3.s8 %v3145_v17  ;;  %v3193_v50 = vld [vmem:[#allocation8 + $0x2f8] sm:$0xff] }
 0x568   :  { %v4400_v53 = vpack.c.bf16 %v4040_v33, %v4032_v8  ;;  %4886 = vmatpush.bf16.msra.mxu3 %v4353_v37  ;;  %v4136_v2 = vcvt.s32.f32 %v3624_v55  ;;  %v3729_v14 = vunpack.c.2.s8 %v3225_v13  ;;  %v3737_v51 = vunpack.c.3.s8 %v3225_v13  ;;  %v6286_v37 = vpop.f32.mrf.mxu3 }
 0x569   :  { %v4297_v34 = vpack.c.bf16 %v3833_v57, %v3825_v38  ;;  %v3921_v28 = vcvt.s32.f32 %v3409_v39  ;;  %v3929_v4 = vcvt.s32.f32 %v3417_v46  ;;  %v3504_v22 = vunpack.c.2.s8 %v6271_v21 }
 0x56a   :  { %4849 = vmatpush.bf16.msrb.mxu0 %v4400_v53  ;;  %v3512_v27 = vunpack.c.3.s8 %v6271_v21  ;;  %v4448_v11 = vpack.c.bf16 %v4136_v2, %v4128_v63  ;;  %v4241_v18 = vcvt.s32.f32 %v3729_v14  ;;  %v4249_v56 = vcvt.s32.f32 %v3737_v51 }
 0x56b   :  { %4872 = vmatpush.bf16.msra.mxu2 %v4297_v34  ;;  %v4594_v6 = vadd.f32 %v6232_v30, %v6260_v32  ;;  %5027 = vtanh.f32 %v6254_v24  ;;  %v4345_v42 = vpack.c.bf16 %v3929_v4, %v3921_v28  ;;  %v4016_v36 = vcvt.s32.f32 %v3504_v22  ;;  %v4647_v30 = vpop.f32.mrf.mxu0 }
 0x56c   :  { %v4024_v26 = vcvt.s32.f32 %v3512_v27  ;;  %4864 = vmatpush.bf16.msrb.mxu1 %v4448_v11  ;;  %v4505_v16 = vpack.c.bf16 %v4249_v56, %v4241_v18  ;;  %v4935_v49 = vperm.slane %v6237_v29, 1  ;;  %v3297_v40 = vunpack.c.0.s8 %v6265_v45  ;;  %v3105_v30 = vld [vmem:[#allocation8 + $0x38] sm:$0xff] }
 0x56d   :  { %v4607_v41 = vadd.f32 %v6222_v48, %v4594_v6  ;;  %4887 = vmatpush.bf16.msra.mxu3 %v4345_v42  ;;  %v3305_v54 = vunpack.c.1.s8 %v6265_v45  ;;  %v3393_v43 = vunpack.c.0.s8 %v3145_v17  ;;  %v3401_v61 = vunpack.c.1.s8 %v3145_v17 }
 0x56e   :  { %v4392_v1 = vpack.c.bf16 %v4024_v26, %v4016_v36  ;;  %v3809_v32 = vcvt.s32.f32 %v3297_v40  ;;  %v3713_v31 = vunpack.c.0.s8 %v3225_v13  ;;  %v3721_v3 = vunpack.c.1.s8 %v3225_v13  ;;  %v3137_v13 = vld [vmem:[#allocation8 + $0x138] sm:$0xff]  ;;  %v6292_v40 = vpop.f32.mrf.mxu2 }
 0x56f   :  { %v4925_v24 = vmul.f32 %v6244_v25, %v4607_v41  ;;  %4865 = vmatmul.bf16.vlgmr.msrb.gmra.mxu1 %v6094_v60  ;;  %v3817_v48 = vcvt.s32.f32 %v3305_v54  ;;  %v3905_v5 = vcvt.s32.f32 %v3393_v43  ;;  %v3913_v59 = vcvt.s32.f32 %v3401_v61 }
 0x570   :  { %4909 = vmatpush.bf16.msra.mxu1 %v4505_v16  ;;  %4850 = vmatpush.bf16.msrb.mxu0 %v4392_v1  ;;  %v3488_v35 = vunpack.c.0.s8 %v6271_v21  ;;  %v4225_v45 = vcvt.s32.f32 %v3713_v31  ;;  %v4233_v23 = vcvt.s32.f32 %v3721_v3  ;;  %v3496_v7 = vunpack.c.1.s8 %v6271_v21 }
 0x571   :  { %v4951_v19 = vadd.f32 %v4935_v49, %v4925_v24  ;;  %v5028_v17 = vpop.eup %5027  ;;  %v4289_v12 = vpack.c.bf16 %v3817_v48, %v3809_v32  ;;  %v4337_v8 = vpack.c.bf16 %v3913_v59, %v3905_v5  ;;  %v3281_v62 = vunpack.c.2.s8 %v3113_v0  ;;  %v4686_v24 = vpop.f32.mrf.mxu3  ;;  %v3185_v48 = vld [vmem:[#allocation8 + $0x2b8] sm:$0xff] }
 0x572   :  { %v4000_v33 = vcvt.s32.f32 %v3488_v35  ;;  %v4497_v38 = vpack.c.bf16 %v4233_v23, %v4225_v45  ;;  %v4008_v57 = vcvt.s32.f32 %v3496_v7  ;;  %v3289_v55 = vunpack.c.3.s8 %v3113_v0  ;;  %v3209_v45 = vld [vmem:[#allocation8 + $0x378] sm:$0xff]  ;;  %v6298_v23 = vpop.f32.mrf.mxu1 }
 0x573   :  { %5029 = vtanh.f32 %v4951_v19  ;;  %4873 = vmatpush.bf16.msra.mxu2 %v4289_v12  ;;  %4888 = vmatpush.bf16.msra.mxu3 %v4337_v8  ;;  %v3793_v53 = vcvt.s32.f32 %v3281_v62  ;;  %v3601_v63 = vunpack.c.2.s8 %v3193_v50  ;;  %v3609_v39 = vunpack.c.3.s8 %v3193_v50 }
 0x574   :  { %v6290_v21 = vadd.f32 %v6235_v10, %v6256_v15  ;;  %4910 = vmatpush.bf16.msra.mxu1 %v4497_v38  ;;  %v4384_v46 = vpack.c.bf16 %v4008_v57, %v4000_v33  ;;  %v3801_v34 = vcvt.s32.f32 %v3289_v55  ;;  %v3377_v2 = vunpack.c.2.s8 %v3137_v13 }
 0x575   :  { %v3385_v14 = vunpack.c.3.s8 %v3137_v13  ;;  %v4113_v51 = vcvt.s32.f32 %v3601_v63  ;;  %v4121_v28 = vcvt.s32.f32 %v3609_v39  ;;  %v3697_v4 = vunpack.c.2.s8 %v3217_v9 }
 0x576   :  { %v3705_v22 = vunpack.c.3.s8 %v3217_v9  ;;  %4851 = vmatpush.bf16.msrb.mxu0 %v4384_v46  ;;  %v4281_v27 = vpack.c.bf16 %v3801_v34, %v3793_v53  ;;  %v3889_v11 = vcvt.s32.f32 %v3377_v2  ;;  %v3265_v56 = vunpack.c.0.s8 %v3113_v0 }
 0x577   :  { %v3897_v18 = vcvt.s32.f32 %v3385_v14  ;;  %v4441_v6 = vpack.c.bf16 %v4121_v28, %v4113_v51  ;;  %v4209_v42 = vcvt.s32.f32 %v3697_v4  ;;  %v3273_v26 = vunpack.c.1.s8 %v3113_v0  ;;  %v4673_v28 = vpop.f32.mrf.mxu2 }
 0x578   :  { %v4217_v36 = vcvt.s32.f32 %v3705_v22  ;;  %4874 = vmatpush.bf16.msra.mxu2 %v4281_v27  ;;  %v3777_v16 = vcvt.s32.f32 %v3265_v56  ;;  %v3585_v41 = vunpack.c.0.s8 %v3193_v50  ;;  %v3593_v49 = vunpack.c.1.s8 %v3193_v50 }
 0x579   :  { %v5030_v10 = vpop.eup %5029  ;;  %v4329_v15 = vpack.c.bf16 %v3897_v18, %v3889_v11  ;;  %v3785_v43 = vcvt.s32.f32 %v3273_v26  ;;  %v3361_v61 = vunpack.c.0.s8 %v3137_v13  ;;  %4852 = vmatmul.bf16.vlgmr.msrb.gmra.mxu0 %v6135_v44  ;;  %v3369_v3 = vunpack.c.1.s8 %v3137_v13  ;;  %v3177_v18 = vld [vmem:[#allocation8 + $0x278] sm:$0xff] }
 0x57a   :  { %v4974_v1 = vrot.slane %v5030_v10, 6  ;;  %4896 = vmatpush.bf16.msra.mxu0 %v4441_v6  ;;  %v4489_v54 = vpack.c.bf16 %v4217_v36, %v4209_v42  ;;  %v4097_v32 = vcvt.s32.f32 %v3585_v41  ;;  %v4105_v31 = vcvt.s32.f32 %v3593_v49  ;;  %v4712_v41 = vpop.f32.mrf.mxu1 }
 0x57b   :  { %4889 = vmatpush.bf16.msra.mxu3 %v4329_v15  ;;  %v3681_v0 = vunpack.c.0.s8 %v3217_v9  ;;  %v4273_v59 = vpack.c.bf16 %v3785_v43, %v3777_v16  ;;  %v3873_v35 = vcvt.s32.f32 %v3361_v61  ;;  %v3689_v19 = vunpack.c.1.s8 %v3217_v9  ;;  %v6300_v7 = vpop.f32.mrf.mxu0  ;;  %v3201_v16 = vld [vmem:[#allocation8 + $0x338] sm:$0xff] }
 0x57c   :  { %v6296_v5 = vsel %vm4980_vm2, %v5028_v17, %v4974_v1  ;;  %4911 = vmatpush.bf16.msra.mxu1 %v4489_v54  ;;  %v4433_v50 = vpack.c.bf16 %v4105_v31, %v4097_v32  ;;  %v3881_v12 = vcvt.s32.f32 %v3369_v3  ;;  %v3249_v33 = vunpack.c.2.s8 %v3105_v30 }
 0x57d   :  { %v4193_v8 = vcvt.s32.f32 %v3681_v0  ;;  %4875 = vmatpush.bf16.msra.mxu2 %v4273_v59  ;;  %v4201_v62 = vcvt.s32.f32 %v3689_v19  ;;  %v3257_v13 = vunpack.c.3.s8 %v3105_v30  ;;  %v3569_v38 = vunpack.c.2.s8 %v3185_v48  ;;  %v3169_v19 = vld [vmem:[#allocation8 + $0x238] sm:$0xff] }
 0x57e   :  { %v3577_v57 = vunpack.c.3.s8 %v3185_v48  ;;  %4897 = vmatpush.bf16.msra.mxu0 %v4433_v50  ;;  %v4321_v17 = vpack.c.bf16 %v3881_v12, %v3873_v35  ;;  %v3761_v55 = vcvt.s32.f32 %v3249_v33  ;;  %v3665_v53 = vunpack.c.2.s8 %v3209_v45 }
 0x57f   :  { %v3673_v63 = vunpack.c.3.s8 %v3209_v45  ;;  %v4481_v9 = vpack.c.bf16 %v4201_v62, %v4193_v8  ;;  %v3769_v39 = vcvt.s32.f32 %v3257_v13  ;;  %v4081_v46 = vcvt.s32.f32 %v3569_v38 }
 0x580   :  { %v4089_v34 = vcvt.s32.f32 %v3577_v57  ;;  %4890 = vmatpush.bf16.msra.mxu3 %v4321_v17  ;;  %v4177_v2 = vcvt.s32.f32 %v3665_v53  ;;  %v4646_v51 = vadd.f32 %v6269_v52, %v6290_v21  ;;  %v3233_v27 = vunpack.c.0.s8 %v3105_v30 }
 0x581   :  { %v4185_v14 = vcvt.s32.f32 %v3673_v63  ;;  %4912 = vmatpush.bf16.msra.mxu1 %v4481_v9  ;;  %v4265_v4 = vpack.c.bf16 %v3769_v39, %v3761_v55  ;;  %v3241_v11 = vunpack.c.1.s8 %v3105_v30  ;;  %v3553_v6 = vunpack.c.0.s8 %v3185_v48 }
 0x582   :  { %v4425_v22 = vpack.c.bf16 %v4089_v34, %v4081_v46  ;;  %v3561_v42 = vunpack.c.1.s8 %v3185_v48  ;;  %v3745_v36 = vcvt.s32.f32 %v3233_v27  ;;  %v3649_v10 = vunpack.c.0.s8 %v3209_v45 }
 0x583   :  { %v4473_v56 = vpack.c.bf16 %v4185_v14, %v4177_v2  ;;  %4876 = vmatpush.bf16.msra.mxu2 %v4265_v4  ;;  %v3753_v26 = vcvt.s32.f32 %v3241_v11  ;;  %v3657_v15 = vunpack.c.1.s8 %v3209_v45  ;;  %v4699_v49 = vpop.f32.mrf.mxu0  ;;  %4891 = vmatmul.bf16.vlgmr.msra.gmra.mxu3 %v5989_v47  ;;  %v4659_v52 = vadd.f32 %v6262_v58, %v4646_v51 }
 0x584   :  { %4898 = vmatpush.bf16.msra.mxu0 %v4425_v22  ;;  %v4065_v21 = vcvt.s32.f32 %v3553_v6  ;;  %v4073_v1 = vcvt.s32.f32 %v3561_v42  ;;  %v3537_v54 = vunpack.c.2.s8 %v3177_v18  ;;  %v4161_v61 = vcvt.s32.f32 %v3649_v10 }
 0x585   :  { %4913 = vmatpush.bf16.msra.mxu1 %v4473_v56  ;;  %v4257_v43 = vpack.c.bf16 %v3753_v26, %v3745_v36  ;;  %v4169_v30 = vcvt.s32.f32 %v3657_v15  ;;  %v3545_v24 = vunpack.c.3.s8 %v3177_v18  ;;  %v4936_v32 = vperm.slane %v6237_v29, 2 }
 0x586   :  { %v4417_v31 = vpack.c.bf16 %v4073_v1, %v4065_v21  ;;  %v4049_v3 = vcvt.s32.f32 %v3537_v54  ;;  %v3633_v0 = vunpack.c.2.s8 %v3201_v16  ;;  %v3641_v35 = vunpack.c.3.s8 %v3201_v16 }
 0x587   :  { %4877 = vmatpush.bf16.msra.mxu2 %v4257_v43  ;;  %v4465_v48 = vpack.c.bf16 %v4169_v30, %v4161_v61  ;;  %v4057_v59 = vcvt.s32.f32 %v3545_v24  ;;  %v3521_v47 = vunpack.c.0.s8 %v3177_v18  ;;  %v4926_v58 = vmul.f32 %v6244_v25, %v4659_v52 }
 0x588   :  { %4899 = vmatpush.bf16.msra.mxu0 %v4417_v31  ;;  %v4145_v45 = vcvt.s32.f32 %v3633_v0  ;;  %v3529_v50 = vunpack.c.1.s8 %v3177_v18  ;;  %v3617_v12 = vunpack.c.0.s8 %v3201_v16  ;;  %v4153_v33 = vcvt.s32.f32 %v3641_v35 }
 0x589   :  { %4914 = vmatpush.bf16.msra.mxu1 %v4465_v48  ;;  %v4409_v8 = vpack.c.bf16 %v4057_v59, %v4049_v3  ;;  %v4033_v62 = vcvt.s32.f32 %v3521_v47  ;;  %v3625_v13 = vunpack.c.1.s8 %v3201_v16  ;;  %v4736_v38 = vpop.f32.mrf.mxu3  ;;  %v3505_v55 = vunpack.c.2.s8 %v3169_v19 }
 0x58a   :  { %4878 = vmatmul.bf16.vlgmr.msra.gmra.mxu2 %v6020_v20  ;;  %v4041_v57 = vcvt.s32.f32 %v3529_v50  ;;  %v4129_v17 = vcvt.s32.f32 %v3617_v12  ;;  %v3513_v53 = vunpack.c.3.s8 %v3169_v19  ;;  %v4457_v63 = vpack.c.bf16 %v4153_v33, %v4145_v45 }
 0x58b   :  { %v4137_v9 = vcvt.s32.f32 %v3625_v13  ;;  %v3489_v39 = vunpack.c.0.s8 %v3169_v19  ;;  %v3497_v46 = vunpack.c.1.s8 %v3169_v19  ;;  %v4017_v2 = vcvt.s32.f32 %v3505_v55 }
 0x58c   :  { %4900 = vmatpush.bf16.msra.mxu0 %v4409_v8  ;;  %v4401_v34 = vpack.c.bf16 %v4041_v57, %v4033_v62  ;;  %v4025_v14 = vcvt.s32.f32 %v3513_v53  ;;  %v4685_v51 = vadd.f32 %v6286_v37, %v6292_v40  ;;  %v4952_v20 = vadd.f32 %v4936_v32, %v4926_v58 }
 0x58d   :  { %4915 = vmatpush.bf16.msra.mxu1 %v4457_v63  ;;  %v4449_v28 = vpack.c.bf16 %v4137_v9, %v4129_v17  ;;  %v4001_v22 = vcvt.s32.f32 %v3489_v39  ;;  %v4009_v11 = vcvt.s32.f32 %v3497_v46  ;;  %v4937_v56 = vperm.slane %v6237_v29, 3 }
 0x58e   :  { %v4698_v4 = vadd.f32 %v6300_v7, %v4685_v51  ;;  %v4393_v27 = vpack.c.bf16 %v4025_v14, %v4017_v2  ;;  %5031 = vtanh.f32 %v4952_v20  ;;  %v4938_v59 = vperm.slane %v6237_v29, 4 }
 0x58f   :  { %v4385_v37 = vpack.c.bf16 %v4009_v11, %v4001_v22  ;;  %v4939_v47 = vperm.slane %v6237_v29, 5  ;;  %v4940_v22 = vperm.slane %v6237_v29, 6 }
 0x590   :  { %4901 = vmatpush.bf16.msra.mxu0 %v4401_v34  ;;  %v4711_v18 = vadd.f32 %v6298_v23, %v4698_v4 }
 0x591   :  { %4916 = vmatpush.bf16.msra.mxu1 %v4449_v28  ;;  %v4738_v6 = vpop.f32.mrf.mxu3 }
 0x592   :  { %v4927_v42 = vmul.f32 %v6244_v25, %v4711_v18  ;;  %v4723_v36 = vpop.f32.mrf.mxu2 }
 0x593   :  { %v4737_v26 = vadd.f32 %v4736_v38, %v4723_v36  ;;  %v4941_v36 = vperm.slane %v6237_v29, 7 }
 0x594   :  { %4902 = vmatpush.bf16.msra.mxu0 %v4393_v27  ;;  %4917 = vmatmul.bf16.vlgmr.msra.gmra.mxu1 %v6094_v60  ;;  %v4953_v40 = vadd.f32 %v4937_v56, %v4927_v42  ;;  %v5032_v7 = vpop.eup %5031 }
 0x595   :  { %v4975_v16 = vrot.slane %v5032_v7, 4 }
 0x596   :  { %5033 = vtanh.f32 %v4953_v40 }
 0x598   :  { %4903 = vmatpush.bf16.msra.mxu0 %v4385_v37 }
 0x59a   :  { %v4762_v10 = vpop.f32.mrf.mxu1  ;;  %v4725_v15 = vpop.f32.mrf.mxu2 }
 0x59b   :  { %4904 = vmatmul.bf16.vlgmr.msra.gmra.mxu0 %v6135_v44 }
 0x59c   :  { %v5034_v23 = vpop.eup %5033 }
 0x59d   :  { %v4976_v41 = vrot.slane %v5034_v23, 2 }
 0x59f   :  { %v4983_v49 = vsel %vm4982_vm3, %v4975_v16, %v4976_v41 }
 0x5a0   :  { %v4985_v52 = vsel %vm4984_vm4, %v6296_v5, %v4983_v49 }
 0x5a1   :  { %4991 = vst [vmem:[%s6347_s10] sm:$0xff] %v4985_v52 }
 0x5a2   :  { %v4764_v60 = vpop.f32.mrf.mxu1 }
 0x5a3   :  { %v4749_v21 = vpop.f32.mrf.mxu0 }
 0x5a4   :  { %v4750_v1 = vadd.f32 %v4749_v21, %v4737_v26 }
 0x5a6   :  { %v4763_v54 = vadd.f32 %v4762_v10, %v4750_v1 }
 0x5a8   :  { %v4928_v5 = vmul.f32 %v6244_v25, %v4763_v54 }
 0x5aa   :  { %v4954_v58 = vadd.f32 %v4938_v59, %v4928_v5 }
 0x5ab   :  { %v4751_v43 = vpop.f32.mrf.mxu0 }
 0x5b1   :  { %v4788_v44 = vpop.f32.mrf.mxu3 }
 0x5b9   :  { %v4790_v61 = vpop.f32.mrf.mxu3 }
 0x5ba   :  { %v4775_v30 = vpop.f32.mrf.mxu2 }
 0x5bb   :  { %v4789_v24 = vadd.f32 %v4788_v44, %v4775_v30 }
 0x5c2   :  { %v4814_v32 = vpop.f32.mrf.mxu1  ;;  %v4777_v31 = vpop.f32.mrf.mxu2 }
 0x5ca   :  { %v4816_v3 = vpop.f32.mrf.mxu1 }
 0x5cc   :  { %v4801_v0 = vpop.f32.mrf.mxu0 }
 0x5cd   :  { %v4802_v48 = vadd.f32 %v4801_v0, %v4789_v24 }
 0x5cf   :  { %v4815_v35 = vadd.f32 %v4814_v32, %v4802_v48 }
 0x5d1   :  { %v4929_v19 = vmul.f32 %v6244_v25, %v4815_v35 }
 0x5d3   :  { %v4955_v45 = vadd.f32 %v4939_v47, %v4929_v19 }
 0x5d4   :  { %v4803_v50 = vpop.f32.mrf.mxu0 }
 0x5d5   :  { %5035 = vtanh.f32 %v4955_v45 }
 0x5d6   :  { %5037 = vtanh.f32 %v4954_v58 }
 0x5d9   :  { %v4840_v8 = vpop.f32.mrf.mxu3 }
 0x5db   :  { %v5036_v12 = vpop.eup %5035 }
 0x5dc   :  { %v4977_v33 = vrot.slane %v5036_v12, 6  ;;  %v5038_v62 = vpop.eup %5037 }
 0x5de   :  { %v4986_v13 = vsel %vm4980_vm2, %v5038_v62, %v4977_v33 }
 0x5e1   :  { %v4842_v38 = vpop.f32.mrf.mxu3 }
 0x5e4   :  { %v4827_v57 = vpop.f32.mrf.mxu2 }
 0x5e5   :  { %v4841_v46 = vadd.f32 %v4840_v8, %v4827_v57 }
 0x5ec   :  { %v4866_v17 = vpop.f32.mrf.mxu1  ;;  %v4829_v55 = vpop.f32.mrf.mxu2 }
 0x5f4   :  { %v4868_v53 = vpop.f32.mrf.mxu1 }
 0x5f6   :  { %v4853_v63 = vpop.f32.mrf.mxu0 }
 0x5f7   :  { %v4854_v2 = vadd.f32 %v4853_v63, %v4841_v46 }
 0x5f9   :  { %v4867_v28 = vadd.f32 %v4866_v17, %v4854_v2 }
 0x5fb   :  { %v4930_v20 = vmul.f32 %v6244_v25, %v4867_v28 }
 0x5fd   :  { %v4956_v6 = vadd.f32 %v4940_v22, %v4930_v20 }
 0x5fe   :  { %v4855_v9 = vpop.f32.mrf.mxu0 }
 0x5ff   :  { %5039 = vtanh.f32 %v4956_v6 }
 0x605   :  { %v5040_v7 = vpop.eup %5039 }
 0x606   :  { %v4892_v39 = vpop.f32.mrf.mxu3  ;;  %v4978_v15 = vrot.slane %v5040_v7, 4 }
 0x60d   :  { %v4879_v34 = vpop.f32.mrf.mxu2 }
 0x60e   :  { %v4894_v14 = vpop.f32.mrf.mxu3  ;;  %v4893_v27 = vadd.f32 %v4892_v39, %v4879_v34 }
 0x611   :  { %v4918_v51 = vpop.f32.mrf.mxu1 }
 0x615   :  { %v4881_v4 = vpop.f32.mrf.mxu2 }
 0x618   :  { %v4905_v11 = vpop.f32.mrf.mxu0 }
 0x619   :  { %v4906_v18 = vadd.f32 %v4905_v11, %v4893_v27  ;;  %v4920_v56 = vpop.f32.mrf.mxu1 }
 0x61b   :  { %v4919_v42 = vadd.f32 %v4918_v51, %v4906_v18 }
 0x61d   :  { %v4931_v26 = vmul.f32 %v6244_v25, %v4919_v42 }
 0x61f   :  { %v4957_v37 = vadd.f32 %v4941_v36, %v4931_v26 }
 0x620   :  { %v4907_v40 = vpop.f32.mrf.mxu0 }
 0x621   :  { %5041 = vtanh.f32 %v4957_v37 }
 0x627   :  { %v5042_v10 = vpop.eup %5041 }
 0x628   :  { %v4979_v23 = vrot.slane %v5042_v10, 2 }
 0x62a   :  { %v4987_v16 = vsel %vm4982_vm3, %v4978_v15, %v4979_v23 }
 0x62b   :  { %v4988_v41 = vsel %vm4984_vm4, %v4986_v13, %v4987_v16 }
 0x62c   :  { %4992 = vst [vmem:[%s6347_s10 + $0x8] sm:$0xff] %v4988_v41 }
 0x62d   :  { %5003 = vsyncpa [#allocation3], 1 }
 0x62e   :  { %5004 = vsyncpa [#allocation7], 1 }
 0x62f   :  { %5005 = vsyncpa [#allocation10], 1 }
 0x630   :  { %5006 = vsyncpa [#allocation4], 1 }

</bundles_post_ra>
